<compile_context>
chip_gen: v5e
topology: v5e:2x2
jax: 0.10.0
libtpu: 0.0.40
codegen_flags: <defaults>
</compile_context>

<pallas_src>
import functools

import jax
import jax.numpy as jnp
from jax import lax
from jax.experimental import pallas as pl
from jax.experimental.pallas import tpu as pltpu


def _rwkv_timemix_kernel(
    x_ref,                                 # (rows, C) x_dtype, time-major within batch block
    xx0_ref, aa0_ref, bb0_ref, pp0_ref,    # (Bb, C) f32 initial state
    coef_ref,                              # (8, C) f32: row0=time_first, row1=w=-exp(time_decay)
    wx_ref, wp_ref,                        # (C, 3C) fused k|v|r weights (x part / prev part)
    wo_ref,                                # (C, C) output weight
    rwkv_ref,                              # out: (Bb, T_TILE, C) f32  (or (rows, C) in "flat" mode)
    e1_ref, e2_ref,                        # out: (Bb, C) f32
    kvr_s,                                 # scratch (rows, 3C) f32
    xx_c, aa_c, bb_c, pp_c,                # scratch (Bb, C) f32 carried state
    *, T_TILE, B, C, OUT_MODE,
):
    f32 = jnp.float32

    # ---- initialize carried state on the first time tile of each batch block
    @pl.when(pl.program_id(1) == 0)
    def _():
        xx_c[...] = xx0_ref[...]
        aa_c[...] = aa0_ref[...]
        bb_c[...] = bb0_ref[...]
        pp_c[...] = pp0_ref[...]

    rows = T_TILE * B
    x = x_ref[...]                                        # (rows, C)

    # token shift inside the tile: carried last-timestep rows + shifted tile rows
    if T_TILE > 1:
        xx_prev = jnp.concatenate([xx_c[...].astype(x.dtype), x[: rows - B, :]], axis=0)
    else:
        xx_prev = xx_c[...].astype(x.dtype)
    xx_c[...] = x[rows - B:, :].astype(f32)               # carry into next tile

    # fused projections (time-mix folded into Wx/Wp): columns [k | v | r]
    wdt = wx_ref.dtype
    kvr_s[...] = (
        jnp.dot(x.astype(wdt), wx_ref[...], preferred_element_type=f32)
        + jnp.dot(xx_prev.astype(wdt), wp_ref[...], preferred_element_type=f32))

    time_first = coef_ref[0:1, :]                         # (1, C)
    w = coef_ref[1:2, :]                                  # (1, C) = -exp(time_decay)

    # ---- serial WKV recurrence; state lives in loop-carried vregs -----------
    def step(t, carry):
        aa, bb, pp, _, _ = carry
        row = pl.multiple_of(t * B, B)                    # B is a multiple of 8
        kt = kvr_s[pl.ds(row, B), pl.ds(0, C)]            # (B, C)
        vt = kvr_s[pl.ds(row, B), pl.ds(C, C)]
        ww = time_first + kt
        p = jnp.maximum(pp, ww)
        e1 = jnp.exp(pp - p)
        e2 = jnp.exp(ww - p)
        # wkv overwrites the v columns in place (vt just had its last read);
        # divide -> EUP reciprocal (off the recurrence carry path).
        kvr_s[pl.ds(row, B), pl.ds(C, C)] = (
            (e1 * aa + e2 * vt) * pl.reciprocal(e1 * bb + e2, approx=True))
        # state update
        ww2 = pp + w
        p2 = jnp.maximum(ww2, kt)
        e1n = jnp.exp(ww2 - p2)
        e2n = jnp.exp(kt - p2)
        return (e1n * aa + e2n * vt, e1n * bb + e2n, p2, e1n, e2n)

    aa0 = aa_c[...]
    zero = jnp.zeros_like(aa0)
    unroll = T_TILE if T_TILE <= 32 else 4
    aa_f, bb_f, pp_f, e1_f, e2_f = lax.fori_loop(
        0, T_TILE, step, (aa0, bb_c[...], pp_c[...], zero, zero), unroll=unroll)

    # one (Bb, C) store per tile, not per timestep
    aa_c[...] = aa_f
    bb_c[...] = bb_f
    pp_c[...] = pp_f
    e1_ref[...] = e1_f      # constant block index over time -> last tile's value lands
    e2_ref[...] = e2_f

    # ---- output projection ---------------------------------------------------
    r = jax.nn.sigmoid(kvr_s[:, pl.ds(2 * C, C)])
    wkv = kvr_s[:, pl.ds(C, C)]                           # v columns now hold wkv
    out = jnp.dot((r * wkv).astype(wdt), wo_ref[...], preferred_element_type=f32)

    if OUT_MODE == "bt":
        # (T_TILE*B, C) -> (B, T_TILE, C): no post-kernel XLA transpose pass.
        out3 = out.reshape(T_TILE, B, C)                  # sublane-aligned split (B % 8 == 0)
        rwkv_ref[...] = pltpu.einshape("tbc->btc", out3)
    else:                                                 # "flat": time-major, untangled in XLA
        rwkv_ref[...] = out


def _divisors(n):
    return [d for d in range(1, n + 1) if n % d == 0]


def _pick_t_tile(T, Bb, C, x_bytes, vmem_budget, target_rows=1024):
    """Largest time tile whose streamed/scratch footprint fits the VMEM budget."""
    fixed = 7 * C * C * 4 + 14 * Bb * C * 4               # weights (f32 worst) + states/carries
    per_row = C * (2 * x_bytes + 2 * 4 + 3 * 4 + 6 * 4)   # x dbuf, out dbuf, kvr scratch, temps
    max_rows = max(8, (vmem_budget - fixed) // max(per_row, 1))
    target = min(target_rows, max_rows)
    valid = [tt for tt in _divisors(T) if tt % 8 == 0 or tt == T]
    fit = [tt for tt in valid if tt * Bb <= target]
    return max(fit) if fit else min(valid)


def rwkv_encoder_forward(tokens, params, xx_init=None, aa_init=None,
                         bb_init=None, pp_init=None, *, t_tile=None,
                         batch_blocks=None, weight_dtype=jnp.bfloat16,
                         x_dtype=None):
    """tokens: int32 [B, T].  Returns (rwkv [B,T,C] f32, e1 [B,C], e2 [B,C])."""
    f32 = jnp.float32
    if x_dtype is None:
        x_dtype = weight_dtype
    B, T = tokens.shape
    C = params["embedding"].shape[1]

    # ---- pad batch to a multiple of 8 (whole-sublane rows in the serial loop)
    B_pad = -(-B // 8) * 8
    if B_pad != B:
        tokens = jnp.concatenate(
            [tokens, jnp.zeros((B_pad - B, T), tokens.dtype)], axis=0)

    if batch_blocks is None:
        batch_blocks = 2 if B_pad % 16 == 0 else 1        # use v7x's 2nd TensorCore
    assert B_pad % batch_blocks == 0
    Bb = B_pad // batch_blocks
    assert Bb % 8 == 0

    def _state(s, fill):
        if s is None:
            return jnp.full((B_pad, C), fill, f32)
        s = s.astype(f32)
        if s.shape[0] != B_pad:
            s = jnp.concatenate(
                [s, jnp.full((B_pad - s.shape[0], C), fill, f32)], axis=0)
        return s

    xx0 = _state(xx_init, 0.0)
    aa0 = _state(aa_init, 0.0)
    bb0 = _state(bb_init, 0.0)
    pp0 = _state(pp_init, -1e38)

    # ---- embedding gather straight into (batch-block, time-major) 2D layout --
    tok_tm = tokens.reshape(batch_blocks, Bb, T).transpose(0, 2, 1).reshape(-1)
    x_tm = jnp.take(params["embedding"].astype(x_dtype), tok_tm, axis=0)  # (B_pad*T, C)

    # ---- fold time-mix coefficients into fused (C, 3C) projection weights ----
    tmk = params["time_mix_k"].reshape(C, 1)
    tmv = params["time_mix_v"].reshape(C, 1)
    tmr = params["time_mix_r"].reshape(C, 1)
    wk_t, wv_t, wr_t = params["wk_t"], params["wv_t"], params["wr_t"]
    wx = jnp.concatenate([tmk * wk_t, tmv * wv_t, tmr * wr_t],
                         axis=1).astype(weight_dtype)
    wp = jnp.concatenate([(1.0 - tmk) * wk_t, (1.0 - tmv) * wv_t,
                          (1.0 - tmr) * wr_t], axis=1).astype(weight_dtype)
    wo = params["wo_t"].astype(weight_dtype)
    coef = jnp.zeros((8, C), f32)
    coef = coef.at[0].set(params["time_first"].reshape(C))
    coef = coef.at[1].set(params["time_decay_w"].reshape(C))

    # ---- VMEM-budgeted time tiling --------------------------------------------
    xb = jnp.dtype(x_dtype).itemsize
    wb = jnp.dtype(weight_dtype).itemsize
    try:
        cap = int(getattr(pltpu.get_tpu_info(), "vmem_capacity_bytes", 64 << 20))
    except Exception:
        cap = 64 << 20                                    # v7x-safe default
    if t_tile is None:
        t_tile = _pick_t_tile(T, Bb, C, xb, int(cap * 0.5))
    assert T % t_tile == 0 and (t_tile % 8 == 0 or t_tile == T), "bad t_tile"
    num_tiles = T // t_tile
    rows = t_tile * Bb

    kern = functools.partial(_rwkv_timemix_kernel, T_TILE=t_tile, B=Bb, C=C)

    def _run(out_mode, single_buffer):
        wbuf = 1 if single_buffer else 2
        est = (2 * rows * C * xb                      # x tile (double-buffered)
               + 2 * rows * C * 4                     # rwkv tile (double-buffered)
               + wbuf * (7 * C * C * wb + 8 * C * 4)  # wx/wp/wo + coefs
               + 2 * 6 * Bb * C * 4                   # init states + e1/e2 outputs
               + rows * 3 * C * 4                     # kvr scratch
               + 4 * Bb * C * 4                       # carried state scratch
               + 6 * rows * C * 4)                    # in-kernel value temporaries
        vmem_limit = int(min(max(est * 1.25 + (2 << 20), 32 << 20), cap * 0.85))

        def _const(shape):
            idx = lambda bb, i: (0,) * len(shape)
            if single_buffer:
                return pl.BlockSpec(shape, idx, pipeline_mode=pl.Buffered(1))
            return pl.BlockSpec(shape, idx)

        x_spec = pl.BlockSpec((rows, C), lambda bb, i: (bb * num_tiles + i, 0))
        st_spec = pl.BlockSpec((Bb, C), lambda bb, i: (bb, 0))
        e_spec = pl.BlockSpec((Bb, C), lambda bb, i: (bb, 0))
        if out_mode == "bt":
            rwkv_shape = (B_pad, T, C)
            rwkv_spec = pl.BlockSpec((Bb, t_tile, C), lambda bb, i: (bb, i, 0))
        else:                                         # "flat" time-major fallback
            rwkv_shape = (B_pad * T, C)
            rwkv_spec = pl.BlockSpec((rows, C), lambda bb, i: (bb * num_tiles + i, 0))

        grid_spec = pltpu.PrefetchScalarGridSpec(
            num_scalar_prefetch=0,
            grid=(batch_blocks, num_tiles),
            in_specs=[x_spec, st_spec, st_spec, st_spec, st_spec,
                      _const((8, C)), _const((C, 3 * C)), _const((C, 3 * C)),
                      _const((C, C))],
            out_specs=(rwkv_spec, e_spec, e_spec),
            scratch_shapes=[pltpu.VMEM((rows, 3 * C), f32)]
                          + [pltpu.VMEM((Bb, C), f32) for _ in range(4)],
        )
        return pl.pallas_call(
            functools.partial(kern, OUT_MODE=out_mode),
            out_shape=(jax.ShapeDtypeStruct(rwkv_shape, f32),
                       jax.ShapeDtypeStruct((B_pad, C), f32),
                       jax.ShapeDtypeStruct((B_pad, C), f32)),
            grid_spec=grid_spec,
            compiler_params=pltpu.CompilerParams(
                dimension_semantics=("parallel", "arbitrary"),  # batch || , time serial
                vmem_limit_bytes=vmem_limit),
        )(x_tm, xx0, aa0, bb0, pp0, coef, wx, wp, wo)

    # Preferred config first; fall back if the installed Pallas/Mosaic rejects
    # Buffered(1) or the in-kernel batch-major relayout.
    last_err = None
    for out_mode, single_buffer in (("bt", True), ("bt", False), ("flat", False)):
        try:
            rwkv_raw, e1, e2 = jax.block_until_ready(_run(out_mode, single_buffer))
            break
        except Exception as e:                        # pragma: no cover - fallback path
            last_err = e
    else:
        raise last_err

    if out_mode == "bt":
        rwkv = rwkv_raw[:B]
    else:
        rwkv = (rwkv_raw.reshape(batch_blocks, T, Bb, C)
                .transpose(0, 2, 1, 3).reshape(B_pad, T, C)[:B])
    return rwkv, e1[:B], e2[:B]


def rwkv_encoder_reference(tokens, params, xx_init=None, aa_init=None,
                           bb_init=None, pp_init=None):
    """Pure-JAX reference (f32) for correctness checking."""
    B, T = tokens.shape
    C = params["embedding"].shape[1]
    f32 = jnp.float32
    if xx_init is None:
        xx_init = jnp.zeros((B, C), f32)
    if aa_init is None:
        aa_init = jnp.zeros((B, C), f32)
    if bb_init is None:
        bb_init = jnp.zeros((B, C), f32)
    if pp_init is None:
        pp_init = jnp.full((B, C), -1e38, f32)

    x = jnp.take(params["embedding"], tokens, axis=0).astype(f32)    # (B,T,C)
    tmk, tmv, tmr = params["time_mix_k"], params["time_mix_v"], params["time_mix_r"]
    xx_prev = jnp.concatenate([xx_init[:, None, :], x[:, :-1, :]], axis=1)
    xk = x * tmk + xx_prev * (1.0 - tmk)
    xv = x * tmv + xx_prev * (1.0 - tmv)
    xr = x * tmr + xx_prev * (1.0 - tmr)
    k = xk @ params["wk_t"]
    v = xv @ params["wv_t"]
    r = jax.nn.sigmoid(xr @ params["wr_t"])
    time_first = params["time_first"][0]
    w = params["time_decay_w"][0]

    def step(carry, kv):
        aa, bb, pp = carry
        kt, vt = kv
        ww = time_first + kt
        p = jnp.maximum(pp, ww)
        e1 = jnp.exp(pp - p)
        e2 = jnp.exp(ww - p)
        wkv = (e1 * aa + e2 * vt) / (e1 * bb + e2)
        ww2 = pp + w
        p2 = jnp.maximum(ww2, kt)
        e1n = jnp.exp(ww2 - p2)
        e2n = jnp.exp(kt - p2)
        return (e1n * aa + e2n * vt, e1n * bb + e2n, p2), (wkv, e1n, e2n)

    k_t = jnp.transpose(k, (1, 0, 2))
    v_t = jnp.transpose(v, (1, 0, 2))
    _, (wkv_t, e1s, e2s) = lax.scan(step, (aa_init, bb_init, pp_init), (k_t, v_t))
    wkv = jnp.transpose(wkv_t, (1, 0, 2))
    rwkv = (r * wkv) @ params["wo_t"]
    return rwkv, e1s[-1], e2s[-1]


def init_params(key, vocab_size, hidden_size):
    C = hidden_size
    k_emb, k_wk, k_wv, k_wr, k_wo = jax.random.split(key, 5)
    scale = 1.0 / jnp.sqrt(jnp.float32(C))
    ratio = jnp.arange(C, dtype=jnp.float32) / C                   # [0, 1)
    decay = -5.0 + 8.0 * ratio                                     # raw time_decay
    wk = jax.random.normal(k_wk, (C, C), jnp.float32) * scale      # torch Linear weight
    wv = jax.random.normal(k_wv, (C, C), jnp.float32) * scale
    wr = jax.random.normal(k_wr, (C, C), jnp.float32) * scale
    wo = jax.random.normal(k_wo, (C, C), jnp.float32) * scale
    return {
        "embedding": jax.random.normal(k_emb, (vocab_size, C), jnp.float32) * 0.02,
        "time_mix_k": ratio.reshape(1, C),
        "time_mix_v": (0.25 + 0.5 * ratio).reshape(1, C),
        "time_mix_r": (0.5 * ratio).reshape(1, C),
        "time_first": (0.5 * (ratio - 0.5)).reshape(1, C),
        "time_decay_w": (-jnp.exp(decay)).reshape(1, C),           # w = -exp(time_decay)
        "wk_t": wk.T, "wv_t": wv.T, "wr_t": wr.T, "wo_t": wo.T,    # y = x @ W.T
    }


if __name__ == "__main__":
    vocab_size, hidden = 50, 128                  # hidden_size=128 as in the module
    key = jax.random.PRNGKey(0)
    pkey, tkey1, tkey2 = jax.random.split(key, 3)
    params = init_params(pkey, vocab_size, hidden)

    # Run 1: f32 weights/activations; B=16 -> 2 batch blocks (parallel grid axis),
    # T=32 with t_tile=8 -> 4 time tiles (exercises the cross-tile state carry).
    B1, T1 = 16, 32
    tokens1 = jax.random.randint(tkey1, (B1, T1), 0, vocab_size, dtype=jnp.int32)
    rwkv1, e11, e21 = jax.block_until_ready(
        rwkv_encoder_forward(tokens1, params, t_tile=8, weight_dtype=jnp.float32))
    r_rwkv1, r_e11, r_e21 = rwkv_encoder_reference(tokens1, params)
    assert rwkv1.shape == (B1, T1, hidden)
    assert e11.shape == (B1, hidden) and e21.shape == (B1, hidden)
    assert bool(jnp.all(jnp.isfinite(rwkv1)))
    assert float(jnp.max(jnp.abs(rwkv1 - r_rwkv1))) < 2e-3
    assert float(jnp.max(jnp.abs(e11 - r_e11))) < 2e-3
    assert float(jnp.max(jnp.abs(e21 - r_e21))) < 2e-3

    # Run 2: bf16 weights + bf16 streamed x; ragged batch (B=6 padded to 8),
    # single batch block.
    B2, T2 = 6, 32
    tokens2 = jax.random.randint(tkey2, (B2, T2), 0, vocab_size, dtype=jnp.int32)
    rwkv2, e12, e22 = jax.block_until_ready(
        rwkv_encoder_forward(tokens2, params, t_tile=8, weight_dtype=jnp.bfloat16))
    r_rwkv2, r_e12, r_e22 = rwkv_encoder_reference(tokens2, params)
    assert rwkv2.shape == (B2, T2, hidden)
    assert bool(jnp.all(jnp.isfinite(rwkv2)))
    assert float(jnp.max(jnp.abs(rwkv2 - r_rwkv2))) < 3e-2
    assert float(jnp.max(jnp.abs(e12 - r_e12))) < 3e-2
    assert float(jnp.max(jnp.abs(e22 - r_e22))) < 3e-2

    print("KERNEL_OK")
</pallas_src>

<mosaic_0001>
module attributes {stable_mosaic.version = 11 : i64} {
  func.func @_rwkv_timemix_kernel(%arg0: i32, %arg1: i32, %arg2: memref<64x128xf32, #tpu.memory_space<vmem>>, %arg3: memref<8x128xf32, #tpu.memory_space<vmem>>, %arg4: memref<8x128xf32, #tpu.memory_space<vmem>>, %arg5: memref<8x128xf32, #tpu.memory_space<vmem>>, %arg6: memref<8x128xf32, #tpu.memory_space<vmem>>, %arg7: memref<8x128xf32, #tpu.memory_space<vmem>>, %arg8: memref<128x384xf32, #tpu.memory_space<vmem>>, %arg9: memref<128x384xf32, #tpu.memory_space<vmem>>, %arg10: memref<128x128xf32, #tpu.memory_space<vmem>>, %arg11: memref<8x8x128xf32, #tpu.memory_space<vmem>>, %arg12: memref<8x128xf32, #tpu.memory_space<vmem>>, %arg13: memref<8x128xf32, #tpu.memory_space<vmem>>, %arg14: memref<64x384xf32, #tpu.memory_space<vmem>>, %arg15: memref<8x128xf32, #tpu.memory_space<vmem>>, %arg16: memref<8x128xf32, #tpu.memory_space<vmem>>, %arg17: memref<8x128xf32, #tpu.memory_space<vmem>>, %arg18: memref<8x128xf32, #tpu.memory_space<vmem>>) attributes {dimension_semantics = [#tpu.dimension_semantics<parallel>, #tpu.dimension_semantics<arbitrary>], iteration_bounds = array<i64: 2, 4>, scalar_prefetch = 0 : i64, scratch_operands = 5 : i64, tpu.core_type = #tpu.core_type<tc>, window_params = [{transform_indices = @transform_0, window_bounds = array<i64: 64, 128>}, {transform_indices = @transform_1, window_bounds = array<i64: 8, 128>}, {transform_indices = @transform_2, window_bounds = array<i64: 8, 128>}, {transform_indices = @transform_3, window_bounds = array<i64: 8, 128>}, {transform_indices = @transform_4, window_bounds = array<i64: 8, 128>}, {pipeline_mode = #tpu.pipeline_mode<synchronous>, transform_indices = @transform_5, window_bounds = array<i64: 8, 128>}, {pipeline_mode = #tpu.pipeline_mode<synchronous>, transform_indices = @transform_6, window_bounds = array<i64: 128, 384>}, {pipeline_mode = #tpu.pipeline_mode<synchronous>, transform_indices = @transform_7, window_bounds = array<i64: 128, 384>}, {pipeline_mode = #tpu.pipeline_mode<synchronous>, transform_indices = @transform_8, window_bounds = array<i64: 128, 128>}, {transform_indices = @transform_9, window_bounds = array<i64: 8, 8, 128>}, {transform_indices = @transform_10, window_bounds = array<i64: 8, 128>}, {transform_indices = @transform_11, window_bounds = array<i64: 8, 128>}]} {
    %c0_i32 = arith.constant 0 : i32
    %0 = arith.cmpi eq, %arg1, %c0_i32 : i32
    %1 = arith.extui %0 : i1 to i32
    %c0_i32_0 = arith.constant 0 : i32
    %2 = arith.cmpi ne, %1, %c0_i32_0 : i32
    scf.if %2 {
      %c0_75 = arith.constant 0 : index
      %c0_76 = arith.constant 0 : index
      %311 = vector.load %arg3[%c0_75, %c0_76] : memref<8x128xf32, #tpu.memory_space<vmem>>, vector<8x128xf32>
      %c0_77 = arith.constant 0 : index
      %c0_78 = arith.constant 0 : index
      %312 = vector.load %arg15[%c0_77, %c0_78] : memref<8x128xf32, #tpu.memory_space<vmem>>, vector<8x128xf32>
      tpu.vector_store %arg15[%c0_77, %c0_78], %311 {strides = array<i32>} : memref<8x128xf32, #tpu.memory_space<vmem>>, vector<8x128xf32>,
      %c0_79 = arith.constant 0 : index
      %c0_80 = arith.constant 0 : index
      %313 = vector.load %arg4[%c0_79, %c0_80] : memref<8x128xf32, #tpu.memory_space<vmem>>, vector<8x128xf32>
      %c0_81 = arith.constant 0 : index
      %c0_82 = arith.constant 0 : index
      %314 = vector.load %arg16[%c0_81, %c0_82] : memref<8x128xf32, #tpu.memory_space<vmem>>, vector<8x128xf32>
      tpu.vector_store %arg16[%c0_81, %c0_82], %313 {strides = array<i32>} : memref<8x128xf32, #tpu.memory_space<vmem>>, vector<8x128xf32>,
      %c0_83 = arith.constant 0 : index
      %c0_84 = arith.constant 0 : index
      %315 = vector.load %arg5[%c0_83, %c0_84] : memref<8x128xf32, #tpu.memory_space<vmem>>, vector<8x128xf32>
      %c0_85 = arith.constant 0 : index
      %c0_86 = arith.constant 0 : index
      %316 = vector.load %arg17[%c0_85, %c0_86] : memref<8x128xf32, #tpu.memory_space<vmem>>, vector<8x128xf32>
      tpu.vector_store %arg17[%c0_85, %c0_86], %315 {strides = array<i32>} : memref<8x128xf32, #tpu.memory_space<vmem>>, vector<8x128xf32>,
      %c0_87 = arith.constant 0 : index
      %c0_88 = arith.constant 0 : index
      %317 = vector.load %arg6[%c0_87, %c0_88] : memref<8x128xf32, #tpu.memory_space<vmem>>, vector<8x128xf32>
      %c0_89 = arith.constant 0 : index
      %c0_90 = arith.constant 0 : index
      %318 = vector.load %arg18[%c0_89, %c0_90] : memref<8x128xf32, #tpu.memory_space<vmem>>, vector<8x128xf32>
      tpu.vector_store %arg18[%c0_89, %c0_90], %317 {strides = array<i32>} : memref<8x128xf32, #tpu.memory_space<vmem>>, vector<8x128xf32>,
    } else {
    }
    %c0 = arith.constant 0 : index
    %c0_1 = arith.constant 0 : index
    %3 = vector.load %arg2[%c0, %c0_1] : memref<64x128xf32, #tpu.memory_space<vmem>>, vector<64x128xf32>
    %c0_2 = arith.constant 0 : index
    %c0_3 = arith.constant 0 : index
    %4 = vector.load %arg15[%c0_2, %c0_3] : memref<8x128xf32, #tpu.memory_space<vmem>>, vector<8x128xf32>
    %5 = vector.extract_strided_slice %3 {offsets = [0, 0], sizes = [56, 128], strides = [1, 1]} : vector<64x128xf32> to vector<56x128xf32>
    %6 = tpu.concatenate %4, %5 in 0 : vector<8x128xf32>, vector<56x128xf32> -> vector<64x128xf32>
    %7 = vector.extract_strided_slice %3 {offsets = [56, 0], sizes = [8, 128], strides = [1, 1]} : vector<64x128xf32> to vector<8x128xf32>
    %c0_4 = arith.constant 0 : index
    %c0_5 = arith.constant 0 : index
    %8 = vector.load %arg15[%c0_4, %c0_5] : memref<8x128xf32, #tpu.memory_space<vmem>>, vector<8x128xf32>
    tpu.vector_store %arg15[%c0_4, %c0_5], %7 {strides = array<i32>} : memref<8x128xf32, #tpu.memory_space<vmem>>, vector<8x128xf32>,
    %c0_6 = arith.constant 0 : index
    %c0_7 = arith.constant 0 : index
    %9 = vector.load %arg8[%c0_6, %c0_7] : memref<128x384xf32, #tpu.memory_space<vmem>>, vector<128x384xf32>
    %cst = arith.constant dense<0.000000e+00> : vector<64x384xf32>
    %10 = tpu.matmul %3, %9, %cst {dimension_numbers = #tpu.dot_dimension_numbers<[1], [0], [0], [1], [0, 0, 1, 1], [], []>} : vector<64x128xf32>, vector<128x384xf32>, vector<64x384xf32> -> vector<64x384xf32>
    %c0_8 = arith.constant 0 : index
    %c0_9 = arith.constant 0 : index
    %11 = vector.load %arg9[%c0_8, %c0_9] : memref<128x384xf32, #tpu.memory_space<vmem>>, vector<128x384xf32>
    %cst_10 = arith.constant dense<0.000000e+00> : vector<64x384xf32>
    %12 = tpu.matmul %6, %11, %cst_10 {dimension_numbers = #tpu.dot_dimension_numbers<[1], [0], [0], [1], [0, 0, 1, 1], [], []>} : vector<64x128xf32>, vector<128x384xf32>, vector<64x384xf32> -> vector<64x384xf32>
    %13 = arith.addf %10, %12 : vector<64x384xf32>
    %c0_11 = arith.constant 0 : index
    %c0_12 = arith.constant 0 : index
    %14 = vector.load %arg14[%c0_11, %c0_12] : memref<64x384xf32, #tpu.memory_space<vmem>>, vector<64x384xf32>
    tpu.vector_store %arg14[%c0_11, %c0_12], %13 {strides = array<i32>} : memref<64x384xf32, #tpu.memory_space<vmem>>, vector<64x384xf32>,
    %c0_13 = arith.constant 0 : index
    %c0_14 = arith.constant 0 : index
    %15 = vector.load %arg7[%c0_13, %c0_14] : memref<8x128xf32, #tpu.memory_space<vmem>>, vector<1x128xf32>
    %c1 = arith.constant 1 : index
    %c0_15 = arith.constant 0 : index
    %16 = vector.load %arg7[%c1, %c0_15] : memref<8x128xf32, #tpu.memory_space<vmem>>, vector<1x128xf32>
    %c0_16 = arith.constant 0 : index
    %c0_17 = arith.constant 0 : index
    %17 = vector.load %arg16[%c0_16, %c0_17] : memref<8x128xf32, #tpu.memory_space<vmem>>, vector<8x128xf32>
    %cst_18 = arith.constant 0.000000e+00 : f32
    %18 = vector.broadcast %cst_18 : f32 to vector<8x128xf32>
    %c0_19 = arith.constant 0 : index
    %c0_20 = arith.constant 0 : index
    %19 = vector.load %arg17[%c0_19, %c0_20] : memref<8x128xf32, #tpu.memory_space<vmem>>, vector<8x128xf32>
    %c0_21 = arith.constant 0 : index
    %c0_22 = arith.constant 0 : index
    %20 = vector.load %arg18[%c0_21, %c0_22] : memref<8x128xf32, #tpu.memory_space<vmem>>, vector<8x128xf32>
    %c0_i32_23 = arith.constant 0 : i32
    %c8_i32 = arith.constant 8 : i32
    %21 = arith.muli %c0_i32_23, %c8_i32 : i32
    %22 = tpu.assume_multiple %21, 8 : i32
    %23 = arith.index_cast %22 : i32 to index
    %c0_24 = arith.constant 0 : index
    %24 = vector.load %arg14[%23, %c0_24] : memref<64x384xf32, #tpu.memory_space<vmem>>, vector<8x128xf32>
    %25 = arith.index_cast %22 : i32 to index
    %c128 = arith.constant 128 : index
    %26 = vector.load %arg14[%25, %c128] : memref<64x384xf32, #tpu.memory_space<vmem>>, vector<8x128xf32>
    %27 = vector.broadcast %15 : vector<1x128xf32> to vector<8x128xf32>
    %28 = arith.addf %27, %24 : vector<8x128xf32>
    %29 = arith.maximumf %20, %28 : vector<8x128xf32>
    %30 = arith.subf %20, %29 : vector<8x128xf32>
    %31 = math.exp %30 : vector<8x128xf32>
    %32 = arith.subf %28, %29 : vector<8x128xf32>
    %33 = math.exp %32 : vector<8x128xf32>
    %34 = arith.mulf %31, %17 : vector<8x128xf32>
    %35 = arith.mulf %33, %26 : vector<8x128xf32>
    %36 = arith.addf %34, %35 : vector<8x128xf32>
    %37 = arith.mulf %31, %19 : vector<8x128xf32>
    %38 = arith.addf %37, %33 : vector<8x128xf32>
    %39 = tpu.reciprocal %38 {approx = true} : vector<8x128xf32> -> vector<8x128xf32>
    %40 = arith.mulf %36, %39 : vector<8x128xf32>
    %41 = arith.index_cast %22 : i32 to index
    %c128_25 = arith.constant 128 : index
    %42 = vector.load %arg14[%41, %c128_25] : memref<64x384xf32, #tpu.memory_space<vmem>>, vector<8x128xf32>
    tpu.vector_store %arg14[%41, %c128_25], %40 {strides = array<i32>} : memref<64x384xf32, #tpu.memory_space<vmem>>, vector<8x128xf32>,
    %43 = vector.broadcast %16 : vector<1x128xf32> to vector<8x128xf32>
    %44 = arith.addf %20, %43 : vector<8x128xf32>
    %45 = arith.maximumf %44, %24 : vector<8x128xf32>
    %46 = arith.subf %44, %45 : vector<8x128xf32>
    %47 = math.exp %46 : vector<8x128xf32>
    %48 = arith.subf %24, %45 : vector<8x128xf32>
    %49 = math.exp %48 : vector<8x128xf32>
    %50 = arith.mulf %47, %17 : vector<8x128xf32>
    %51 = arith.mulf %49, %26 : vector<8x128xf32>
    %52 = arith.addf %50, %51 : vector<8x128xf32>
    %53 = arith.mulf %47, %19 : vector<8x128xf32>
    %54 = arith.addf %53, %49 : vector<8x128xf32>
    %c1_i32 = arith.constant 1 : i32
    %c8_i32_26 = arith.constant 8 : i32
    %55 = arith.muli %c1_i32, %c8_i32_26 : i32
    %56 = tpu.assume_multiple %55, 8 : i32
    %57 = arith.index_cast %56 : i32 to index
    %c0_27 = arith.constant 0 : index
    %58 = vector.load %arg14[%57, %c0_27] : memref<64x384xf32, #tpu.memory_space<vmem>>, vector<8x128xf32>
    %59 = arith.index_cast %56 : i32 to index
    %c128_28 = arith.constant 128 : index
    %60 = vector.load %arg14[%59, %c128_28] : memref<64x384xf32, #tpu.memory_space<vmem>>, vector<8x128xf32>
    %61 = vector.broadcast %15 : vector<1x128xf32> to vector<8x128xf32>
    %62 = arith.addf %61, %58 : vector<8x128xf32>
    %63 = arith.maximumf %45, %62 : vector<8x128xf32>
    %64 = arith.subf %45, %63 : vector<8x128xf32>
    %65 = math.exp %64 : vector<8x128xf32>
    %66 = arith.subf %62, %63 : vector<8x128xf32>
    %67 = math.exp %66 : vector<8x128xf32>
    %68 = arith.mulf %65, %52 : vector<8x128xf32>
    %69 = arith.mulf %67, %60 : vector<8x128xf32>
    %70 = arith.addf %68, %69 : vector<8x128xf32>
    %71 = arith.mulf %65, %54 : vector<8x128xf32>
    %72 = arith.addf %71, %67 : vector<8x128xf32>
    %73 = tpu.reciprocal %72 {approx = true} : vector<8x128xf32> -> vector<8x128xf32>
    %74 = arith.mulf %70, %73 : vector<8x128xf32>
    %75 = arith.index_cast %56 : i32 to index
    %c128_29 = arith.constant 128 : index
    %76 = vector.load %arg14[%75, %c128_29] : memref<64x384xf32, #tpu.memory_space<vmem>>, vector<8x128xf32>
    tpu.vector_store %arg14[%75, %c128_29], %74 {strides = array<i32>} : memref<64x384xf32, #tpu.memory_space<vmem>>, vector<8x128xf32>,
    %77 = vector.broadcast %16 : vector<1x128xf32> to vector<8x128xf32>
    %78 = arith.addf %45, %77 : vector<8x128xf32>
    %79 = arith.maximumf %78, %58 : vector<8x128xf32>
    %80 = arith.subf %78, %79 : vector<8x128xf32>
    %81 = math.exp %80 : vector<8x128xf32>
    %82 = arith.subf %58, %79 : vector<8x128xf32>
    %83 = math.exp %82 : vector<8x128xf32>
    %84 = arith.mulf %81, %52 : vector<8x128xf32>
    %85 = arith.mulf %83, %60 : vector<8x128xf32>
    %86 = arith.addf %84, %85 : vector<8x128xf32>
    %87 = arith.mulf %81, %54 : vector<8x128xf32>
    %88 = arith.addf %87, %83 : vector<8x128xf32>
    %c2_i32 = arith.constant 2 : i32
    %c8_i32_30 = arith.constant 8 : i32
    %89 = arith.muli %c2_i32, %c8_i32_30 : i32
    %90 = tpu.assume_multiple %89, 8 : i32
    %91 = arith.index_cast %90 : i32 to index
    %c0_31 = arith.constant 0 : index
    %92 = vector.load %arg14[%91, %c0_31] : memref<64x384xf32, #tpu.memory_space<vmem>>, vector<8x128xf32>
    %93 = arith.index_cast %90 : i32 to index
    %c128_32 = arith.constant 128 : index
    %94 = vector.load %arg14[%93, %c128_32] : memref<64x384xf32, #tpu.memory_space<vmem>>, vector<8x128xf32>
    %95 = vector.broadcast %15 : vector<1x128xf32> to vector<8x128xf32>
    %96 = arith.addf %95, %92 : vector<8x128xf32>
    %97 = arith.maximumf %79, %96 : vector<8x128xf32>
    %98 = arith.subf %79, %97 : vector<8x128xf32>
    %99 = math.exp %98 : vector<8x128xf32>
    %100 = arith.subf %96, %97 : vector<8x128xf32>
    %101 = math.exp %100 : vector<8x128xf32>
    %102 = arith.mulf %99, %86 : vector<8x128xf32>
    %103 = arith.mulf %101, %94 : vector<8x128xf32>
    %104 = arith.addf %102, %103 : vector<8x128xf32>
    %105 = arith.mulf %99, %88 : vector<8x128xf32>
    %106 = arith.addf %105, %101 : vector<8x128xf32>
    %107 = tpu.reciprocal %106 {approx = true} : vector<8x128xf32> -> vector<8x128xf32>
    %108 = arith.mulf %104, %107 : vector<8x128xf32>
    %109 = arith.index_cast %90 : i32 to index
    %c128_33 = arith.constant 128 : index
    %110 = vector.load %arg14[%109, %c128_33] : memref<64x384xf32, #tpu.memory_space<vmem>>, vector<8x128xf32>
    tpu.vector_store %arg14[%109, %c128_33], %108 {strides = array<i32>} : memref<64x384xf32, #tpu.memory_space<vmem>>, vector<8x128xf32>,
    %111 = vector.broadcast %16 : vector<1x128xf32> to vector<8x128xf32>
    %112 = arith.addf %79, %111 : vector<8x128xf32>
    %113 = arith.maximumf %112, %92 : vector<8x128xf32>
    %114 = arith.subf %112, %113 : vector<8x128xf32>
    %115 = math.exp %114 : vector<8x128xf32>
    %116 = arith.subf %92, %113 : vector<8x128xf32>
    %117 = math.exp %116 : vector<8x128xf32>
    %118 = arith.mulf %115, %86 : vector<8x128xf32>
    %119 = arith.mulf %117, %94 : vector<8x128xf32>
    %120 = arith.addf %118, %119 : vector<8x128xf32>
    %121 = arith.mulf %115, %88 : vector<8x128xf32>
    %122 = arith.addf %121, %117 : vector<8x128xf32>
    %c3_i32 = arith.constant 3 : i32
    %c8_i32_34 = arith.constant 8 : i32
    %123 = arith.muli %c3_i32, %c8_i32_34 : i32
    %124 = tpu.assume_multiple %123, 8 : i32
    %125 = arith.index_cast %124 : i32 to index
    %c0_35 = arith.constant 0 : index
    %126 = vector.load %arg14[%125, %c0_35] : memref<64x384xf32, #tpu.memory_space<vmem>>, vector<8x128xf32>
    %127 = arith.index_cast %124 : i32 to index
    %c128_36 = arith.constant 128 : index
    %128 = vector.load %arg14[%127, %c128_36] : memref<64x384xf32, #tpu.memory_space<vmem>>, vector<8x128xf32>
    %129 = vector.broadcast %15 : vector<1x128xf32> to vector<8x128xf32>
    %130 = arith.addf %129, %126 : vector<8x128xf32>
    %131 = arith.maximumf %113, %130 : vector<8x128xf32>
    %132 = arith.subf %113, %131 : vector<8x128xf32>
    %133 = math.exp %132 : vector<8x128xf32>
    %134 = arith.subf %130, %131 : vector<8x128xf32>
    %135 = math.exp %134 : vector<8x128xf32>
    %136 = arith.mulf %133, %120 : vector<8x128xf32>
    %137 = arith.mulf %135, %128 : vector<8x128xf32>
    %138 = arith.addf %136, %137 : vector<8x128xf32>
    %139 = arith.mulf %133, %122 : vector<8x128xf32>
    %140 = arith.addf %139, %135 : vector<8x128xf32>
    %141 = tpu.reciprocal %140 {approx = true} : vector<8x128xf32> -> vector<8x128xf32>
    %142 = arith.mulf %138, %141 : vector<8x128xf32>
    %143 = arith.index_cast %124 : i32 to index
    %c128_37 = arith.constant 128 : index
    %144 = vector.load %arg14[%143, %c128_37] : memref<64x384xf32, #tpu.memory_space<vmem>>, vector<8x128xf32>
    tpu.vector_store %arg14[%143, %c128_37], %142 {strides = array<i32>} : memref<64x384xf32, #tpu.memory_space<vmem>>, vector<8x128xf32>,
    %145 = vector.broadcast %16 : vector<1x128xf32> to vector<8x128xf32>
    %146 = arith.addf %113, %145 : vector<8x128xf32>
    %147 = arith.maximumf %146, %126 : vector<8x128xf32>
    %148 = arith.subf %146, %147 : vector<8x128xf32>
    %149 = math.exp %148 : vector<8x128xf32>
    %150 = arith.subf %126, %147 : vector<8x128xf32>
    %151 = math.exp %150 : vector<8x128xf32>
    %152 = arith.mulf %149, %120 : vector<8x128xf32>
    %153 = arith.mulf %151, %128 : vector<8x128xf32>
    %154 = arith.addf %152, %153 : vector<8x128xf32>
    %155 = arith.mulf %149, %122 : vector<8x128xf32>
    %156 = arith.addf %155, %151 : vector<8x128xf32>
    %c4_i32 = arith.constant 4 : i32
    %c8_i32_38 = arith.constant 8 : i32
    %157 = arith.muli %c4_i32, %c8_i32_38 : i32
    %158 = tpu.assume_multiple %157, 8 : i32
    %159 = arith.index_cast %158 : i32 to index
    %c0_39 = arith.constant 0 : index
    %160 = vector.load %arg14[%159, %c0_39] : memref<64x384xf32, #tpu.memory_space<vmem>>, vector<8x128xf32>
    %161 = arith.index_cast %158 : i32 to index
    %c128_40 = arith.constant 128 : index
    %162 = vector.load %arg14[%161, %c128_40] : memref<64x384xf32, #tpu.memory_space<vmem>>, vector<8x128xf32>
    %163 = vector.broadcast %15 : vector<1x128xf32> to vector<8x128xf32>
    %164 = arith.addf %163, %160 : vector<8x128xf32>
    %165 = arith.maximumf %147, %164 : vector<8x128xf32>
    %166 = arith.subf %147, %165 : vector<8x128xf32>
    %167 = math.exp %166 : vector<8x128xf32>
    %168 = arith.subf %164, %165 : vector<8x128xf32>
    %169 = math.exp %168 : vector<8x128xf32>
    %170 = arith.mulf %167, %154 : vector<8x128xf32>
    %171 = arith.mulf %169, %162 : vector<8x128xf32>
    %172 = arith.addf %170, %171 : vector<8x128xf32>
    %173 = arith.mulf %167, %156 : vector<8x128xf32>
    %174 = arith.addf %173, %169 : vector<8x128xf32>
    %175 = tpu.reciprocal %174 {approx = true} : vector<8x128xf32> -> vector<8x128xf32>
    %176 = arith.mulf %172, %175 : vector<8x128xf32>
    %177 = arith.index_cast %158 : i32 to index
    %c128_41 = arith.constant 128 : index
    %178 = vector.load %arg14[%177, %c128_41] : memref<64x384xf32, #tpu.memory_space<vmem>>, vector<8x128xf32>
    tpu.vector_store %arg14[%177, %c128_41], %176 {strides = array<i32>} : memref<64x384xf32, #tpu.memory_space<vmem>>, vector<8x128xf32>,
    %179 = vector.broadcast %16 : vector<1x128xf32> to vector<8x128xf32>
    %180 = arith.addf %147, %179 : vector<8x128xf32>
    %181 = arith.maximumf %180, %160 : vector<8x128xf32>
    %182 = arith.subf %180, %181 : vector<8x128xf32>
    %183 = math.exp %182 : vector<8x128xf32>
    %184 = arith.subf %160, %181 : vector<8x128xf32>
    %185 = math.exp %184 : vector<8x128xf32>
    %186 = arith.mulf %183, %154 : vector<8x128xf32>
    %187 = arith.mulf %185, %162 : vector<8x128xf32>
    %188 = arith.addf %186, %187 : vector<8x128xf32>
    %189 = arith.mulf %183, %156 : vector<8x128xf32>
    %190 = arith.addf %189, %185 : vector<8x128xf32>
    %c5_i32 = arith.constant 5 : i32
    %c8_i32_42 = arith.constant 8 : i32
    %191 = arith.muli %c5_i32, %c8_i32_42 : i32
    %192 = tpu.assume_multiple %191, 8 : i32
    %193 = arith.index_cast %192 : i32 to index
    %c0_43 = arith.constant 0 : index
    %194 = vector.load %arg14[%193, %c0_43] : memref<64x384xf32, #tpu.memory_space<vmem>>, vector<8x128xf32>
    %195 = arith.index_cast %192 : i32 to index
    %c128_44 = arith.constant 128 : index
    %196 = vector.load %arg14[%195, %c128_44] : memref<64x384xf32, #tpu.memory_space<vmem>>, vector<8x128xf32>
    %197 = vector.broadcast %15 : vector<1x128xf32> to vector<8x128xf32>
    %198 = arith.addf %197, %194 : vector<8x128xf32>
    %199 = arith.maximumf %181, %198 : vector<8x128xf32>
    %200 = arith.subf %181, %199 : vector<8x128xf32>
    %201 = math.exp %200 : vector<8x128xf32>
    %202 = arith.subf %198, %199 : vector<8x128xf32>
    %203 = math.exp %202 : vector<8x128xf32>
    %204 = arith.mulf %201, %188 : vector<8x128xf32>
    %205 = arith.mulf %203, %196 : vector<8x128xf32>
    %206 = arith.addf %204, %205 : vector<8x128xf32>
    %207 = arith.mulf %201, %190 : vector<8x128xf32>
    %208 = arith.addf %207, %203 : vector<8x128xf32>
    %209 = tpu.reciprocal %208 {approx = true} : vector<8x128xf32> -> vector<8x128xf32>
    %210 = arith.mulf %206, %209 : vector<8x128xf32>
    %211 = arith.index_cast %192 : i32 to index
    %c128_45 = arith.constant 128 : index
    %212 = vector.load %arg14[%211, %c128_45] : memref<64x384xf32, #tpu.memory_space<vmem>>, vector<8x128xf32>
    tpu.vector_store %arg14[%211, %c128_45], %210 {strides = array<i32>} : memref<64x384xf32, #tpu.memory_space<vmem>>, vector<8x128xf32>,
    %213 = vector.broadcast %16 : vector<1x128xf32> to vector<8x128xf32>
    %214 = arith.addf %181, %213 : vector<8x128xf32>
    %215 = arith.maximumf %214, %194 : vector<8x128xf32>
    %216 = arith.subf %214, %215 : vector<8x128xf32>
    %217 = math.exp %216 : vector<8x128xf32>
    %218 = arith.subf %194, %215 : vector<8x128xf32>
    %219 = math.exp %218 : vector<8x128xf32>
    %220 = arith.mulf %217, %188 : vector<8x128xf32>
    %221 = arith.mulf %219, %196 : vector<8x128xf32>
    %222 = arith.addf %220, %221 : vector<8x128xf32>
    %223 = arith.mulf %217, %190 : vector<8x128xf32>
    %224 = arith.addf %223, %219 : vector<8x128xf32>
    %c6_i32 = arith.constant 6 : i32
    %c8_i32_46 = arith.constant 8 : i32
    %225 = arith.muli %c6_i32, %c8_i32_46 : i32
    %226 = tpu.assume_multiple %225, 8 : i32
    %227 = arith.index_cast %226 : i32 to index
    %c0_47 = arith.constant 0 : index
    %228 = vector.load %arg14[%227, %c0_47] : memref<64x384xf32, #tpu.memory_space<vmem>>, vector<8x128xf32>
    %229 = arith.index_cast %226 : i32 to index
    %c128_48 = arith.constant 128 : index
    %230 = vector.load %arg14[%229, %c128_48] : memref<64x384xf32, #tpu.memory_space<vmem>>, vector<8x128xf32>
    %231 = vector.broadcast %15 : vector<1x128xf32> to vector<8x128xf32>
    %232 = arith.addf %231, %228 : vector<8x128xf32>
    %233 = arith.maximumf %215, %232 : vector<8x128xf32>
    %234 = arith.subf %215, %233 : vector<8x128xf32>
    %235 = math.exp %234 : vector<8x128xf32>
    %236 = arith.subf %232, %233 : vector<8x128xf32>
    %237 = math.exp %236 : vector<8x128xf32>
    %238 = arith.mulf %235, %222 : vector<8x128xf32>
    %239 = arith.mulf %237, %230 : vector<8x128xf32>
    %240 = arith.addf %238, %239 : vector<8x128xf32>
    %241 = arith.mulf %235, %224 : vector<8x128xf32>
    %242 = arith.addf %241, %237 : vector<8x128xf32>
    %243 = tpu.reciprocal %242 {approx = true} : vector<8x128xf32> -> vector<8x128xf32>
    %244 = arith.mulf %240, %243 : vector<8x128xf32>
    %245 = arith.index_cast %226 : i32 to index
    %c128_49 = arith.constant 128 : index
    %246 = vector.load %arg14[%245, %c128_49] : memref<64x384xf32, #tpu.memory_space<vmem>>, vector<8x128xf32>
    tpu.vector_store %arg14[%245, %c128_49], %244 {strides = array<i32>} : memref<64x384xf32, #tpu.memory_space<vmem>>, vector<8x128xf32>,
    %247 = vector.broadcast %16 : vector<1x128xf32> to vector<8x128xf32>
    %248 = arith.addf %215, %247 : vector<8x128xf32>
    %249 = arith.maximumf %248, %228 : vector<8x128xf32>
    %250 = arith.subf %248, %249 : vector<8x128xf32>
    %251 = math.exp %250 : vector<8x128xf32>
    %252 = arith.subf %228, %249 : vector<8x128xf32>
    %253 = math.exp %252 : vector<8x128xf32>
    %254 = arith.mulf %251, %222 : vector<8x128xf32>
    %255 = arith.mulf %253, %230 : vector<8x128xf32>
    %256 = arith.addf %254, %255 : vector<8x128xf32>
    %257 = arith.mulf %251, %224 : vector<8x128xf32>
    %258 = arith.addf %257, %253 : vector<8x128xf32>
    %c7_i32 = arith.constant 7 : i32
    %c8_i32_50 = arith.constant 8 : i32
    %259 = arith.muli %c7_i32, %c8_i32_50 : i32
    %260 = tpu.assume_multiple %259, 8 : i32
    %261 = arith.index_cast %260 : i32 to index
    %c0_51 = arith.constant 0 : index
    %262 = vector.load %arg14[%261, %c0_51] : memref<64x384xf32, #tpu.memory_space<vmem>>, vector<8x128xf32>
    %263 = arith.index_cast %260 : i32 to index
    %c128_52 = arith.constant 128 : index
    %264 = vector.load %arg14[%263, %c128_52] : memref<64x384xf32, #tpu.memory_space<vmem>>, vector<8x128xf32>
    %265 = vector.broadcast %15 : vector<1x128xf32> to vector<8x128xf32>
    %266 = arith.addf %265, %262 : vector<8x128xf32>
    %267 = arith.maximumf %249, %266 : vector<8x128xf32>
    %268 = arith.subf %249, %267 : vector<8x128xf32>
    %269 = math.exp %268 : vector<8x128xf32>
    %270 = arith.subf %266, %267 : vector<8x128xf32>
    %271 = math.exp %270 : vector<8x128xf32>
    %272 = arith.mulf %269, %256 : vector<8x128xf32>
    %273 = arith.mulf %271, %264 : vector<8x128xf32>
    %274 = arith.addf %272, %273 : vector<8x128xf32>
    %275 = arith.mulf %269, %258 : vector<8x128xf32>
    %276 = arith.addf %275, %271 : vector<8x128xf32>
    %277 = tpu.reciprocal %276 {approx = true} : vector<8x128xf32> -> vector<8x128xf32>
    %278 = arith.mulf %274, %277 : vector<8x128xf32>
    %279 = arith.index_cast %260 : i32 to index
    %c128_53 = arith.constant 128 : index
    %280 = vector.load %arg14[%279, %c128_53] : memref<64x384xf32, #tpu.memory_space<vmem>>, vector<8x128xf32>
    tpu.vector_store %arg14[%279, %c128_53], %278 {strides = array<i32>} : memref<64x384xf32, #tpu.memory_space<vmem>>, vector<8x128xf32>,
    %281 = vector.broadcast %16 : vector<1x128xf32> to vector<8x128xf32>
    %282 = arith.addf %249, %281 : vector<8x128xf32>
    %283 = arith.maximumf %282, %262 : vector<8x128xf32>
    %284 = arith.subf %282, %283 : vector<8x128xf32>
    %285 = math.exp %284 : vector<8x128xf32>
    %286 = arith.subf %262, %283 : vector<8x128xf32>
    %287 = math.exp %286 : vector<8x128xf32>
    %288 = arith.mulf %285, %256 : vector<8x128xf32>
    %289 = arith.mulf %287, %264 : vector<8x128xf32>
    %290 = arith.addf %288, %289 : vector<8x128xf32>
    %291 = arith.mulf %285, %258 : vector<8x128xf32>
    %292 = arith.addf %291, %287 : vector<8x128xf32>
    %c8_i32_54 = arith.constant 8 : i32
    %c0_55 = arith.constant 0 : index
    %c0_56 = arith.constant 0 : index
    %293 = vector.load %arg16[%c0_55, %c0_56] : memref<8x128xf32, #tpu.memory_space<vmem>>, vector<8x128xf32>
    tpu.vector_store %arg16[%c0_55, %c0_56], %290 {strides = array<i32>} : memref<8x128xf32, #tpu.memory_space<vmem>>, vector<8x128xf32>,
    %c0_57 = arith.constant 0 : index
    %c0_58 = arith.constant 0 : index
    %294 = vector.load %arg17[%c0_57, %c0_58] : memref<8x128xf32, #tpu.memory_space<vmem>>, vector<8x128xf32>
    tpu.vector_store %arg17[%c0_57, %c0_58], %292 {strides = array<i32>} : memref<8x128xf32, #tpu.memory_space<vmem>>, vector<8x128xf32>,
    %c0_59 = arith.constant 0 : index
    %c0_60 = arith.constant 0 : index
    %295 = vector.load %arg18[%c0_59, %c0_60] : memref<8x128xf32, #tpu.memory_space<vmem>>, vector<8x128xf32>
    tpu.vector_store %arg18[%c0_59, %c0_60], %283 {strides = array<i32>} : memref<8x128xf32, #tpu.memory_space<vmem>>, vector<8x128xf32>,
    %c0_61 = arith.constant 0 : index
    %c0_62 = arith.constant 0 : index
    %296 = vector.load %arg12[%c0_61, %c0_62] : memref<8x128xf32, #tpu.memory_space<vmem>>, vector<8x128xf32>
    tpu.vector_store %arg12[%c0_61, %c0_62], %285 {strides = array<i32>} : memref<8x128xf32, #tpu.memory_space<vmem>>, vector<8x128xf32>,
    %c0_63 = arith.constant 0 : index
    %c0_64 = arith.constant 0 : index
    %297 = vector.load %arg13[%c0_63, %c0_64] : memref<8x128xf32, #tpu.memory_space<vmem>>, vector<8x128xf32>
    tpu.vector_store %arg13[%c0_63, %c0_64], %287 {strides = array<i32>} : memref<8x128xf32, #tpu.memory_space<vmem>>, vector<8x128xf32>,
    %c0_65 = arith.constant 0 : index
    %c256 = arith.constant 256 : index
    %298 = vector.load %arg14[%c0_65, %c256] : memref<64x384xf32, #tpu.memory_space<vmem>>, vector<64x128xf32>
    %299 = arith.negf %298 : vector<64x128xf32>
    %300 = math.exp %299 : vector<64x128xf32>
    %cst_66 = arith.constant 1.000000e+00 : f32
    %301 = vector.broadcast %cst_66 : f32 to vector<64x128xf32>
    %302 = arith.addf %301, %300 : vector<64x128xf32>
    %303 = arith.divf %301, %302 : vector<64x128xf32>
    %c0_67 = arith.constant 0 : index
    %c128_68 = arith.constant 128 : index
    %304 = vector.load %arg14[%c0_67, %c128_68] : memref<64x384xf32, #tpu.memory_space<vmem>>, vector<64x128xf32>
    %305 = arith.mulf %303, %304 : vector<64x128xf32>
    %c0_69 = arith.constant 0 : index
    %c0_70 = arith.constant 0 : index
    %306 = vector.load %arg10[%c0_69, %c0_70] : memref<128x128xf32, #tpu.memory_space<vmem>>, vector<128x128xf32>
    %cst_71 = arith.constant dense<0.000000e+00> : vector<64x128xf32>
    %307 = tpu.matmul %305, %306, %cst_71 {dimension_numbers = #tpu.dot_dimension_numbers<[1], [0], [0], [1], [0, 0, 1, 1], [], []>} : vector<64x128xf32>, vector<128x128xf32>, vector<64x128xf32> -> vector<64x128xf32>
    %308 = vector.shape_cast %307 : vector<64x128xf32> to vector<8x8x128xf32>
    %309 = tpu.transpose %308, [1, 0, 2] : vector<8x8x128xf32> -> vector<8x8x128xf32>
    %c0_72 = arith.constant 0 : index
    %c0_73 = arith.constant 0 : index
    %c0_74 = arith.constant 0 : index
    %310 = vector.load %arg11[%c0_72, %c0_73, %c0_74] : memref<8x8x128xf32, #tpu.memory_space<vmem>>, vector<8x8x128xf32>
    tpu.vector_store %arg11[%c0_72, %c0_73, %c0_74], %309 {strides = array<i32>} : memref<8x8x128xf32, #tpu.memory_space<vmem>>, vector<8x8x128xf32>,
    return
  }
  func.func @transform_0(%arg0: i32, %arg1: i32) -> (i32, i32) {
    %c4_i32 = arith.constant 4 : i32
    %0 = arith.muli %arg0, %c4_i32 : i32
    %1 = arith.addi %0, %arg1 : i32
    %c0_i32 = arith.constant 0 : i32
    %c0_i32_0 = arith.constant 0 : i32
    return %1, %c0_i32 : i32, i32
  }
  func.func @transform_1(%arg0: i32, %arg1: i32) -> (i32, i32) {
    %c0_i32 = arith.constant 0 : i32
    %c0_i32_0 = arith.constant 0 : i32
    return %arg0, %c0_i32 : i32, i32
  }
  func.func @transform_2(%arg0: i32, %arg1: i32) -> (i32, i32) {
    %c0_i32 = arith.constant 0 : i32
    %c0_i32_0 = arith.constant 0 : i32
    return %arg0, %c0_i32 : i32, i32
  }
  func.func @transform_3(%arg0: i32, %arg1: i32) -> (i32, i32) {
    %c0_i32 = arith.constant 0 : i32
    %c0_i32_0 = arith.constant 0 : i32
    return %arg0, %c0_i32 : i32, i32
  }
  func.func @transform_4(%arg0: i32, %arg1: i32) -> (i32, i32) {
    %c0_i32 = arith.constant 0 : i32
    %c0_i32_0 = arith.constant 0 : i32
    return %arg0, %c0_i32 : i32, i32
  }
  func.func @transform_5(%arg0: i32, %arg1: i32) -> (i32, i32) {
    %c0_i32 = arith.constant 0 : i32
    %c0_i32_0 = arith.constant 0 : i32
    %c0_i32_1 = arith.constant 0 : i32
    return %c0_i32, %c0_i32_0 : i32, i32
  }
  func.func @transform_6(%arg0: i32, %arg1: i32) -> (i32, i32) {
    %c0_i32 = arith.constant 0 : i32
    %c0_i32_0 = arith.constant 0 : i32
    %c0_i32_1 = arith.constant 0 : i32
    return %c0_i32, %c0_i32_0 : i32, i32
  }
  func.func @transform_7(%arg0: i32, %arg1: i32) -> (i32, i32) {
    %c0_i32 = arith.constant 0 : i32
    %c0_i32_0 = arith.constant 0 : i32
    %c0_i32_1 = arith.constant 0 : i32
    return %c0_i32, %c0_i32_0 : i32, i32
  }
  func.func @transform_8(%arg0: i32, %arg1: i32) -> (i32, i32) {
    %c0_i32 = arith.constant 0 : i32
    %c0_i32_0 = arith.constant 0 : i32
    %c0_i32_1 = arith.constant 0 : i32
    return %c0_i32, %c0_i32_0 : i32, i32
  }
  func.func @transform_9(%arg0: i32, %arg1: i32) -> (i32, i32, i32) {
    %c0_i32 = arith.constant 0 : i32
    %c0_i32_0 = arith.constant 0 : i32
    return %arg0, %arg1, %c0_i32 : i32, i32, i32
  }
  func.func @transform_10(%arg0: i32, %arg1: i32) -> (i32, i32) {
    %c0_i32 = arith.constant 0 : i32
    %c0_i32_0 = arith.constant 0 : i32
    return %arg0, %c0_i32 : i32, i32
  }
  func.func @transform_11(%arg0: i32, %arg1: i32) -> (i32, i32) {
    %c0_i32 = arith.constant 0 : i32
    %c0_i32_0 = arith.constant 0 : i32
    return %arg0, %c0_i32 : i32, i32
  }
}

module attributes {stable_mosaic.version = 11 : i64} {
  func.func @_rwkv_timemix_kernel(%arg0: i32, %arg1: i32, %arg2: memref<64x128xf32, #tpu.memory_space<vmem>>, %arg3: memref<8x128xf32, #tpu.memory_space<vmem>>, %arg4: memref<8x128xf32, #tpu.memory_space<vmem>>, %arg5: memref<8x128xf32, #tpu.memory_space<vmem>>, %arg6: memref<8x128xf32, #tpu.memory_space<vmem>>, %arg7: memref<8x128xf32, #tpu.memory_space<vmem>>, %arg8: memref<128x384xf32, #tpu.memory_space<vmem>>, %arg9: memref<128x384xf32, #tpu.memory_space<vmem>>, %arg10: memref<128x128xf32, #tpu.memory_space<vmem>>, %arg11: memref<8x8x128xf32, #tpu.memory_space<vmem>>, %arg12: memref<8x128xf32, #tpu.memory_space<vmem>>, %arg13: memref<8x128xf32, #tpu.memory_space<vmem>>, %arg14: memref<64x384xf32, #tpu.memory_space<vmem>>, %arg15: memref<8x128xf32, #tpu.memory_space<vmem>>, %arg16: memref<8x128xf32, #tpu.memory_space<vmem>>, %arg17: memref<8x128xf32, #tpu.memory_space<vmem>>, %arg18: memref<8x128xf32, #tpu.memory_space<vmem>>) attributes {dimension_semantics = [#tpu.dimension_semantics<parallel>, #tpu.dimension_semantics<arbitrary>], iteration_bounds = array<i64: 2, 4>, scalar_prefetch = 0 : i64, scratch_operands = 5 : i64, tpu.core_type = #tpu.core_type<tc>, window_params = [{transform_indices = @transform_0, window_bounds = array<i64: 64, 128>}, {transform_indices = @transform_1, window_bounds = array<i64: 8, 128>}, {transform_indices = @transform_2, window_bounds = array<i64: 8, 128>}, {transform_indices = @transform_3, window_bounds = array<i64: 8, 128>}, {transform_indices = @transform_4, window_bounds = array<i64: 8, 128>}, {pipeline_mode = #tpu.pipeline_mode<synchronous>, transform_indices = @transform_5, window_bounds = array<i64: 8, 128>}, {pipeline_mode = #tpu.pipeline_mode<synchronous>, transform_indices = @transform_6, window_bounds = array<i64: 128, 384>}, {pipeline_mode = #tpu.pipeline_mode<synchronous>, transform_indices = @transform_7, window_bounds = array<i64: 128, 384>}, {pipeline_mode = #tpu.pipeline_mode<synchronous>, transform_indices = @transform_8, window_bounds = array<i64: 128, 128>}, {transform_indices = @transform_9, window_bounds = array<i64: 8, 8, 128>}, {transform_indices = @transform_10, window_bounds = array<i64: 8, 128>}, {transform_indices = @transform_11, window_bounds = array<i64: 8, 128>}]} {
    %c0_i32 = arith.constant 0 : i32
    %0 = arith.cmpi eq, %arg1, %c0_i32 : i32
    %1 = arith.extui %0 : i1 to i32
    %c0_i32_0 = arith.constant 0 : i32
    %2 = arith.cmpi ne, %1, %c0_i32_0 : i32
    scf.if %2 {
      %c0_75 = arith.constant 0 : index
      %c0_76 = arith.constant 0 : index
      %311 = vector.load %arg3[%c0_75, %c0_76] : memref<8x128xf32, #tpu.memory_space<vmem>>, vector<8x128xf32>
      %c0_77 = arith.constant 0 : index
      %c0_78 = arith.constant 0 : index
      %312 = vector.load %arg15[%c0_77, %c0_78] : memref<8x128xf32, #tpu.memory_space<vmem>>, vector<8x128xf32>
      tpu.vector_store %arg15[%c0_77, %c0_78], %311 {strides = array<i32>} : memref<8x128xf32, #tpu.memory_space<vmem>>, vector<8x128xf32>,
      %c0_79 = arith.constant 0 : index
      %c0_80 = arith.constant 0 : index
      %313 = vector.load %arg4[%c0_79, %c0_80] : memref<8x128xf32, #tpu.memory_space<vmem>>, vector<8x128xf32>
      %c0_81 = arith.constant 0 : index
      %c0_82 = arith.constant 0 : index
      %314 = vector.load %arg16[%c0_81, %c0_82] : memref<8x128xf32, #tpu.memory_space<vmem>>, vector<8x128xf32>
      tpu.vector_store %arg16[%c0_81, %c0_82], %313 {strides = array<i32>} : memref<8x128xf32, #tpu.memory_space<vmem>>, vector<8x128xf32>,
      %c0_83 = arith.constant 0 : index
      %c0_84 = arith.constant 0 : index
      %315 = vector.load %arg5[%c0_83, %c0_84] : memref<8x128xf32, #tpu.memory_space<vmem>>, vector<8x128xf32>
      %c0_85 = arith.constant 0 : index
      %c0_86 = arith.constant 0 : index
      %316 = vector.load %arg17[%c0_85, %c0_86] : memref<8x128xf32, #tpu.memory_space<vmem>>, vector<8x128xf32>
      tpu.vector_store %arg17[%c0_85, %c0_86], %315 {strides = array<i32>} : memref<8x128xf32, #tpu.memory_space<vmem>>, vector<8x128xf32>,
      %c0_87 = arith.constant 0 : index
      %c0_88 = arith.constant 0 : index
      %317 = vector.load %arg6[%c0_87, %c0_88] : memref<8x128xf32, #tpu.memory_space<vmem>>, vector<8x128xf32>
      %c0_89 = arith.constant 0 : index
      %c0_90 = arith.constant 0 : index
      %318 = vector.load %arg18[%c0_89, %c0_90] : memref<8x128xf32, #tpu.memory_space<vmem>>, vector<8x128xf32>
      tpu.vector_store %arg18[%c0_89, %c0_90], %317 {strides = array<i32>} : memref<8x128xf32, #tpu.memory_space<vmem>>, vector<8x128xf32>,
    } else {
    }
    %c0 = arith.constant 0 : index
    %c0_1 = arith.constant 0 : index
    %3 = vector.load %arg2[%c0, %c0_1] : memref<64x128xf32, #tpu.memory_space<vmem>>, vector<64x128xf32>
    %c0_2 = arith.constant 0 : index
    %c0_3 = arith.constant 0 : index
    %4 = vector.load %arg15[%c0_2, %c0_3] : memref<8x128xf32, #tpu.memory_space<vmem>>, vector<8x128xf32>
    %5 = vector.extract_strided_slice %3 {offsets = [0, 0], sizes = [56, 128], strides = [1, 1]} : vector<64x128xf32> to vector<56x128xf32>
    %6 = tpu.concatenate %4, %5 in 0 : vector<8x128xf32>, vector<56x128xf32> -> vector<64x128xf32>
    %7 = vector.extract_strided_slice %3 {offsets = [56, 0], sizes = [8, 128], strides = [1, 1]} : vector<64x128xf32> to vector<8x128xf32>
    %c0_4 = arith.constant 0 : index
    %c0_5 = arith.constant 0 : index
    %8 = vector.load %arg15[%c0_4, %c0_5] : memref<8x128xf32, #tpu.memory_space<vmem>>, vector<8x128xf32>
    tpu.vector_store %arg15[%c0_4, %c0_5], %7 {strides = array<i32>} : memref<8x128xf32, #tpu.memory_space<vmem>>, vector<8x128xf32>,
    %c0_6 = arith.constant 0 : index
    %c0_7 = arith.constant 0 : index
    %9 = vector.load %arg8[%c0_6, %c0_7] : memref<128x384xf32, #tpu.memory_space<vmem>>, vector<128x384xf32>
    %cst = arith.constant dense<0.000000e+00> : vector<64x384xf32>
    %10 = tpu.matmul %3, %9, %cst {dimension_numbers = #tpu.dot_dimension_numbers<[1], [0], [0], [1], [0, 0, 1, 1], [], []>} : vector<64x128xf32>, vector<128x384xf32>, vector<64x384xf32> -> vector<64x384xf32>
    %c0_8 = arith.constant 0 : index
    %c0_9 = arith.constant 0 : index
    %11 = vector.load %arg9[%c0_8, %c0_9] : memref<128x384xf32, #tpu.memory_space<vmem>>, vector<128x384xf32>
    %cst_10 = arith.constant dense<0.000000e+00> : vector<64x384xf32>
    %12 = tpu.matmul %6, %11, %cst_10 {dimension_numbers = #tpu.dot_dimension_numbers<[1], [0], [0], [1], [0, 0, 1, 1], [], []>} : vector<64x128xf32>, vector<128x384xf32>, vector<64x384xf32> -> vector<64x384xf32>
    %13 = arith.addf %10, %12 : vector<64x384xf32>
    %c0_11 = arith.constant 0 : index
    %c0_12 = arith.constant 0 : index
    %14 = vector.load %arg14[%c0_11, %c0_12] : memref<64x384xf32, #tpu.memory_space<vmem>>, vector<64x384xf32>
    tpu.vector_store %arg14[%c0_11, %c0_12], %13 {strides = array<i32>} : memref<64x384xf32, #tpu.memory_space<vmem>>, vector<64x384xf32>,
    %c0_13 = arith.constant 0 : index
    %c0_14 = arith.constant 0 : index
    %15 = vector.load %arg7[%c0_13, %c0_14] : memref<8x128xf32, #tpu.memory_space<vmem>>, vector<1x128xf32>
    %c1 = arith.constant 1 : index
    %c0_15 = arith.constant 0 : index
    %16 = vector.load %arg7[%c1, %c0_15] : memref<8x128xf32, #tpu.memory_space<vmem>>, vector<1x128xf32>
    %c0_16 = arith.constant 0 : index
    %c0_17 = arith.constant 0 : index
    %17 = vector.load %arg16[%c0_16, %c0_17] : memref<8x128xf32, #tpu.memory_space<vmem>>, vector<8x128xf32>
    %cst_18 = arith.constant 0.000000e+00 : f32
    %18 = vector.broadcast %cst_18 : f32 to vector<8x128xf32>
    %c0_19 = arith.constant 0 : index
    %c0_20 = arith.constant 0 : index
    %19 = vector.load %arg17[%c0_19, %c0_20] : memref<8x128xf32, #tpu.memory_space<vmem>>, vector<8x128xf32>
    %c0_21 = arith.constant 0 : index
    %c0_22 = arith.constant 0 : index
    %20 = vector.load %arg18[%c0_21, %c0_22] : memref<8x128xf32, #tpu.memory_space<vmem>>, vector<8x128xf32>
    %c0_i32_23 = arith.constant 0 : i32
    %c8_i32 = arith.constant 8 : i32
    %21 = arith.muli %c0_i32_23, %c8_i32 : i32
    %22 = tpu.assume_multiple %21, 8 : i32
    %23 = arith.index_cast %22 : i32 to index
    %c0_24 = arith.constant 0 : index
    %24 = vector.load %arg14[%23, %c0_24] : memref<64x384xf32, #tpu.memory_space<vmem>>, vector<8x128xf32>
    %25 = arith.index_cast %22 : i32 to index
    %c128 = arith.constant 128 : index
    %26 = vector.load %arg14[%25, %c128] : memref<64x384xf32, #tpu.memory_space<vmem>>, vector<8x128xf32>
    %27 = vector.broadcast %15 : vector<1x128xf32> to vector<8x128xf32>
    %28 = arith.addf %27, %24 : vector<8x128xf32>
    %29 = arith.maximumf %20, %28 : vector<8x128xf32>
    %30 = arith.subf %20, %29 : vector<8x128xf32>
    %31 = math.exp %30 : vector<8x128xf32>
    %32 = arith.subf %28, %29 : vector<8x128xf32>
    %33 = math.exp %32 : vector<8x128xf32>
    %34 = arith.mulf %31, %17 : vector<8x128xf32>
    %35 = arith.mulf %33, %26 : vector<8x128xf32>
    %36 = arith.addf %34, %35 : vector<8x128xf32>
    %37 = arith.mulf %31, %19 : vector<8x128xf32>
    %38 = arith.addf %37, %33 : vector<8x128xf32>
    %39 = tpu.reciprocal %38 {approx = true} : vector<8x128xf32> -> vector<8x128xf32>
    %40 = arith.mulf %36, %39 : vector<8x128xf32>
    %41 = arith.index_cast %22 : i32 to index
    %c128_25 = arith.constant 128 : index
    %42 = vector.load %arg14[%41, %c128_25] : memref<64x384xf32, #tpu.memory_space<vmem>>, vector<8x128xf32>
    tpu.vector_store %arg14[%41, %c128_25], %40 {strides = array<i32>} : memref<64x384xf32, #tpu.memory_space<vmem>>, vector<8x128xf32>,
    %43 = vector.broadcast %16 : vector<1x128xf32> to vector<8x128xf32>
    %44 = arith.addf %20, %43 : vector<8x128xf32>
    %45 = arith.maximumf %44, %24 : vector<8x128xf32>
    %46 = arith.subf %44, %45 : vector<8x128xf32>
    %47 = math.exp %46 : vector<8x128xf32>
    %48 = arith.subf %24, %45 : vector<8x128xf32>
    %49 = math.exp %48 : vector<8x128xf32>
    %50 = arith.mulf %47, %17 : vector<8x128xf32>
    %51 = arith.mulf %49, %26 : vector<8x128xf32>
    %52 = arith.addf %50, %51 : vector<8x128xf32>
    %53 = arith.mulf %47, %19 : vector<8x128xf32>
    %54 = arith.addf %53, %49 : vector<8x128xf32>
    %c1_i32 = arith.constant 1 : i32
    %c8_i32_26 = arith.constant 8 : i32
    %55 = arith.muli %c1_i32, %c8_i32_26 : i32
    %56 = tpu.assume_multiple %55, 8 : i32
    %57 = arith.index_cast %56 : i32 to index
    %c0_27 = arith.constant 0 : index
    %58 = vector.load %arg14[%57, %c0_27] : memref<64x384xf32, #tpu.memory_space<vmem>>, vector<8x128xf32>
    %59 = arith.index_cast %56 : i32 to index
    %c128_28 = arith.constant 128 : index
    %60 = vector.load %arg14[%59, %c128_28] : memref<64x384xf32, #tpu.memory_space<vmem>>, vector<8x128xf32>
    %61 = vector.broadcast %15 : vector<1x128xf32> to vector<8x128xf32>
    %62 = arith.addf %61, %58 : vector<8x128xf32>
    %63 = arith.maximumf %45, %62 : vector<8x128xf32>
    %64 = arith.subf %45, %63 : vector<8x128xf32>
    %65 = math.exp %64 : vector<8x128xf32>
    %66 = arith.subf %62, %63 : vector<8x128xf32>
    %67 = math.exp %66 : vector<8x128xf32>
    %68 = arith.mulf %65, %52 : vector<8x128xf32>
    %69 = arith.mulf %67, %60 : vector<8x128xf32>
    %70 = arith.addf %68, %69 : vector<8x128xf32>
    %71 = arith.mulf %65, %54 : vector<8x128xf32>
    %72 = arith.addf %71, %67 : vector<8x128xf32>
    %73 = tpu.reciprocal %72 {approx = true} : vector<8x128xf32> -> vector<8x128xf32>
    %74 = arith.mulf %70, %73 : vector<8x128xf32>
    %75 = arith.index_cast %56 : i32 to index
    %c128_29 = arith.constant 128 : index
    %76 = vector.load %arg14[%75, %c128_29] : memref<64x384xf32, #tpu.memory_space<vmem>>, vector<8x128xf32>
    tpu.vector_store %arg14[%75, %c128_29], %74 {strides = array<i32>} : memref<64x384xf32, #tpu.memory_space<vmem>>, vector<8x128xf32>,
    %77 = vector.broadcast %16 : vector<1x128xf32> to vector<8x128xf32>
    %78 = arith.addf %45, %77 : vector<8x128xf32>
    %79 = arith.maximumf %78, %58 : vector<8x128xf32>
    %80 = arith.subf %78, %79 : vector<8x128xf32>
    %81 = math.exp %80 : vector<8x128xf32>
    %82 = arith.subf %58, %79 : vector<8x128xf32>
    %83 = math.exp %82 : vector<8x128xf32>
    %84 = arith.mulf %81, %52 : vector<8x128xf32>
    %85 = arith.mulf %83, %60 : vector<8x128xf32>
    %86 = arith.addf %84, %85 : vector<8x128xf32>
    %87 = arith.mulf %81, %54 : vector<8x128xf32>
    %88 = arith.addf %87, %83 : vector<8x128xf32>
    %c2_i32 = arith.constant 2 : i32
    %c8_i32_30 = arith.constant 8 : i32
    %89 = arith.muli %c2_i32, %c8_i32_30 : i32
    %90 = tpu.assume_multiple %89, 8 : i32
    %91 = arith.index_cast %90 : i32 to index
    %c0_31 = arith.constant 0 : index
    %92 = vector.load %arg14[%91, %c0_31] : memref<64x384xf32, #tpu.memory_space<vmem>>, vector<8x128xf32>
    %93 = arith.index_cast %90 : i32 to index
    %c128_32 = arith.constant 128 : index
    %94 = vector.load %arg14[%93, %c128_32] : memref<64x384xf32, #tpu.memory_space<vmem>>, vector<8x128xf32>
    %95 = vector.broadcast %15 : vector<1x128xf32> to vector<8x128xf32>
    %96 = arith.addf %95, %92 : vector<8x128xf32>
    %97 = arith.maximumf %79, %96 : vector<8x128xf32>
    %98 = arith.subf %79, %97 : vector<8x128xf32>
    %99 = math.exp %98 : vector<8x128xf32>
    %100 = arith.subf %96, %97 : vector<8x128xf32>
    %101 = math.exp %100 : vector<8x128xf32>
    %102 = arith.mulf %99, %86 : vector<8x128xf32>
    %103 = arith.mulf %101, %94 : vector<8x128xf32>
    %104 = arith.addf %102, %103 : vector<8x128xf32>
    %105 = arith.mulf %99, %88 : vector<8x128xf32>
    %106 = arith.addf %105, %101 : vector<8x128xf32>
    %107 = tpu.reciprocal %106 {approx = true} : vector<8x128xf32> -> vector<8x128xf32>
    %108 = arith.mulf %104, %107 : vector<8x128xf32>
    %109 = arith.index_cast %90 : i32 to index
    %c128_33 = arith.constant 128 : index
    %110 = vector.load %arg14[%109, %c128_33] : memref<64x384xf32, #tpu.memory_space<vmem>>, vector<8x128xf32>
    tpu.vector_store %arg14[%109, %c128_33], %108 {strides = array<i32>} : memref<64x384xf32, #tpu.memory_space<vmem>>, vector<8x128xf32>,
    %111 = vector.broadcast %16 : vector<1x128xf32> to vector<8x128xf32>
    %112 = arith.addf %79, %111 : vector<8x128xf32>
    %113 = arith.maximumf %112, %92 : vector<8x128xf32>
    %114 = arith.subf %112, %113 : vector<8x128xf32>
    %115 = math.exp %114 : vector<8x128xf32>
    %116 = arith.subf %92, %113 : vector<8x128xf32>
    %117 = math.exp %116 : vector<8x128xf32>
    %118 = arith.mulf %115, %86 : vector<8x128xf32>
    %119 = arith.mulf %117, %94 : vector<8x128xf32>
    %120 = arith.addf %118, %119 : vector<8x128xf32>
    %121 = arith.mulf %115, %88 : vector<8x128xf32>
    %122 = arith.addf %121, %117 : vector<8x128xf32>
    %c3_i32 = arith.constant 3 : i32
    %c8_i32_34 = arith.constant 8 : i32
    %123 = arith.muli %c3_i32, %c8_i32_34 : i32
    %124 = tpu.assume_multiple %123, 8 : i32
    %125 = arith.index_cast %124 : i32 to index
    %c0_35 = arith.constant 0 : index
    %126 = vector.load %arg14[%125, %c0_35] : memref<64x384xf32, #tpu.memory_space<vmem>>, vector<8x128xf32>
    %127 = arith.index_cast %124 : i32 to index
    %c128_36 = arith.constant 128 : index
    %128 = vector.load %arg14[%127, %c128_36] : memref<64x384xf32, #tpu.memory_space<vmem>>, vector<8x128xf32>
    %129 = vector.broadcast %15 : vector<1x128xf32> to vector<8x128xf32>
    %130 = arith.addf %129, %126 : vector<8x128xf32>
    %131 = arith.maximumf %113, %130 : vector<8x128xf32>
    %132 = arith.subf %113, %131 : vector<8x128xf32>
    %133 = math.exp %132 : vector<8x128xf32>
    %134 = arith.subf %130, %131 : vector<8x128xf32>
    %135 = math.exp %134 : vector<8x128xf32>
    %136 = arith.mulf %133, %120 : vector<8x128xf32>
    %137 = arith.mulf %135, %128 : vector<8x128xf32>
    %138 = arith.addf %136, %137 : vector<8x128xf32>
    %139 = arith.mulf %133, %122 : vector<8x128xf32>
    %140 = arith.addf %139, %135 : vector<8x128xf32>
    %141 = tpu.reciprocal %140 {approx = true} : vector<8x128xf32> -> vector<8x128xf32>
    %142 = arith.mulf %138, %141 : vector<8x128xf32>
    %143 = arith.index_cast %124 : i32 to index
    %c128_37 = arith.constant 128 : index
    %144 = vector.load %arg14[%143, %c128_37] : memref<64x384xf32, #tpu.memory_space<vmem>>, vector<8x128xf32>
    tpu.vector_store %arg14[%143, %c128_37], %142 {strides = array<i32>} : memref<64x384xf32, #tpu.memory_space<vmem>>, vector<8x128xf32>,
    %145 = vector.broadcast %16 : vector<1x128xf32> to vector<8x128xf32>
    %146 = arith.addf %113, %145 : vector<8x128xf32>
    %147 = arith.maximumf %146, %126 : vector<8x128xf32>
    %148 = arith.subf %146, %147 : vector<8x128xf32>
    %149 = math.exp %148 : vector<8x128xf32>
    %150 = arith.subf %126, %147 : vector<8x128xf32>
    %151 = math.exp %150 : vector<8x128xf32>
    %152 = arith.mulf %149, %120 : vector<8x128xf32>
    %153 = arith.mulf %151, %128 : vector<8x128xf32>
    %154 = arith.addf %152, %153 : vector<8x128xf32>
    %155 = arith.mulf %149, %122 : vector<8x128xf32>
    %156 = arith.addf %155, %151 : vector<8x128xf32>
    %c4_i32 = arith.constant 4 : i32
    %c8_i32_38 = arith.constant 8 : i32
    %157 = arith.muli %c4_i32, %c8_i32_38 : i32
    %158 = tpu.assume_multiple %157, 8 : i32
    %159 = arith.index_cast %158 : i32 to index
    %c0_39 = arith.constant 0 : index
    %160 = vector.load %arg14[%159, %c0_39] : memref<64x384xf32, #tpu.memory_space<vmem>>, vector<8x128xf32>
    %161 = arith.index_cast %158 : i32 to index
    %c128_40 = arith.constant 128 : index
    %162 = vector.load %arg14[%161, %c128_40] : memref<64x384xf32, #tpu.memory_space<vmem>>, vector<8x128xf32>
    %163 = vector.broadcast %15 : vector<1x128xf32> to vector<8x128xf32>
    %164 = arith.addf %163, %160 : vector<8x128xf32>
    %165 = arith.maximumf %147, %164 : vector<8x128xf32>
    %166 = arith.subf %147, %165 : vector<8x128xf32>
    %167 = math.exp %166 : vector<8x128xf32>
    %168 = arith.subf %164, %165 : vector<8x128xf32>
    %169 = math.exp %168 : vector<8x128xf32>
    %170 = arith.mulf %167, %154 : vector<8x128xf32>
    %171 = arith.mulf %169, %162 : vector<8x128xf32>
    %172 = arith.addf %170, %171 : vector<8x128xf32>
    %173 = arith.mulf %167, %156 : vector<8x128xf32>
    %174 = arith.addf %173, %169 : vector<8x128xf32>
    %175 = tpu.reciprocal %174 {approx = true} : vector<8x128xf32> -> vector<8x128xf32>
    %176 = arith.mulf %172, %175 : vector<8x128xf32>
    %177 = arith.index_cast %158 : i32 to index
    %c128_41 = arith.constant 128 : index
    %178 = vector.load %arg14[%177, %c128_41] : memref<64x384xf32, #tpu.memory_space<vmem>>, vector<8x128xf32>
    tpu.vector_store %arg14[%177, %c128_41], %176 {strides = array<i32>} : memref<64x384xf32, #tpu.memory_space<vmem>>, vector<8x128xf32>,
    %179 = vector.broadcast %16 : vector<1x128xf32> to vector<8x128xf32>
    %180 = arith.addf %147, %179 : vector<8x128xf32>
    %181 = arith.maximumf %180, %160 : vector<8x128xf32>
    %182 = arith.subf %180, %181 : vector<8x128xf32>
    %183 = math.exp %182 : vector<8x128xf32>
    %184 = arith.subf %160, %181 : vector<8x128xf32>
    %185 = math.exp %184 : vector<8x128xf32>
    %186 = arith.mulf %183, %154 : vector<8x128xf32>
    %187 = arith.mulf %185, %162 : vector<8x128xf32>
    %188 = arith.addf %186, %187 : vector<8x128xf32>
    %189 = arith.mulf %183, %156 : vector<8x128xf32>
    %190 = arith.addf %189, %185 : vector<8x128xf32>
    %c5_i32 = arith.constant 5 : i32
    %c8_i32_42 = arith.constant 8 : i32
    %191 = arith.muli %c5_i32, %c8_i32_42 : i32
    %192 = tpu.assume_multiple %191, 8 : i32
    %193 = arith.index_cast %192 : i32 to index
    %c0_43 = arith.constant 0 : index
    %194 = vector.load %arg14[%193, %c0_43] : memref<64x384xf32, #tpu.memory_space<vmem>>, vector<8x128xf32>
    %195 = arith.index_cast %192 : i32 to index
    %c128_44 = arith.constant 128 : index
    %196 = vector.load %arg14[%195, %c128_44] : memref<64x384xf32, #tpu.memory_space<vmem>>, vector<8x128xf32>
    %197 = vector.broadcast %15 : vector<1x128xf32> to vector<8x128xf32>
    %198 = arith.addf %197, %194 : vector<8x128xf32>
    %199 = arith.maximumf %181, %198 : vector<8x128xf32>
    %200 = arith.subf %181, %199 : vector<8x128xf32>
    %201 = math.exp %200 : vector<8x128xf32>
    %202 = arith.subf %198, %199 : vector<8x128xf32>
    %203 = math.exp %202 : vector<8x128xf32>
    %204 = arith.mulf %201, %188 : vector<8x128xf32>
    %205 = arith.mulf %203, %196 : vector<8x128xf32>
    %206 = arith.addf %204, %205 : vector<8x128xf32>
    %207 = arith.mulf %201, %190 : vector<8x128xf32>
    %208 = arith.addf %207, %203 : vector<8x128xf32>
    %209 = tpu.reciprocal %208 {approx = true} : vector<8x128xf32> -> vector<8x128xf32>
    %210 = arith.mulf %206, %209 : vector<8x128xf32>
    %211 = arith.index_cast %192 : i32 to index
    %c128_45 = arith.constant 128 : index
    %212 = vector.load %arg14[%211, %c128_45] : memref<64x384xf32, #tpu.memory_space<vmem>>, vector<8x128xf32>
    tpu.vector_store %arg14[%211, %c128_45], %210 {strides = array<i32>} : memref<64x384xf32, #tpu.memory_space<vmem>>, vector<8x128xf32>,
    %213 = vector.broadcast %16 : vector<1x128xf32> to vector<8x128xf32>
    %214 = arith.addf %181, %213 : vector<8x128xf32>
    %215 = arith.maximumf %214, %194 : vector<8x128xf32>
    %216 = arith.subf %214, %215 : vector<8x128xf32>
    %217 = math.exp %216 : vector<8x128xf32>
    %218 = arith.subf %194, %215 : vector<8x128xf32>
    %219 = math.exp %218 : vector<8x128xf32>
    %220 = arith.mulf %217, %188 : vector<8x128xf32>
    %221 = arith.mulf %219, %196 : vector<8x128xf32>
    %222 = arith.addf %220, %221 : vector<8x128xf32>
    %223 = arith.mulf %217, %190 : vector<8x128xf32>
    %224 = arith.addf %223, %219 : vector<8x128xf32>
    %c6_i32 = arith.constant 6 : i32
    %c8_i32_46 = arith.constant 8 : i32
    %225 = arith.muli %c6_i32, %c8_i32_46 : i32
    %226 = tpu.assume_multiple %225, 8 : i32
    %227 = arith.index_cast %226 : i32 to index
    %c0_47 = arith.constant 0 : index
    %228 = vector.load %arg14[%227, %c0_47] : memref<64x384xf32, #tpu.memory_space<vmem>>, vector<8x128xf32>
    %229 = arith.index_cast %226 : i32 to index
    %c128_48 = arith.constant 128 : index
    %230 = vector.load %arg14[%229, %c128_48] : memref<64x384xf32, #tpu.memory_space<vmem>>, vector<8x128xf32>
    %231 = vector.broadcast %15 : vector<1x128xf32> to vector<8x128xf32>
    %232 = arith.addf %231, %228 : vector<8x128xf32>
    %233 = arith.maximumf %215, %232 : vector<8x128xf32>
    %234 = arith.subf %215, %233 : vector<8x128xf32>
    %235 = math.exp %234 : vector<8x128xf32>
    %236 = arith.subf %232, %233 : vector<8x128xf32>
    %237 = math.exp %236 : vector<8x128xf32>
    %238 = arith.mulf %235, %222 : vector<8x128xf32>
    %239 = arith.mulf %237, %230 : vector<8x128xf32>
    %240 = arith.addf %238, %239 : vector<8x128xf32>
    %241 = arith.mulf %235, %224 : vector<8x128xf32>
    %242 = arith.addf %241, %237 : vector<8x128xf32>
    %243 = tpu.reciprocal %242 {approx = true} : vector<8x128xf32> -> vector<8x128xf32>
    %244 = arith.mulf %240, %243 : vector<8x128xf32>
    %245 = arith.index_cast %226 : i32 to index
    %c128_49 = arith.constant 128 : index
    %246 = vector.load %arg14[%245, %c128_49] : memref<64x384xf32, #tpu.memory_space<vmem>>, vector<8x128xf32>
    tpu.vector_store %arg14[%245, %c128_49], %244 {strides = array<i32>} : memref<64x384xf32, #tpu.memory_space<vmem>>, vector<8x128xf32>,
    %247 = vector.broadcast %16 : vector<1x128xf32> to vector<8x128xf32>
    %248 = arith.addf %215, %247 : vector<8x128xf32>
    %249 = arith.maximumf %248, %228 : vector<8x128xf32>
    %250 = arith.subf %248, %249 : vector<8x128xf32>
    %251 = math.exp %250 : vector<8x128xf32>
    %252 = arith.subf %228, %249 : vector<8x128xf32>
    %253 = math.exp %252 : vector<8x128xf32>
    %254 = arith.mulf %251, %222 : vector<8x128xf32>
    %255 = arith.mulf %253, %230 : vector<8x128xf32>
    %256 = arith.addf %254, %255 : vector<8x128xf32>
    %257 = arith.mulf %251, %224 : vector<8x128xf32>
    %258 = arith.addf %257, %253 : vector<8x128xf32>
    %c7_i32 = arith.constant 7 : i32
    %c8_i32_50 = arith.constant 8 : i32
    %259 = arith.muli %c7_i32, %c8_i32_50 : i32
    %260 = tpu.assume_multiple %259, 8 : i32
    %261 = arith.index_cast %260 : i32 to index
    %c0_51 = arith.constant 0 : index
    %262 = vector.load %arg14[%261, %c0_51] : memref<64x384xf32, #tpu.memory_space<vmem>>, vector<8x128xf32>
    %263 = arith.index_cast %260 : i32 to index
    %c128_52 = arith.constant 128 : index
    %264 = vector.load %arg14[%263, %c128_52] : memref<64x384xf32, #tpu.memory_space<vmem>>, vector<8x128xf32>
    %265 = vector.broadcast %15 : vector<1x128xf32> to vector<8x128xf32>
    %266 = arith.addf %265, %262 : vector<8x128xf32>
    %267 = arith.maximumf %249, %266 : vector<8x128xf32>
    %268 = arith.subf %249, %267 : vector<8x128xf32>
    %269 = math.exp %268 : vector<8x128xf32>
    %270 = arith.subf %266, %267 : vector<8x128xf32>
    %271 = math.exp %270 : vector<8x128xf32>
    %272 = arith.mulf %269, %256 : vector<8x128xf32>
    %273 = arith.mulf %271, %264 : vector<8x128xf32>
    %274 = arith.addf %272, %273 : vector<8x128xf32>
    %275 = arith.mulf %269, %258 : vector<8x128xf32>
    %276 = arith.addf %275, %271 : vector<8x128xf32>
    %277 = tpu.reciprocal %276 {approx = true} : vector<8x128xf32> -> vector<8x128xf32>
    %278 = arith.mulf %274, %277 : vector<8x128xf32>
    %279 = arith.index_cast %260 : i32 to index
    %c128_53 = arith.constant 128 : index
    %280 = vector.load %arg14[%279, %c128_53] : memref<64x384xf32, #tpu.memory_space<vmem>>, vector<8x128xf32>
    tpu.vector_store %arg14[%279, %c128_53], %278 {strides = array<i32>} : memref<64x384xf32, #tpu.memory_space<vmem>>, vector<8x128xf32>,
    %281 = vector.broadcast %16 : vector<1x128xf32> to vector<8x128xf32>
    %282 = arith.addf %249, %281 : vector<8x128xf32>
    %283 = arith.maximumf %282, %262 : vector<8x128xf32>
    %284 = arith.subf %282, %283 : vector<8x128xf32>
    %285 = math.exp %284 : vector<8x128xf32>
    %286 = arith.subf %262, %283 : vector<8x128xf32>
    %287 = math.exp %286 : vector<8x128xf32>
    %288 = arith.mulf %285, %256 : vector<8x128xf32>
    %289 = arith.mulf %287, %264 : vector<8x128xf32>
    %290 = arith.addf %288, %289 : vector<8x128xf32>
    %291 = arith.mulf %285, %258 : vector<8x128xf32>
    %292 = arith.addf %291, %287 : vector<8x128xf32>
    %c8_i32_54 = arith.constant 8 : i32
    %c0_55 = arith.constant 0 : index
    %c0_56 = arith.constant 0 : index
    %293 = vector.load %arg16[%c0_55, %c0_56] : memref<8x128xf32, #tpu.memory_space<vmem>>, vector<8x128xf32>
    tpu.vector_store %arg16[%c0_55, %c0_56], %290 {strides = array<i32>} : memref<8x128xf32, #tpu.memory_space<vmem>>, vector<8x128xf32>,
    %c0_57 = arith.constant 0 : index
    %c0_58 = arith.constant 0 : index
    %294 = vector.load %arg17[%c0_57, %c0_58] : memref<8x128xf32, #tpu.memory_space<vmem>>, vector<8x128xf32>
    tpu.vector_store %arg17[%c0_57, %c0_58], %292 {strides = array<i32>} : memref<8x128xf32, #tpu.memory_space<vmem>>, vector<8x128xf32>,
    %c0_59 = arith.constant 0 : index
    %c0_60 = arith.constant 0 : index
    %295 = vector.load %arg18[%c0_59, %c0_60] : memref<8x128xf32, #tpu.memory_space<vmem>>, vector<8x128xf32>
    tpu.vector_store %arg18[%c0_59, %c0_60], %283 {strides = array<i32>} : memref<8x128xf32, #tpu.memory_space<vmem>>, vector<8x128xf32>,
    %c0_61 = arith.constant 0 : index
    %c0_62 = arith.constant 0 : index
    %296 = vector.load %arg12[%c0_61, %c0_62] : memref<8x128xf32, #tpu.memory_space<vmem>>, vector<8x128xf32>
    tpu.vector_store %arg12[%c0_61, %c0_62], %285 {strides = array<i32>} : memref<8x128xf32, #tpu.memory_space<vmem>>, vector<8x128xf32>,
    %c0_63 = arith.constant 0 : index
    %c0_64 = arith.constant 0 : index
    %297 = vector.load %arg13[%c0_63, %c0_64] : memref<8x128xf32, #tpu.memory_space<vmem>>, vector<8x128xf32>
    tpu.vector_store %arg13[%c0_63, %c0_64], %287 {strides = array<i32>} : memref<8x128xf32, #tpu.memory_space<vmem>>, vector<8x128xf32>,
    %c0_65 = arith.constant 0 : index
    %c256 = arith.constant 256 : index
    %298 = vector.load %arg14[%c0_65, %c256] : memref<64x384xf32, #tpu.memory_space<vmem>>, vector<64x128xf32>
    %299 = arith.negf %298 : vector<64x128xf32>
    %300 = math.exp %299 : vector<64x128xf32>
    %cst_66 = arith.constant 1.000000e+00 : f32
    %301 = vector.broadcast %cst_66 : f32 to vector<64x128xf32>
    %302 = arith.addf %301, %300 : vector<64x128xf32>
    %303 = arith.divf %301, %302 : vector<64x128xf32>
    %c0_67 = arith.constant 0 : index
    %c128_68 = arith.constant 128 : index
    %304 = vector.load %arg14[%c0_67, %c128_68] : memref<64x384xf32, #tpu.memory_space<vmem>>, vector<64x128xf32>
    %305 = arith.mulf %303, %304 : vector<64x128xf32>
    %c0_69 = arith.constant 0 : index
    %c0_70 = arith.constant 0 : index
    %306 = vector.load %arg10[%c0_69, %c0_70] : memref<128x128xf32, #tpu.memory_space<vmem>>, vector<128x128xf32>
    %cst_71 = arith.constant dense<0.000000e+00> : vector<64x128xf32>
    %307 = tpu.matmul %305, %306, %cst_71 {dimension_numbers = #tpu.dot_dimension_numbers<[1], [0], [0], [1], [0, 0, 1, 1], [], []>} : vector<64x128xf32>, vector<128x128xf32>, vector<64x128xf32> -> vector<64x128xf32>
    %308 = vector.shape_cast %307 : vector<64x128xf32> to vector<8x8x128xf32>
    %309 = tpu.transpose %308, [1, 0, 2] : vector<8x8x128xf32> -> vector<8x8x128xf32>
    %c0_72 = arith.constant 0 : index
    %c0_73 = arith.constant 0 : index
    %c0_74 = arith.constant 0 : index
    %310 = vector.load %arg11[%c0_72, %c0_73, %c0_74] : memref<8x8x128xf32, #tpu.memory_space<vmem>>, vector<8x8x128xf32>
    tpu.vector_store %arg11[%c0_72, %c0_73, %c0_74], %309 {strides = array<i32>} : memref<8x8x128xf32, #tpu.memory_space<vmem>>, vector<8x8x128xf32>,
    return
  }
  func.func @transform_0(%arg0: i32, %arg1: i32) -> (i32, i32) {
    %c4_i32 = arith.constant 4 : i32
    %0 = arith.muli %arg0, %c4_i32 : i32
    %1 = arith.addi %0, %arg1 : i32
    %c0_i32 = arith.constant 0 : i32
    %c0_i32_0 = arith.constant 0 : i32
    return %1, %c0_i32 : i32, i32
  }
  func.func @transform_1(%arg0: i32, %arg1: i32) -> (i32, i32) {
    %c0_i32 = arith.constant 0 : i32
    %c0_i32_0 = arith.constant 0 : i32
    return %arg0, %c0_i32 : i32, i32
  }
  func.func @transform_2(%arg0: i32, %arg1: i32) -> (i32, i32) {
    %c0_i32 = arith.constant 0 : i32
    %c0_i32_0 = arith.constant 0 : i32
    return %arg0, %c0_i32 : i32, i32
  }
  func.func @transform_3(%arg0: i32, %arg1: i32) -> (i32, i32) {
    %c0_i32 = arith.constant 0 : i32
    %c0_i32_0 = arith.constant 0 : i32
    return %arg0, %c0_i32 : i32, i32
  }
  func.func @transform_4(%arg0: i32, %arg1: i32) -> (i32, i32) {
    %c0_i32 = arith.constant 0 : i32
    %c0_i32_0 = arith.constant 0 : i32
    return %arg0, %c0_i32 : i32, i32
  }
  func.func @transform_5(%arg0: i32, %arg1: i32) -> (i32, i32) {
    %c0_i32 = arith.constant 0 : i32
    %c0_i32_0 = arith.constant 0 : i32
    %c0_i32_1 = arith.constant 0 : i32
    return %c0_i32, %c0_i32_0 : i32, i32
  }
  func.func @transform_6(%arg0: i32, %arg1: i32) -> (i32, i32) {
    %c0_i32 = arith.constant 0 : i32
    %c0_i32_0 = arith.constant 0 : i32
    %c0_i32_1 = arith.constant 0 : i32
    return %c0_i32, %c0_i32_0 : i32, i32
  }
  func.func @transform_7(%arg0: i32, %arg1: i32) -> (i32, i32) {
    %c0_i32 = arith.constant 0 : i32
    %c0_i32_0 = arith.constant 0 : i32
    %c0_i32_1 = arith.constant 0 : i32
    return %c0_i32, %c0_i32_0 : i32, i32
  }
  func.func @transform_8(%arg0: i32, %arg1: i32) -> (i32, i32) {
    %c0_i32 = arith.constant 0 : i32
    %c0_i32_0 = arith.constant 0 : i32
    %c0_i32_1 = arith.constant 0 : i32
    return %c0_i32, %c0_i32_0 : i32, i32
  }
  func.func @transform_9(%arg0: i32, %arg1: i32) -> (i32, i32, i32) {
    %c0_i32 = arith.constant 0 : i32
    %c0_i32_0 = arith.constant 0 : i32
    return %arg0, %arg1, %c0_i32 : i32, i32, i32
  }
  func.func @transform_10(%arg0: i32, %arg1: i32) -> (i32, i32) {
    %c0_i32 = arith.constant 0 : i32
    %c0_i32_0 = arith.constant 0 : i32
    return %arg0, %c0_i32 : i32, i32
  }
  func.func @transform_11(%arg0: i32, %arg1: i32) -> (i32, i32) {
    %c0_i32 = arith.constant 0 : i32
    %c0_i32_0 = arith.constant 0 : i32
    return %arg0, %c0_i32 : i32, i32
  }
}

module attributes {stable_mosaic.version = 11 : i64} {
  func.func @_rwkv_timemix_kernel(%arg0: i32, %arg1: i32, %arg2: memref<64x128xf32, #tpu.memory_space<vmem>>, %arg3: memref<8x128xf32, #tpu.memory_space<vmem>>, %arg4: memref<8x128xf32, #tpu.memory_space<vmem>>, %arg5: memref<8x128xf32, #tpu.memory_space<vmem>>, %arg6: memref<8x128xf32, #tpu.memory_space<vmem>>, %arg7: memref<8x128xf32, #tpu.memory_space<vmem>>, %arg8: memref<128x384xf32, #tpu.memory_space<vmem>>, %arg9: memref<128x384xf32, #tpu.memory_space<vmem>>, %arg10: memref<128x128xf32, #tpu.memory_space<vmem>>, %arg11: memref<64x128xf32, #tpu.memory_space<vmem>>, %arg12: memref<8x128xf32, #tpu.memory_space<vmem>>, %arg13: memref<8x128xf32, #tpu.memory_space<vmem>>, %arg14: memref<64x384xf32, #tpu.memory_space<vmem>>, %arg15: memref<8x128xf32, #tpu.memory_space<vmem>>, %arg16: memref<8x128xf32, #tpu.memory_space<vmem>>, %arg17: memref<8x128xf32, #tpu.memory_space<vmem>>, %arg18: memref<8x128xf32, #tpu.memory_space<vmem>>) attributes {dimension_semantics = [#tpu.dimension_semantics<parallel>, #tpu.dimension_semantics<arbitrary>], iteration_bounds = array<i64: 2, 4>, scalar_prefetch = 0 : i64, scratch_operands = 5 : i64, tpu.core_type = #tpu.core_type<tc>, window_params = [{transform_indices = @transform_0, window_bounds = array<i64: 64, 128>}, {transform_indices = @transform_1, window_bounds = array<i64: 8, 128>}, {transform_indices = @transform_2, window_bounds = array<i64: 8, 128>}, {transform_indices = @transform_3, window_bounds = array<i64: 8, 128>}, {transform_indices = @transform_4, window_bounds = array<i64: 8, 128>}, {pipeline_mode = #tpu.pipeline_mode<synchronous>, transform_indices = @transform_5, window_bounds = array<i64: 8, 128>}, {pipeline_mode = #tpu.pipeline_mode<synchronous>, transform_indices = @transform_6, window_bounds = array<i64: 128, 384>}, {pipeline_mode = #tpu.pipeline_mode<synchronous>, transform_indices = @transform_7, window_bounds = array<i64: 128, 384>}, {pipeline_mode = #tpu.pipeline_mode<synchronous>, transform_indices = @transform_8, window_bounds = array<i64: 128, 128>}, {transform_indices = @transform_9, window_bounds = array<i64: 64, 128>}, {transform_indices = @transform_10, window_bounds = array<i64: 8, 128>}, {transform_indices = @transform_11, window_bounds = array<i64: 8, 128>}]} {
    %c0_i32 = arith.constant 0 : i32
    %0 = arith.cmpi eq, %arg1, %c0_i32 : i32
    %1 = arith.extui %0 : i1 to i32
    %c0_i32_0 = arith.constant 0 : i32
    %2 = arith.cmpi ne, %1, %c0_i32_0 : i32
    scf.if %2 {
      %c0_74 = arith.constant 0 : index
      %c0_75 = arith.constant 0 : index
      %309 = vector.load %arg3[%c0_74, %c0_75] : memref<8x128xf32, #tpu.memory_space<vmem>>, vector<8x128xf32>
      %c0_76 = arith.constant 0 : index
      %c0_77 = arith.constant 0 : index
      %310 = vector.load %arg15[%c0_76, %c0_77] : memref<8x128xf32, #tpu.memory_space<vmem>>, vector<8x128xf32>
      tpu.vector_store %arg15[%c0_76, %c0_77], %309 {strides = array<i32>} : memref<8x128xf32, #tpu.memory_space<vmem>>, vector<8x128xf32>,
      %c0_78 = arith.constant 0 : index
      %c0_79 = arith.constant 0 : index
      %311 = vector.load %arg4[%c0_78, %c0_79] : memref<8x128xf32, #tpu.memory_space<vmem>>, vector<8x128xf32>
      %c0_80 = arith.constant 0 : index
      %c0_81 = arith.constant 0 : index
      %312 = vector.load %arg16[%c0_80, %c0_81] : memref<8x128xf32, #tpu.memory_space<vmem>>, vector<8x128xf32>
      tpu.vector_store %arg16[%c0_80, %c0_81], %311 {strides = array<i32>} : memref<8x128xf32, #tpu.memory_space<vmem>>, vector<8x128xf32>,
      %c0_82 = arith.constant 0 : index
      %c0_83 = arith.constant 0 : index
      %313 = vector.load %arg5[%c0_82, %c0_83] : memref<8x128xf32, #tpu.memory_space<vmem>>, vector<8x128xf32>
      %c0_84 = arith.constant 0 : index
      %c0_85 = arith.constant 0 : index
      %314 = vector.load %arg17[%c0_84, %c0_85] : memref<8x128xf32, #tpu.memory_space<vmem>>, vector<8x128xf32>
      tpu.vector_store %arg17[%c0_84, %c0_85], %313 {strides = array<i32>} : memref<8x128xf32, #tpu.memory_space<vmem>>, vector<8x128xf32>,
      %c0_86 = arith.constant 0 : index
      %c0_87 = arith.constant 0 : index
      %315 = vector.load %arg6[%c0_86, %c0_87] : memref<8x128xf32, #tpu.memory_space<vmem>>, vector<8x128xf32>
      %c0_88 = arith.constant 0 : index
      %c0_89 = arith.constant 0 : index
      %316 = vector.load %arg18[%c0_88, %c0_89] : memref<8x128xf32, #tpu.memory_space<vmem>>, vector<8x128xf32>
      tpu.vector_store %arg18[%c0_88, %c0_89], %315 {strides = array<i32>} : memref<8x128xf32, #tpu.memory_space<vmem>>, vector<8x128xf32>,
    } else {
    }
    %c0 = arith.constant 0 : index
    %c0_1 = arith.constant 0 : index
    %3 = vector.load %arg2[%c0, %c0_1] : memref<64x128xf32, #tpu.memory_space<vmem>>, vector<64x128xf32>
    %c0_2 = arith.constant 0 : index
    %c0_3 = arith.constant 0 : index
    %4 = vector.load %arg15[%c0_2, %c0_3] : memref<8x128xf32, #tpu.memory_space<vmem>>, vector<8x128xf32>
    %5 = vector.extract_strided_slice %3 {offsets = [0, 0], sizes = [56, 128], strides = [1, 1]} : vector<64x128xf32> to vector<56x128xf32>
    %6 = tpu.concatenate %4, %5 in 0 : vector<8x128xf32>, vector<56x128xf32> -> vector<64x128xf32>
    %7 = vector.extract_strided_slice %3 {offsets = [56, 0], sizes = [8, 128], strides = [1, 1]} : vector<64x128xf32> to vector<8x128xf32>
    %c0_4 = arith.constant 0 : index
    %c0_5 = arith.constant 0 : index
    %8 = vector.load %arg15[%c0_4, %c0_5] : memref<8x128xf32, #tpu.memory_space<vmem>>, vector<8x128xf32>
    tpu.vector_store %arg15[%c0_4, %c0_5], %7 {strides = array<i32>} : memref<8x128xf32, #tpu.memory_space<vmem>>, vector<8x128xf32>,
    %c0_6 = arith.constant 0 : index
    %c0_7 = arith.constant 0 : index
    %9 = vector.load %arg8[%c0_6, %c0_7] : memref<128x384xf32, #tpu.memory_space<vmem>>, vector<128x384xf32>
    %cst = arith.constant dense<0.000000e+00> : vector<64x384xf32>
    %10 = tpu.matmul %3, %9, %cst {dimension_numbers = #tpu.dot_dimension_numbers<[1], [0], [0], [1], [0, 0, 1, 1], [], []>} : vector<64x128xf32>, vector<128x384xf32>, vector<64x384xf32> -> vector<64x384xf32>
    %c0_8 = arith.constant 0 : index
    %c0_9 = arith.constant 0 : index
    %11 = vector.load %arg9[%c0_8, %c0_9] : memref<128x384xf32, #tpu.memory_space<vmem>>, vector<128x384xf32>
    %cst_10 = arith.constant dense<0.000000e+00> : vector<64x384xf32>
    %12 = tpu.matmul %6, %11, %cst_10 {dimension_numbers = #tpu.dot_dimension_numbers<[1], [0], [0], [1], [0, 0, 1, 1], [], []>} : vector<64x128xf32>, vector<128x384xf32>, vector<64x384xf32> -> vector<64x384xf32>
    %13 = arith.addf %10, %12 : vector<64x384xf32>
    %c0_11 = arith.constant 0 : index
    %c0_12 = arith.constant 0 : index
    %14 = vector.load %arg14[%c0_11, %c0_12] : memref<64x384xf32, #tpu.memory_space<vmem>>, vector<64x384xf32>
    tpu.vector_store %arg14[%c0_11, %c0_12], %13 {strides = array<i32>} : memref<64x384xf32, #tpu.memory_space<vmem>>, vector<64x384xf32>,
    %c0_13 = arith.constant 0 : index
    %c0_14 = arith.constant 0 : index
    %15 = vector.load %arg7[%c0_13, %c0_14] : memref<8x128xf32, #tpu.memory_space<vmem>>, vector<1x128xf32>
    %c1 = arith.constant 1 : index
    %c0_15 = arith.constant 0 : index
    %16 = vector.load %arg7[%c1, %c0_15] : memref<8x128xf32, #tpu.memory_space<vmem>>, vector<1x128xf32>
    %c0_16 = arith.constant 0 : index
    %c0_17 = arith.constant 0 : index
    %17 = vector.load %arg16[%c0_16, %c0_17] : memref<8x128xf32, #tpu.memory_space<vmem>>, vector<8x128xf32>
    %cst_18 = arith.constant 0.000000e+00 : f32
    %18 = vector.broadcast %cst_18 : f32 to vector<8x128xf32>
    %c0_19 = arith.constant 0 : index
    %c0_20 = arith.constant 0 : index
    %19 = vector.load %arg17[%c0_19, %c0_20] : memref<8x128xf32, #tpu.memory_space<vmem>>, vector<8x128xf32>
    %c0_21 = arith.constant 0 : index
    %c0_22 = arith.constant 0 : index
    %20 = vector.load %arg18[%c0_21, %c0_22] : memref<8x128xf32, #tpu.memory_space<vmem>>, vector<8x128xf32>
    %c0_i32_23 = arith.constant 0 : i32
    %c8_i32 = arith.constant 8 : i32
    %21 = arith.muli %c0_i32_23, %c8_i32 : i32
    %22 = tpu.assume_multiple %21, 8 : i32
    %23 = arith.index_cast %22 : i32 to index
    %c0_24 = arith.constant 0 : index
    %24 = vector.load %arg14[%23, %c0_24] : memref<64x384xf32, #tpu.memory_space<vmem>>, vector<8x128xf32>
    %25 = arith.index_cast %22 : i32 to index
    %c128 = arith.constant 128 : index
    %26 = vector.load %arg14[%25, %c128] : memref<64x384xf32, #tpu.memory_space<vmem>>, vector<8x128xf32>
    %27 = vector.broadcast %15 : vector<1x128xf32> to vector<8x128xf32>
    %28 = arith.addf %27, %24 : vector<8x128xf32>
    %29 = arith.maximumf %20, %28 : vector<8x128xf32>
    %30 = arith.subf %20, %29 : vector<8x128xf32>
    %31 = math.exp %30 : vector<8x128xf32>
    %32 = arith.subf %28, %29 : vector<8x128xf32>
    %33 = math.exp %32 : vector<8x128xf32>
    %34 = arith.mulf %31, %17 : vector<8x128xf32>
    %35 = arith.mulf %33, %26 : vector<8x128xf32>
    %36 = arith.addf %34, %35 : vector<8x128xf32>
    %37 = arith.mulf %31, %19 : vector<8x128xf32>
    %38 = arith.addf %37, %33 : vector<8x128xf32>
    %39 = tpu.reciprocal %38 {approx = true} : vector<8x128xf32> -> vector<8x128xf32>
    %40 = arith.mulf %36, %39 : vector<8x128xf32>
    %41 = arith.index_cast %22 : i32 to index
    %c128_25 = arith.constant 128 : index
    %42 = vector.load %arg14[%41, %c128_25] : memref<64x384xf32, #tpu.memory_space<vmem>>, vector<8x128xf32>
    tpu.vector_store %arg14[%41, %c128_25], %40 {strides = array<i32>} : memref<64x384xf32, #tpu.memory_space<vmem>>, vector<8x128xf32>,
    %43 = vector.broadcast %16 : vector<1x128xf32> to vector<8x128xf32>
    %44 = arith.addf %20, %43 : vector<8x128xf32>
    %45 = arith.maximumf %44, %24 : vector<8x128xf32>
    %46 = arith.subf %44, %45 : vector<8x128xf32>
    %47 = math.exp %46 : vector<8x128xf32>
    %48 = arith.subf %24, %45 : vector<8x128xf32>
    %49 = math.exp %48 : vector<8x128xf32>
    %50 = arith.mulf %47, %17 : vector<8x128xf32>
    %51 = arith.mulf %49, %26 : vector<8x128xf32>
    %52 = arith.addf %50, %51 : vector<8x128xf32>
    %53 = arith.mulf %47, %19 : vector<8x128xf32>
    %54 = arith.addf %53, %49 : vector<8x128xf32>
    %c1_i32 = arith.constant 1 : i32
    %c8_i32_26 = arith.constant 8 : i32
    %55 = arith.muli %c1_i32, %c8_i32_26 : i32
    %56 = tpu.assume_multiple %55, 8 : i32
    %57 = arith.index_cast %56 : i32 to index
    %c0_27 = arith.constant 0 : index
    %58 = vector.load %arg14[%57, %c0_27] : memref<64x384xf32, #tpu.memory_space<vmem>>, vector<8x128xf32>
    %59 = arith.index_cast %56 : i32 to index
    %c128_28 = arith.constant 128 : index
    %60 = vector.load %arg14[%59, %c128_28] : memref<64x384xf32, #tpu.memory_space<vmem>>, vector<8x128xf32>
    %61 = vector.broadcast %15 : vector<1x128xf32> to vector<8x128xf32>
    %62 = arith.addf %61, %58 : vector<8x128xf32>
    %63 = arith.maximumf %45, %62 : vector<8x128xf32>
    %64 = arith.subf %45, %63 : vector<8x128xf32>
    %65 = math.exp %64 : vector<8x128xf32>
    %66 = arith.subf %62, %63 : vector<8x128xf32>
    %67 = math.exp %66 : vector<8x128xf32>
    %68 = arith.mulf %65, %52 : vector<8x128xf32>
    %69 = arith.mulf %67, %60 : vector<8x128xf32>
    %70 = arith.addf %68, %69 : vector<8x128xf32>
    %71 = arith.mulf %65, %54 : vector<8x128xf32>
    %72 = arith.addf %71, %67 : vector<8x128xf32>
    %73 = tpu.reciprocal %72 {approx = true} : vector<8x128xf32> -> vector<8x128xf32>
    %74 = arith.mulf %70, %73 : vector<8x128xf32>
    %75 = arith.index_cast %56 : i32 to index
    %c128_29 = arith.constant 128 : index
    %76 = vector.load %arg14[%75, %c128_29] : memref<64x384xf32, #tpu.memory_space<vmem>>, vector<8x128xf32>
    tpu.vector_store %arg14[%75, %c128_29], %74 {strides = array<i32>} : memref<64x384xf32, #tpu.memory_space<vmem>>, vector<8x128xf32>,
    %77 = vector.broadcast %16 : vector<1x128xf32> to vector<8x128xf32>
    %78 = arith.addf %45, %77 : vector<8x128xf32>
    %79 = arith.maximumf %78, %58 : vector<8x128xf32>
    %80 = arith.subf %78, %79 : vector<8x128xf32>
    %81 = math.exp %80 : vector<8x128xf32>
    %82 = arith.subf %58, %79 : vector<8x128xf32>
    %83 = math.exp %82 : vector<8x128xf32>
    %84 = arith.mulf %81, %52 : vector<8x128xf32>
    %85 = arith.mulf %83, %60 : vector<8x128xf32>
    %86 = arith.addf %84, %85 : vector<8x128xf32>
    %87 = arith.mulf %81, %54 : vector<8x128xf32>
    %88 = arith.addf %87, %83 : vector<8x128xf32>
    %c2_i32 = arith.constant 2 : i32
    %c8_i32_30 = arith.constant 8 : i32
    %89 = arith.muli %c2_i32, %c8_i32_30 : i32
    %90 = tpu.assume_multiple %89, 8 : i32
    %91 = arith.index_cast %90 : i32 to index
    %c0_31 = arith.constant 0 : index
    %92 = vector.load %arg14[%91, %c0_31] : memref<64x384xf32, #tpu.memory_space<vmem>>, vector<8x128xf32>
    %93 = arith.index_cast %90 : i32 to index
    %c128_32 = arith.constant 128 : index
    %94 = vector.load %arg14[%93, %c128_32] : memref<64x384xf32, #tpu.memory_space<vmem>>, vector<8x128xf32>
    %95 = vector.broadcast %15 : vector<1x128xf32> to vector<8x128xf32>
    %96 = arith.addf %95, %92 : vector<8x128xf32>
    %97 = arith.maximumf %79, %96 : vector<8x128xf32>
    %98 = arith.subf %79, %97 : vector<8x128xf32>
    %99 = math.exp %98 : vector<8x128xf32>
    %100 = arith.subf %96, %97 : vector<8x128xf32>
    %101 = math.exp %100 : vector<8x128xf32>
    %102 = arith.mulf %99, %86 : vector<8x128xf32>
    %103 = arith.mulf %101, %94 : vector<8x128xf32>
    %104 = arith.addf %102, %103 : vector<8x128xf32>
    %105 = arith.mulf %99, %88 : vector<8x128xf32>
    %106 = arith.addf %105, %101 : vector<8x128xf32>
    %107 = tpu.reciprocal %106 {approx = true} : vector<8x128xf32> -> vector<8x128xf32>
    %108 = arith.mulf %104, %107 : vector<8x128xf32>
    %109 = arith.index_cast %90 : i32 to index
    %c128_33 = arith.constant 128 : index
    %110 = vector.load %arg14[%109, %c128_33] : memref<64x384xf32, #tpu.memory_space<vmem>>, vector<8x128xf32>
    tpu.vector_store %arg14[%109, %c128_33], %108 {strides = array<i32>} : memref<64x384xf32, #tpu.memory_space<vmem>>, vector<8x128xf32>,
    %111 = vector.broadcast %16 : vector<1x128xf32> to vector<8x128xf32>
    %112 = arith.addf %79, %111 : vector<8x128xf32>
    %113 = arith.maximumf %112, %92 : vector<8x128xf32>
    %114 = arith.subf %112, %113 : vector<8x128xf32>
    %115 = math.exp %114 : vector<8x128xf32>
    %116 = arith.subf %92, %113 : vector<8x128xf32>
    %117 = math.exp %116 : vector<8x128xf32>
    %118 = arith.mulf %115, %86 : vector<8x128xf32>
    %119 = arith.mulf %117, %94 : vector<8x128xf32>
    %120 = arith.addf %118, %119 : vector<8x128xf32>
    %121 = arith.mulf %115, %88 : vector<8x128xf32>
    %122 = arith.addf %121, %117 : vector<8x128xf32>
    %c3_i32 = arith.constant 3 : i32
    %c8_i32_34 = arith.constant 8 : i32
    %123 = arith.muli %c3_i32, %c8_i32_34 : i32
    %124 = tpu.assume_multiple %123, 8 : i32
    %125 = arith.index_cast %124 : i32 to index
    %c0_35 = arith.constant 0 : index
    %126 = vector.load %arg14[%125, %c0_35] : memref<64x384xf32, #tpu.memory_space<vmem>>, vector<8x128xf32>
    %127 = arith.index_cast %124 : i32 to index
    %c128_36 = arith.constant 128 : index
    %128 = vector.load %arg14[%127, %c128_36] : memref<64x384xf32, #tpu.memory_space<vmem>>, vector<8x128xf32>
    %129 = vector.broadcast %15 : vector<1x128xf32> to vector<8x128xf32>
    %130 = arith.addf %129, %126 : vector<8x128xf32>
    %131 = arith.maximumf %113, %130 : vector<8x128xf32>
    %132 = arith.subf %113, %131 : vector<8x128xf32>
    %133 = math.exp %132 : vector<8x128xf32>
    %134 = arith.subf %130, %131 : vector<8x128xf32>
    %135 = math.exp %134 : vector<8x128xf32>
    %136 = arith.mulf %133, %120 : vector<8x128xf32>
    %137 = arith.mulf %135, %128 : vector<8x128xf32>
    %138 = arith.addf %136, %137 : vector<8x128xf32>
    %139 = arith.mulf %133, %122 : vector<8x128xf32>
    %140 = arith.addf %139, %135 : vector<8x128xf32>
    %141 = tpu.reciprocal %140 {approx = true} : vector<8x128xf32> -> vector<8x128xf32>
    %142 = arith.mulf %138, %141 : vector<8x128xf32>
    %143 = arith.index_cast %124 : i32 to index
    %c128_37 = arith.constant 128 : index
    %144 = vector.load %arg14[%143, %c128_37] : memref<64x384xf32, #tpu.memory_space<vmem>>, vector<8x128xf32>
    tpu.vector_store %arg14[%143, %c128_37], %142 {strides = array<i32>} : memref<64x384xf32, #tpu.memory_space<vmem>>, vector<8x128xf32>,
    %145 = vector.broadcast %16 : vector<1x128xf32> to vector<8x128xf32>
    %146 = arith.addf %113, %145 : vector<8x128xf32>
    %147 = arith.maximumf %146, %126 : vector<8x128xf32>
    %148 = arith.subf %146, %147 : vector<8x128xf32>
    %149 = math.exp %148 : vector<8x128xf32>
    %150 = arith.subf %126, %147 : vector<8x128xf32>
    %151 = math.exp %150 : vector<8x128xf32>
    %152 = arith.mulf %149, %120 : vector<8x128xf32>
    %153 = arith.mulf %151, %128 : vector<8x128xf32>
    %154 = arith.addf %152, %153 : vector<8x128xf32>
    %155 = arith.mulf %149, %122 : vector<8x128xf32>
    %156 = arith.addf %155, %151 : vector<8x128xf32>
    %c4_i32 = arith.constant 4 : i32
    %c8_i32_38 = arith.constant 8 : i32
    %157 = arith.muli %c4_i32, %c8_i32_38 : i32
    %158 = tpu.assume_multiple %157, 8 : i32
    %159 = arith.index_cast %158 : i32 to index
    %c0_39 = arith.constant 0 : index
    %160 = vector.load %arg14[%159, %c0_39] : memref<64x384xf32, #tpu.memory_space<vmem>>, vector<8x128xf32>
    %161 = arith.index_cast %158 : i32 to index
    %c128_40 = arith.constant 128 : index
    %162 = vector.load %arg14[%161, %c128_40] : memref<64x384xf32, #tpu.memory_space<vmem>>, vector<8x128xf32>
    %163 = vector.broadcast %15 : vector<1x128xf32> to vector<8x128xf32>
    %164 = arith.addf %163, %160 : vector<8x128xf32>
    %165 = arith.maximumf %147, %164 : vector<8x128xf32>
    %166 = arith.subf %147, %165 : vector<8x128xf32>
    %167 = math.exp %166 : vector<8x128xf32>
    %168 = arith.subf %164, %165 : vector<8x128xf32>
    %169 = math.exp %168 : vector<8x128xf32>
    %170 = arith.mulf %167, %154 : vector<8x128xf32>
    %171 = arith.mulf %169, %162 : vector<8x128xf32>
    %172 = arith.addf %170, %171 : vector<8x128xf32>
    %173 = arith.mulf %167, %156 : vector<8x128xf32>
    %174 = arith.addf %173, %169 : vector<8x128xf32>
    %175 = tpu.reciprocal %174 {approx = true} : vector<8x128xf32> -> vector<8x128xf32>
    %176 = arith.mulf %172, %175 : vector<8x128xf32>
    %177 = arith.index_cast %158 : i32 to index
    %c128_41 = arith.constant 128 : index
    %178 = vector.load %arg14[%177, %c128_41] : memref<64x384xf32, #tpu.memory_space<vmem>>, vector<8x128xf32>
    tpu.vector_store %arg14[%177, %c128_41], %176 {strides = array<i32>} : memref<64x384xf32, #tpu.memory_space<vmem>>, vector<8x128xf32>,
    %179 = vector.broadcast %16 : vector<1x128xf32> to vector<8x128xf32>
    %180 = arith.addf %147, %179 : vector<8x128xf32>
    %181 = arith.maximumf %180, %160 : vector<8x128xf32>
    %182 = arith.subf %180, %181 : vector<8x128xf32>
    %183 = math.exp %182 : vector<8x128xf32>
    %184 = arith.subf %160, %181 : vector<8x128xf32>
    %185 = math.exp %184 : vector<8x128xf32>
    %186 = arith.mulf %183, %154 : vector<8x128xf32>
    %187 = arith.mulf %185, %162 : vector<8x128xf32>
    %188 = arith.addf %186, %187 : vector<8x128xf32>
    %189 = arith.mulf %183, %156 : vector<8x128xf32>
    %190 = arith.addf %189, %185 : vector<8x128xf32>
    %c5_i32 = arith.constant 5 : i32
    %c8_i32_42 = arith.constant 8 : i32
    %191 = arith.muli %c5_i32, %c8_i32_42 : i32
    %192 = tpu.assume_multiple %191, 8 : i32
    %193 = arith.index_cast %192 : i32 to index
    %c0_43 = arith.constant 0 : index
    %194 = vector.load %arg14[%193, %c0_43] : memref<64x384xf32, #tpu.memory_space<vmem>>, vector<8x128xf32>
    %195 = arith.index_cast %192 : i32 to index
    %c128_44 = arith.constant 128 : index
    %196 = vector.load %arg14[%195, %c128_44] : memref<64x384xf32, #tpu.memory_space<vmem>>, vector<8x128xf32>
    %197 = vector.broadcast %15 : vector<1x128xf32> to vector<8x128xf32>
    %198 = arith.addf %197, %194 : vector<8x128xf32>
    %199 = arith.maximumf %181, %198 : vector<8x128xf32>
    %200 = arith.subf %181, %199 : vector<8x128xf32>
    %201 = math.exp %200 : vector<8x128xf32>
    %202 = arith.subf %198, %199 : vector<8x128xf32>
    %203 = math.exp %202 : vector<8x128xf32>
    %204 = arith.mulf %201, %188 : vector<8x128xf32>
    %205 = arith.mulf %203, %196 : vector<8x128xf32>
    %206 = arith.addf %204, %205 : vector<8x128xf32>
    %207 = arith.mulf %201, %190 : vector<8x128xf32>
    %208 = arith.addf %207, %203 : vector<8x128xf32>
    %209 = tpu.reciprocal %208 {approx = true} : vector<8x128xf32> -> vector<8x128xf32>
    %210 = arith.mulf %206, %209 : vector<8x128xf32>
    %211 = arith.index_cast %192 : i32 to index
    %c128_45 = arith.constant 128 : index
    %212 = vector.load %arg14[%211, %c128_45] : memref<64x384xf32, #tpu.memory_space<vmem>>, vector<8x128xf32>
    tpu.vector_store %arg14[%211, %c128_45], %210 {strides = array<i32>} : memref<64x384xf32, #tpu.memory_space<vmem>>, vector<8x128xf32>,
    %213 = vector.broadcast %16 : vector<1x128xf32> to vector<8x128xf32>
    %214 = arith.addf %181, %213 : vector<8x128xf32>
    %215 = arith.maximumf %214, %194 : vector<8x128xf32>
    %216 = arith.subf %214, %215 : vector<8x128xf32>
    %217 = math.exp %216 : vector<8x128xf32>
    %218 = arith.subf %194, %215 : vector<8x128xf32>
    %219 = math.exp %218 : vector<8x128xf32>
    %220 = arith.mulf %217, %188 : vector<8x128xf32>
    %221 = arith.mulf %219, %196 : vector<8x128xf32>
    %222 = arith.addf %220, %221 : vector<8x128xf32>
    %223 = arith.mulf %217, %190 : vector<8x128xf32>
    %224 = arith.addf %223, %219 : vector<8x128xf32>
    %c6_i32 = arith.constant 6 : i32
    %c8_i32_46 = arith.constant 8 : i32
    %225 = arith.muli %c6_i32, %c8_i32_46 : i32
    %226 = tpu.assume_multiple %225, 8 : i32
    %227 = arith.index_cast %226 : i32 to index
    %c0_47 = arith.constant 0 : index
    %228 = vector.load %arg14[%227, %c0_47] : memref<64x384xf32, #tpu.memory_space<vmem>>, vector<8x128xf32>
    %229 = arith.index_cast %226 : i32 to index
    %c128_48 = arith.constant 128 : index
    %230 = vector.load %arg14[%229, %c128_48] : memref<64x384xf32, #tpu.memory_space<vmem>>, vector<8x128xf32>
    %231 = vector.broadcast %15 : vector<1x128xf32> to vector<8x128xf32>
    %232 = arith.addf %231, %228 : vector<8x128xf32>
    %233 = arith.maximumf %215, %232 : vector<8x128xf32>
    %234 = arith.subf %215, %233 : vector<8x128xf32>
    %235 = math.exp %234 : vector<8x128xf32>
    %236 = arith.subf %232, %233 : vector<8x128xf32>
    %237 = math.exp %236 : vector<8x128xf32>
    %238 = arith.mulf %235, %222 : vector<8x128xf32>
    %239 = arith.mulf %237, %230 : vector<8x128xf32>
    %240 = arith.addf %238, %239 : vector<8x128xf32>
    %241 = arith.mulf %235, %224 : vector<8x128xf32>
    %242 = arith.addf %241, %237 : vector<8x128xf32>
    %243 = tpu.reciprocal %242 {approx = true} : vector<8x128xf32> -> vector<8x128xf32>
    %244 = arith.mulf %240, %243 : vector<8x128xf32>
    %245 = arith.index_cast %226 : i32 to index
    %c128_49 = arith.constant 128 : index
    %246 = vector.load %arg14[%245, %c128_49] : memref<64x384xf32, #tpu.memory_space<vmem>>, vector<8x128xf32>
    tpu.vector_store %arg14[%245, %c128_49], %244 {strides = array<i32>} : memref<64x384xf32, #tpu.memory_space<vmem>>, vector<8x128xf32>,
    %247 = vector.broadcast %16 : vector<1x128xf32> to vector<8x128xf32>
    %248 = arith.addf %215, %247 : vector<8x128xf32>
    %249 = arith.maximumf %248, %228 : vector<8x128xf32>
    %250 = arith.subf %248, %249 : vector<8x128xf32>
    %251 = math.exp %250 : vector<8x128xf32>
    %252 = arith.subf %228, %249 : vector<8x128xf32>
    %253 = math.exp %252 : vector<8x128xf32>
    %254 = arith.mulf %251, %222 : vector<8x128xf32>
    %255 = arith.mulf %253, %230 : vector<8x128xf32>
    %256 = arith.addf %254, %255 : vector<8x128xf32>
    %257 = arith.mulf %251, %224 : vector<8x128xf32>
    %258 = arith.addf %257, %253 : vector<8x128xf32>
    %c7_i32 = arith.constant 7 : i32
    %c8_i32_50 = arith.constant 8 : i32
    %259 = arith.muli %c7_i32, %c8_i32_50 : i32
    %260 = tpu.assume_multiple %259, 8 : i32
    %261 = arith.index_cast %260 : i32 to index
    %c0_51 = arith.constant 0 : index
    %262 = vector.load %arg14[%261, %c0_51] : memref<64x384xf32, #tpu.memory_space<vmem>>, vector<8x128xf32>
    %263 = arith.index_cast %260 : i32 to index
    %c128_52 = arith.constant 128 : index
    %264 = vector.load %arg14[%263, %c128_52] : memref<64x384xf32, #tpu.memory_space<vmem>>, vector<8x128xf32>
    %265 = vector.broadcast %15 : vector<1x128xf32> to vector<8x128xf32>
    %266 = arith.addf %265, %262 : vector<8x128xf32>
    %267 = arith.maximumf %249, %266 : vector<8x128xf32>
    %268 = arith.subf %249, %267 : vector<8x128xf32>
    %269 = math.exp %268 : vector<8x128xf32>
    %270 = arith.subf %266, %267 : vector<8x128xf32>
    %271 = math.exp %270 : vector<8x128xf32>
    %272 = arith.mulf %269, %256 : vector<8x128xf32>
    %273 = arith.mulf %271, %264 : vector<8x128xf32>
    %274 = arith.addf %272, %273 : vector<8x128xf32>
    %275 = arith.mulf %269, %258 : vector<8x128xf32>
    %276 = arith.addf %275, %271 : vector<8x128xf32>
    %277 = tpu.reciprocal %276 {approx = true} : vector<8x128xf32> -> vector<8x128xf32>
    %278 = arith.mulf %274, %277 : vector<8x128xf32>
    %279 = arith.index_cast %260 : i32 to index
    %c128_53 = arith.constant 128 : index
    %280 = vector.load %arg14[%279, %c128_53] : memref<64x384xf32, #tpu.memory_space<vmem>>, vector<8x128xf32>
    tpu.vector_store %arg14[%279, %c128_53], %278 {strides = array<i32>} : memref<64x384xf32, #tpu.memory_space<vmem>>, vector<8x128xf32>,
    %281 = vector.broadcast %16 : vector<1x128xf32> to vector<8x128xf32>
    %282 = arith.addf %249, %281 : vector<8x128xf32>
    %283 = arith.maximumf %282, %262 : vector<8x128xf32>
    %284 = arith.subf %282, %283 : vector<8x128xf32>
    %285 = math.exp %284 : vector<8x128xf32>
    %286 = arith.subf %262, %283 : vector<8x128xf32>
    %287 = math.exp %286 : vector<8x128xf32>
    %288 = arith.mulf %285, %256 : vector<8x128xf32>
    %289 = arith.mulf %287, %264 : vector<8x128xf32>
    %290 = arith.addf %288, %289 : vector<8x128xf32>
    %291 = arith.mulf %285, %258 : vector<8x128xf32>
    %292 = arith.addf %291, %287 : vector<8x128xf32>
    %c8_i32_54 = arith.constant 8 : i32
    %c0_55 = arith.constant 0 : index
    %c0_56 = arith.constant 0 : index
    %293 = vector.load %arg16[%c0_55, %c0_56] : memref<8x128xf32, #tpu.memory_space<vmem>>, vector<8x128xf32>
    tpu.vector_store %arg16[%c0_55, %c0_56], %290 {strides = array<i32>} : memref<8x128xf32, #tpu.memory_space<vmem>>, vector<8x128xf32>,
    %c0_57 = arith.constant 0 : index
    %c0_58 = arith.constant 0 : index
    %294 = vector.load %arg17[%c0_57, %c0_58] : memref<8x128xf32, #tpu.memory_space<vmem>>, vector<8x128xf32>
    tpu.vector_store %arg17[%c0_57, %c0_58], %292 {strides = array<i32>} : memref<8x128xf32, #tpu.memory_space<vmem>>, vector<8x128xf32>,
    %c0_59 = arith.constant 0 : index
    %c0_60 = arith.constant 0 : index
    %295 = vector.load %arg18[%c0_59, %c0_60] : memref<8x128xf32, #tpu.memory_space<vmem>>, vector<8x128xf32>
    tpu.vector_store %arg18[%c0_59, %c0_60], %283 {strides = array<i32>} : memref<8x128xf32, #tpu.memory_space<vmem>>, vector<8x128xf32>,
    %c0_61 = arith.constant 0 : index
    %c0_62 = arith.constant 0 : index
    %296 = vector.load %arg12[%c0_61, %c0_62] : memref<8x128xf32, #tpu.memory_space<vmem>>, vector<8x128xf32>
    tpu.vector_store %arg12[%c0_61, %c0_62], %285 {strides = array<i32>} : memref<8x128xf32, #tpu.memory_space<vmem>>, vector<8x128xf32>,
    %c0_63 = arith.constant 0 : index
    %c0_64 = arith.constant 0 : index
    %297 = vector.load %arg13[%c0_63, %c0_64] : memref<8x128xf32, #tpu.memory_space<vmem>>, vector<8x128xf32>
    tpu.vector_store %arg13[%c0_63, %c0_64], %287 {strides = array<i32>} : memref<8x128xf32, #tpu.memory_space<vmem>>, vector<8x128xf32>,
    %c0_65 = arith.constant 0 : index
    %c256 = arith.constant 256 : index
    %298 = vector.load %arg14[%c0_65, %c256] : memref<64x384xf32, #tpu.memory_space<vmem>>, vector<64x128xf32>
    %299 = arith.negf %298 : vector<64x128xf32>
    %300 = math.exp %299 : vector<64x128xf32>
    %cst_66 = arith.constant 1.000000e+00 : f32
    %301 = vector.broadcast %cst_66 : f32 to vector<64x128xf32>
    %302 = arith.addf %301, %300 : vector<64x128xf32>
    %303 = arith.divf %301, %302 : vector<64x128xf32>
    %c0_67 = arith.constant 0 : index
    %c128_68 = arith.constant 128 : index
    %304 = vector.load %arg14[%c0_67, %c128_68] : memref<64x384xf32, #tpu.memory_space<vmem>>, vector<64x128xf32>
    %305 = arith.mulf %303, %304 : vector<64x128xf32>
    %c0_69 = arith.constant 0 : index
    %c0_70 = arith.constant 0 : index
    %306 = vector.load %arg10[%c0_69, %c0_70] : memref<128x128xf32, #tpu.memory_space<vmem>>, vector<128x128xf32>
    %cst_71 = arith.constant dense<0.000000e+00> : vector<64x128xf32>
    %307 = tpu.matmul %305, %306, %cst_71 {dimension_numbers = #tpu.dot_dimension_numbers<[1], [0], [0], [1], [0, 0, 1, 1], [], []>} : vector<64x128xf32>, vector<128x128xf32>, vector<64x128xf32> -> vector<64x128xf32>
    %c0_72 = arith.constant 0 : index
    %c0_73 = arith.constant 0 : index
    %308 = vector.load %arg11[%c0_72, %c0_73] : memref<64x128xf32, #tpu.memory_space<vmem>>, vector<64x128xf32>
    tpu.vector_store %arg11[%c0_72, %c0_73], %307 {strides = array<i32>} : memref<64x128xf32, #tpu.memory_space<vmem>>, vector<64x128xf32>,
    return
  }
  func.func @transform_0(%arg0: i32, %arg1: i32) -> (i32, i32) {
    %c4_i32 = arith.constant 4 : i32
    %0 = arith.muli %arg0, %c4_i32 : i32
    %1 = arith.addi %0, %arg1 : i32
    %c0_i32 = arith.constant 0 : i32
    %c0_i32_0 = arith.constant 0 : i32
    return %1, %c0_i32 : i32, i32
  }
  func.func @transform_1(%arg0: i32, %arg1: i32) -> (i32, i32) {
    %c0_i32 = arith.constant 0 : i32
    %c0_i32_0 = arith.constant 0 : i32
    return %arg0, %c0_i32 : i32, i32
  }
  func.func @transform_2(%arg0: i32, %arg1: i32) -> (i32, i32) {
    %c0_i32 = arith.constant 0 : i32
    %c0_i32_0 = arith.constant 0 : i32
    return %arg0, %c0_i32 : i32, i32
  }
  func.func @transform_3(%arg0: i32, %arg1: i32) -> (i32, i32) {
    %c0_i32 = arith.constant 0 : i32
    %c0_i32_0 = arith.constant 0 : i32
    return %arg0, %c0_i32 : i32, i32
  }
  func.func @transform_4(%arg0: i32, %arg1: i32) -> (i32, i32) {
    %c0_i32 = arith.constant 0 : i32
    %c0_i32_0 = arith.constant 0 : i32
    return %arg0, %c0_i32 : i32, i32
  }
  func.func @transform_5(%arg0: i32, %arg1: i32) -> (i32, i32) {
    %c0_i32 = arith.constant 0 : i32
    %c0_i32_0 = arith.constant 0 : i32
    %c0_i32_1 = arith.constant 0 : i32
    return %c0_i32, %c0_i32_0 : i32, i32
  }
  func.func @transform_6(%arg0: i32, %arg1: i32) -> (i32, i32) {
    %c0_i32 = arith.constant 0 : i32
    %c0_i32_0 = arith.constant 0 : i32
    %c0_i32_1 = arith.constant 0 : i32
    return %c0_i32, %c0_i32_0 : i32, i32
  }
  func.func @transform_7(%arg0: i32, %arg1: i32) -> (i32, i32) {
    %c0_i32 = arith.constant 0 : i32
    %c0_i32_0 = arith.constant 0 : i32
    %c0_i32_1 = arith.constant 0 : i32
    return %c0_i32, %c0_i32_0 : i32, i32
  }
  func.func @transform_8(%arg0: i32, %arg1: i32) -> (i32, i32) {
    %c0_i32 = arith.constant 0 : i32
    %c0_i32_0 = arith.constant 0 : i32
    %c0_i32_1 = arith.constant 0 : i32
    return %c0_i32, %c0_i32_0 : i32, i32
  }
  func.func @transform_9(%arg0: i32, %arg1: i32) -> (i32, i32) {
    %c4_i32 = arith.constant 4 : i32
    %0 = arith.muli %arg0, %c4_i32 : i32
    %1 = arith.addi %0, %arg1 : i32
    %c0_i32 = arith.constant 0 : i32
    %c0_i32_0 = arith.constant 0 : i32
    return %1, %c0_i32 : i32, i32
  }
  func.func @transform_10(%arg0: i32, %arg1: i32) -> (i32, i32) {
    %c0_i32 = arith.constant 0 : i32
    %c0_i32_0 = arith.constant 0 : i32
    return %arg0, %c0_i32 : i32, i32
  }
  func.func @transform_11(%arg0: i32, %arg1: i32) -> (i32, i32) {
    %c0_i32 = arith.constant 0 : i32
    %c0_i32_0 = arith.constant 0 : i32
    return %arg0, %c0_i32 : i32, i32
  }
}

</mosaic_0001>

<bundles_post_ra>
// kernel: tpu_custom_call.1
= control target key start
LH: loop header
LB: loop body
LE: loop exit
PB: predicated region body
PF: predicated region fallthrough
CT: control target
= control target key end

     0   :  { %s4014_s0 = inlined_call_operand.hbm [shape: f32[512,128], index: 0, kind: input, shape index: {}]   ;;  %s4015_s1 = inlined_call_operand.hbm [shape: f32[16,128], index: 1, kind: input, shape index: {}]   ;;  %s4016_s2 = inlined_call_operand.hbm [shape: f32[16,128], index: 2, kind: input, shape index: {}]   ;;  %s4017_s3 = inlined_call_operand.hbm [shape: f32[16,128], index: 3, kind: input, shape index: {}]   ;;  %s4018_s4 = inlined_call_operand.hbm [shape: f32[16,128], index: 4, kind: input, shape index: {}]   ;;  %s4019_s5 = inlined_call_operand.hbm [shape: f32[8,128], index: 5, kind: input, shape index: {}]   ;;  %s4020_s6 = inlined_call_operand.hbm [shape: f32[128,384], index: 6, kind: input, shape index: {}]   ;;  %s4021_s7 = inlined_call_operand.hbm [shape: f32[128,384], index: 7, kind: input, shape index: {}]   ;;  %s4022_s8 = inlined_call_operand.hbm [shape: f32[128,128], index: 8, kind: input, shape index: {}]   ;;  %s4023_s9 = inlined_call_operand.hbm [shape: f32[16,32,128], index: 9, kind: output, shape index: {0}]   ;;  %s4024_s10 = inlined_call_operand.hbm [shape: f32[16,128], index: 10, kind: output, shape index: {1}]   ;;  %s4025_s11 = inlined_call_operand.hbm [shape: f32[16,128], index: 11, kind: output, shape index: {2}]  }
   0x1   :  { %4062 = sst [smem:[#allocation52_spill]] %s4014_s0 }
   0x2   :  { %4063 = sst [smem:[#allocation53_spill]] %s4015_s1 }
   0x3   :  { %4064 = sst [smem:[#allocation54_spill]] %s4016_s2 }
   0x4   :  { %4065 = sst [smem:[#allocation55_spill]] %s4017_s3 }
   0x5   :  { %4066 = sst [smem:[#allocation56_spill]] %s4018_s4 }
   0x6   :  { %4067 = sst [smem:[#allocation57_spill]] %s4019_s5 }
   0x7   :  { %4068 = sst [smem:[#allocation58_spill]] %s4020_s6 }
   0x8   :  { %4069 = sst [smem:[#allocation59_spill]] %s4021_s7 }
   0x9   :  { %4070 = sst [smem:[#allocation60_spill]] %s4022_s8 }
   0xa   :  { %4071 = sst [smem:[#allocation61_spill]] %s4023_s9 }
   0xb   :  { %4072 = sst [smem:[#allocation62_spill]] %s4024_s10 }
   0xc   :  { %4073 = sst [smem:[#allocation63_spill]] %s4025_s11 }
   0xd   :  { %17 = vsyncpa [#allocation8], 0 }
   0xe   :  { %19 = vsyncpa [#allocation8 + $0x1], 0 }
   0xf   :  { %20 = vsyncpa [#allocation11], 0 }
  0x10   :  { %22 = vsyncpa [#allocation11 + $0x1], 0 }
  0x11   :  { %23 = vsyncpa [#allocation14], 0 }
  0x12   :  { %25 = vsyncpa [#allocation14 + $0x1], 0 }
  0x13   :  { %26 = vsyncpa [#allocation17], 0 }
  0x14   :  { %27 = vsyncpa [#allocation20], 0 }
  0x15   :  { %28 = vsyncpa [#allocation9], 0 }
  0x16   :  { %30 = vsyncpa [#allocation9 + $0x1], 0 }
  0x17   :  { %31 = vsyncpa [#allocation24], 0 }
  0x18   :  { %33 = vsyncpa [#allocation24 + $0x1], 0  ;;  %s3018_s17 = smov 0   ;;  %s3020_s18 = smov 0  }
  0x19   :  { %s3022_s19 = smov 0   ;;  %s3024_s20 = smov 0  }
  0x1a   :  { %s3026_s21 = smov 0   ;;  %s3028_s22 = smov 0  }
  0x1b   :  { %s3030_s23 = smov 0   ;;  %s3032_s24 = smov 0  }
  0x1c   :  { %s3034_s25 = smov 0   ;;  %s3036_s26 = smov 0  }
  0x1d   :  { %s3038_s27 = smov 0   ;;  %s3040_s28 = smov 0  }
  0x1e   :  { %s3042_s29 = smov 0   ;;  %s3044_s30 = smov 0  }
  0x1f LB: > { %4074 = sst [smem:[#allocation33_spill]] %s2891_s17  ;;  %s3089_s12 = sadd.s32 4294967295, %s2943_s30   ;;  %s2943_s30 = sphi %s3044_s30, %s39_s30   ;;  %s2939_s29 = sphi %s3042_s29, %s4179_s29   ;;  %s2935_s28 = sphi %s3040_s28, %s4178_s28   ;;  %s2931_s27 = sphi %s3038_s27, %s4177_s27   ;;  %s2927_s26 = sphi %s3036_s26, %s4166_s26   ;;  %s2923_s25 = sphi %s3034_s25, %s4176_s25   ;;  %s2919_s24 = sphi %s3032_s24, %s4175_s24   ;;  %s2915_s23 = sphi %s3030_s23, %s4165_s23   ;;  %s2911_s22 = sphi %s3028_s22, %s4174_s22   ;;  %s2907_s21 = sphi %s3026_s21, %s4173_s21   ;;  %s2903_s20 = sphi %s3024_s20, %s4172_s20   ;;  %s2899_s19 = sphi %s3022_s19, %s4171_s19   ;;  %s2895_s18 = sphi %s3020_s18, %s4170_s18   ;;  %s2891_s17 = sphi %s3018_s17, %s4163_s17  }
  0x20   : > { %4075 = sst [smem:[#allocation34_spill]] %s2895_s18  ;;  %p2031_p0 = scmp.ge.s32.totalorder %s2943_s30, 1 }
  0x21   : > { %4076 = sst [smem:[#allocation35_spill]] %s2907_s21  ;;  %p4033_p1 = scmp.eq.s32.totalorder %s3089_s12, 0 }
  0x22   : > { %4077 = sst [smem:[#allocation36_spill]] %s2919_s24  ;;  %p354_p2 = scmp.lt.s32.totalorder %s2943_s30, 9 }
  0x23   : > { %4078 = sst [smem:[#allocation37_spill]] %s2927_s26  ;;  %s2945_s9 = smov [#allocation16]  }
  0x24   : > { %4079 = sst [smem:[#allocation38_spill]] %s2931_s27  ;;  %p3097_p3 = pnand %p2031_p0, %p354_p2 }
  0x25   : > { %4080 = sst [smem:[#allocation39_spill]] %s2935_s28  ;;  %s368_s11 = sshll.u32 %s2945_s9, 4  ;;  %s369_s11 = int_to_ptr.vmem [resolvable:$true] %s368_s11 }
  0x26   : > { %4081 = sst [smem:[#allocation40_spill]] %s3089_s12  ;;  %p2163_p4 = pneg %p3097_p3 }
  0x27   : > { %s4082_s5 = sld [smem:[#allocation57_spill]]  ;;  %s2946_s9 = smov [#allocation19]  }
  0x28   : > { %s4083_s16 = scalar_select %p3097_p3, 1, 0 }
  0x29   : > { %p3105_p5 = pnand %p2163_p4, %p4033_p1  ;;  %s4086_s7 = sld [smem:[#allocation59_spill]] }
  0x2a   : > { %4084 = sst [smem:[#allocation41_spill]] %s4083_s16  ;;  %s393_s27 = sshll.u32 %s2946_s9, 4  ;;  %s394_s27 = int_to_ptr.vmem [resolvable:$true] %s393_s27 }
  0x2b   : > { %s4034_s26 = smov 384   ;;  %s4035_s16 = smov 24  }
  0x2c   : > { %p4031_p6 = scmp.eq.s32.totalorder %s2943_s30, 0  ;;  %p95_p7 = scmp.ne.s32.totalorder %s2911_s22, %s2907_s21 }
  0x2d   : > { %s366_s15 = sshll.u32 %s4082_s5, 4  ;;  %s4036_s5 = sadd.s32 4294967294, %s2943_s30   ;;  %s367_s15 = int_to_ptr.hbm [resolvable:$true] %s366_s15 }
  0x2e   : > { %2166 = dma.hbm_to_vmem [thread:$0]  (!%p3105_p5), %s367_s15, 128, %s369_s11, [#allocation17]  }
  0x2f   : > { %s391_s10 = sshll.u32 %s4086_s7, 4  ;;  %p101_p8 = scmp.ne.s32.totalorder %s2907_s21, %s2903_s20  ;;  %s392_s10 = int_to_ptr.hbm [resolvable:$true] %s391_s10 }
  0x30   : > { %2172 = dma.hbm_to_vmem [thread:$0]  (!%p3105_p5), %s392_s10, 6144, %s394_s27, [#allocation20], %s4034_s26, %s4034_s26, %s4035_s16  }
  0x31   : > { %p288_p9 = scmp.ne.s32.totalorder %s2899_s19, %s2895_s18  ;;  %p3130_p10 = por %p95_p7, %p4031_p6 }
  0x32   : > { %p289_p11 = scmp.eq.s32.totalorder %s3089_s12, 7  ;;  %p3137_p12 = por %p101_p8, %p4033_p1 }
  0x33   : > { %p294_p13 = scmp.ne.s32.totalorder %s2895_s18, %s2891_s17  ;;  %p295_p2 = scmp.eq.s32.totalorder %s4036_s5, 7 }
  0x34   : > { %s4088_s15 = scalar_select %p3137_p12, 1, 0 }
  0x35   : > { %p3143_p0 = por %p289_p11, %p288_p9  ;;  %p3149_p4 = por %p289_p11, %p95_p7 }
  0x36   : > { %4089 = sst [smem:[#allocation42_spill]] %s4088_s15  ;;  %p4049_p6 = scmp.lt.s32.totalorder %s2943_s30, 8 }
  0x37   : > { %s4090_s10 = scalar_select %p3143_p0, 1, 0 }
  0x38   : > { %s4092_s20 = scalar_select %p3149_p4, 1, 0 }
  0x39   : > { %4091 = sst [smem:[#allocation43_spill]] %s4090_s10  ;;  %p3154_p3 = por %p295_p2, %p294_p13 }
  0x3a   : > { %4093 = sst [smem:[#allocation44_spill]] %s4092_s20  ;;  %p3158_p1 = por %p295_p2, %p101_p8 }
  0x3b   : > { %s4094_s27 = scalar_select %p3154_p3, 1, 0 }
  0x3c   : > { %s4096_s9 = scalar_select %p3158_p1, 1, 0 }
  0x3d   : > { %4095 = sst [smem:[#allocation45_spill]] %s4094_s27  ;;  %s445_s14 = sand.u32 1, %s2943_s30  }
  0x3e   : > { %4097 = sst [smem:[#allocation46_spill]] %s4096_s9  ;;  %s447_s26 = sand.u32 1, %s2911_s22  }
  0x3f   : > { %s3164_s16 = sshll.u32 %s447_s26, 3  ;;  %s3167_s5 = sshll.u32 %s2939_s29, 3 }
  0x40   : > { %s4098_s1 = sld [smem:[#allocation53_spill]]  ;;  %s449_s20 = scalar_lea.vmem [#allocation10], %s3164_s16 }
  0x41   : > { %s457_s27 = sshll.u32 %s449_s20, 4  ;;  %p3178_p7 = pnand %p4049_p6, %p3130_p10  ;;  %s458_s27 = int_to_ptr.vmem [resolvable:$true] %s457_s27 }
  0x42   : > { %s4100_s3 = sld [smem:[#allocation55_spill]]  ;;  %s3186_s7 = scalar_lea.sflag [#allocation11], %s445_s14 }
  0x43   : > { %s3192_s20 = scalar_lea.sflag [#allocation14], %s445_s14  ;;  %s4101_s6 = sld [smem:[#allocation58_spill]] }
  0x44   : > { %s4102_s8 = sld [smem:[#allocation60_spill]]  ;;  %s4104_s4 = smov 384  }
  0x45   : > { %s4050_s15 = smov 128   ;;  %s4051_s9 = smov 8  }
  0x46   : > { %s453_s10 = scalar_lea.hbm %s4098_s1, %s3167_s5  ;;  %p69_p9 = scmp.ne.s32.totalorder %s2923_s25, %s2919_s24 }
  0x47   : > { %s455_s18 = sshll.u32 %s453_s10, 4  ;;  %s487_s10 = scalar_lea.vmem [#allocation13], %s3164_s16  ;;  %s456_s18 = int_to_ptr.hbm [resolvable:$true] %s455_s18 }
  0x48   : > { %s491_s21 = scalar_lea.hbm %s4100_s3, %s3167_s5  ;;  %s495_s11 = sshll.u32 %s487_s10, 4  ;;  %s496_s11 = int_to_ptr.vmem [resolvable:$true] %s495_s11 }
  0x49   : > { %2182 = dma.hbm_to_vmem [thread:$0]  (!%p3178_p7), %s456_s18, 128, %s458_s27, %s3186_s7  }
  0x4a   : > { %s493_s17 = sshll.u32 %s491_s21, 4  ;;  %s377_s1 = sshll.u32 %s4101_s6, 4  ;;  %s494_s17 = int_to_ptr.hbm [resolvable:$true] %s493_s17  ;;  %s378_s1 = int_to_ptr.hbm [resolvable:$true] %s377_s1 }
  0x4b   : > { %2188 = dma.hbm_to_vmem [thread:$0]  (!%p3178_p7), %s494_s17, 128, %s496_s11, %s3192_s20  }
  0x4c   : > { %s2949_s18 = smov [#allocation18]   ;;  %s405_s14 = sshll.u32 %s4102_s8, 4  ;;  %s406_s14 = int_to_ptr.hbm [resolvable:$true] %s405_s14 }
  0x4d   : > { %s379_s21 = sshll.u32 %s2949_s18, 4  ;;  %s4103_s3 = smov 24   ;;  %s380_s21 = int_to_ptr.vmem [resolvable:$true] %s379_s21 }
  0x4e   : > { %2169 = dma.hbm_to_vmem [thread:$0]  (!%p3105_p5), %s378_s1, 6144, %s380_s21, [#allocation17], %s4104_s4, %s4104_s4, %s4103_s3  }
  0x4f   : > { %s2950_s17 = smov [#allocation21]   ;;  %s48_s1 = sadd.s32 1, %s2935_s28 }
  0x50   : > { %s407_s11 = sshll.u32 %s2950_s17, 4  ;;  %s51_s3 = sadd.s32 1, %s2939_s29  ;;  %s408_s11 = int_to_ptr.vmem [resolvable:$true] %s407_s11 }
  0x51   : > { %2175 = dma.hbm_to_vmem [thread:$0]  (!%p3105_p5), %s406_s14, 2048, %s408_s11, [#allocation20], %s4050_s15, %s4050_s15, %s4051_s9  }
  0x52   : > { %p49_p8 = scmp.ge.s32.totalorder %s48_s1, 4  ;;  %s2029_s4 = sshll.u32 %s2939_s29, 2 }
  0x53   : > { %s56_s18 = sadd.s32 %s2935_s28, %s2029_s4  ;;  %s62_s21 = sadd.s32 1, %s2923_s25 }
  0x54   : > { %s4181_s1 = smov (%p49_p8, %s48_s1), 0  ;;  %s4183_s3 = smov (!%p49_p8, %s51_s3), %s2939_s29 }
  0x55   : > { %4105 = sst [smem:[#allocation47_spill]] %s4181_s1  ;;  %p75_p10 = scmp.ne.s32.totalorder %s2919_s24, %s2915_s23 }
  0x56   : > { %p53_p11 = scmp.ge.s32.totalorder %s4183_s3, 2  ;;  %s274_s13 = ssub.s32 %s2935_s28, %s4181_s1 }
  0x57   : > { %p4106_p5 = scmp.eq.s32.totalorder %s2943_s30, 0  ;;  %p4108_p2 = scmp.eq.s32.totalorder %s3089_s12, 0 }
  0x58   : > { %s4185_s3 = smov (%p53_p11, %s4183_s3), 0  ;;  %s278_s23 = sadd.s32 1, %s2899_s19 }
  0x59   : > { %p3229_p13 = por %p4106_p5, %p69_p9  ;;  %p3235_p6 = por %p4108_p2, %p75_p10 }
  0x5a   : > { %4111 = sst [smem:[#allocation49_spill]] %s4185_s3  ;;  %s421_s14 = sand.u32 1, %s2923_s25  }
  0x5b   : > { %s4109_s10 = scalar_select %p3235_p6, 1, 0 }
  0x5c   : > { %s2030_s17 = sshll.u32 %s4185_s3, 2  ;;  %s85_s11 = ssub.s32 %s2939_s29, %s4185_s3 }
  0x5d   : > { %4110 = sst [smem:[#allocation48_spill]] %s4109_s10  ;;  %s58_s4 = sadd.s32 %s2030_s17, %s4181_s1 }
  0x5e   : > { %p86_p8 = scmp.eq.s32.totalorder %s85_s11, 0  ;;  %s59_s15 = ssub.s32 %s56_s18, %s58_s4 }
  0x5f   : > { %s275_s9 = sor.u32 %s274_s13, %s85_s11  ;;  %p60_p9 = scmp.eq.s32.totalorder %s59_s15, 0 }
  0x60   : > { %p276_p10 = scmp.eq.s32.totalorder %s275_s9, 0  ;;  %s4112_s6 = sadd.s32 1, %s2911_s22 }
  0x61   : > { %s3250_s8 = scalar_select %p86_p8, %s2911_s22, %s4112_s6  }
  0x62   : > { %s3253_s28 = scalar_select %p60_p9, %s2923_s25, %s62_s21  }
  0x63   : > { %s3256_s12 = scalar_select %p276_p10, %s2899_s19, %s278_s23  }
  0x64   : > { %s2037_s10 = sshll.u32 %s421_s14, 6  ;;  %s2081_s24 = sshll.u32 %s56_s18, 6 }
  0x65   : > { %s4113_s0 = sld [smem:[#allocation52_spill]]  ;;  %s425_s13 = scalar_lea.vmem [#allocation7], %s2037_s10 }
  0x66   : > { %s435_s15 = sshll.u32 %s425_s13, 4  ;;  %p4114_p11 = scmp.lt.s32.totalorder %s2943_s30, 8  ;;  %s436_s15 = int_to_ptr.vmem [resolvable:$true] %s435_s15 }
  0x67   : > { %s4115_s2 = sld [smem:[#allocation54_spill]]  ;;  %s422_s23 = scalar_lea.sflag [#allocation8], %s421_s14 }
  0x68   : > { %p2177_p5 = pnand %p4114_p11, %p3229_p13  ;;  %s4116_s11 = smov 8  }
  0x69   : > { %s468_s10 = scalar_lea.vmem [#allocation12], %s3164_s16  ;;  %s4118_s13 = sld [smem:[#allocation56_spill]] }
  0x6a   : > { %s476_s17 = sshll.u32 %s468_s10, 4  ;;  %s506_s6 = scalar_lea.vmem [#allocation15], %s3164_s16  ;;  %s477_s17 = int_to_ptr.vmem [resolvable:$true] %s476_s17 }
  0x6b   : > { %s432_s4 = scalar_lea.hbm %s4113_s0, %s2081_s24  ;;  %s4117_s24 = smov 128  }
  0x6c   : > { %s433_s9 = sshll.u32 %s432_s4, 4  ;;  %s514_s21 = sshll.u32 %s506_s6, 4  ;;  %s434_s9 = int_to_ptr.hbm [resolvable:$true] %s433_s9  ;;  %s515_s21 = int_to_ptr.vmem [resolvable:$true] %s514_s21 }
  0x6d   : > { %s472_s18 = scalar_lea.hbm %s4115_s2, %s3167_s5  ;;  %s4119_s14 = sld [smem:[#allocation41_spill]] }
  0x6e   : > { %s474_s3 = sshll.u32 %s472_s18, 4  ;;  %s475_s3 = int_to_ptr.hbm [resolvable:$true] %s474_s3 }
  0x6f   : > { %2179 = dma.hbm_to_vmem [thread:$0]  (!%p2177_p5), %s434_s9, 1024, %s436_s15, %s422_s23, %s4117_s24, %s4117_s24, %s4116_s11  }
  0x70   : > { %2185 = dma.hbm_to_vmem [thread:$0]  (!%p3178_p7), %s475_s3, 128, %s477_s17, %s3186_s7  }
  0x71   : > { %s510_s0 = scalar_lea.hbm %s4118_s13, %s3167_s5 }
  0x72   : > { %s512_s1 = sshll.u32 %s510_s0, 4  ;;  %s513_s1 = int_to_ptr.hbm [resolvable:$true] %s512_s1 }
  0x73   : > { %2191 = dma.hbm_to_vmem [thread:$0]  (!%p3178_p7), %s513_s1, 128, %s515_s21, %s3192_s20  }
  0x74   : > { %p4120_p13 = scmp.ne.s32.totalorder %s4119_s14, 0 }
  0x76   : > { %523 = sbr.rel (%p4120_p13) target bundleno = 659 (0x293), region = 56 }
  0x7b   : > { %s4121_s15 = sld [smem:[#allocation36_spill]] }
  0x81   : > { %s525_s18 = sand.u32 1, %s4121_s15  }
  0x82   : > { %s2050_s23 = sshll.u32 %s525_s18, 6  ;;  %s526_s11 = scalar_lea.sflag [#allocation8], %s525_s18 }
  0x83   : > { %s3287_s7 = scalar_lea.vmem [#allocation7], %s2050_s23 }
  0x84   : > { %2862 = dma.done.wait (%p3235_p6), %s526_s11, 1024  }
  0x85   : > { %2864 = vsyncadd (%p3235_p6), %s526_s11, 4294966272  ;;  %s4123_s0 = sld [smem:[#allocation40_spill]] }
  0x86   : > { %s4124_s16 = sld [smem:[#allocation35_spill]] }
  0x8b   : > { %s3294_s26 = sand.u32 1, %s4123_s0  }
  0x8c   : > { %s537_s20 = sand.u32 1, %s4124_s16   ;;  %s536_s3 = scalar_lea.sflag [#allocation11], %s3294_s26 }
  0x8d   : > { %s3297_s1 = sshll.u32 %s537_s20, 3 }
  0x8e   : > { %s539_s24 = scalar_lea.vmem [#allocation10], %s3297_s1 }
  0x8f   : > { %2866 = dma.done.wait (%p3137_p12), %s536_s3, 256  }
  0x90   : > { %2868 = vsyncadd (%p3137_p12), %s536_s3, 4294967040  ;;  %s549_s10 = scalar_lea.vmem [#allocation12], %s3297_s1  ;;  %s556_s17 = scalar_lea.sflag [#allocation14], %s3294_s26 }
  0x91   : > { %s559_s27 = scalar_lea.vmem [#allocation13], %s3297_s1 }
  0x92   : > { %2870 = dma.done.wait (%p3137_p12), %s556_s17, 256  }
  0x93   : > { %2872 = vsyncadd (%p3137_p12), %s556_s17, 4294967040  ;;  %s569_s4 = scalar_lea.vmem [#allocation15], %s3297_s1  ;;  %p4126_p6 = scmp.eq.s32.totalorder %s4123_s0, 0 }
  0x95   : > { %2874 = dma.done.wait (%p4126_p6), [#allocation17], 6272   ;;  %p4127_p7 = pmov %p4126_p6 }
  0x96   : > { %p4128_p2 = pmov %p4126_p6 }
  0x97   : > { %2876 = vsyncadd (%p4127_p7), [#allocation17], 4294961024 }
  0x98   : > { %2878 = dma.done.wait (%p4128_p2), [#allocation20], 8192   ;;  %p4129_p8 = pmov %p4128_p2 }
  0x99   : > { %s4130_s13 = sld [smem:[#allocation34_spill]]  ;;  %s651_s15 = scalar_lea.vmem [#allocation23], %s3297_s1 }
  0x9a   : > { %2880 = vsyncadd (%p4129_p8), [#allocation20], 4294959104  ;;  %s658_s9 = scalar_lea.vmem [#allocation25], %s3297_s1  ;;  %s4131_s18 = sld [smem:[#allocation37_spill]] }
  0x9f   : > { %s4061_s6 = sand.u32 1, %s4130_s13  }
  0xa0   : > { %s2059_s21 = sshll.u32 %s4061_s6, 6  ;;  %p2062_p12 = scmp.ne.s32.totalorder %s4131_s18, 0 }
  0xa1   : > { %s3324_s14 = scalar_lea.vmem [#allocation22], %s2059_s21 }
  0xa2   : > { %666 = sbr.rel (%p2062_p12) target bundleno = 172 (0xac), region = 96 }
  0xa7   : > { %v667_v0 = vld [vmem:[%s539_s24] sm:$0xff]  ;;  %v669_v1 = vld [vmem:[%s549_s10] sm:$0xff] }
  0xa8   : > { %v671_v2 = vld [vmem:[%s559_s27] sm:$0xff]  ;;  %668 = vst [vmem:[#allocation3] sm:$0xff] %v667_v0  ;;  %v673_v3 = vld [vmem:[%s569_s4] sm:$0xff] }
  0xa9   : > { %670 = vst [vmem:[#allocation4] sm:$0xff] %v669_v1 }
  0xaa   : > { %672 = vst [vmem:[#allocation5] sm:$0xff] %v671_v2 }
  0xab   : > { %674 = vst [vmem:[#allocation6] sm:$0xff] %v673_v3 }
  0xac PF: > { %v778_v4 = vld [vmem:[#allocation19 + $0x168] sm:$0xff]  ;;  %v779_v5 = vld [vmem:[#allocation19 + $0x170] sm:$0xff]  ;;  %v776_v7 = vld [vmem:[#allocation19 + $0x158] sm:$0xff]  ;;  %s4148_s23 = sld [smem:[#allocation38_spill]]  ;;  %s1731_s3 = sshll.u32 %s651_s15, 4  ;;  %s1732_s3 = int_to_ptr.vmem [resolvable:$true] %s1731_s3 }
  0xad   : > { %v775_v6 = vld [vmem:[#allocation19 + $0x150] sm:$0xff]  ;;  %781 = vmatpush.msra.mxu0 %v778_v4  ;;  %2083 = vmatpush.msra.mxu3 %v778_v4  ;;  %v772_v8 = vld [vmem:[#allocation19 + $0x138] sm:$0xff]  ;;  %v773_v9 = vld [vmem:[#allocation19 + $0x140] sm:$0xff]  ;;  %s4150_s5 = sld [smem:[#allocation62_spill]]  ;;  %s1695_s10 = scalar_lea.sflag [#allocation24], %s3294_s26 }
  0xae   : > { %822 = vmatpush.msra.mxu1 %v779_v5  ;;  %v769_v10 = vld [vmem:[#allocation19 + $0x120] sm:$0xff]  ;;  %v770_v11 = vld [vmem:[#allocation19 + $0x128] sm:$0xff]  ;;  %v767_v13 = vld [vmem:[#allocation19 + $0x110] sm:$0xff] }
  0xaf   : > { %782 = vmatpush.msra.mxu0 %v775_v6  ;;  %2084 = vmatpush.msra.mxu3 %v775_v6  ;;  %v766_v12 = vld [vmem:[#allocation19 + $0x108] sm:$0xff]  ;;  %v763_v14 = vld [vmem:[#allocation19 + $0xf0] sm:$0xff]  ;;  %v764_v15 = vld [vmem:[#allocation19 + $0xf8] sm:$0xff] }
  0xb0   : > { %823 = vmatpush.msra.mxu1 %v776_v7  ;;  %v760_v16 = vld [vmem:[#allocation19 + $0xd8] sm:$0xff]  ;;  %v761_v17 = vld [vmem:[#allocation19 + $0xe0] sm:$0xff]  ;;  %v758_v19 = vld [vmem:[#allocation19 + $0xc8] sm:$0xff] }
  0xb1   : > { %783 = vmatpush.msra.mxu0 %v772_v8  ;;  %2085 = vmatpush.msra.mxu3 %v772_v8  ;;  %v757_v18 = vld [vmem:[#allocation19 + $0xc0] sm:$0xff]  ;;  %v754_v20 = vld [vmem:[#allocation19 + $0xa8] sm:$0xff]  ;;  %v755_v21 = vld [vmem:[#allocation19 + $0xb0] sm:$0xff] }
  0xb2   : > { %824 = vmatpush.msra.mxu1 %v773_v9  ;;  %v780_v22 = vld [vmem:[#allocation19 + $0x178] sm:$0xff]  ;;  %v751_v23 = vld [vmem:[#allocation19 + $0x90] sm:$0xff]  ;;  %v777_v24 = vld [vmem:[#allocation19 + $0x160] sm:$0xff] }
  0xb3   : > { %784 = vmatpush.msra.mxu0 %v769_v10  ;;  %2086 = vmatpush.msra.mxu3 %v769_v10  ;;  %v752_v25 = vld [vmem:[#allocation19 + $0x98] sm:$0xff]  ;;  %v774_v26 = vld [vmem:[#allocation19 + $0x148] sm:$0xff]  ;;  %v749_v28 = vld [vmem:[#allocation19 + $0x80] sm:$0xff]  ;;  %s2741_s21 = scalar_lea.hbm %s4150_s5, 16 }
  0xb4   : > { %825 = vmatpush.msra.mxu1 %v770_v11  ;;  %863 = vmatpush.msra.mxu2 %v780_v22  ;;  %v748_v27 = vld [vmem:[#allocation19 + $0x78] sm:$0xff]  ;;  %v771_v29 = vld [vmem:[#allocation19 + $0x130] sm:$0xff]  ;;  %v745_v30 = vld [vmem:[#allocation19 + $0x60] sm:$0xff] }
  0xb5   : > { %785 = vmatpush.msra.mxu0 %v766_v12  ;;  %2087 = vmatpush.msra.mxu3 %v766_v12  ;;  %v746_v31 = vld [vmem:[#allocation19 + $0x68] sm:$0xff]  ;;  %v768_v32 = vld [vmem:[#allocation19 + $0x118] sm:$0xff]  ;;  %v743_v34 = vld [vmem:[#allocation19 + $0x50] sm:$0xff] }
  0xb6   : > { %826 = vmatpush.msra.mxu1 %v767_v13  ;;  %864 = vmatpush.msra.mxu2 %v777_v24  ;;  %v742_v33 = vld [vmem:[#allocation19 + $0x48] sm:$0xff]  ;;  %v765_v35 = vld [vmem:[#allocation19 + $0x100] sm:$0xff]  ;;  %v739_v36 = vld [vmem:[#allocation19 + $0x30] sm:$0xff] }
  0xb7   : > { %786 = vmatpush.msra.mxu0 %v763_v14  ;;  %2088 = vmatpush.msra.mxu3 %v763_v14  ;;  %v740_v37 = vld [vmem:[#allocation19 + $0x38] sm:$0xff]  ;;  %v762_v38 = vld [vmem:[#allocation19 + $0xe8] sm:$0xff]  ;;  %v737_v40 = vld [vmem:[#allocation19 + $0x20] sm:$0xff] }
  0xb8   : > { %827 = vmatpush.msra.mxu1 %v764_v15  ;;  %865 = vmatpush.msra.mxu2 %v774_v26  ;;  %v736_v39 = vld [vmem:[#allocation19 + $0x18] sm:$0xff]  ;;  %v759_v41 = vld [vmem:[#allocation19 + $0xd0] sm:$0xff]  ;;  %v733_v42 = vld [vmem:[#allocation19] sm:$0xff] }
  0xb9   : > { %787 = vmatpush.msra.mxu0 %v760_v16  ;;  %2089 = vmatpush.msra.mxu3 %v760_v16  ;;  %v734_v43 = vld [vmem:[#allocation19 + $0x8] sm:$0xff]  ;;  %v3329_v44 = vld [vmem:[#allocation3] sm:$0xff]  ;;  %v3332_v45 = vld [vmem:[%s3287_s7 + $0x18] sm:$0xff] }
  0xba   : > { %828 = vmatpush.msra.mxu1 %v761_v17  ;;  %866 = vmatpush.msra.mxu2 %v771_v29  ;;  %v731_v46 = vld [vmem:[#allocation18 + $0x170] sm:$0xff]  ;;  %v730_v47 = vld [vmem:[#allocation18 + $0x168] sm:$0xff]  ;;  %v756_v48 = vld [vmem:[#allocation19 + $0xb8] sm:$0xff] }
  0xbb   : > { %788 = vmatpush.msra.mxu0 %v757_v18  ;;  %2090 = vmatpush.msra.mxu3 %v757_v18  ;;  %v728_v49 = vld [vmem:[#allocation18 + $0x158] sm:$0xff]  ;;  %v727_v50 = vld [vmem:[#allocation18 + $0x150] sm:$0xff]  ;;  %v753_v51 = vld [vmem:[#allocation19 + $0xa0] sm:$0xff] }
  0xbc   : > { %829 = vmatpush.msra.mxu1 %v758_v19  ;;  %867 = vmatpush.msra.mxu2 %v768_v32  ;;  %v725_v52 = vld [vmem:[#allocation18 + $0x140] sm:$0xff]  ;;  %v724_v53 = vld [vmem:[#allocation18 + $0x138] sm:$0xff]  ;;  %v750_v55 = vld [vmem:[#allocation19 + $0x88] sm:$0xff] }
  0xbd   : > { %789 = vmatpush.msra.mxu0 %v754_v20  ;;  %2091 = vmatpush.msra.mxu3 %v754_v20  ;;  %v3337_v54 = vld [vmem:[#allocation18 + $0x178] sm:$0xff]  ;;  %v3339_v56 = vld [vmem:[#allocation18 + $0x160] sm:$0xff]  ;;  %v722_v57 = vld [vmem:[#allocation18 + $0x128] sm:$0xff] }
  0xbe   : > { %830 = vmatpush.msra.mxu1 %v755_v21  ;;  %868 = vmatpush.msra.mxu2 %v765_v35  ;;  %v721_v58 = vld [vmem:[#allocation18 + $0x120] sm:$0xff]  ;;  %v3343_v59 = vld [vmem:[%s3287_s7] sm:$0xff]  ;;  %v719_v61 = vld [vmem:[#allocation18 + $0x110] sm:$0xff] }
  0xbf   : > { %790 = vmatpush.msra.mxu0 %v751_v23  ;;  %2092 = vmatpush.msra.mxu3 %v751_v23  ;;  %v3346_v60 = vld [vmem:[%s3287_s7 + $0x20] sm:$0xff]  ;;  %v718_v62 = vld [vmem:[#allocation18 + $0x108] sm:$0xff]  ;;  %v747_v63 = vld [vmem:[#allocation19 + $0x70] sm:$0xff] }
  0xc0   : > { %831 = vmatpush.msra.mxu1 %v752_v25  ;;  %869 = vmatpush.msra.mxu2 %v762_v38  ;;  %v716_v0 = vld [vmem:[#allocation18 + $0xf8] sm:$0xff]  ;;  %v3351_v1 = vld [vmem:[#allocation18 + $0x148] sm:$0xff]  ;;  %v715_v2 = vld [vmem:[#allocation18 + $0xf0] sm:$0xff] }
  0xc1   : > { %791 = vmatpush.msra.mxu0 %v748_v27  ;;  %2093 = vmatpush.msra.mxu3 %v748_v27  ;;  %v744_v3 = vld [vmem:[#allocation19 + $0x58] sm:$0xff]  ;;  %v713_v4 = vld [vmem:[#allocation18 + $0xe0] sm:$0xff]  ;;  %v3354_v5 = vld [vmem:[#allocation18 + $0x130] sm:$0xff] }
  0xc2   : > { %832 = vmatpush.msra.mxu1 %v749_v28  ;;  %870 = vmatpush.msra.mxu2 %v759_v41  ;;  %v712_v6 = vld [vmem:[#allocation18 + $0xd8] sm:$0xff]  ;;  %v741_v7 = vld [vmem:[#allocation19 + $0x40] sm:$0xff]  ;;  %v710_v8 = vld [vmem:[#allocation18 + $0xc8] sm:$0xff] }
  0xc3   : > { %792 = vmatpush.msra.mxu0 %v745_v30  ;;  %2094 = vmatpush.msra.mxu3 %v745_v30  ;;  %v3357_v9 = vld [vmem:[#allocation18 + $0x118] sm:$0xff]  ;;  %v709_v10 = vld [vmem:[#allocation18 + $0xc0] sm:$0xff]  ;;  %v707_v13 = vld [vmem:[#allocation18 + $0xb0] sm:$0xff] }
  0xc4   : > { %833 = vmatpush.msra.mxu1 %v746_v31  ;;  %871 = vmatpush.msra.mxu2 %v756_v48  ;;  %v3360_v11 = vld [vmem:[%s3287_s7 + $0x8] sm:$0xff]  ;;  %v706_v14 = vld [vmem:[#allocation18 + $0xa8] sm:$0xff]  ;;  %v704_v17 = vld [vmem:[#allocation18 + $0x98] sm:$0xff] }
  0xc5   : > { %793 = vmatpush.msra.mxu0 %v742_v33  ;;  %2095 = vmatpush.msra.mxu3 %v742_v33  ;;  %v3364_v12 = vld [vmem:[%s3287_s7 + $0x28] sm:$0xff]  ;;  %v738_v15 = vld [vmem:[#allocation19 + $0x28] sm:$0xff]  ;;  %v703_v18 = vld [vmem:[#allocation18 + $0x90] sm:$0xff] }
  0xc6   : > { %834 = vmatpush.msra.mxu1 %v743_v34  ;;  %872 = vmatpush.msra.mxu2 %v753_v51  ;;  %v3368_v16 = vld [vmem:[#allocation18 + $0x100] sm:$0xff]  ;;  %v735_v19 = vld [vmem:[#allocation19 + $0x10] sm:$0xff]  ;;  %v3372_v20 = vld [vmem:[#allocation18 + $0xe8] sm:$0xff] }
  0xc7   : > { %794 = vmatpush.msra.mxu0 %v739_v36  ;;  %2096 = vmatpush.msra.mxu3 %v739_v36  ;;  %v701_v21 = vld [vmem:[#allocation18 + $0x80] sm:$0xff]  ;;  %v700_v22 = vld [vmem:[#allocation18 + $0x78] sm:$0xff]  ;;  %v3375_v23 = vld [vmem:[#allocation18 + $0xd0] sm:$0xff] }
  0xc8   : > { %835 = vmatpush.msra.mxu1 %v740_v37  ;;  %873 = vmatpush.msra.mxu2 %v750_v55  ;;  %v698_v24 = vld [vmem:[#allocation18 + $0x68] sm:$0xff]  ;;  %v697_v25 = vld [vmem:[#allocation18 + $0x60] sm:$0xff]  ;;  %v695_v28 = vld [vmem:[#allocation18 + $0x50] sm:$0xff] }
  0xc9   : > { %795 = vmatpush.msra.mxu0 %v736_v39  ;;  %2097 = vmatpush.msra.mxu3 %v736_v39  ;;  %v3379_v26 = vld [vmem:[%s3287_s7 + $0x10] sm:$0xff]  ;;  %v708_v30 = vld [vmem:[#allocation18 + $0xb8] sm:$0xff]  ;;  %v691_v32 = vld [vmem:[#allocation18 + $0x30] sm:$0xff] }
  0xca   : > { %836 = vmatpush.msra.mxu1 %v737_v40  ;;  %874 = vmatpush.msra.mxu2 %v747_v63  ;;  %v3382_v27 = vld [vmem:[%s3287_s7 + $0x30] sm:$0xff]  ;;  %v692_v31 = vld [vmem:[#allocation18 + $0x38] sm:$0xff]  ;;  %v705_v33 = vld [vmem:[#allocation18 + $0xa0] sm:$0xff] }
  0xcb   : > { %796 = vmatpush.msra.mxu0 %v733_v42  ;;  %2098 = vmatpush.msra.mxu3 %v733_v42  ;;  %v694_v29 = vld [vmem:[#allocation18 + $0x48] sm:$0xff]  ;;  %v689_v34 = vld [vmem:[#allocation18 + $0x20] sm:$0xff]  ;;  %v688_v35 = vld [vmem:[#allocation18 + $0x18] sm:$0xff] }
  0xcc   : > { %837 = vmatpush.msra.mxu1 %v734_v43  ;;  %797 = vmatmul.f32.vlgmr.msra.gmra.mxu0 %v3329_v44  ;;  %v686_v36 = vld [vmem:[#allocation18 + $0x8] sm:$0xff]  ;;  %v685_v38 = vld [vmem:[#allocation18] sm:$0xff]  ;;  %v699_v39 = vld [vmem:[#allocation18 + $0x70] sm:$0xff] }
  0xcd   : > { %809 = vmatmul.f32.vlgmr.msra.gmra.mxu3 %v3332_v45  ;;  %838 = vmatmul.f32.vlgmr.msra.gmra.mxu1 %v3329_v44  ;;  %v702_v37 = vld [vmem:[#allocation18 + $0x88] sm:$0xff]  ;;  %v696_v40 = vld [vmem:[#allocation18 + $0x58] sm:$0xff]  ;;  %v693_v41 = vld [vmem:[#allocation18 + $0x40] sm:$0xff] }
  0xce   : > { %945 = vmatpush.msrb.mxu0 %v731_v46  ;;  %904 = vmatpush.msrb.mxu3 %v730_v47  ;;  %v690_v42 = vld [vmem:[#allocation18 + $0x28] sm:$0xff]  ;;  %v687_v43 = vld [vmem:[#allocation18 + $0x10] sm:$0xff] }
  0xcf   : > { %2099 = vmatpush.msrb.mxu1 %v3337_v54  ;;  %875 = vmatpush.msra.mxu2 %v744_v3 }
  0xd0   : > { %946 = vmatpush.msrb.mxu0 %v728_v49  ;;  %905 = vmatpush.msrb.mxu3 %v727_v50 }
  0xd1   : > { %2100 = vmatpush.msrb.mxu1 %v3339_v56  ;;  %876 = vmatpush.msra.mxu2 %v741_v7 }
  0xd2   : > { %947 = vmatpush.msrb.mxu0 %v725_v52  ;;  %906 = vmatpush.msrb.mxu3 %v724_v53 }
  0xd3   : > { %2101 = vmatpush.msrb.mxu1 %v3351_v1  ;;  %877 = vmatpush.msra.mxu2 %v738_v15 }
  0xd4   : > { %948 = vmatpush.msrb.mxu0 %v722_v57  ;;  %907 = vmatpush.msrb.mxu3 %v721_v58 }
  0xd5   : > { %800 = vmatmul.f32.gmra.mxu0 %v3343_v59  ;;  %812 = vmatmul.f32.gmra.mxu3 %v3346_v60 }
  0xd6   : > { %841 = vmatmul.f32.gmra.mxu1 %v3343_v59  ;;  %949 = vmatpush.msrb.mxu0 %v719_v61  ;;  %v1055_v61 = vld [vmem:[#allocation6] sm:$0xff] }
  0xd7   : > { %908 = vmatpush.msrb.mxu3 %v718_v62  ;;  %2102 = vmatpush.msrb.mxu1 %v3354_v5 }
  0xd8   : > { %950 = vmatpush.msrb.mxu0 %v716_v0  ;;  %878 = vmatpush.msra.mxu2 %v735_v19 }
  0xd9   : > { %909 = vmatpush.msrb.mxu3 %v715_v2  ;;  %2103 = vmatpush.msrb.mxu1 %v3357_v9 }
  0xda   : > { %951 = vmatpush.msrb.mxu0 %v713_v4  ;;  %879 = vmatmul.f32.vlgmr.msra.gmra.mxu2 %v3329_v44  ;;  %v682_v44 = vld [vmem:[%s3287_s7 + $0x38] sm:$0xff]  ;;  %v3457_v4 = vld [vmem:[#allocation16] ss:$0 sm:$0xff]  ;;  %s2077_s7 = sshll.u32 %s4148_s23, 3 }
  0xdb   : > { %910 = vmatpush.msrb.mxu3 %v712_v6  ;;  %2104 = vmatpush.msrb.mxu1 %v3368_v16  ;;  %684 = vst [vmem:[#allocation3] sm:$0xff] %v682_v44  ;;  %s1729_s20 = scalar_lea.hbm %s4150_s5, %s2077_s7 }
  0xdc   : > { %952 = vmatpush.msrb.mxu0 %v710_v8  ;;  %s1733_s24 = sshll.u32 %s1729_s20, 4  ;;  %s1734_s24 = int_to_ptr.hbm [resolvable:$true] %s1733_s24 }
  0xdd   : > { %911 = vmatpush.msrb.mxu3 %v709_v10  ;;  %803 = vmatmul.f32.gmra.mxu0 %v3360_v11  ;;  %s2735_s17 = sshra.s32 %s1734_s24, 4  ;;  %s2736_s17 = int_to_ptr.hbm [resolvable:$true] %s2735_s17 }
  0xde   : > { %815 = vmatmul.f32.gmra.mxu3 %v3364_v12  ;;  %844 = vmatmul.f32.gmra.mxu1 %v3360_v11  ;;  %s2737_s27 = scalar_lea.hbm %s2736_s17, 8  ;;  %p2742_p5 = scmp.lt.s32.totalorder %s2736_s17, %s4150_s5 }
  0xdf   : > { %953 = vmatpush.msrb.mxu0 %v707_v13  ;;  %912 = vmatpush.msrb.mxu3 %v706_v14  ;;  %p2738_p9 = scmp.ne.s32.totalorder %s2736_s17, %s2737_s27  ;;  %p2743_p13 = scmp.lt.s32.totalorder %s2741_s21, %s2737_s27 }
  0xe0   : > { %2105 = vmatpush.msrb.mxu1 %v3372_v20 }
  0xe1   : > { %954 = vmatpush.msrb.mxu0 %v704_v17  ;;  %913 = vmatpush.msrb.mxu3 %v703_v18  ;;  %v1525_v17 = vld [vmem:[#allocation21 + $0x70] sm:$0xff]  ;;  %p2739_p10 = pnand %p2738_p9, %p3149_p4  ;;  %p2744_p6 = por %p2743_p13, %p2742_p5 }
  0xe2   : > { %2106 = vmatpush.msrb.mxu1 %v3375_v23  ;;  %882 = vmatmul.f32.gmra.mxu2 %v3343_v59 }
  0xe3   : > { %955 = vmatpush.msrb.mxu0 %v701_v21  ;;  %914 = vmatpush.msrb.mxu3 %v700_v22  ;;  %p2740_p11 = pneg %p2739_p10 }
  0xe4   : > { %2107 = vmatpush.msrb.mxu1 %v708_v30 }
  0xe5   : > { %956 = vmatpush.msrb.mxu0 %v698_v24  ;;  %915 = vmatpush.msrb.mxu3 %v697_v25  ;;  %p2745_p7 = pnand %p2744_p6, %p2740_p11 }
  0xe6   : > { %806 = vmatmul.f32.gmra.mxu0 %v3379_v26  ;;  %818 = vmatmul.f32.gmra.mxu3 %v3382_v27 }
  0xe7   : > { %847 = vmatmul.f32.gmra.mxu1 %v3379_v26  ;;  %957 = vmatpush.msrb.mxu0 %v695_v28 }
  0xe8   : > { %916 = vmatpush.msrb.mxu3 %v694_v29  ;;  %2108 = vmatpush.msrb.mxu1 %v705_v33 }
  0xe9   : > { %958 = vmatpush.msrb.mxu0 %v692_v31 }
  0xea   : > { %917 = vmatpush.msrb.mxu3 %v691_v32  ;;  %2109 = vmatpush.msrb.mxu1 %v702_v37 }
  0xeb   : > { %959 = vmatpush.msrb.mxu0 %v689_v34  ;;  %885 = vmatmul.f32.gmra.mxu2 %v3360_v11 }
  0xec   : > { %918 = vmatpush.msrb.mxu3 %v688_v35  ;;  %2110 = vmatpush.msrb.mxu1 %v699_v39 }
  0xed   : > { %960 = vmatpush.msrb.mxu0 %v686_v36 }
  0xee   : > { %919 = vmatpush.msrb.mxu3 %v685_v38  ;;  %961 = vmatmul.f32.vlgmr.msrb.gmra.mxu0 %v3343_v59 }
  0xef   : > { %850 = vmatmul.f32.gmra.mxu1 %v3332_v45  ;;  %920 = vmatmul.f32.vlgmr.msrb.gmra.mxu3 %v3343_v59 }
  0xf0   : > { %986 = vmatpush.msra.mxu0 %v3337_v54  ;;  %2111 = vmatpush.msrb.mxu1 %v696_v40 }
  0xf2   : > { %987 = vmatpush.msra.mxu0 %v3339_v56  ;;  %2112 = vmatpush.msrb.mxu1 %v693_v41 }
  0xf3   : > { %888 = vmatmul.f32.gmra.mxu2 %v3379_v26 }
  0xf4   : > { %988 = vmatpush.msra.mxu0 %v3351_v1  ;;  %2113 = vmatpush.msrb.mxu1 %v690_v42 }
  0xf6   : > { %964 = vmatmul.f32.gmra.mxu0 %v3360_v11  ;;  %2114 = vmatpush.msrb.mxu1 %v687_v43 }
  0xf7   : > { %853 = vmatmul.f32.gmra.mxu1 %v3346_v60  ;;  %923 = vmatmul.f32.gmra.mxu3 %v3360_v11 }
  0xf8   : > { %989 = vmatpush.msra.mxu0 %v3354_v5 }
  0xfa   : > { %990 = vmatpush.msra.mxu0 %v3357_v9 }
  0xfb   : > { %891 = vmatmul.f32.gmra.mxu2 %v3332_v45 }
  0xfc   : > { %991 = vmatpush.msra.mxu0 %v3368_v16  ;;  %v1526_v16 = vld [vmem:[#allocation21 + $0x78] sm:$0xff] }
  0xfd   : > { %1527 = vmatpush.msrb.mxu2 %v1526_v16  ;;  %2115 = vmatpush.msra.mxu3 %v1526_v16 }
  0xfe   : > { %967 = vmatmul.f32.gmra.mxu0 %v3379_v26 }
  0xff   : > { %856 = vmatmul.f32.gmra.mxu1 %v3364_v12  ;;  %926 = vmatmul.f32.gmra.mxu3 %v3379_v26 }
 0x100   : > { %992 = vmatpush.msra.mxu0 %v3372_v20  ;;  %1528 = vmatpush.msrb.mxu2 %v1525_v17 }
 0x101   : > { %2116 = vmatpush.msra.mxu3 %v1525_v17 }
 0x102   : > { %993 = vmatpush.msra.mxu0 %v3375_v23 }
 0x103   : > { %894 = vmatmul.f32.gmra.mxu2 %v3346_v60 }
 0x104   : > { %994 = vmatpush.msra.mxu0 %v708_v30 }
 0x106   : > { %970 = vmatmul.f32.gmra.mxu0 %v3332_v45 }
 0x107   : > { %859 = vmatmul.f32.gmra.mxu1 %v3382_v27  ;;  %929 = vmatmul.f32.gmra.mxu3 %v3332_v45 }
 0x108   : > { %995 = vmatpush.msra.mxu0 %v705_v33  ;;  %v3480_v33 = vld [vmem:[#allocation4] sm:$0xff] }
 0x10a   : > { %996 = vmatpush.msra.mxu0 %v702_v37 }
 0x10b   : > { %897 = vmatmul.f32.gmra.mxu2 %v3364_v12 }
 0x10c   : > { %997 = vmatpush.msra.mxu0 %v699_v39 }
 0x10e   : > { %973 = vmatmul.f32.gmra.mxu0 %v3346_v60 }
 0x10f   : > { %932 = vmatmul.f32.gmra.mxu3 %v3346_v60  ;;  %1008 = vmatmul.f32.vlgmr.msrb.gmra.mxu1 %v3379_v26 }
 0x110   : > { %998 = vmatpush.msra.mxu0 %v696_v40 }
 0x112   : > { %999 = vmatpush.msra.mxu0 %v693_v41 }
 0x113   : > { %900 = vmatmul.f32.gmra.mxu2 %v3382_v27 }
 0x114   : > { %1000 = vmatpush.msra.mxu0 %v690_v42  ;;  %v1524_v42 = vld [vmem:[#allocation21 + $0x68] sm:$0xff] }
 0x115   : > { %1529 = vmatpush.msrb.mxu2 %v1524_v42  ;;  %2117 = vmatpush.msra.mxu3 %v1524_v42 }
 0x116   : > { %976 = vmatmul.f32.gmra.mxu0 %v3364_v12 }
 0x117   : > { %935 = vmatmul.f32.gmra.mxu3 %v3364_v12  ;;  %1011 = vmatmul.f32.gmra.mxu1 %v3332_v45 }
 0x118   : > { %1001 = vmatpush.msra.mxu0 %v687_v43  ;;  %v1523_v43 = vld [vmem:[#allocation21 + $0x60] sm:$0xff] }
 0x119   : > { %1530 = vmatpush.msrb.mxu2 %v1523_v43  ;;  %2118 = vmatpush.msra.mxu3 %v1523_v43 }
 0x11e   : > { %979 = vmatmul.f32.gmra.mxu0 %v3382_v27 }
 0x11f   : > { %938 = vmatmul.f32.gmra.mxu3 %v3382_v27  ;;  %1014 = vmatmul.f32.gmra.mxu1 %v3346_v60  ;;  %v3450_v60 = vld [vmem:[#allocation16 + $0x1] ss:$0 sm:$0xff] }
 0x120   : > { %v1079_v62 = vadd.f32 %v3450_v60, %v1055_v61 }
 0x126   : > { %982 = vmatmul.f32.gmra.mxu0 %v682_v44 }
 0x127   : > { %941 = vmatmul.f32.gmra.mxu3 %v682_v44  ;;  %1017 = vmatmul.f32.gmra.mxu1 %v3364_v12 }
 0x12e   : > { %1002 = vmatmul.f32.vlgmr.msra.gmra.mxu0 %v3343_v59 }
 0x12f   : > { %1020 = vmatmul.f32.gmra.mxu1 %v3382_v27 }
 0x136   : > { %1005 = vmatmul.f32.gmra.mxu0 %v3360_v11 }
 0x137   : > { %1023 = vmatmul.f32.gmra.mxu1 %v682_v44 }
 0x149   : > { %v798_v45 = vpop.f32.mrf.mxu0 }
 0x14a   : > { %v839_v46 = vpop.f32.mrf.mxu1 }
 0x150   : > { %v3430_v47 = vpop.f32.mrf.mxu3 }
 0x152   : > { %v801_v48 = vpop.f32.mrf.mxu0 }
 0x153   : > { %v3432_v49 = vpop.f32.mrf.mxu1 }
 0x158   : > { %v3434_v50 = vpop.f32.mrf.mxu3 }
 0x15a   : > { %v804_v51 = vpop.f32.mrf.mxu0 }
 0x15b   : > { %v3436_v52 = vpop.f32.mrf.mxu1 }
 0x15d   : > { %v3448_v59 = vpop.f32.mrf.mxu2 }
 0x161   : > { %v3438_v53 = vpop.f32.mrf.mxu3 }
 0x163   : > { %v3440_v54 = vpop.f32.mrf.mxu0 }
 0x164   : > { %v3442_v55 = vpop.f32.mrf.mxu1 }
 0x165   : > { %v3459_v5 = vpop.f32.mrf.mxu2 }
 0x169   : > { %v3444_v56 = vpop.f32.mrf.mxu3 }
 0x16b   : > { %v962_v57 = vpop.f32.mrf.mxu0 }
 0x16c   : > { %v3446_v58 = vpop.f32.mrf.mxu1  ;;  %v3482_v34 = vadd.f32 %v962_v57, %v839_v46 }
 0x16e   : > { %v3477_v24 = vpop.f32.mrf.mxu2 }
 0x172   : > { %v921_v63 = vpop.f32.mrf.mxu3 }
 0x173   : > { %v922_v0 = vadd.f32 %v921_v63, %v798_v45  ;;  %v3453_v1 = vpop.f32.mrf.mxu0 }
 0x174   : > { %v3455_v2 = vpop.f32.mrf.mxu1 }
 0x175   : > { %v1080_v3 = vmax.f32 %v1079_v62, %v922_v0  ;;  %v3462_v10 = vadd.f32 %v3457_v4, %v922_v0 }
 0x177   : > { %v1081_v6 = vsub.f32 %v1079_v62, %v1080_v3  ;;  %v1084_v7 = vsub.f32 %v922_v0, %v1080_v3  ;;  %v1113_v13 = vadd.f32 %v3450_v60, %v1080_v3  ;;  %v3473_v20 = vmax.f32 %v1055_v61, %v3462_v10  ;;  %v1054_v62 = vld [vmem:[#allocation5] sm:$0xff] }
 0x178   : > { %v966_v0 = vadd.f32 %v3453_v1, %v3432_v49 }
 0x179   : > { %v1082_v8 = vmul.f32 1.442695, %v1081_v6  ;;  %v1085_v9 = vmul.f32 1.442695, %v1084_v7  ;;  %v1064_v31 = vsub.f32 %v1055_v61, %v3473_v20  ;;  %v1067_v63 = vsub.f32 %v3462_v10, %v3473_v20 }
 0x17a   : > { %v924_v11 = vpop.f32.mrf.mxu3 }
 0x17b   : > { %2339 = vpow2.f32 %v1082_v8  ;;  %v925_v12 = vadd.f32 %v924_v11, %v801_v48  ;;  %v3465_v14 = vpop.f32.mrf.mxu0  ;;  %v1065_v45 = vmul.f32 1.442695, %v1064_v31 }
 0x17c   : > { %2341 = vpow2.f32 %v1085_v9  ;;  %v3467_v15 = vpop.f32.mrf.mxu1 }
 0x17d   : > { %v1097_v18 = vadd.f32 %v3457_v4, %v925_v12  ;;  %v3470_v19 = vmax.f32 %v1113_v13, %v925_v12 }
 0x17f   : > { %v1098_v21 = vmax.f32 %v1080_v3, %v1097_v18  ;;  %v1115_v22 = vsub.f32 %v1113_v13, %v3470_v19  ;;  %v1118_v23 = vsub.f32 %v925_v12, %v3470_v19  ;;  %v1147_v39 = vadd.f32 %v3450_v60, %v3470_v19  ;;  %v3507_v12 = vpop.f32.mrf.mxu2 }
 0x181   : > { %v2340_v25 = vpop.eup %2339  ;;  %v1099_v26 = vsub.f32 %v1080_v3, %v1098_v21  ;;  %v1102_v27 = vsub.f32 %v1097_v18, %v1098_v21  ;;  %v1116_v28 = vmul.f32 1.442695, %v1115_v22  ;;  %v1119_v29 = vmul.f32 1.442695, %v1118_v23 }
 0x182   : > { %v2342_v30 = vpop.eup %2341  ;;  %v927_v32 = vpop.f32.mrf.mxu3  ;;  %v1087_v44 = vmul.f32 %v2340_v25, %v3480_v33  ;;  %v1090_v18 = vmul.f32 %v2340_v25, %v1054_v62 }
 0x183   : > { %v1100_v35 = vmul.f32 1.442695, %v1099_v26  ;;  %v1103_v36 = vmul.f32 1.442695, %v1102_v27  ;;  %2343 = vpow2.f32 %v1116_v28  ;;  %v3484_v37 = vpop.f32.mrf.mxu0  ;;  %v928_v38 = vadd.f32 %v927_v32, %v804_v51 }
 0x184   : > { %2345 = vpow2.f32 %v1119_v29  ;;  %v3488_v40 = vpop.f32.mrf.mxu1  ;;  %v1088_v41 = vmul.f32 %v2342_v30, %v3482_v34  ;;  %v1068_v28 = vmul.f32 1.442695, %v1067_v63  ;;  %v3529_v32 = vadd.f32 %v2342_v30, %v1090_v18 }
 0x185   : > { %2347 = vpow2.f32 %v1100_v35  ;;  %v3493_v46 = vadd.f32 %v3457_v4, %v928_v38  ;;  %v3495_v48 = vmax.f32 %v1147_v39, %v928_v38  ;;  %v1522_v35 = vld [vmem:[#allocation21 + $0x58] sm:$0xff] }
 0x186   : > { %2349 = vpow2.f32 %v1103_v36  ;;  %v1089_v3 = vadd.f32 %v1088_v41, %v1087_v44  ;;  %v1521_v36 = vld [vmem:[#allocation21 + $0x50] sm:$0xff]  ;;  %1531 = vmatpush.msrb.mxu2 %v1522_v35  ;;  %2119 = vmatpush.msra.mxu3 %v1522_v35 }
 0x187   : > { %v1149_v51 = vsub.f32 %v1147_v39, %v3495_v48  ;;  %v1152_v57 = vsub.f32 %v928_v38, %v3495_v48  ;;  %2351 = vpow2.f32 %v1065_v45  ;;  %v1132_v7 = vmax.f32 %v3470_v19, %v3493_v46 }
 0x188   : > { %v1181_v11 = vadd.f32 %v3450_v60, %v3495_v48  ;;  %v3534_v39 = vadd.f32 %v3465_v14, %v3436_v52  ;;  %1532 = vmatpush.msrb.mxu2 %v1521_v36  ;;  %2120 = vmatpush.msra.mxu3 %v1521_v36 }
 0x189   : > { %v2344_v61 = vpop.eup %2343  ;;  %v1150_v8 = vmul.f32 1.442695, %v1149_v51  ;;  %v1153_v16 = vmul.f32 1.442695, %v1152_v57  ;;  %v1136_v41 = vsub.f32 %v3493_v46, %v1132_v7 }
 0x18a   : > { %v2346_v6 = vpop.eup %2345  ;;  %v930_v9 = vpop.f32.mrf.mxu3  ;;  %v1121_v17 = vmul.f32 %v2344_v61, %v1089_v3  ;;  %v1124_v44 = vmul.f32 %v2344_v61, %v3529_v32 }
 0x18b   : > { %v3509_v13 = vpop.eup %2347  ;;  %v1122_v10 = vmul.f32 %v2346_v6, %v966_v0  ;;  %v931_v49 = vadd.f32 %v930_v9, %v3440_v54  ;;  %v3512_v1 = vpop.f32.mrf.mxu0  ;;  %2353 = vpow2.f32 %v1150_v8  ;;  %v1133_v54 = vsub.f32 %v3470_v19, %v1132_v7 }
 0x18c   : > { %v1009_v20 = vpop.f32.mrf.mxu1  ;;  %v3514_v21 = vpop.eup %2349  ;;  %2355 = vpow2.f32 %v1153_v16  ;;  %v1105_v27 = vmul.f32 %v3509_v13, %v1089_v3  ;;  %v1137_v7 = vmul.f32 1.442695, %v1136_v41 }
 0x18d   : > { %v3516_v22 = vmax.f32 %v1181_v11, %v931_v49  ;;  %v3519_v23 = vadd.f32 %v3457_v4, %v931_v49  ;;  %v3521_v26 = vadd.f32 %v1122_v10, %v1121_v17  ;;  %v3527_v31 = vpop.eup %2351  ;;  %v1106_v38 = vmul.f32 %v3514_v21, %v966_v0 }
 0x18e   : > { %v1010_v45 = vadd.f32 %v1009_v20, %v3477_v24  ;;  %2357 = vpow2.f32 %v1068_v28  ;;  %v1134_v52 = vmul.f32 1.442695, %v1133_v54  ;;  %v3549_v24 = vpop.f32.mrf.mxu2  ;;  %v1073_v8 = vmul.f32 %v3527_v31, %v1054_v62  ;;  %v1520_v28 = vld [vmem:[#allocation21 + $0x48] sm:$0xff] }
 0x18f   : > { %v1183_v29 = vsub.f32 %v1181_v11, %v3516_v22  ;;  %v1186_v25 = vsub.f32 %v931_v49, %v3516_v22  ;;  %v1166_v30 = vmax.f32 %v3495_v48, %v3519_v23  ;;  %v3541_v57 = vadd.f32 %v1106_v38, %v1105_v27  ;;  %1533 = vmatpush.msrb.mxu2 %v1520_v28 }
 0x190   : > { %v1215_v0 = vadd.f32 %v3450_v60, %v3516_v22  ;;  %v3553_v11 = vadd.f32 %v2346_v6, %v1124_v44  ;;  %v2065_v16 = vmul.f32 -1.442695, %v1010_v45  ;;  %2121 = vmatpush.msra.mxu3 %v1520_v28 }
 0x191   : > { %v1184_v42 = vmul.f32 1.442695, %v1183_v29  ;;  %v1187_v19 = vmul.f32 1.442695, %v1186_v25  ;;  %v2354_v43 = vpop.eup %2353  ;;  %v1167_v10 = vsub.f32 %v3495_v48, %v1166_v30  ;;  %v3571_v48 = vadd.f32 %v3484_v37, %v3442_v55 }
 0x192   : > { %v933_v51 = vpop.f32.mrf.mxu3  ;;  %v2356_v63 = vpop.eup %2355  ;;  %v1155_v9 = vmul.f32 %v2354_v43, %v3521_v26  ;;  %v1158_v18 = vmul.f32 %v2354_v43, %v3553_v11 }
 0x193   : > { %v3543_v14 = vpop.f32.mrf.mxu0  ;;  %v1156_v46 = vmul.f32 %v2356_v63, %v3534_v39  ;;  %2359 = vpow2.f32 %v1187_v19  ;;  %v934_v61 = vadd.f32 %v933_v51, %v3430_v47  ;;  %v1170_v47 = vsub.f32 %v3519_v23, %v1166_v30  ;;  %v1519_v23 = vld [vmem:[#allocation21 + $0x40] sm:$0xff] }
 0x194   : > { %v1012_v3 = vpop.f32.mrf.mxu1  ;;  %2361 = vpow2.f32 %v1184_v42  ;;  %v3567_v27 = vpop.eup %2357  ;;  %v1168_v29 = vmul.f32 1.442695, %v1167_v10  ;;  %v3579_v43 = vadd.f32 %v2356_v63, %v1158_v18  ;;  %1534 = vmatpush.msrb.mxu2 %v1519_v23  ;;  %2122 = vmatpush.msra.mxu3 %v1519_v23 }
 0x195   : > { %v3556_v49 = vmax.f32 %v1215_v0, %v934_v61  ;;  %2363 = vpow2.f32 %v1134_v52  ;;  %v3559_v17 = vadd.f32 %v1156_v46, %v1155_v9  ;;  %v3563_v20 = vadd.f32 %v3457_v4, %v934_v61 }
 0x196   : > { %2365 = vpow2.f32 %v1137_v7  ;;  %v1074_v36 = vadd.f32 %v3567_v27, %v1073_v8  ;;  %v1171_v41 = vmul.f32 1.442695, %v1170_v47  ;;  %v1013_v46 = vadd.f32 %v1012_v3, %v3507_v12 }
 0x197   : > { %v1217_v62 = vsub.f32 %v1215_v0, %v3556_v49  ;;  %v1220_v6 = vsub.f32 %v934_v61, %v3556_v49  ;;  %2367 = vpow2.f32 %v2065_v16  ;;  %v1249_v55 = vadd.f32 %v3450_v60, %v3556_v49  ;;  %v3595_v61 = vpop.f32.mrf.mxu2 }
 0x198   : > { %v3584_v30 = vmax.f32 %v3516_v22, %v3563_v20  ;;  %v3608_v12 = vadd.f32 %v3512_v1, %v3446_v58 }
 0x199   : > { %v2360_v54 = vpop.eup %2359  ;;  %v1218_v25 = vmul.f32 1.442695, %v1217_v62  ;;  %v1221_v42 = vmul.f32 1.442695, %v1220_v6 }
 0x19a   : > { %v936_v35 = vpop.f32.mrf.mxu3  ;;  %v2362_v38 = vpop.eup %2361  ;;  %v1190_v44 = vmul.f32 %v2360_v54, %v3571_v48  ;;  %v1201_v3 = vsub.f32 %v3516_v22, %v3584_v30 }
 0x19b   : > { %v937_v19 = vadd.f32 %v936_v35, %v3434_v50  ;;  %v3577_v37 = vpop.f32.mrf.mxu0  ;;  %2369 = vpow2.f32 %v1218_v25  ;;  %v3586_v51 = vpop.eup %2363  ;;  %v1192_v63 = vmul.f32 %v2362_v38, %v3579_v43  ;;  %v1189_v0 = vmul.f32 %v2362_v38, %v3559_v17 }
 0x19c   : > { %v1015_v45 = vpop.f32.mrf.mxu1  ;;  %2371 = vpow2.f32 %v1221_v42  ;;  %v3598_v7 = vpop.eup %2365  ;;  %v2066_v25 = vmul.f32 -1.442695, %v1013_v46  ;;  %v1139_v58 = vmul.f32 %v3586_v51, %v3521_v26  ;;  %v1204_v46 = vsub.f32 %v3563_v20, %v3584_v30 }
 0x19d   : > { %v3589_v50 = vadd.f32 %v3457_v4, %v937_v19  ;;  %v3591_v52 = vmax.f32 %v1249_v55, %v937_v19  ;;  %2373 = vrcp.f32 %v1074_v36  ;;  %v2368_v16 = vpop.eup %2367  ;;  %v3612_v47 = vadd.f32 %v1190_v44, %v1189_v0 }
 0x19e   : > { %2375 = vpow2.f32 %v1168_v29  ;;  %v3618_v29 = vadd.f32 %v2360_v54, %v1192_v63  ;;  %v1140_v1 = vmul.f32 %v3598_v7, %v3534_v39  ;;  %v3624_v36 = vadd.f32 1.0, %v2368_v16  ;;  %v1518_v39 = vld [vmem:[#allocation21 + $0x38] sm:$0xff] }
 0x19f   : > { %v3602_v8 = vmax.f32 %v3556_v49, %v3589_v50  ;;  %v1251_v9 = vsub.f32 %v1249_v55, %v3591_v52  ;;  %v1254_v10 = vsub.f32 %v937_v19, %v3591_v52  ;;  %2377 = vpow2.f32 %v1171_v41  ;;  %1535 = vmatpush.msrb.mxu2 %v1518_v39  ;;  %2123 = vmatpush.msra.mxu3 %v1518_v39 }
 0x1a0   : > { %v1283_v38 = vadd.f32 %v3450_v60, %v3591_v52  ;;  %v1202_v63 = vmul.f32 1.442695, %v1201_v3  ;;  %v1016_v0 = vadd.f32 %v1015_v45, %v3549_v24  ;;  %v3653_v20 = vadd.f32 %v3543_v14, %v3455_v2 }
 0x1a1   : > { %v1252_v6 = vmul.f32 1.442695, %v1251_v9  ;;  %v1255_v28 = vmul.f32 1.442695, %v1254_v10  ;;  %v2370_v23 = vpop.eup %2369 }
 0x1a2   : > { %v939_v35 = vpop.f32.mrf.mxu3  ;;  %v2372_v22 = vpop.eup %2371  ;;  %v1226_v19 = vmul.f32 %v2370_v23, %v3618_v29  ;;  %v1223_v9 = vmul.f32 %v2370_v23, %v3612_v47  ;;  %v2067_v39 = vmul.f32 -1.442695, %v1016_v0 }
 0x1a3   : > { %2379 = vpow2.f32 %v1252_v6  ;;  %v3628_v41 = vpop.f32.mrf.mxu0  ;;  %v3630_v42 = vpop.eup %2373  ;;  %v1224_v54 = vmul.f32 %v2372_v22, %v3608_v12  ;;  %v940_v26 = vadd.f32 %v939_v35, %v3438_v53  ;;  %v1517_v6 = vld [vmem:[#allocation21 + $0x30] sm:$0xff]  ;;  %v1516_v35 = vld [vmem:[#allocation21 + $0x28] sm:$0xff] }
 0x1a4   : > { %2381 = vpow2.f32 %v1255_v28  ;;  %v3635_v55 = vpop.f32.mrf.mxu1  ;;  %v3637_v44 = vpop.eup %2375  ;;  %v3648_v28 = vadd.f32 %v1140_v1, %v1139_v58  ;;  %1536 = vmatpush.msrb.mxu2 %v1517_v6  ;;  %2124 = vmatpush.msra.mxu3 %v1517_v6  ;;  %v3657_v30 = vadd.f32 %v2372_v22, %v1226_v19  ;;  %v1205_v1 = vmul.f32 1.442695, %v1204_v46  ;;  %v1514_v6 = vld [vmem:[#allocation21 + $0x18] sm:$0xff] }
 0x1a5   : > { %v3643_v10 = vpop.eup %2377  ;;  %2383 = vpow2.f32 %v2066_v25  ;;  %v1267_v53 = vadd.f32 %v3457_v4, %v940_v26  ;;  %v3646_v16 = vmax.f32 %v1283_v38, %v940_v26  ;;  %v3655_v24 = vadd.f32 %v1224_v54, %v1223_v9  ;;  %v898_v25 = vpop.f32.mrf.mxu2 }
 0x1a6   : > { %4132 = vst [vmem:[#allocation50_spill] sm:$0xff] %v3648_v28  ;;  %2385 = vrcp.f32 %v3624_v36  ;;  %1537 = vmatpush.msrb.mxu2 %v1516_v35  ;;  %2125 = vmatpush.msra.mxu3 %v1516_v35 }
 0x1a7   : > { %4133 = vst [vmem:[#allocation51_spill] sm:$0xff] %v3657_v30  ;;  %v1268_v45 = vmax.f32 %v3591_v52, %v1267_v53  ;;  %v1285_v3 = vsub.f32 %v1283_v38, %v3646_v16  ;;  %v1288_v23 = vsub.f32 %v940_v26, %v3646_v16  ;;  %2387 = vpow2.f32 %v1202_v63  ;;  %v1515_v26 = vld [vmem:[#allocation21 + $0x20] sm:$0xff] }
 0x1a8   : > { %v1317_v2 = vadd.f32 %v3450_v60, %v3646_v16  ;;  %1538 = vmatpush.msrb.mxu2 %v1515_v26  ;;  %2126 = vmatpush.msra.mxu3 %v1515_v26 }
 0x1a9   : > { %v2380_v58 = vpop.eup %2379  ;;  %v1269_v54 = vsub.f32 %v3591_v52, %v1268_v45  ;;  %v1272_v19 = vsub.f32 %v1267_v53, %v1268_v45  ;;  %v1286_v38 = vmul.f32 1.442695, %v1285_v3  ;;  %v1289_v63 = vmul.f32 1.442695, %v1288_v23  ;;  %v1513_v45 = vld [vmem:[#allocation21 + $0x10] sm:$0xff] }
 0x1aa   : > { %v2382_v14 = vpop.eup %2381  ;;  %v1260_v22 = vmul.f32 %v2380_v58, %v3657_v30  ;;  %v942_v9 = vpop.f32.mrf.mxu3  ;;  %v1257_v60 = vmul.f32 %v2380_v58, %v3655_v24  ;;  %1539 = vmatpush.msrb.mxu2 %v1514_v6  ;;  %2127 = vmatpush.msra.mxu3 %v1514_v6 }
 0x1ab   : > { %v1258_v62 = vmul.f32 %v2382_v14, %v3653_v20  ;;  %v943_v46 = vadd.f32 %v942_v9, %v3444_v56  ;;  %v1003_v0 = vpop.f32.mrf.mxu0  ;;  %v3669_v35 = vpop.eup %2383  ;;  %v1270_v28 = vmul.f32 1.442695, %v1269_v54  ;;  %v1273_v52 = vmul.f32 1.442695, %v1272_v19 }
 0x1ac   : > { %v1261_v18 = vadd.f32 %v2382_v14, %v1260_v22  ;;  %2389 = vpow2.f32 %v1286_v38  ;;  %v1021_v53 = vpop.f32.mrf.mxu1  ;;  %v3671_v3 = vpop.eup %2385  ;;  %v1173_v56 = vmul.f32 %v3637_v44, %v3559_v17  ;;  %v1004_v58 = vadd.f32 %v1003_v0, %v3448_v59  ;;  %v1512_v14 = vld [vmem:[#allocation21 + $0x8] sm:$0xff]  ;;  %1540 = vmatpush.msrb.mxu2 %v1513_v45  ;;  %2128 = vmatpush.msra.mxu3 %v1513_v45 }
 0x1ad   : > { %2391 = vpow2.f32 %v1289_v63  ;;  %v1301_v23 = vadd.f32 %v3457_v4, %v943_v46  ;;  %v1318_v30 = vmax.f32 %v1317_v2, %v943_v46  ;;  %v3677_v22 = vadd.f32 %v1258_v62, %v1257_v60  ;;  %v3681_v19 = vpop.eup %2387  ;;  %v901_v0 = vpop.f32.mrf.mxu2 }
 0x1ae   : > { %2393 = vpow2.f32 %v1270_v28  ;;  %v1174_v54 = vmul.f32 %v3643_v10, %v3571_v48  ;;  %v1022_v17 = vadd.f32 %v1021_v53, %v898_v25  ;;  %v1511_v28 = vld [vmem:[#allocation21] sm:$0xff]  ;;  %1541 = vmatpush.msrb.mxu2 %v1512_v14  ;;  %v2063_v63 = vmul.f32 -1.442695, %v1004_v58  ;;  %2129 = vmatpush.msra.mxu3 %v1512_v14 }
 0x1af   : > { %2395 = vpow2.f32 %v1273_v52  ;;  %v1302_v4 = vmax.f32 %v3646_v16, %v1301_v23  ;;  %v1319_v38 = vsub.f32 %v1317_v2, %v1318_v30  ;;  %v1322_v9 = vsub.f32 %v943_v46, %v1318_v30  ;;  %1332 = vst [vmem:[#allocation6] sm:$0xff] %v1318_v30 }
 0x1b0   : > { %2397 = vpow2.f32 %v1205_v1  ;;  %v3685_v60 = vadd.f32 %v1174_v54, %v1173_v56  ;;  %1542 = vmatpush.msrb.mxu2 %v1511_v28  ;;  %v2069_v53 = vmul.f32 -1.442695, %v1022_v17  ;;  %2130 = vmatpush.msra.mxu3 %v1511_v28  ;;  %v3694_v17 = vadd.f32 1.0, %v3669_v35 }
 0x1b1   : > { %v1303_v59 = vsub.f32 %v3646_v16, %v1302_v4  ;;  %v1306_v62 = vsub.f32 %v1301_v23, %v1302_v4  ;;  %v1320_v26 = vmul.f32 1.442695, %v1319_v38  ;;  %v1323_v6 = vmul.f32 1.442695, %v1322_v9 }
 0x1b2   : > { %v2390_v48 = vpop.eup %2389  ;;  %2399 = vpow2.f32 %v2067_v39  ;;  %v981_v16 = vadd.f32 %v3577_v37, %v3467_v15  ;;  %v1070_v35 = vmul.f32 %v3527_v31, %v3480_v33  ;;  %v984_v31 = vadd.f32 %v3628_v41, %v3488_v40 }
 0x1b3   : > { %v2392_v2 = vpop.eup %2391  ;;  %v1294_v30 = vmul.f32 %v2390_v48, %v1261_v18  ;;  %v1304_v46 = vmul.f32 1.442695, %v1303_v59  ;;  %v1307_v1 = vmul.f32 1.442695, %v1306_v62  ;;  %2401 = vpow2.f32 %v1320_v26  ;;  %v1006_v25 = vpop.f32.mrf.mxu0 }
 0x1b4   : > { %v2394_v52 = vpop.eup %2393  ;;  %2403 = vpow2.f32 %v1323_v6  ;;  %v1007_v39 = vadd.f32 %v1006_v25, %v3459_v5  ;;  %v1024_v45 = vpop.f32.mrf.mxu1  ;;  %v4134_v59 = vsub.f32 %v3556_v49, %v3602_v8  ;;  %v1019_v6 = vadd.f32 %v3635_v55, %v3595_v61 }
 0x1b5   : > { %v2396_v23 = vpop.eup %2395  ;;  %v1278_v56 = vmul.f32 %v2394_v52, %v1261_v18  ;;  %v1295_v58 = vadd.f32 %v2392_v2, %v1294_v30  ;;  %2405 = vpow2.f32 %v1304_v46  ;;  %v1025_v14 = vadd.f32 %v1024_v45, %v901_v0 }
 0x1b6   : > { %v3690_v54 = vpop.eup %2397  ;;  %2407 = vpow2.f32 %v1307_v1  ;;  %v2064_v4 = vmul.f32 -1.442695, %v1007_v39  ;;  %v1275_v38 = vmul.f32 %v2394_v52, %v3677_v22  ;;  %v1276_v9 = vmul.f32 %v2396_v23, %v981_v16 }
 0x1b7   : > { %v1279_v15 = vadd.f32 %v2396_v23, %v1278_v56  ;;  %2409 = vpow2.f32 %v2063_v63  ;;  %v2070_v37 = vmul.f32 -1.442695, %v1025_v14  ;;  %v1236_v62 = vmul.f32 1.442695, %v4134_v59 }
 0x1b8   : > { %v2400_v5 = vpop.eup %2399  ;;  %2411 = vpow2.f32 %v2069_v53  ;;  %v1277_v18 = vadd.f32 %v1276_v9, %v1275_v38  ;;  %v4135_v30 = vsub.f32 %v3589_v50, %v3602_v8  ;;  %v1291_v49 = vmul.f32 %v2390_v48, %v3677_v22 }
 0x1b9   : > { %v2402_v28 = vpop.eup %2401  ;;  %2413 = vrcp.f32 %v1279_v15  ;;  %v1292_v1 = vmul.f32 %v2392_v2, %v981_v16  ;;  %v1071_v55 = vmul.f32 %v3567_v27, %v3482_v34  ;;  %v1108_v50 = vmul.f32 %v3509_v13, %v3529_v32 }
 0x1ba   : > { %v2404_v26 = vpop.eup %2403  ;;  %v1328_v0 = vmul.f32 %v2402_v28, %v1295_v58  ;;  %1333 = vst [vmem:[%s651_s15] sm:$0xff] %v2402_v28  ;;  %2415 = vpow2.f32 %v2064_v4  ;;  %v1239_v46 = vmul.f32 1.442695, %v4135_v30  ;;  %v2068_v22 = vmul.f32 -1.442695, %v1019_v6 }
 0x1bb   : > { %v2406_v63 = vpop.eup %2405  ;;  %1334 = vst [vmem:[%s658_s9] sm:$0xff] %v2404_v26  ;;  %2417 = vpow2.f32 %v2070_v37  ;;  %v1293_v8 = vadd.f32 %v1292_v1, %v1291_v49  ;;  %v1406_v16 = vmul.f32 %v3671_v3, %v3624_v36  ;;  %v1072_v13 = vadd.f32 %v1071_v55, %v1070_v35 }
 0x1bc   : > { %v2408_v25 = vpop.eup %2407  ;;  %2419 = vrcp.f32 %v3694_v17  ;;  %v1329_v61 = vadd.f32 %v2404_v26, %v1328_v0  ;;  %v1312_v52 = vmul.f32 %v2406_v63, %v1295_v58  ;;  %v1326_v32 = vmul.f32 %v2404_v26, %v984_v31 }
 0x1bd   : > { %v2410_v33 = vpop.eup %2409  ;;  %2421 = vpow2.f32 %v1236_v62  ;;  %v1309_v39 = vmul.f32 %v2406_v63, %v1293_v8  ;;  %v1325_v45 = vmul.f32 %v2402_v28, %v1293_v8  ;;  %v1142_v41 = vmul.f32 %v3586_v51, %v3553_v11 }
 0x1be   : > { %v2412_v53 = vpop.eup %2411  ;;  %1331 = vst [vmem:[#allocation5] sm:$0xff] %v1329_v61  ;;  %v3718_v48 = vadd.f32 1.0, %v2410_v33  ;;  %v1313_v2 = vadd.f32 %v2408_v25, %v1312_v52  ;;  %2423 = vpow2.f32 %v1239_v46  ;;  %v1310_v14 = vmul.f32 %v2408_v25, %v984_v31 }
 0x1bf   : > { %v2414_v34 = vpop.eup %2413  ;;  %v3722_v27 = vadd.f32 1.0, %v2412_v53  ;;  %v3734_v38 = vadd.f32 1.0, %v2400_v5  ;;  %v1407_v15 = vsub.f32 1.0, %v1406_v16  ;;  %v3742_v11 = vmul.f32 %v3630_v42, %v1072_v13 }
 0x1c0   : > { %v2416_v40 = vpop.eup %2415  ;;  %2425 = vrcp.f32 %v3718_v48  ;;  %v3730_v58 = vmul.f32 %v2414_v34, %v1277_v18  ;;  %v1109_v51 = vadd.f32 %v3514_v21, %v1108_v50  ;;  %v1384_v18 = vand.u32 2147483647, %v3718_v48 }
 0x1c1   : > { %v2418_v23 = vpop.eup %2417  ;;  %2427 = vrcp.f32 %v3722_v27  ;;  %v3728_v56 = vadd.f32 1.0, %v2416_v40  ;;  %v1386_v5 = vand.u32 2147483648, %v3718_v48  ;;  %v3749_v28 = vadd.f32 %v3598_v7, %v1142_v41 }
 0x1c2   : > { %v3732_v4 = vpop.eup %2419  ;;  %2429 = vpow2.f32 %v2068_v22  ;;  %v3736_v9 = vadd.f32 1.0, %v2418_v23  ;;  %v1474_v62 = vand.u32 2147483647, %v3722_v27  ;;  %v1311_v26 = vadd.f32 %v1310_v14, %v1309_v39 }
 0x1c3   : > { %v3738_v37 = vpop.eup %2421  ;;  %2431 = vrcp.f32 %v3728_v56  ;;  %v1327_v6 = vadd.f32 %v1326_v32, %v1325_v45  ;;  %v1476_v21 = vand.u32 2147483648, %v3722_v27  ;;  %v3757_v0 = vmul.f32 %v3671_v3, %v1407_v15 }
 0x1c4   : > { %2433 = vrcp.f32 %v3736_v9  ;;  %v3751_v59 = vpop.eup %2423  ;;  %v3761_v35 = vmul.f32 %v3637_v44, %v3579_v43  ;;  %vm1380_vm0 = vweird.f32 %v3718_v48  ;;  %vm1470_vm1 = vweird.f32 %v3722_v27 }
 0x1c5   : > { %2435 = vrcp.f32 %v1313_v2  ;;  %1330 = vst [vmem:[#allocation4] sm:$0xff] %v1327_v6  ;;  %vm3767_vm2 = vcmp.eq.f32.partialorder %v1384_v18, 8.507059e+37  ;;  %v1387_v1 = vor.u32 1.1754944e-38, %v1386_v5  ;;  %vm1395_vm3 = vweird.f32 %v3728_v56 }
 0x1c6   : > { %v2426_v42 = vpop.eup %2425  ;;  %2437 = vrcp.f32 %v3734_v38  ;;  %vm3772_vm4 = vcmp.eq.f32.partialorder %v1474_v62, 8.507059e+37  ;;  %v1399_v61 = vand.u32 2147483647, %v3728_v56  ;;  %v1401_v55 = vand.u32 2147483648, %v3728_v56 }
 0x1c7   : > { %v2428_v7 = vpop.eup %2427  ;;  %v1376_v63 = vmul.f32 %v2426_v42, %v3718_v48  ;;  %2439 = vrcp.f32 %v1109_v51  ;;  %v1477_v31 = vor.u32 1.1754944e-38, %v1476_v21  ;;  %vm1381_vm6 = vweird.f32 %v2426_v42 }
 0x1c8   : > { %v2430_v30 = vpop.eup %2429  ;;  %v1466_v46 = vmul.f32 %v2428_v7, %v3722_v27  ;;  %vm1471_vm5 = vweird.f32 %v2428_v7  ;;  %vm1485_vm7 = vweird.f32 %v3736_v9  ;;  %v1491_v45 = vand.u32 2147483648, %v3736_v9  ;;  %vm1382_vm10 = vmor %vm1380_vm0, %vm1381_vm6 }
 0x1c9   : > { %v2432_v43 = vpop.eup %2431  ;;  %v1377_v44 = vsub.f32 1.0, %v1376_v63  ;;  %vm3787_vm8 = vmor %vm1470_vm1, %vm1471_vm5  ;;  %v1207_v23 = vmul.f32 %v3681_v19, %v3612_v47  ;;  %v1489_v51 = vand.u32 2147483647, %v3736_v9  ;;  %v1402_v5 = vor.u32 1.1754944e-38, %v1401_v55 }
 0x1ca   : > { %v2434_v52 = vpop.eup %2433  ;;  %v1467_v33 = vsub.f32 1.0, %v1466_v46  ;;  %v1391_v50 = vmul.f32 %v2432_v43, %v3728_v56  ;;  %vm1396_vm11 = vweird.f32 %v2432_v43  ;;  %v1208_v62 = vmul.f32 %v3690_v54, %v3608_v12 }
 0x1cb   : > { %v2436_v8 = vpop.eup %2435  ;;  %v1378_v53 = vmul.f32 %v2426_v42, %v1377_v44  ;;  %v1481_v22 = vmul.f32 %v2434_v52, %v3736_v9  ;;  %vm1486_vm9 = vweird.f32 %v2434_v52  ;;  %vm1397_vm13 = vmor %vm1395_vm3, %vm1396_vm11  ;;  %vm1490_vm14 = vcmp.eq.f32.partialorder %v1489_v51, 8.507059e+37 }
 0x1cc   : > { %v3781_v2 = vpop.eup %2437  ;;  %v1468_v16 = vmul.f32 %v2428_v7, %v1467_v33  ;;  %v1392_v34 = vsub.f32 1.0, %v1391_v50  ;;  %v1315_v39 = vmul.f32 %v2436_v8, %v1311_v26  ;;  %vm3804_vm12 = vmor %vm1485_vm7, %vm1486_vm9  ;;  %v1209_v49 = vadd.f32 %v1208_v62, %v1207_v23 }
 0x1cd   : > { %v2440_v40 = vpop.eup %2439  ;;  %v1379_v13 = vadd.f32 %v2426_v42, %v1378_v53  ;;  %v1482_v41 = vsub.f32 1.0, %v1481_v22  ;;  %vm1400_vm15 = vcmp.eq.f32.partialorder %v1399_v61, 8.507059e+37  ;;  %vm1410_vm0 = vweird.f32 %v3624_v36 }
 0x1ce   : > { %v1469_v14 = vadd.f32 %v2428_v7, %v1468_v16  ;;  %v1393_v15 = vmul.f32 %v2432_v43, %v1392_v34  ;;  %vm1411_vm1 = vweird.f32 %v3671_v3  ;;  %v1241_v25 = vmul.f32 %v3738_v37, %v3655_v24  ;;  %v4147_v34 = vld [vmem:[#allocation50_spill] sm:$0xff] }
 0x1cf   : > { %v1383_v18 = vsel %vm1382_vm10, %v2426_v42, %v1379_v13  ;;  %v1483_v27 = vmul.f32 %v2434_v52, %v1482_v41  ;;  %v1210_v42 = vmul.f32 %v3681_v19, %v3618_v29  ;;  %v1421_v19 = vmul.f32 %v3732_v4, %v3694_v17 }
 0x1d0   : > { %v1388_v26 = vsel %vm3767_vm2, %v1387_v1, %v1383_v18  ;;  %v1473_v47 = vsel %vm3787_vm8, %v2428_v7, %v1469_v14  ;;  %v1394_v6 = vadd.f32 %v2432_v43, %v1393_v15  ;;  %v1492_v7 = vor.u32 1.1754944e-38, %v1491_v45  ;;  %vm3839_vm2 = vmor %vm1410_vm0, %vm1411_vm1 }
 0x1d1   : > { %v1503_v21 = vmul.f32 %v1388_v26, %v3742_v11  ;;  %v1478_v12 = vsel %vm3772_vm4, %v1477_v31, %v1473_v47  ;;  %v1484_v63 = vadd.f32 %v2434_v52, %v1483_v27  ;;  %v1211_v11 = vadd.f32 %v3690_v54, %v1210_v42 }
 0x1d2   : > { %v1509_v46 = vmul.f32 %v1478_v12, %v3730_v58  ;;  %v1398_v9 = vsel %vm1397_vm13, %v2432_v43, %v1394_v6  ;;  %v3821_v1 = vadd.f32 1.0, %v2430_v30  ;;  %v1416_v58 = vand.u32 2147483648, %v3624_v36  ;;  %v4144_v30 = vld [vmem:[#allocation51_spill] sm:$0xff] }
 0x1d3   : > { %1543 = vmatmul.f32.vlgmr.msrb.gmra.mxu2 %v1503_v21  ;;  %v1488_v29 = vsel %vm3804_vm12, %v2434_v52, %v1484_v63  ;;  %v1403_v56 = vsel %vm1400_vm15, %v1402_v5, %v1398_v9  ;;  %v1111_v43 = vmul.f32 %v2440_v40, %v3541_v57  ;;  %2441 = vrcp.f32 %v1211_v11 }
 0x1d4   : > { %1561 = vmatmul.f32.vlgmr.msra.gmra.mxu3 %v1509_v46  ;;  %v1493_v44 = vsel %vm1490_vm14, %v1492_v7, %v1488_v29  ;;  %2443 = vrcp.f32 %v3749_v28  ;;  %v1242_v54 = vmul.f32 %v3751_v59, %v3653_v20  ;;  %v1244_v61 = vmul.f32 %v3738_v37, %v4144_v30 }
 0x1d5   : > { %v1504_v55 = vmul.f32 %v1403_v56, %v1111_v43  ;;  %v1409_v52 = vadd.f32 %v3671_v3, %v3757_v0  ;;  %v1414_v57 = vand.u32 2147483647, %v3624_v36  ;;  %v1422_v33 = vsub.f32 1.0, %v1421_v19 }
 0x1d6   : > { %v1510_v31 = vmul.f32 %v1493_v44, %v1315_v39  ;;  %v1243_v24 = vadd.f32 %v1242_v54, %v1241_v25  ;;  %v1245_v20 = vadd.f32 %v3751_v59, %v1244_v61  ;;  %2445 = vrcp.f32 %v3821_v1 }
 0x1d7   : > { %v1417_v37 = vor.u32 1.1754944e-38, %v1416_v58  ;;  %v1177_v50 = vadd.f32 %v3643_v10, %v3761_v35  ;;  %v1413_v36 = vsel %vm3839_vm2, %v3671_v3, %v1409_v52  ;;  %vm1415_vm3 = vcmp.eq.f32.partialorder %v1414_v57, 8.507059e+37 }
 0x1d8   : > { %2447 = vrcp.f32 %v1245_v20  ;;  %v1423_v8 = vmul.f32 %v3732_v4, %v1422_v33  ;;  %v1436_v53 = vmul.f32 %v3781_v2, %v3734_v38  ;;  %vm1425_vm4 = vweird.f32 %v3694_v17 }
 0x1d9   : > { %v2442_v0 = vpop.eup %2441  ;;  %vm1426_vm5 = vweird.f32 %v3732_v4  ;;  %v1418_v10 = vsel %vm1415_vm3, %v1417_v37, %v1413_v36  ;;  %2449 = vrcp.f32 %v1177_v50  ;;  %v1431_v35 = vand.u32 2147483648, %v3694_v17 }
 0x1da   : > { %v2444_v59 = vpop.eup %2443  ;;  %v1213_v22 = vmul.f32 %v2442_v0, %v1209_v49  ;;  %v1424_v39 = vadd.f32 %v3732_v4, %v1423_v8  ;;  %v1429_v45 = vand.u32 2147483647, %v3694_v17  ;;  %v1437_v40 = vsub.f32 1.0, %v1436_v53  ;;  %vm1427_vm6 = vmor %vm1425_vm4, %vm1426_vm5 }
 0x1db   : > { %1546 = vmatmul.f32.gmra.mxu2 %v1504_v55  ;;  %v1145_v3 = vmul.f32 %v2444_v59, %v4147_v34  ;;  %v1432_v23 = vor.u32 1.1754944e-38, %v1431_v35  ;;  %vm1440_vm8 = vweird.f32 %v3734_v38  ;;  %vm1441_vm9 = vweird.f32 %v3781_v2 }
 0x1dc   : > { %1564 = vmatmul.f32.gmra.mxu3 %v1510_v31  ;;  %v2446_v16 = vpop.eup %2445  ;;  %v1428_v14 = vsel %vm1427_vm6, %v3732_v4, %v1424_v39  ;;  %vm1430_vm7 = vcmp.eq.f32.partialorder %v1429_v45, 8.507059e+37  ;;  %v1438_v15 = vmul.f32 %v3781_v2, %v1437_v40  ;;  %v1446_v5 = vand.u32 2147483648, %v3734_v38  ;;  %vm1442_vm10 = vmor %vm1440_vm8, %vm1441_vm9 }
 0x1dd   : > { %v1505_v32 = vmul.f32 %v1418_v10, %v1145_v3  ;;  %v1451_v51 = vmul.f32 %v2446_v16, %v3821_v1  ;;  %v1433_v17 = vsel %vm1430_vm7, %v1432_v23, %v1428_v14  ;;  %v1444_v26 = vand.u32 2147483647, %v3734_v38 }
 0x1de   : > { %v2448_v13 = vpop.eup %2447  ;;  %v1439_v62 = vadd.f32 %v3781_v2, %v1438_v15  ;;  %v1447_v6 = vor.u32 1.1754944e-38, %v1446_v5  ;;  %vm1455_vm12 = vweird.f32 %v3821_v1  ;;  %vm1456_vm13 = vweird.f32 %v2446_v16 }
 0x1df   : > { %v1247_v41 = vmul.f32 %v2448_v13, %v1243_v24  ;;  %v2450_v18 = vpop.eup %2449  ;;  %v1452_v4 = vsub.f32 1.0, %v1451_v51  ;;  %vm1445_vm11 = vcmp.eq.f32.partialorder %v1444_v26, 8.507059e+37  ;;  %v1459_v38 = vand.u32 2147483647, %v3821_v1  ;;  %vm1457_vm14 = vmor %vm1455_vm12, %vm1456_vm13 }
 0x1e0   : > { %v1179_v27 = vmul.f32 %v2450_v18, %v3685_v60  ;;  %v1443_v48 = vsel %vm1442_vm10, %v3781_v2, %v1439_v62  ;;  %v1461_v60 = vand.u32 2147483648, %v3821_v1 }
 0x1e1   : > { %v1453_v42 = vmul.f32 %v2446_v16, %v1452_v4  ;;  %v1448_v21 = vsel %vm1445_vm11, %v1447_v6, %v1443_v48  ;;  %vm1460_vm15 = vcmp.eq.f32.partialorder %v1459_v38, 8.507059e+37 }
 0x1e2   : > { %v1506_v47 = vmul.f32 %v1433_v17, %v1179_v27  ;;  %v1507_v63 = vmul.f32 %v1448_v21, %v1213_v22  ;;  %v1462_v7 = vor.u32 1.1754944e-38, %v1461_v60 }
 0x1e3   : > { %1549 = vmatmul.f32.gmra.mxu2 %v1505_v32  ;;  %v1454_v12 = vadd.f32 %v2446_v16, %v1453_v42 }
 0x1e5   : > { %v1458_v46 = vsel %vm1457_vm14, %v2446_v16, %v1454_v12 }
 0x1e6   : > { %v1463_v2 = vsel %vm1460_vm15, %v1462_v7, %v1458_v46 }
 0x1e7   : > { %v1508_v9 = vmul.f32 %v1463_v2, %v1247_v41 }
 0x1eb   : > { %1552 = vmatmul.f32.gmra.mxu2 %v1506_v47 }
 0x1f3   : > { %1555 = vmatmul.f32.gmra.mxu2 %v1507_v63 }
 0x1fb   : > { %1558 = vmatmul.f32.gmra.mxu2 %v1508_v9 }
 0x1fc   : > { %2748 = shalt.err (!%p2745_p7)
}
 0x1fd   : > { %2158 = dma.vmem_to_hbm [thread:$0]  (%p3149_p4), %s1732_s3, 128, %s1734_s24, %s1695_s10  }
 0x1fe   : > { %s4151_s20 = sld [smem:[#allocation63_spill]]  ;;  %s1745_s13 = sshll.u32 %s658_s9, 4  ;;  %s1746_s13 = int_to_ptr.vmem [resolvable:$true] %s1745_s13 }
 0x204   : > { %s4152_s6 = smov %s4151_s20  ;;  %s1743_s4 = scalar_lea.hbm %s4151_s20, %s2077_s7 }
 0x205   : > { %s1747_s2 = sshll.u32 %s1743_s4, 4  ;;  %s2769_s3 = scalar_lea.hbm %s4152_s6, 16  ;;  %s1748_s2 = int_to_ptr.hbm [resolvable:$true] %s1747_s2 }
 0x206   : > { %s2763_s17 = sshra.s32 %s1748_s2, 4  ;;  %s2764_s17 = int_to_ptr.hbm [resolvable:$true] %s2763_s17 }
 0x207   : > { %s2765_s27 = scalar_lea.hbm %s2764_s17, 8  ;;  %p2770_p9 = scmp.lt.s32.totalorder %s2764_s17, %s4152_s6 }
 0x208   : > { %p2766_p2 = scmp.ne.s32.totalorder %s2764_s17, %s2765_s27  ;;  %p2771_p10 = scmp.lt.s32.totalorder %s2769_s3, %s2765_s27 }
 0x20a   : > { %p2767_p8 = pnand %p2766_p2, %p3149_p4  ;;  %p2772_p11 = por %p2771_p10, %p2770_p9 }
 0x20c   : > { %p2768_p12 = pneg %p2767_p8 }
 0x20e   : > { %p2773_p5 = pnand %p2772_p11, %p2768_p12 }
 0x210   : > { %2776 = shalt.err (!%p2773_p5)
}
 0x211   : > { %2159 = dma.vmem_to_hbm [thread:$0]  (%p3149_p4), %s1746_s13, 128, %s1748_s2, %s1695_s10   ;;  %v2953_v56 = vmov 1983009808   ;;  %vm1569_vm0 = vcmask 1047556   ;;  %v2954_v0 = vmov 1934713408  }
 0x212   : > { %v1574_v58 = vunpack.c.l.s4 %v2953_v56  ;;  %v1622_v36 = vunpack.c.l.s4 %v2954_v0  ;;  %s4153_s2 = sld [smem:[#allocation37_spill]]  ;;  %s2082_s26 = sshll.u32 %s4148_s23, 5 }
 0x213   : > { %s4154_s7 = sld [smem:[#allocation61_spill]]  ;;  %s1714_s15 = sshll.u32 %s3324_s14, 4  ;;  %s1715_s15 = int_to_ptr.vmem [resolvable:$true] %s1714_s15 }
 0x214   : > { %v1575_v61 = vunpack.c.0.s8 %v1574_v58  ;;  %v1623_v45 = vunpack.c.0.s8 %v1622_v36  ;;  %s4155_s16 = sld [smem:[#allocation34_spill]] }
 0x218   : > { %s1711_s1 = sadd.s32 %s4153_s2, %s2082_s26 }
 0x219   : > { %s2076_s9 = sshll.u32 %s1711_s1, 3  ;;  %s2797_s24 = scalar_lea.hbm %s4154_s7, 512 }
 0x21a   : > { %s1713_s10 = scalar_lea.hbm %s4154_s7, %s2076_s9  ;;  %s4157_s13 = sand.u32 1, %s4155_s16  }
 0x21b   : > { %s1716_s20 = sshll.u32 %s1713_s10, 4  ;;  %s1690_s17 = scalar_lea.sflag [#allocation9], %s4157_s13  ;;  %s1717_s20 = int_to_ptr.hbm [resolvable:$true] %s1716_s20 }
 0x21c   : > { %s2791_s27 = sshra.s32 %s1717_s20, 4  ;;  %s2792_s27 = int_to_ptr.hbm [resolvable:$true] %s2791_s27 }
 0x21d   : > { %s2793_s21 = scalar_lea.hbm %s2792_s27, 64  ;;  %p2798_p7 = scmp.lt.s32.totalorder %s2792_s27, %s4154_s7 }
 0x21e   : > { %p2794_p4 = scmp.ne.s32.totalorder %s2792_s27, %s2793_s21  ;;  %p2799_p2 = scmp.lt.s32.totalorder %s2797_s24, %s2793_s21 }
 0x220   : > { %p2795_p13 = pnand %p2794_p4, %p3143_p0  ;;  %p2800_p8 = por %p2799_p2, %p2798_p7 }
 0x222   : > { %p2796_p6 = pneg %p2795_p13 }
 0x224   : > { %p2801_p12 = pnand %p2800_p8, %p2796_p6 }
 0x256   : > { %v1544_v49 = vpop.f32.mrf.mxu2 }
 0x257   : > { %v1562_v44 = vpop.f32.mrf.mxu3  ;;  %v1571_v52 = vrot.slane %v1544_v49, 4 }
 0x258   : > { %v1593_v24 = vrot.slane %v1562_v44, 4 }
 0x25e   : > { %v1547_v29 = vpop.f32.mrf.mxu2 }
 0x25f   : > { %v1583_v25 = vrot.slane %v1547_v29, 4  ;;  %v1565_v53 = vpop.f32.mrf.mxu3 }
 0x260   : > { %v1605_v3 = vrot.slane %v1565_v53, 4 }
 0x266   : > { %v1550_v19 = vpop.f32.mrf.mxu2 }
 0x267   : > { %v1568_v1 = vrot.slane %v1550_v19, 4  ;;  %v1572_v20 = vsel %vm1569_vm0, %v1550_v19, %v1571_v52 }
 0x268   : > { %v1580_v59 = vperm.slane %v1572_v20, %v1575_v61 }
 0x269   : > { %v1570_v30 = vsel %vm1569_vm0, %v1568_v1, %v1544_v49 }
 0x26a   : > { %v1576_v33 = vperm.slane %v1570_v30, %v1575_v61  ;;  %v1631_v40 = vrot.slane %v1580_v59, 4 }
 0x26c   : > { %v1619_v22 = vrot.slane %v1576_v33, 4 }
 0x26e   : > { %v1553_v11 = vpop.f32.mrf.mxu2 }
 0x26f   : > { %v1581_v43 = vrot.slane %v1553_v11, 4  ;;  %v1584_v55 = vsel %vm1569_vm0, %v1553_v11, %v1583_v25 }
 0x270   : > { %v1592_v31 = vperm.slane %v1584_v55, %v1575_v61 }
 0x271   : > { %v1582_v54 = vsel %vm1569_vm0, %v1581_v43, %v1547_v29 }
 0x272   : > { %v1588_v57 = vperm.slane %v1582_v54, %v1575_v61  ;;  %v1629_v10 = vrot.slane %v1592_v31, 4  ;;  %v1632_v18 = vsel %vm1569_vm0, %v1592_v31, %v1631_v40 }
 0x273   : > { %v1640_v48 = vperm.slane %v1632_v18, %v1623_v45 }
 0x274   : > { %v1617_v50 = vrot.slane %v1588_v57, 4  ;;  %v1620_v16 = vsel %vm1569_vm0, %v1588_v57, %v1619_v22  ;;  %v1630_v13 = vsel %vm1569_vm0, %v1629_v10, %v1580_v59 }
 0x275   : > { %v1628_v23 = vperm.slane %v1620_v16, %v1623_v45  ;;  %v1636_v27 = vperm.slane %v1630_v13, %v1623_v45  ;;  %v1679_v43 = vrot.slane %v1640_v48, 4 }
 0x276   : > { %v1556_v28 = vpop.f32.mrf.mxu2  ;;  %v1618_v39 = vsel %vm1569_vm0, %v1617_v50, %v1576_v33 }
 0x277   : > { %v1595_v37 = vrot.slane %v1556_v28, 4  ;;  %v1594_v8 = vsel %vm1569_vm0, %v1593_v24, %v1556_v28  ;;  %v1624_v51 = vperm.slane %v1618_v39, %v1623_v45  ;;  %v1671_v42 = vrot.slane %v1628_v23, 4 }
 0x278   : > { %v1600_v34 = vperm.slane %v1594_v8, %v1575_v61  ;;  %v1675_v49 = vrot.slane %v1636_v27, 4 }
 0x279   : > { %v1596_v35 = vsel %vm1569_vm0, %v1562_v44, %v1595_v37  ;;  %v1667_v60 = vrot.slane %v1624_v51, 4 }
 0x27a   : > { %v1604_v32 = vperm.slane %v1596_v35, %v1575_v61  ;;  %v1643_v17 = vrot.slane %v1600_v34, 4 }
 0x27c   : > { %v1655_v26 = vrot.slane %v1604_v32, 4 }
 0x27e   : > { %v1559_v41 = vpop.f32.mrf.mxu2 }
 0x27f   : > { %v1606_v14 = vsel %vm1569_vm0, %v1605_v3, %v1559_v41  ;;  %v1607_v15 = vrot.slane %v1559_v41, 4 }
 0x280   : > { %v1612_v5 = vperm.slane %v1606_v14, %v1575_v61 }
 0x281   : > { %v1608_v62 = vsel %vm1569_vm0, %v1565_v53, %v1607_v15 }
 0x282   : > { %v1616_v4 = vperm.slane %v1608_v62, %v1575_v61  ;;  %v1641_v47 = vrot.slane %v1612_v5, 4  ;;  %v1644_v6 = vsel %vm1569_vm0, %v1612_v5, %v1643_v17 }
 0x283   : > { %v1652_v21 = vperm.slane %v1644_v6, %v1623_v45 }
 0x284   : > { %v1642_v12 = vsel %vm1569_vm0, %v1641_v47, %v1600_v34  ;;  %v1653_v38 = vrot.slane %v1616_v4, 4  ;;  %v1656_v63 = vsel %vm1569_vm0, %v1616_v4, %v1655_v26 }
 0x285   : > { %v1648_v7 = vperm.slane %v1642_v12, %v1623_v45  ;;  %v1664_v46 = vperm.slane %v1656_v63, %v1623_v45  ;;  %v1669_v2 = vrot.slane %v1652_v21, 4  ;;  %v1672_v9 = vsel %vm1569_vm0, %v1652_v21, %v1671_v42 }
 0x286   : > { %v1654_v29 = vsel %vm1569_vm0, %v1653_v38, %v1604_v32  ;;  %1684 = vst [vmem:[%s3324_s14 + $0x18] sm:$0xff] %v1672_v9 }
 0x287   : > { %v1660_v19 = vperm.slane %v1654_v29, %v1623_v45  ;;  %v1665_v11 = vrot.slane %v1648_v7, 4  ;;  %v1668_v1 = vsel %vm1569_vm0, %v1648_v7, %v1667_v60  ;;  %v1670_v56 = vsel %vm1569_vm0, %v1669_v2, %v1628_v23 }
 0x288   : > { %v1677_v58 = vrot.slane %v1664_v46, 4  ;;  %1682 = vst [vmem:[%s3324_s14 + $0x8] sm:$0xff] %v1668_v1  ;;  %v1680_v55 = vsel %vm1569_vm0, %v1664_v46, %v1679_v43 }
 0x289   : > { %v1666_v44 = vsel %vm1569_vm0, %v1665_v11, %v1624_v51  ;;  %v1673_v25 = vrot.slane %v1660_v19, 4  ;;  %v1676_v54 = vsel %vm1569_vm0, %v1660_v19, %v1675_v49  ;;  %1683 = vst [vmem:[%s3324_s14 + $0x10] sm:$0xff] %v1670_v56 }
 0x28a   : > { %v1678_v30 = vsel %vm1569_vm0, %v1677_v58, %v1640_v48  ;;  %1681 = vst [vmem:[%s3324_s14] sm:$0xff] %v1666_v44 }
 0x28b   : > { %v1674_v61 = vsel %vm1569_vm0, %v1673_v25, %v1636_v27  ;;  %1686 = vst [vmem:[%s3324_s14 + $0x28] sm:$0xff] %v1676_v54 }
 0x28c   : > { %1685 = vst [vmem:[%s3324_s14 + $0x20] sm:$0xff] %v1674_v61 }
 0x28d   : > { %1687 = vst [vmem:[%s3324_s14 + $0x30] sm:$0xff] %v1678_v30 }
 0x28e   : > { %1688 = vst [vmem:[%s3324_s14 + $0x38] sm:$0xff] %v1680_v55 }
 0x28f   : > { %2804 = shalt.err (!%p2801_p12)
}
 0x290   : > { %s2955_s14 = smov 128   ;;  %s2956_s26 = smov 512  }
 0x291   : > { %s2957_s1 = smov 8  }
 0x292   : > { %2157 = dma.vmem_to_hbm [thread:$0]  (%p3143_p0), %s1715_s15, 1024, %s1717_s20, %s1690_s17, %s2955_s14, %s2956_s26, %s2957_s1  }
 0x293 PF: > { %s4158_s9 = sld [smem:[#allocation33_spill]]  ;;  %p2211_p9 = scmp.ge.s32.totalorder %s2943_s30, 2 }
 0x295   : > { %p2193_p10 = pnand %p2211_p9, %p3154_p3 }
 0x297   : > { %p2194_p11 = pneg %p2193_p10 }
 0x299   : > { %s1759_s11 = sand.u32 1, %s4158_s9  }
 0x29a   : > { %s1760_s10 = scalar_lea.sflag [#allocation9], %s1759_s11 }
 0x29b   : > { %2882 = dma.done.wait (%p2194_p11), %s1760_s10, 1024  }
 0x29c   : > { %2884 = vsyncadd (%p2194_p11), %s1760_s10, 4294966272  ;;  %s4160_s16 = sadd.s32 4294967294, %s2943_s30   ;;  %p2196_p5 = pnand %p2211_p9, %p3158_p1 }
 0x29d   : > { %s1769_s27 = sand.u32 1, %s4160_s16  }
 0x29e   : > { %p2197_p4 = pneg %p2196_p5  ;;  %s1770_s15 = scalar_lea.sflag [#allocation24], %s1769_s27 }
 0x2a0   : > { %2886 = dma.done.wait (%p2197_p4), %s1770_s15, 256  }
 0x2a1   : > { %2888 = vsyncadd (%p2197_p4), %s1770_s15, 4294967040  ;;  %s39_s30 = sadd.s32 1, %s2943_s30   ;;  %s4163_s17 = sld [smem:[#allocation34_spill]] }
 0x2a2   : > { %p3967_p0 = scmp.ge.s32.totalorder %s39_s30, 10   ;;  %s4164_s4 = sld [smem:[#allocation35_spill]] }
 0x2a3   : > { %s4165_s23 = sld [smem:[#allocation36_spill]]  ;;  %s4170_s18 = smov %s2899_s19 }
 0x2a4   : > { %s4166_s26 = sld [smem:[#allocation39_spill]]  ;;  %s4171_s19 = smov %s3256_s12 }
 0x2a5   : > { %s4167_s3 = sld [smem:[#allocation47_spill]]  ;;  %s4173_s21 = smov %s2911_s22 }
 0x2a6   : > { %s4168_s0 = sld [smem:[#allocation49_spill]]  ;;  %s4174_s22 = smov %s3250_s8 }
 0x2a7   : > { %s4175_s24 = smov %s2923_s25  ;;  %s4176_s25 = smov %s3253_s28 }
 0x2a8   : > { %s4172_s20 = smov %s4164_s4  ;;  %s4177_s27 = smov %s2939_s29 }
 0x2a9   :  { %38 = sbr.rel (!%p3967_p0) target bundleno = 31 (0x1f), region = 209 }
 0x2ab   : > { %s4178_s28 = smov %s4167_s3 }
 0x2ac   : > { %s4179_s29 = smov %s4168_s0 }
 0x2ae   :  { %1786 = vsyncpa [#allocation8], 1 }
 0x2af   :  { %1788 = vsyncpa [#allocation8 + $0x1], 1 }
 0x2b0   :  { %1789 = vsyncpa [#allocation11], 1 }
 0x2b1   :  { %1791 = vsyncpa [#allocation11 + $0x1], 1 }
 0x2b2   :  { %1792 = vsyncpa [#allocation14], 1 }
 0x2b3   :  { %1794 = vsyncpa [#allocation14 + $0x1], 1 }
 0x2b4   :  { %1795 = vsyncpa [#allocation17], 1 }
 0x2b5   :  { %1796 = vsyncpa [#allocation20], 1 }
 0x2b6   :  { %1797 = vsyncpa [#allocation9], 1 }
 0x2b7   :  { %1799 = vsyncpa [#allocation9 + $0x1], 1 }
 0x2b8   :  { %1800 = vsyncpa [#allocation24], 1 }
 0x2b9   :  { %1802 = vsyncpa [#allocation24 + $0x1], 1 }

// kernel: tpu_custom_call.1
= control target key start
LH: loop header
LB: loop body
LE: loop exit
PB: predicated region body
PF: predicated region fallthrough
CT: control target
= control target key end

     0   :  { %s4014_s0 = inlined_call_operand.hbm [shape: f32[512,128], index: 0, kind: input, shape index: {}]   ;;  %s4015_s1 = inlined_call_operand.hbm [shape: f32[16,128], index: 1, kind: input, shape index: {}]   ;;  %s4016_s2 = inlined_call_operand.hbm [shape: f32[16,128], index: 2, kind: input, shape index: {}]   ;;  %s4017_s3 = inlined_call_operand.hbm [shape: f32[16,128], index: 3, kind: input, shape index: {}]   ;;  %s4018_s4 = inlined_call_operand.hbm [shape: f32[16,128], index: 4, kind: input, shape index: {}]   ;;  %s4019_s5 = inlined_call_operand.hbm [shape: f32[8,128], index: 5, kind: input, shape index: {}]   ;;  %s4020_s6 = inlined_call_operand.hbm [shape: f32[128,384], index: 6, kind: input, shape index: {}]   ;;  %s4021_s7 = inlined_call_operand.hbm [shape: f32[128,384], index: 7, kind: input, shape index: {}]   ;;  %s4022_s8 = inlined_call_operand.hbm [shape: f32[128,128], index: 8, kind: input, shape index: {}]   ;;  %s4023_s9 = inlined_call_operand.hbm [shape: f32[16,32,128], index: 9, kind: output, shape index: {0}]   ;;  %s4024_s10 = inlined_call_operand.hbm [shape: f32[16,128], index: 10, kind: output, shape index: {1}]   ;;  %s4025_s11 = inlined_call_operand.hbm [shape: f32[16,128], index: 11, kind: output, shape index: {2}]  }
   0x1   :  { %4062 = sst [smem:[#allocation52_spill]] %s4014_s0 }
   0x2   :  { %4063 = sst [smem:[#allocation53_spill]] %s4015_s1 }
   0x3   :  { %4064 = sst [smem:[#allocation54_spill]] %s4016_s2 }
   0x4   :  { %4065 = sst [smem:[#allocation55_spill]] %s4017_s3 }
   0x5   :  { %4066 = sst [smem:[#allocation56_spill]] %s4018_s4 }
   0x6   :  { %4067 = sst [smem:[#allocation57_spill]] %s4019_s5 }
   0x7   :  { %4068 = sst [smem:[#allocation58_spill]] %s4020_s6 }
   0x8   :  { %4069 = sst [smem:[#allocation59_spill]] %s4021_s7 }
   0x9   :  { %4070 = sst [smem:[#allocation60_spill]] %s4022_s8 }
   0xa   :  { %4071 = sst [smem:[#allocation61_spill]] %s4023_s9 }
   0xb   :  { %4072 = sst [smem:[#allocation62_spill]] %s4024_s10 }
   0xc   :  { %4073 = sst [smem:[#allocation63_spill]] %s4025_s11 }
   0xd   :  { %17 = vsyncpa [#allocation8], 0 }
   0xe   :  { %19 = vsyncpa [#allocation8 + $0x1], 0 }
   0xf   :  { %20 = vsyncpa [#allocation11], 0 }
  0x10   :  { %22 = vsyncpa [#allocation11 + $0x1], 0 }
  0x11   :  { %23 = vsyncpa [#allocation14], 0 }
  0x12   :  { %25 = vsyncpa [#allocation14 + $0x1], 0 }
  0x13   :  { %26 = vsyncpa [#allocation17], 0 }
  0x14   :  { %27 = vsyncpa [#allocation20], 0 }
  0x15   :  { %28 = vsyncpa [#allocation9], 0 }
  0x16   :  { %30 = vsyncpa [#allocation9 + $0x1], 0 }
  0x17   :  { %31 = vsyncpa [#allocation24], 0 }
  0x18   :  { %33 = vsyncpa [#allocation24 + $0x1], 0  ;;  %s3018_s17 = smov 0   ;;  %s3020_s18 = smov 0  }
  0x19   :  { %s3022_s19 = smov 0   ;;  %s3024_s20 = smov 0  }
  0x1a   :  { %s3026_s21 = smov 0   ;;  %s3028_s22 = smov 0  }
  0x1b   :  { %s3030_s23 = smov 0   ;;  %s3032_s24 = smov 0  }
  0x1c   :  { %s3034_s25 = smov 0   ;;  %s3036_s26 = smov 0  }
  0x1d   :  { %s3038_s27 = smov 0   ;;  %s3040_s28 = smov 0  }
  0x1e   :  { %s3042_s29 = smov 0   ;;  %s3044_s30 = smov 0  }
  0x1f LB: > { %4074 = sst [smem:[#allocation33_spill]] %s2891_s17  ;;  %s3089_s12 = sadd.s32 4294967295, %s2943_s30   ;;  %s2943_s30 = sphi %s3044_s30, %s39_s30   ;;  %s2939_s29 = sphi %s3042_s29, %s4179_s29   ;;  %s2935_s28 = sphi %s3040_s28, %s4178_s28   ;;  %s2931_s27 = sphi %s3038_s27, %s4177_s27   ;;  %s2927_s26 = sphi %s3036_s26, %s4166_s26   ;;  %s2923_s25 = sphi %s3034_s25, %s4176_s25   ;;  %s2919_s24 = sphi %s3032_s24, %s4175_s24   ;;  %s2915_s23 = sphi %s3030_s23, %s4165_s23   ;;  %s2911_s22 = sphi %s3028_s22, %s4174_s22   ;;  %s2907_s21 = sphi %s3026_s21, %s4173_s21   ;;  %s2903_s20 = sphi %s3024_s20, %s4172_s20   ;;  %s2899_s19 = sphi %s3022_s19, %s4171_s19   ;;  %s2895_s18 = sphi %s3020_s18, %s4170_s18   ;;  %s2891_s17 = sphi %s3018_s17, %s4163_s17  }
  0x20   : > { %4075 = sst [smem:[#allocation34_spill]] %s2895_s18  ;;  %p2031_p0 = scmp.ge.s32.totalorder %s2943_s30, 1 }
  0x21   : > { %4076 = sst [smem:[#allocation35_spill]] %s2907_s21  ;;  %p4033_p1 = scmp.eq.s32.totalorder %s3089_s12, 0 }
  0x22   : > { %4077 = sst [smem:[#allocation36_spill]] %s2919_s24  ;;  %p354_p2 = scmp.lt.s32.totalorder %s2943_s30, 9 }
  0x23   : > { %4078 = sst [smem:[#allocation37_spill]] %s2927_s26  ;;  %s2945_s9 = smov [#allocation16]  }
  0x24   : > { %4079 = sst [smem:[#allocation38_spill]] %s2931_s27  ;;  %p3097_p3 = pnand %p2031_p0, %p354_p2 }
  0x25   : > { %4080 = sst [smem:[#allocation39_spill]] %s2935_s28  ;;  %s368_s11 = sshll.u32 %s2945_s9, 4  ;;  %s369_s11 = int_to_ptr.vmem [resolvable:$true] %s368_s11 }
  0x26   : > { %4081 = sst [smem:[#allocation40_spill]] %s3089_s12  ;;  %p2163_p4 = pneg %p3097_p3 }
  0x27   : > { %s4082_s5 = sld [smem:[#allocation57_spill]]  ;;  %s2946_s9 = smov [#allocation19]  }
  0x28   : > { %s4083_s16 = scalar_select %p3097_p3, 1, 0 }
  0x29   : > { %p3105_p5 = pnand %p2163_p4, %p4033_p1  ;;  %s4086_s7 = sld [smem:[#allocation59_spill]] }
  0x2a   : > { %4084 = sst [smem:[#allocation41_spill]] %s4083_s16  ;;  %s393_s27 = sshll.u32 %s2946_s9, 4  ;;  %s394_s27 = int_to_ptr.vmem [resolvable:$true] %s393_s27 }
  0x2b   : > { %s4034_s26 = smov 384   ;;  %s4035_s16 = smov 24  }
  0x2c   : > { %p4031_p6 = scmp.eq.s32.totalorder %s2943_s30, 0  ;;  %p95_p7 = scmp.ne.s32.totalorder %s2911_s22, %s2907_s21 }
  0x2d   : > { %s366_s15 = sshll.u32 %s4082_s5, 4  ;;  %s4036_s5 = sadd.s32 4294967294, %s2943_s30   ;;  %s367_s15 = int_to_ptr.hbm [resolvable:$true] %s366_s15 }
  0x2e   : > { %2166 = dma.hbm_to_vmem [thread:$0]  (!%p3105_p5), %s367_s15, 128, %s369_s11, [#allocation17]  }
  0x2f   : > { %s391_s10 = sshll.u32 %s4086_s7, 4  ;;  %p101_p8 = scmp.ne.s32.totalorder %s2907_s21, %s2903_s20  ;;  %s392_s10 = int_to_ptr.hbm [resolvable:$true] %s391_s10 }
  0x30   : > { %2172 = dma.hbm_to_vmem [thread:$0]  (!%p3105_p5), %s392_s10, 6144, %s394_s27, [#allocation20], %s4034_s26, %s4034_s26, %s4035_s16  }
  0x31   : > { %p288_p9 = scmp.ne.s32.totalorder %s2899_s19, %s2895_s18  ;;  %p3130_p10 = por %p95_p7, %p4031_p6 }
  0x32   : > { %p289_p11 = scmp.eq.s32.totalorder %s3089_s12, 7  ;;  %p3137_p12 = por %p101_p8, %p4033_p1 }
  0x33   : > { %p294_p13 = scmp.ne.s32.totalorder %s2895_s18, %s2891_s17  ;;  %p295_p2 = scmp.eq.s32.totalorder %s4036_s5, 7 }
  0x34   : > { %s4088_s15 = scalar_select %p3137_p12, 1, 0 }
  0x35   : > { %p3143_p0 = por %p289_p11, %p288_p9  ;;  %p3149_p4 = por %p289_p11, %p95_p7 }
  0x36   : > { %4089 = sst [smem:[#allocation42_spill]] %s4088_s15  ;;  %p4049_p6 = scmp.lt.s32.totalorder %s2943_s30, 8 }
  0x37   : > { %s4090_s10 = scalar_select %p3143_p0, 1, 0 }
  0x38   : > { %s4092_s20 = scalar_select %p3149_p4, 1, 0 }
  0x39   : > { %4091 = sst [smem:[#allocation43_spill]] %s4090_s10  ;;  %p3154_p3 = por %p295_p2, %p294_p13 }
  0x3a   : > { %4093 = sst [smem:[#allocation44_spill]] %s4092_s20  ;;  %p3158_p1 = por %p295_p2, %p101_p8 }
  0x3b   : > { %s4094_s27 = scalar_select %p3154_p3, 1, 0 }
  0x3c   : > { %s4096_s9 = scalar_select %p3158_p1, 1, 0 }
  0x3d   : > { %4095 = sst [smem:[#allocation45_spill]] %s4094_s27  ;;  %s445_s14 = sand.u32 1, %s2943_s30  }
  0x3e   : > { %4097 = sst [smem:[#allocation46_spill]] %s4096_s9  ;;  %s447_s26 = sand.u32 1, %s2911_s22  }
  0x3f   : > { %s3164_s16 = sshll.u32 %s447_s26, 3  ;;  %s3167_s5 = sshll.u32 %s2939_s29, 3 }
  0x40   : > { %s4098_s1 = sld [smem:[#allocation53_spill]]  ;;  %s449_s20 = scalar_lea.vmem [#allocation10], %s3164_s16 }
  0x41   : > { %s457_s27 = sshll.u32 %s449_s20, 4  ;;  %p3178_p7 = pnand %p4049_p6, %p3130_p10  ;;  %s458_s27 = int_to_ptr.vmem [resolvable:$true] %s457_s27 }
  0x42   : > { %s4100_s3 = sld [smem:[#allocation55_spill]]  ;;  %s3186_s7 = scalar_lea.sflag [#allocation11], %s445_s14 }
  0x43   : > { %s3192_s20 = scalar_lea.sflag [#allocation14], %s445_s14  ;;  %s4101_s6 = sld [smem:[#allocation58_spill]] }
  0x44   : > { %s4102_s8 = sld [smem:[#allocation60_spill]]  ;;  %s4104_s4 = smov 384  }
  0x45   : > { %s4050_s15 = smov 128   ;;  %s4051_s9 = smov 8  }
  0x46   : > { %s453_s10 = scalar_lea.hbm %s4098_s1, %s3167_s5  ;;  %p69_p9 = scmp.ne.s32.totalorder %s2923_s25, %s2919_s24 }
  0x47   : > { %s455_s18 = sshll.u32 %s453_s10, 4  ;;  %s487_s10 = scalar_lea.vmem [#allocation13], %s3164_s16  ;;  %s456_s18 = int_to_ptr.hbm [resolvable:$true] %s455_s18 }
  0x48   : > { %s491_s21 = scalar_lea.hbm %s4100_s3, %s3167_s5  ;;  %s495_s11 = sshll.u32 %s487_s10, 4  ;;  %s496_s11 = int_to_ptr.vmem [resolvable:$true] %s495_s11 }
  0x49   : > { %2182 = dma.hbm_to_vmem [thread:$0]  (!%p3178_p7), %s456_s18, 128, %s458_s27, %s3186_s7  }
  0x4a   : > { %s493_s17 = sshll.u32 %s491_s21, 4  ;;  %s377_s1 = sshll.u32 %s4101_s6, 4  ;;  %s494_s17 = int_to_ptr.hbm [resolvable:$true] %s493_s17  ;;  %s378_s1 = int_to_ptr.hbm [resolvable:$true] %s377_s1 }
  0x4b   : > { %2188 = dma.hbm_to_vmem [thread:$0]  (!%p3178_p7), %s494_s17, 128, %s496_s11, %s3192_s20  }
  0x4c   : > { %s2949_s18 = smov [#allocation18]   ;;  %s405_s14 = sshll.u32 %s4102_s8, 4  ;;  %s406_s14 = int_to_ptr.hbm [resolvable:$true] %s405_s14 }
  0x4d   : > { %s379_s21 = sshll.u32 %s2949_s18, 4  ;;  %s4103_s3 = smov 24   ;;  %s380_s21 = int_to_ptr.vmem [resolvable:$true] %s379_s21 }
  0x4e   : > { %2169 = dma.hbm_to_vmem [thread:$0]  (!%p3105_p5), %s378_s1, 6144, %s380_s21, [#allocation17], %s4104_s4, %s4104_s4, %s4103_s3  }
  0x4f   : > { %s2950_s17 = smov [#allocation21]   ;;  %s48_s1 = sadd.s32 1, %s2935_s28 }
  0x50   : > { %s407_s11 = sshll.u32 %s2950_s17, 4  ;;  %s51_s3 = sadd.s32 1, %s2939_s29  ;;  %s408_s11 = int_to_ptr.vmem [resolvable:$true] %s407_s11 }
  0x51   : > { %2175 = dma.hbm_to_vmem [thread:$0]  (!%p3105_p5), %s406_s14, 2048, %s408_s11, [#allocation20], %s4050_s15, %s4050_s15, %s4051_s9  }
  0x52   : > { %p49_p8 = scmp.ge.s32.totalorder %s48_s1, 4  ;;  %s2029_s4 = sshll.u32 %s2939_s29, 2 }
  0x53   : > { %s56_s18 = sadd.s32 %s2935_s28, %s2029_s4  ;;  %s62_s21 = sadd.s32 1, %s2923_s25 }
  0x54   : > { %s4181_s1 = smov (%p49_p8, %s48_s1), 0  ;;  %s4183_s3 = smov (!%p49_p8, %s51_s3), %s2939_s29 }
  0x55   : > { %4105 = sst [smem:[#allocation47_spill]] %s4181_s1  ;;  %p75_p10 = scmp.ne.s32.totalorder %s2919_s24, %s2915_s23 }
  0x56   : > { %p53_p11 = scmp.ge.s32.totalorder %s4183_s3, 2  ;;  %s274_s13 = ssub.s32 %s2935_s28, %s4181_s1 }
  0x57   : > { %p4106_p5 = scmp.eq.s32.totalorder %s2943_s30, 0  ;;  %p4108_p2 = scmp.eq.s32.totalorder %s3089_s12, 0 }
  0x58   : > { %s4185_s3 = smov (%p53_p11, %s4183_s3), 0  ;;  %s278_s23 = sadd.s32 1, %s2899_s19 }
  0x59   : > { %p3229_p13 = por %p4106_p5, %p69_p9  ;;  %p3235_p6 = por %p4108_p2, %p75_p10 }
  0x5a   : > { %4111 = sst [smem:[#allocation49_spill]] %s4185_s3  ;;  %s421_s14 = sand.u32 1, %s2923_s25  }
  0x5b   : > { %s4109_s10 = scalar_select %p3235_p6, 1, 0 }
  0x5c   : > { %s2030_s17 = sshll.u32 %s4185_s3, 2  ;;  %s85_s11 = ssub.s32 %s2939_s29, %s4185_s3 }
  0x5d   : > { %4110 = sst [smem:[#allocation48_spill]] %s4109_s10  ;;  %s58_s4 = sadd.s32 %s2030_s17, %s4181_s1 }
  0x5e   : > { %p86_p8 = scmp.eq.s32.totalorder %s85_s11, 0  ;;  %s59_s15 = ssub.s32 %s56_s18, %s58_s4 }
  0x5f   : > { %s275_s9 = sor.u32 %s274_s13, %s85_s11  ;;  %p60_p9 = scmp.eq.s32.totalorder %s59_s15, 0 }
  0x60   : > { %p276_p10 = scmp.eq.s32.totalorder %s275_s9, 0  ;;  %s4112_s6 = sadd.s32 1, %s2911_s22 }
  0x61   : > { %s3250_s8 = scalar_select %p86_p8, %s2911_s22, %s4112_s6  }
  0x62   : > { %s3253_s28 = scalar_select %p60_p9, %s2923_s25, %s62_s21  }
  0x63   : > { %s3256_s12 = scalar_select %p276_p10, %s2899_s19, %s278_s23  }
  0x64   : > { %s2037_s10 = sshll.u32 %s421_s14, 6  ;;  %s2081_s24 = sshll.u32 %s56_s18, 6 }
  0x65   : > { %s4113_s0 = sld [smem:[#allocation52_spill]]  ;;  %s425_s13 = scalar_lea.vmem [#allocation7], %s2037_s10 }
  0x66   : > { %s435_s15 = sshll.u32 %s425_s13, 4  ;;  %p4114_p11 = scmp.lt.s32.totalorder %s2943_s30, 8  ;;  %s436_s15 = int_to_ptr.vmem [resolvable:$true] %s435_s15 }
  0x67   : > { %s4115_s2 = sld [smem:[#allocation54_spill]]  ;;  %s422_s23 = scalar_lea.sflag [#allocation8], %s421_s14 }
  0x68   : > { %p2177_p5 = pnand %p4114_p11, %p3229_p13  ;;  %s4116_s11 = smov 8  }
  0x69   : > { %s468_s10 = scalar_lea.vmem [#allocation12], %s3164_s16  ;;  %s4118_s13 = sld [smem:[#allocation56_spill]] }
  0x6a   : > { %s476_s17 = sshll.u32 %s468_s10, 4  ;;  %s506_s6 = scalar_lea.vmem [#allocation15], %s3164_s16  ;;  %s477_s17 = int_to_ptr.vmem [resolvable:$true] %s476_s17 }
  0x6b   : > { %s432_s4 = scalar_lea.hbm %s4113_s0, %s2081_s24  ;;  %s4117_s24 = smov 128  }
  0x6c   : > { %s433_s9 = sshll.u32 %s432_s4, 4  ;;  %s514_s21 = sshll.u32 %s506_s6, 4  ;;  %s434_s9 = int_to_ptr.hbm [resolvable:$true] %s433_s9  ;;  %s515_s21 = int_to_ptr.vmem [resolvable:$true] %s514_s21 }
  0x6d   : > { %s472_s18 = scalar_lea.hbm %s4115_s2, %s3167_s5  ;;  %s4119_s14 = sld [smem:[#allocation41_spill]] }
  0x6e   : > { %s474_s3 = sshll.u32 %s472_s18, 4  ;;  %s475_s3 = int_to_ptr.hbm [resolvable:$true] %s474_s3 }
  0x6f   : > { %2179 = dma.hbm_to_vmem [thread:$0]  (!%p2177_p5), %s434_s9, 1024, %s436_s15, %s422_s23, %s4117_s24, %s4117_s24, %s4116_s11  }
  0x70   : > { %2185 = dma.hbm_to_vmem [thread:$0]  (!%p3178_p7), %s475_s3, 128, %s477_s17, %s3186_s7  }
  0x71   : > { %s510_s0 = scalar_lea.hbm %s4118_s13, %s3167_s5 }
  0x72   : > { %s512_s1 = sshll.u32 %s510_s0, 4  ;;  %s513_s1 = int_to_ptr.hbm [resolvable:$true] %s512_s1 }
  0x73   : > { %2191 = dma.hbm_to_vmem [thread:$0]  (!%p3178_p7), %s513_s1, 128, %s515_s21, %s3192_s20  }
  0x74   : > { %p4120_p13 = scmp.ne.s32.totalorder %s4119_s14, 0 }
  0x76   : > { %523 = sbr.rel (%p4120_p13) target bundleno = 659 (0x293), region = 56 }
  0x7b   : > { %s4121_s15 = sld [smem:[#allocation36_spill]] }
  0x81   : > { %s525_s18 = sand.u32 1, %s4121_s15  }
  0x82   : > { %s2050_s23 = sshll.u32 %s525_s18, 6  ;;  %s526_s11 = scalar_lea.sflag [#allocation8], %s525_s18 }
  0x83   : > { %s3287_s7 = scalar_lea.vmem [#allocation7], %s2050_s23 }
  0x84   : > { %2862 = dma.done.wait (%p3235_p6), %s526_s11, 1024  }
  0x85   : > { %2864 = vsyncadd (%p3235_p6), %s526_s11, 4294966272  ;;  %s4123_s0 = sld [smem:[#allocation40_spill]] }
  0x86   : > { %s4124_s16 = sld [smem:[#allocation35_spill]] }
  0x8b   : > { %s3294_s26 = sand.u32 1, %s4123_s0  }
  0x8c   : > { %s537_s20 = sand.u32 1, %s4124_s16   ;;  %s536_s3 = scalar_lea.sflag [#allocation11], %s3294_s26 }
  0x8d   : > { %s3297_s1 = sshll.u32 %s537_s20, 3 }
  0x8e   : > { %s539_s24 = scalar_lea.vmem [#allocation10], %s3297_s1 }
  0x8f   : > { %2866 = dma.done.wait (%p3137_p12), %s536_s3, 256  }
  0x90   : > { %2868 = vsyncadd (%p3137_p12), %s536_s3, 4294967040  ;;  %s549_s10 = scalar_lea.vmem [#allocation12], %s3297_s1  ;;  %s556_s17 = scalar_lea.sflag [#allocation14], %s3294_s26 }
  0x91   : > { %s559_s27 = scalar_lea.vmem [#allocation13], %s3297_s1 }
  0x92   : > { %2870 = dma.done.wait (%p3137_p12), %s556_s17, 256  }
  0x93   : > { %2872 = vsyncadd (%p3137_p12), %s556_s17, 4294967040  ;;  %s569_s4 = scalar_lea.vmem [#allocation15], %s3297_s1  ;;  %p4126_p6 = scmp.eq.s32.totalorder %s4123_s0, 0 }
  0x95   : > { %2874 = dma.done.wait (%p4126_p6), [#allocation17], 6272   ;;  %p4127_p7 = pmov %p4126_p6 }
  0x96   : > { %p4128_p2 = pmov %p4126_p6 }
  0x97   : > { %2876 = vsyncadd (%p4127_p7), [#allocation17], 4294961024 }
  0x98   : > { %2878 = dma.done.wait (%p4128_p2), [#allocation20], 8192   ;;  %p4129_p8 = pmov %p4128_p2 }
  0x99   : > { %s4130_s13 = sld [smem:[#allocation34_spill]]  ;;  %s651_s15 = scalar_lea.vmem [#allocation23], %s3297_s1 }
  0x9a   : > { %2880 = vsyncadd (%p4129_p8), [#allocation20], 4294959104  ;;  %s658_s9 = scalar_lea.vmem [#allocation25], %s3297_s1  ;;  %s4131_s18 = sld [smem:[#allocation37_spill]] }
  0x9f   : > { %s4061_s6 = sand.u32 1, %s4130_s13  }
  0xa0   : > { %s2059_s21 = sshll.u32 %s4061_s6, 6  ;;  %p2062_p12 = scmp.ne.s32.totalorder %s4131_s18, 0 }
  0xa1   : > { %s3324_s14 = scalar_lea.vmem [#allocation22], %s2059_s21 }
  0xa2   : > { %666 = sbr.rel (%p2062_p12) target bundleno = 172 (0xac), region = 96 }
  0xa7   : > { %v667_v0 = vld [vmem:[%s539_s24] sm:$0xff]  ;;  %v669_v1 = vld [vmem:[%s549_s10] sm:$0xff] }
  0xa8   : > { %v671_v2 = vld [vmem:[%s559_s27] sm:$0xff]  ;;  %668 = vst [vmem:[#allocation3] sm:$0xff] %v667_v0  ;;  %v673_v3 = vld [vmem:[%s569_s4] sm:$0xff] }
  0xa9   : > { %670 = vst [vmem:[#allocation4] sm:$0xff] %v669_v1 }
  0xaa   : > { %672 = vst [vmem:[#allocation5] sm:$0xff] %v671_v2 }
  0xab   : > { %674 = vst [vmem:[#allocation6] sm:$0xff] %v673_v3 }
  0xac PF: > { %v778_v4 = vld [vmem:[#allocation19 + $0x168] sm:$0xff]  ;;  %v779_v5 = vld [vmem:[#allocation19 + $0x170] sm:$0xff]  ;;  %v776_v7 = vld [vmem:[#allocation19 + $0x158] sm:$0xff]  ;;  %s4148_s23 = sld [smem:[#allocation38_spill]]  ;;  %s1731_s3 = sshll.u32 %s651_s15, 4  ;;  %s1732_s3 = int_to_ptr.vmem [resolvable:$true] %s1731_s3 }
  0xad   : > { %v775_v6 = vld [vmem:[#allocation19 + $0x150] sm:$0xff]  ;;  %781 = vmatpush.msra.mxu0 %v778_v4  ;;  %2083 = vmatpush.msra.mxu3 %v778_v4  ;;  %v772_v8 = vld [vmem:[#allocation19 + $0x138] sm:$0xff]  ;;  %v773_v9 = vld [vmem:[#allocation19 + $0x140] sm:$0xff]  ;;  %s4150_s5 = sld [smem:[#allocation62_spill]]  ;;  %s1695_s10 = scalar_lea.sflag [#allocation24], %s3294_s26 }
  0xae   : > { %822 = vmatpush.msra.mxu1 %v779_v5  ;;  %v769_v10 = vld [vmem:[#allocation19 + $0x120] sm:$0xff]  ;;  %v770_v11 = vld [vmem:[#allocation19 + $0x128] sm:$0xff]  ;;  %v767_v13 = vld [vmem:[#allocation19 + $0x110] sm:$0xff] }
  0xaf   : > { %782 = vmatpush.msra.mxu0 %v775_v6  ;;  %2084 = vmatpush.msra.mxu3 %v775_v6  ;;  %v766_v12 = vld [vmem:[#allocation19 + $0x108] sm:$0xff]  ;;  %v763_v14 = vld [vmem:[#allocation19 + $0xf0] sm:$0xff]  ;;  %v764_v15 = vld [vmem:[#allocation19 + $0xf8] sm:$0xff] }
  0xb0   : > { %823 = vmatpush.msra.mxu1 %v776_v7  ;;  %v760_v16 = vld [vmem:[#allocation19 + $0xd8] sm:$0xff]  ;;  %v761_v17 = vld [vmem:[#allocation19 + $0xe0] sm:$0xff]  ;;  %v758_v19 = vld [vmem:[#allocation19 + $0xc8] sm:$0xff] }
  0xb1   : > { %783 = vmatpush.msra.mxu0 %v772_v8  ;;  %2085 = vmatpush.msra.mxu3 %v772_v8  ;;  %v757_v18 = vld [vmem:[#allocation19 + $0xc0] sm:$0xff]  ;;  %v754_v20 = vld [vmem:[#allocation19 + $0xa8] sm:$0xff]  ;;  %v755_v21 = vld [vmem:[#allocation19 + $0xb0] sm:$0xff] }
  0xb2   : > { %824 = vmatpush.msra.mxu1 %v773_v9  ;;  %v780_v22 = vld [vmem:[#allocation19 + $0x178] sm:$0xff]  ;;  %v751_v23 = vld [vmem:[#allocation19 + $0x90] sm:$0xff]  ;;  %v777_v24 = vld [vmem:[#allocation19 + $0x160] sm:$0xff] }
  0xb3   : > { %784 = vmatpush.msra.mxu0 %v769_v10  ;;  %2086 = vmatpush.msra.mxu3 %v769_v10  ;;  %v752_v25 = vld [vmem:[#allocation19 + $0x98] sm:$0xff]  ;;  %v774_v26 = vld [vmem:[#allocation19 + $0x148] sm:$0xff]  ;;  %v749_v28 = vld [vmem:[#allocation19 + $0x80] sm:$0xff]  ;;  %s2741_s21 = scalar_lea.hbm %s4150_s5, 16 }
  0xb4   : > { %825 = vmatpush.msra.mxu1 %v770_v11  ;;  %863 = vmatpush.msra.mxu2 %v780_v22  ;;  %v748_v27 = vld [vmem:[#allocation19 + $0x78] sm:$0xff]  ;;  %v771_v29 = vld [vmem:[#allocation19 + $0x130] sm:$0xff]  ;;  %v745_v30 = vld [vmem:[#allocation19 + $0x60] sm:$0xff] }
  0xb5   : > { %785 = vmatpush.msra.mxu0 %v766_v12  ;;  %2087 = vmatpush.msra.mxu3 %v766_v12  ;;  %v746_v31 = vld [vmem:[#allocation19 + $0x68] sm:$0xff]  ;;  %v768_v32 = vld [vmem:[#allocation19 + $0x118] sm:$0xff]  ;;  %v743_v34 = vld [vmem:[#allocation19 + $0x50] sm:$0xff] }
  0xb6   : > { %826 = vmatpush.msra.mxu1 %v767_v13  ;;  %864 = vmatpush.msra.mxu2 %v777_v24  ;;  %v742_v33 = vld [vmem:[#allocation19 + $0x48] sm:$0xff]  ;;  %v765_v35 = vld [vmem:[#allocation19 + $0x100] sm:$0xff]  ;;  %v739_v36 = vld [vmem:[#allocation19 + $0x30] sm:$0xff] }
  0xb7   : > { %786 = vmatpush.msra.mxu0 %v763_v14  ;;  %2088 = vmatpush.msra.mxu3 %v763_v14  ;;  %v740_v37 = vld [vmem:[#allocation19 + $0x38] sm:$0xff]  ;;  %v762_v38 = vld [vmem:[#allocation19 + $0xe8] sm:$0xff]  ;;  %v737_v40 = vld [vmem:[#allocation19 + $0x20] sm:$0xff] }
  0xb8   : > { %827 = vmatpush.msra.mxu1 %v764_v15  ;;  %865 = vmatpush.msra.mxu2 %v774_v26  ;;  %v736_v39 = vld [vmem:[#allocation19 + $0x18] sm:$0xff]  ;;  %v759_v41 = vld [vmem:[#allocation19 + $0xd0] sm:$0xff]  ;;  %v733_v42 = vld [vmem:[#allocation19] sm:$0xff] }
  0xb9   : > { %787 = vmatpush.msra.mxu0 %v760_v16  ;;  %2089 = vmatpush.msra.mxu3 %v760_v16  ;;  %v734_v43 = vld [vmem:[#allocation19 + $0x8] sm:$0xff]  ;;  %v3329_v44 = vld [vmem:[#allocation3] sm:$0xff]  ;;  %v3332_v45 = vld [vmem:[%s3287_s7 + $0x18] sm:$0xff] }
  0xba   : > { %828 = vmatpush.msra.mxu1 %v761_v17  ;;  %866 = vmatpush.msra.mxu2 %v771_v29  ;;  %v731_v46 = vld [vmem:[#allocation18 + $0x170] sm:$0xff]  ;;  %v730_v47 = vld [vmem:[#allocation18 + $0x168] sm:$0xff]  ;;  %v756_v48 = vld [vmem:[#allocation19 + $0xb8] sm:$0xff] }
  0xbb   : > { %788 = vmatpush.msra.mxu0 %v757_v18  ;;  %2090 = vmatpush.msra.mxu3 %v757_v18  ;;  %v728_v49 = vld [vmem:[#allocation18 + $0x158] sm:$0xff]  ;;  %v727_v50 = vld [vmem:[#allocation18 + $0x150] sm:$0xff]  ;;  %v753_v51 = vld [vmem:[#allocation19 + $0xa0] sm:$0xff] }
  0xbc   : > { %829 = vmatpush.msra.mxu1 %v758_v19  ;;  %867 = vmatpush.msra.mxu2 %v768_v32  ;;  %v725_v52 = vld [vmem:[#allocation18 + $0x140] sm:$0xff]  ;;  %v724_v53 = vld [vmem:[#allocation18 + $0x138] sm:$0xff]  ;;  %v750_v55 = vld [vmem:[#allocation19 + $0x88] sm:$0xff] }
  0xbd   : > { %789 = vmatpush.msra.mxu0 %v754_v20  ;;  %2091 = vmatpush.msra.mxu3 %v754_v20  ;;  %v3337_v54 = vld [vmem:[#allocation18 + $0x178] sm:$0xff]  ;;  %v3339_v56 = vld [vmem:[#allocation18 + $0x160] sm:$0xff]  ;;  %v722_v57 = vld [vmem:[#allocation18 + $0x128] sm:$0xff] }
  0xbe   : > { %830 = vmatpush.msra.mxu1 %v755_v21  ;;  %868 = vmatpush.msra.mxu2 %v765_v35  ;;  %v721_v58 = vld [vmem:[#allocation18 + $0x120] sm:$0xff]  ;;  %v3343_v59 = vld [vmem:[%s3287_s7] sm:$0xff]  ;;  %v719_v61 = vld [vmem:[#allocation18 + $0x110] sm:$0xff] }
  0xbf   : > { %790 = vmatpush.msra.mxu0 %v751_v23  ;;  %2092 = vmatpush.msra.mxu3 %v751_v23  ;;  %v3346_v60 = vld [vmem:[%s3287_s7 + $0x20] sm:$0xff]  ;;  %v718_v62 = vld [vmem:[#allocation18 + $0x108] sm:$0xff]  ;;  %v747_v63 = vld [vmem:[#allocation19 + $0x70] sm:$0xff] }
  0xc0   : > { %831 = vmatpush.msra.mxu1 %v752_v25  ;;  %869 = vmatpush.msra.mxu2 %v762_v38  ;;  %v716_v0 = vld [vmem:[#allocation18 + $0xf8] sm:$0xff]  ;;  %v3351_v1 = vld [vmem:[#allocation18 + $0x148] sm:$0xff]  ;;  %v715_v2 = vld [vmem:[#allocation18 + $0xf0] sm:$0xff] }
  0xc1   : > { %791 = vmatpush.msra.mxu0 %v748_v27  ;;  %2093 = vmatpush.msra.mxu3 %v748_v27  ;;  %v744_v3 = vld [vmem:[#allocation19 + $0x58] sm:$0xff]  ;;  %v713_v4 = vld [vmem:[#allocation18 + $0xe0] sm:$0xff]  ;;  %v3354_v5 = vld [vmem:[#allocation18 + $0x130] sm:$0xff] }
  0xc2   : > { %832 = vmatpush.msra.mxu1 %v749_v28  ;;  %870 = vmatpush.msra.mxu2 %v759_v41  ;;  %v712_v6 = vld [vmem:[#allocation18 + $0xd8] sm:$0xff]  ;;  %v741_v7 = vld [vmem:[#allocation19 + $0x40] sm:$0xff]  ;;  %v710_v8 = vld [vmem:[#allocation18 + $0xc8] sm:$0xff] }
  0xc3   : > { %792 = vmatpush.msra.mxu0 %v745_v30  ;;  %2094 = vmatpush.msra.mxu3 %v745_v30  ;;  %v3357_v9 = vld [vmem:[#allocation18 + $0x118] sm:$0xff]  ;;  %v709_v10 = vld [vmem:[#allocation18 + $0xc0] sm:$0xff]  ;;  %v707_v13 = vld [vmem:[#allocation18 + $0xb0] sm:$0xff] }
  0xc4   : > { %833 = vmatpush.msra.mxu1 %v746_v31  ;;  %871 = vmatpush.msra.mxu2 %v756_v48  ;;  %v3360_v11 = vld [vmem:[%s3287_s7 + $0x8] sm:$0xff]  ;;  %v706_v14 = vld [vmem:[#allocation18 + $0xa8] sm:$0xff]  ;;  %v704_v17 = vld [vmem:[#allocation18 + $0x98] sm:$0xff] }
  0xc5   : > { %793 = vmatpush.msra.mxu0 %v742_v33  ;;  %2095 = vmatpush.msra.mxu3 %v742_v33  ;;  %v3364_v12 = vld [vmem:[%s3287_s7 + $0x28] sm:$0xff]  ;;  %v738_v15 = vld [vmem:[#allocation19 + $0x28] sm:$0xff]  ;;  %v703_v18 = vld [vmem:[#allocation18 + $0x90] sm:$0xff] }
  0xc6   : > { %834 = vmatpush.msra.mxu1 %v743_v34  ;;  %872 = vmatpush.msra.mxu2 %v753_v51  ;;  %v3368_v16 = vld [vmem:[#allocation18 + $0x100] sm:$0xff]  ;;  %v735_v19 = vld [vmem:[#allocation19 + $0x10] sm:$0xff]  ;;  %v3372_v20 = vld [vmem:[#allocation18 + $0xe8] sm:$0xff] }
  0xc7   : > { %794 = vmatpush.msra.mxu0 %v739_v36  ;;  %2096 = vmatpush.msra.mxu3 %v739_v36  ;;  %v701_v21 = vld [vmem:[#allocation18 + $0x80] sm:$0xff]  ;;  %v700_v22 = vld [vmem:[#allocation18 + $0x78] sm:$0xff]  ;;  %v3375_v23 = vld [vmem:[#allocation18 + $0xd0] sm:$0xff] }
  0xc8   : > { %835 = vmatpush.msra.mxu1 %v740_v37  ;;  %873 = vmatpush.msra.mxu2 %v750_v55  ;;  %v698_v24 = vld [vmem:[#allocation18 + $0x68] sm:$0xff]  ;;  %v697_v25 = vld [vmem:[#allocation18 + $0x60] sm:$0xff]  ;;  %v695_v28 = vld [vmem:[#allocation18 + $0x50] sm:$0xff] }
  0xc9   : > { %795 = vmatpush.msra.mxu0 %v736_v39  ;;  %2097 = vmatpush.msra.mxu3 %v736_v39  ;;  %v3379_v26 = vld [vmem:[%s3287_s7 + $0x10] sm:$0xff]  ;;  %v708_v30 = vld [vmem:[#allocation18 + $0xb8] sm:$0xff]  ;;  %v691_v32 = vld [vmem:[#allocation18 + $0x30] sm:$0xff] }
  0xca   : > { %836 = vmatpush.msra.mxu1 %v737_v40  ;;  %874 = vmatpush.msra.mxu2 %v747_v63  ;;  %v3382_v27 = vld [vmem:[%s3287_s7 + $0x30] sm:$0xff]  ;;  %v692_v31 = vld [vmem:[#allocation18 + $0x38] sm:$0xff]  ;;  %v705_v33 = vld [vmem:[#allocation18 + $0xa0] sm:$0xff] }
  0xcb   : > { %796 = vmatpush.msra.mxu0 %v733_v42  ;;  %2098 = vmatpush.msra.mxu3 %v733_v42  ;;  %v694_v29 = vld [vmem:[#allocation18 + $0x48] sm:$0xff]  ;;  %v689_v34 = vld [vmem:[#allocation18 + $0x20] sm:$0xff]  ;;  %v688_v35 = vld [vmem:[#allocation18 + $0x18] sm:$0xff] }
  0xcc   : > { %837 = vmatpush.msra.mxu1 %v734_v43  ;;  %797 = vmatmul.f32.vlgmr.msra.gmra.mxu0 %v3329_v44  ;;  %v686_v36 = vld [vmem:[#allocation18 + $0x8] sm:$0xff]  ;;  %v685_v38 = vld [vmem:[#allocation18] sm:$0xff]  ;;  %v699_v39 = vld [vmem:[#allocation18 + $0x70] sm:$0xff] }
  0xcd   : > { %809 = vmatmul.f32.vlgmr.msra.gmra.mxu3 %v3332_v45  ;;  %838 = vmatmul.f32.vlgmr.msra.gmra.mxu1 %v3329_v44  ;;  %v702_v37 = vld [vmem:[#allocation18 + $0x88] sm:$0xff]  ;;  %v696_v40 = vld [vmem:[#allocation18 + $0x58] sm:$0xff]  ;;  %v693_v41 = vld [vmem:[#allocation18 + $0x40] sm:$0xff] }
  0xce   : > { %945 = vmatpush.msrb.mxu0 %v731_v46  ;;  %904 = vmatpush.msrb.mxu3 %v730_v47  ;;  %v690_v42 = vld [vmem:[#allocation18 + $0x28] sm:$0xff]  ;;  %v687_v43 = vld [vmem:[#allocation18 + $0x10] sm:$0xff] }
  0xcf   : > { %2099 = vmatpush.msrb.mxu1 %v3337_v54  ;;  %875 = vmatpush.msra.mxu2 %v744_v3 }
  0xd0   : > { %946 = vmatpush.msrb.mxu0 %v728_v49  ;;  %905 = vmatpush.msrb.mxu3 %v727_v50 }
  0xd1   : > { %2100 = vmatpush.msrb.mxu1 %v3339_v56  ;;  %876 = vmatpush.msra.mxu2 %v741_v7 }
  0xd2   : > { %947 = vmatpush.msrb.mxu0 %v725_v52  ;;  %906 = vmatpush.msrb.mxu3 %v724_v53 }
  0xd3   : > { %2101 = vmatpush.msrb.mxu1 %v3351_v1  ;;  %877 = vmatpush.msra.mxu2 %v738_v15 }
  0xd4   : > { %948 = vmatpush.msrb.mxu0 %v722_v57  ;;  %907 = vmatpush.msrb.mxu3 %v721_v58 }
  0xd5   : > { %800 = vmatmul.f32.gmra.mxu0 %v3343_v59  ;;  %812 = vmatmul.f32.gmra.mxu3 %v3346_v60 }
  0xd6   : > { %841 = vmatmul.f32.gmra.mxu1 %v3343_v59  ;;  %949 = vmatpush.msrb.mxu0 %v719_v61  ;;  %v1055_v61 = vld [vmem:[#allocation6] sm:$0xff] }
  0xd7   : > { %908 = vmatpush.msrb.mxu3 %v718_v62  ;;  %2102 = vmatpush.msrb.mxu1 %v3354_v5 }
  0xd8   : > { %950 = vmatpush.msrb.mxu0 %v716_v0  ;;  %878 = vmatpush.msra.mxu2 %v735_v19 }
  0xd9   : > { %909 = vmatpush.msrb.mxu3 %v715_v2  ;;  %2103 = vmatpush.msrb.mxu1 %v3357_v9 }
  0xda   : > { %951 = vmatpush.msrb.mxu0 %v713_v4  ;;  %879 = vmatmul.f32.vlgmr.msra.gmra.mxu2 %v3329_v44  ;;  %v682_v44 = vld [vmem:[%s3287_s7 + $0x38] sm:$0xff]  ;;  %v3457_v4 = vld [vmem:[#allocation16] ss:$0 sm:$0xff]  ;;  %s2077_s7 = sshll.u32 %s4148_s23, 3 }
  0xdb   : > { %910 = vmatpush.msrb.mxu3 %v712_v6  ;;  %2104 = vmatpush.msrb.mxu1 %v3368_v16  ;;  %684 = vst [vmem:[#allocation3] sm:$0xff] %v682_v44  ;;  %s1729_s20 = scalar_lea.hbm %s4150_s5, %s2077_s7 }
  0xdc   : > { %952 = vmatpush.msrb.mxu0 %v710_v8  ;;  %s1733_s24 = sshll.u32 %s1729_s20, 4  ;;  %s1734_s24 = int_to_ptr.hbm [resolvable:$true] %s1733_s24 }
  0xdd   : > { %911 = vmatpush.msrb.mxu3 %v709_v10  ;;  %803 = vmatmul.f32.gmra.mxu0 %v3360_v11  ;;  %s2735_s17 = sshra.s32 %s1734_s24, 4  ;;  %s2736_s17 = int_to_ptr.hbm [resolvable:$true] %s2735_s17 }
  0xde   : > { %815 = vmatmul.f32.gmra.mxu3 %v3364_v12  ;;  %844 = vmatmul.f32.gmra.mxu1 %v3360_v11  ;;  %s2737_s27 = scalar_lea.hbm %s2736_s17, 8  ;;  %p2742_p5 = scmp.lt.s32.totalorder %s2736_s17, %s4150_s5 }
  0xdf   : > { %953 = vmatpush.msrb.mxu0 %v707_v13  ;;  %912 = vmatpush.msrb.mxu3 %v706_v14  ;;  %p2738_p9 = scmp.ne.s32.totalorder %s2736_s17, %s2737_s27  ;;  %p2743_p13 = scmp.lt.s32.totalorder %s2741_s21, %s2737_s27 }
  0xe0   : > { %2105 = vmatpush.msrb.mxu1 %v3372_v20 }
  0xe1   : > { %954 = vmatpush.msrb.mxu0 %v704_v17  ;;  %913 = vmatpush.msrb.mxu3 %v703_v18  ;;  %v1525_v17 = vld [vmem:[#allocation21 + $0x70] sm:$0xff]  ;;  %p2739_p10 = pnand %p2738_p9, %p3149_p4  ;;  %p2744_p6 = por %p2743_p13, %p2742_p5 }
  0xe2   : > { %2106 = vmatpush.msrb.mxu1 %v3375_v23  ;;  %882 = vmatmul.f32.gmra.mxu2 %v3343_v59 }
  0xe3   : > { %955 = vmatpush.msrb.mxu0 %v701_v21  ;;  %914 = vmatpush.msrb.mxu3 %v700_v22  ;;  %p2740_p11 = pneg %p2739_p10 }
  0xe4   : > { %2107 = vmatpush.msrb.mxu1 %v708_v30 }
  0xe5   : > { %956 = vmatpush.msrb.mxu0 %v698_v24  ;;  %915 = vmatpush.msrb.mxu3 %v697_v25  ;;  %p2745_p7 = pnand %p2744_p6, %p2740_p11 }
  0xe6   : > { %806 = vmatmul.f32.gmra.mxu0 %v3379_v26  ;;  %818 = vmatmul.f32.gmra.mxu3 %v3382_v27 }
  0xe7   : > { %847 = vmatmul.f32.gmra.mxu1 %v3379_v26  ;;  %957 = vmatpush.msrb.mxu0 %v695_v28 }
  0xe8   : > { %916 = vmatpush.msrb.mxu3 %v694_v29  ;;  %2108 = vmatpush.msrb.mxu1 %v705_v33 }
  0xe9   : > { %958 = vmatpush.msrb.mxu0 %v692_v31 }
  0xea   : > { %917 = vmatpush.msrb.mxu3 %v691_v32  ;;  %2109 = vmatpush.msrb.mxu1 %v702_v37 }
  0xeb   : > { %959 = vmatpush.msrb.mxu0 %v689_v34  ;;  %885 = vmatmul.f32.gmra.mxu2 %v3360_v11 }
  0xec   : > { %918 = vmatpush.msrb.mxu3 %v688_v35  ;;  %2110 = vmatpush.msrb.mxu1 %v699_v39 }
  0xed   : > { %960 = vmatpush.msrb.mxu0 %v686_v36 }
  0xee   : > { %919 = vmatpush.msrb.mxu3 %v685_v38  ;;  %961 = vmatmul.f32.vlgmr.msrb.gmra.mxu0 %v3343_v59 }
  0xef   : > { %850 = vmatmul.f32.gmra.mxu1 %v3332_v45  ;;  %920 = vmatmul.f32.vlgmr.msrb.gmra.mxu3 %v3343_v59 }
  0xf0   : > { %986 = vmatpush.msra.mxu0 %v3337_v54  ;;  %2111 = vmatpush.msrb.mxu1 %v696_v40 }
  0xf2   : > { %987 = vmatpush.msra.mxu0 %v3339_v56  ;;  %2112 = vmatpush.msrb.mxu1 %v693_v41 }
  0xf3   : > { %888 = vmatmul.f32.gmra.mxu2 %v3379_v26 }
  0xf4   : > { %988 = vmatpush.msra.mxu0 %v3351_v1  ;;  %2113 = vmatpush.msrb.mxu1 %v690_v42 }
  0xf6   : > { %964 = vmatmul.f32.gmra.mxu0 %v3360_v11  ;;  %2114 = vmatpush.msrb.mxu1 %v687_v43 }
  0xf7   : > { %853 = vmatmul.f32.gmra.mxu1 %v3346_v60  ;;  %923 = vmatmul.f32.gmra.mxu3 %v3360_v11 }
  0xf8   : > { %989 = vmatpush.msra.mxu0 %v3354_v5 }
  0xfa   : > { %990 = vmatpush.msra.mxu0 %v3357_v9 }
  0xfb   : > { %891 = vmatmul.f32.gmra.mxu2 %v3332_v45 }
  0xfc   : > { %991 = vmatpush.msra.mxu0 %v3368_v16  ;;  %v1526_v16 = vld [vmem:[#allocation21 + $0x78] sm:$0xff] }
  0xfd   : > { %1527 = vmatpush.msrb.mxu2 %v1526_v16  ;;  %2115 = vmatpush.msra.mxu3 %v1526_v16 }
  0xfe   : > { %967 = vmatmul.f32.gmra.mxu0 %v3379_v26 }
  0xff   : > { %856 = vmatmul.f32.gmra.mxu1 %v3364_v12  ;;  %926 = vmatmul.f32.gmra.mxu3 %v3379_v26 }
 0x100   : > { %992 = vmatpush.msra.mxu0 %v3372_v20  ;;  %1528 = vmatpush.msrb.mxu2 %v1525_v17 }
 0x101   : > { %2116 = vmatpush.msra.mxu3 %v1525_v17 }
 0x102   : > { %993 = vmatpush.msra.mxu0 %v3375_v23 }
 0x103   : > { %894 = vmatmul.f32.gmra.mxu2 %v3346_v60 }
 0x104   : > { %994 = vmatpush.msra.mxu0 %v708_v30 }
 0x106   : > { %970 = vmatmul.f32.gmra.mxu0 %v3332_v45 }
 0x107   : > { %859 = vmatmul.f32.gmra.mxu1 %v3382_v27  ;;  %929 = vmatmul.f32.gmra.mxu3 %v3332_v45 }
 0x108   : > { %995 = vmatpush.msra.mxu0 %v705_v33  ;;  %v3480_v33 = vld [vmem:[#allocation4] sm:$0xff] }
 0x10a   : > { %996 = vmatpush.msra.mxu0 %v702_v37 }
 0x10b   : > { %897 = vmatmul.f32.gmra.mxu2 %v3364_v12 }
 0x10c   : > { %997 = vmatpush.msra.mxu0 %v699_v39 }
 0x10e   : > { %973 = vmatmul.f32.gmra.mxu0 %v3346_v60 }
 0x10f   : > { %932 = vmatmul.f32.gmra.mxu3 %v3346_v60  ;;  %1008 = vmatmul.f32.vlgmr.msrb.gmra.mxu1 %v3379_v26 }
 0x110   : > { %998 = vmatpush.msra.mxu0 %v696_v40 }
 0x112   : > { %999 = vmatpush.msra.mxu0 %v693_v41 }
 0x113   : > { %900 = vmatmul.f32.gmra.mxu2 %v3382_v27 }
 0x114   : > { %1000 = vmatpush.msra.mxu0 %v690_v42  ;;  %v1524_v42 = vld [vmem:[#allocation21 + $0x68] sm:$0xff] }
 0x115   : > { %1529 = vmatpush.msrb.mxu2 %v1524_v42  ;;  %2117 = vmatpush.msra.mxu3 %v1524_v42 }
 0x116   : > { %976 = vmatmul.f32.gmra.mxu0 %v3364_v12 }
 0x117   : > { %935 = vmatmul.f32.gmra.mxu3 %v3364_v12  ;;  %1011 = vmatmul.f32.gmra.mxu1 %v3332_v45 }
 0x118   : > { %1001 = vmatpush.msra.mxu0 %v687_v43  ;;  %v1523_v43 = vld [vmem:[#allocation21 + $0x60] sm:$0xff] }
 0x119   : > { %1530 = vmatpush.msrb.mxu2 %v1523_v43  ;;  %2118 = vmatpush.msra.mxu3 %v1523_v43 }
 0x11e   : > { %979 = vmatmul.f32.gmra.mxu0 %v3382_v27 }
 0x11f   : > { %938 = vmatmul.f32.gmra.mxu3 %v3382_v27  ;;  %1014 = vmatmul.f32.gmra.mxu1 %v3346_v60  ;;  %v3450_v60 = vld [vmem:[#allocation16 + $0x1] ss:$0 sm:$0xff] }
 0x120   : > { %v1079_v62 = vadd.f32 %v3450_v60, %v1055_v61 }
 0x126   : > { %982 = vmatmul.f32.gmra.mxu0 %v682_v44 }
 0x127   : > { %941 = vmatmul.f32.gmra.mxu3 %v682_v44  ;;  %1017 = vmatmul.f32.gmra.mxu1 %v3364_v12 }
 0x12e   : > { %1002 = vmatmul.f32.vlgmr.msra.gmra.mxu0 %v3343_v59 }
 0x12f   : > { %1020 = vmatmul.f32.gmra.mxu1 %v3382_v27 }
 0x136   : > { %1005 = vmatmul.f32.gmra.mxu0 %v3360_v11 }
 0x137   : > { %1023 = vmatmul.f32.gmra.mxu1 %v682_v44 }
 0x149   : > { %v798_v45 = vpop.f32.mrf.mxu0 }
 0x14a   : > { %v839_v46 = vpop.f32.mrf.mxu1 }
 0x150   : > { %v3430_v47 = vpop.f32.mrf.mxu3 }
 0x152   : > { %v801_v48 = vpop.f32.mrf.mxu0 }
 0x153   : > { %v3432_v49 = vpop.f32.mrf.mxu1 }
 0x158   : > { %v3434_v50 = vpop.f32.mrf.mxu3 }
 0x15a   : > { %v804_v51 = vpop.f32.mrf.mxu0 }
 0x15b   : > { %v3436_v52 = vpop.f32.mrf.mxu1 }
 0x15d   : > { %v3448_v59 = vpop.f32.mrf.mxu2 }
 0x161   : > { %v3438_v53 = vpop.f32.mrf.mxu3 }
 0x163   : > { %v3440_v54 = vpop.f32.mrf.mxu0 }
 0x164   : > { %v3442_v55 = vpop.f32.mrf.mxu1 }
 0x165   : > { %v3459_v5 = vpop.f32.mrf.mxu2 }
 0x169   : > { %v3444_v56 = vpop.f32.mrf.mxu3 }
 0x16b   : > { %v962_v57 = vpop.f32.mrf.mxu0 }
 0x16c   : > { %v3446_v58 = vpop.f32.mrf.mxu1  ;;  %v3482_v34 = vadd.f32 %v962_v57, %v839_v46 }
 0x16e   : > { %v3477_v24 = vpop.f32.mrf.mxu2 }
 0x172   : > { %v921_v63 = vpop.f32.mrf.mxu3 }
 0x173   : > { %v922_v0 = vadd.f32 %v921_v63, %v798_v45  ;;  %v3453_v1 = vpop.f32.mrf.mxu0 }
 0x174   : > { %v3455_v2 = vpop.f32.mrf.mxu1 }
 0x175   : > { %v1080_v3 = vmax.f32 %v1079_v62, %v922_v0  ;;  %v3462_v10 = vadd.f32 %v3457_v4, %v922_v0 }
 0x177   : > { %v1081_v6 = vsub.f32 %v1079_v62, %v1080_v3  ;;  %v1084_v7 = vsub.f32 %v922_v0, %v1080_v3  ;;  %v1113_v13 = vadd.f32 %v3450_v60, %v1080_v3  ;;  %v3473_v20 = vmax.f32 %v1055_v61, %v3462_v10  ;;  %v1054_v62 = vld [vmem:[#allocation5] sm:$0xff] }
 0x178   : > { %v966_v0 = vadd.f32 %v3453_v1, %v3432_v49 }
 0x179   : > { %v1082_v8 = vmul.f32 1.442695, %v1081_v6  ;;  %v1085_v9 = vmul.f32 1.442695, %v1084_v7  ;;  %v1064_v31 = vsub.f32 %v1055_v61, %v3473_v20  ;;  %v1067_v63 = vsub.f32 %v3462_v10, %v3473_v20 }
 0x17a   : > { %v924_v11 = vpop.f32.mrf.mxu3 }
 0x17b   : > { %2339 = vpow2.f32 %v1082_v8  ;;  %v925_v12 = vadd.f32 %v924_v11, %v801_v48  ;;  %v3465_v14 = vpop.f32.mrf.mxu0  ;;  %v1065_v45 = vmul.f32 1.442695, %v1064_v31 }
 0x17c   : > { %2341 = vpow2.f32 %v1085_v9  ;;  %v3467_v15 = vpop.f32.mrf.mxu1 }
 0x17d   : > { %v1097_v18 = vadd.f32 %v3457_v4, %v925_v12  ;;  %v3470_v19 = vmax.f32 %v1113_v13, %v925_v12 }
 0x17f   : > { %v1098_v21 = vmax.f32 %v1080_v3, %v1097_v18  ;;  %v1115_v22 = vsub.f32 %v1113_v13, %v3470_v19  ;;  %v1118_v23 = vsub.f32 %v925_v12, %v3470_v19  ;;  %v1147_v39 = vadd.f32 %v3450_v60, %v3470_v19  ;;  %v3507_v12 = vpop.f32.mrf.mxu2 }
 0x181   : > { %v2340_v25 = vpop.eup %2339  ;;  %v1099_v26 = vsub.f32 %v1080_v3, %v1098_v21  ;;  %v1102_v27 = vsub.f32 %v1097_v18, %v1098_v21  ;;  %v1116_v28 = vmul.f32 1.442695, %v1115_v22  ;;  %v1119_v29 = vmul.f32 1.442695, %v1118_v23 }
 0x182   : > { %v2342_v30 = vpop.eup %2341  ;;  %v927_v32 = vpop.f32.mrf.mxu3  ;;  %v1087_v44 = vmul.f32 %v2340_v25, %v3480_v33  ;;  %v1090_v18 = vmul.f32 %v2340_v25, %v1054_v62 }
 0x183   : > { %v1100_v35 = vmul.f32 1.442695, %v1099_v26  ;;  %v1103_v36 = vmul.f32 1.442695, %v1102_v27  ;;  %2343 = vpow2.f32 %v1116_v28  ;;  %v3484_v37 = vpop.f32.mrf.mxu0  ;;  %v928_v38 = vadd.f32 %v927_v32, %v804_v51 }
 0x184   : > { %2345 = vpow2.f32 %v1119_v29  ;;  %v3488_v40 = vpop.f32.mrf.mxu1  ;;  %v1088_v41 = vmul.f32 %v2342_v30, %v3482_v34  ;;  %v1068_v28 = vmul.f32 1.442695, %v1067_v63  ;;  %v3529_v32 = vadd.f32 %v2342_v30, %v1090_v18 }
 0x185   : > { %2347 = vpow2.f32 %v1100_v35  ;;  %v3493_v46 = vadd.f32 %v3457_v4, %v928_v38  ;;  %v3495_v48 = vmax.f32 %v1147_v39, %v928_v38  ;;  %v1522_v35 = vld [vmem:[#allocation21 + $0x58] sm:$0xff] }
 0x186   : > { %2349 = vpow2.f32 %v1103_v36  ;;  %v1089_v3 = vadd.f32 %v1088_v41, %v1087_v44  ;;  %v1521_v36 = vld [vmem:[#allocation21 + $0x50] sm:$0xff]  ;;  %1531 = vmatpush.msrb.mxu2 %v1522_v35  ;;  %2119 = vmatpush.msra.mxu3 %v1522_v35 }
 0x187   : > { %v1149_v51 = vsub.f32 %v1147_v39, %v3495_v48  ;;  %v1152_v57 = vsub.f32 %v928_v38, %v3495_v48  ;;  %2351 = vpow2.f32 %v1065_v45  ;;  %v1132_v7 = vmax.f32 %v3470_v19, %v3493_v46 }
 0x188   : > { %v1181_v11 = vadd.f32 %v3450_v60, %v3495_v48  ;;  %v3534_v39 = vadd.f32 %v3465_v14, %v3436_v52  ;;  %1532 = vmatpush.msrb.mxu2 %v1521_v36  ;;  %2120 = vmatpush.msra.mxu3 %v1521_v36 }
 0x189   : > { %v2344_v61 = vpop.eup %2343  ;;  %v1150_v8 = vmul.f32 1.442695, %v1149_v51  ;;  %v1153_v16 = vmul.f32 1.442695, %v1152_v57  ;;  %v1136_v41 = vsub.f32 %v3493_v46, %v1132_v7 }
 0x18a   : > { %v2346_v6 = vpop.eup %2345  ;;  %v930_v9 = vpop.f32.mrf.mxu3  ;;  %v1121_v17 = vmul.f32 %v2344_v61, %v1089_v3  ;;  %v1124_v44 = vmul.f32 %v2344_v61, %v3529_v32 }
 0x18b   : > { %v3509_v13 = vpop.eup %2347  ;;  %v1122_v10 = vmul.f32 %v2346_v6, %v966_v0  ;;  %v931_v49 = vadd.f32 %v930_v9, %v3440_v54  ;;  %v3512_v1 = vpop.f32.mrf.mxu0  ;;  %2353 = vpow2.f32 %v1150_v8  ;;  %v1133_v54 = vsub.f32 %v3470_v19, %v1132_v7 }
 0x18c   : > { %v1009_v20 = vpop.f32.mrf.mxu1  ;;  %v3514_v21 = vpop.eup %2349  ;;  %2355 = vpow2.f32 %v1153_v16  ;;  %v1105_v27 = vmul.f32 %v3509_v13, %v1089_v3  ;;  %v1137_v7 = vmul.f32 1.442695, %v1136_v41 }
 0x18d   : > { %v3516_v22 = vmax.f32 %v1181_v11, %v931_v49  ;;  %v3519_v23 = vadd.f32 %v3457_v4, %v931_v49  ;;  %v3521_v26 = vadd.f32 %v1122_v10, %v1121_v17  ;;  %v3527_v31 = vpop.eup %2351  ;;  %v1106_v38 = vmul.f32 %v3514_v21, %v966_v0 }
 0x18e   : > { %v1010_v45 = vadd.f32 %v1009_v20, %v3477_v24  ;;  %2357 = vpow2.f32 %v1068_v28  ;;  %v1134_v52 = vmul.f32 1.442695, %v1133_v54  ;;  %v3549_v24 = vpop.f32.mrf.mxu2  ;;  %v1073_v8 = vmul.f32 %v3527_v31, %v1054_v62  ;;  %v1520_v28 = vld [vmem:[#allocation21 + $0x48] sm:$0xff] }
 0x18f   : > { %v1183_v29 = vsub.f32 %v1181_v11, %v3516_v22  ;;  %v1186_v25 = vsub.f32 %v931_v49, %v3516_v22  ;;  %v1166_v30 = vmax.f32 %v3495_v48, %v3519_v23  ;;  %v3541_v57 = vadd.f32 %v1106_v38, %v1105_v27  ;;  %1533 = vmatpush.msrb.mxu2 %v1520_v28 }
 0x190   : > { %v1215_v0 = vadd.f32 %v3450_v60, %v3516_v22  ;;  %v3553_v11 = vadd.f32 %v2346_v6, %v1124_v44  ;;  %v2065_v16 = vmul.f32 -1.442695, %v1010_v45  ;;  %2121 = vmatpush.msra.mxu3 %v1520_v28 }
 0x191   : > { %v1184_v42 = vmul.f32 1.442695, %v1183_v29  ;;  %v1187_v19 = vmul.f32 1.442695, %v1186_v25  ;;  %v2354_v43 = vpop.eup %2353  ;;  %v1167_v10 = vsub.f32 %v3495_v48, %v1166_v30  ;;  %v3571_v48 = vadd.f32 %v3484_v37, %v3442_v55 }
 0x192   : > { %v933_v51 = vpop.f32.mrf.mxu3  ;;  %v2356_v63 = vpop.eup %2355  ;;  %v1155_v9 = vmul.f32 %v2354_v43, %v3521_v26  ;;  %v1158_v18 = vmul.f32 %v2354_v43, %v3553_v11 }
 0x193   : > { %v3543_v14 = vpop.f32.mrf.mxu0  ;;  %v1156_v46 = vmul.f32 %v2356_v63, %v3534_v39  ;;  %2359 = vpow2.f32 %v1187_v19  ;;  %v934_v61 = vadd.f32 %v933_v51, %v3430_v47  ;;  %v1170_v47 = vsub.f32 %v3519_v23, %v1166_v30  ;;  %v1519_v23 = vld [vmem:[#allocation21 + $0x40] sm:$0xff] }
 0x194   : > { %v1012_v3 = vpop.f32.mrf.mxu1  ;;  %2361 = vpow2.f32 %v1184_v42  ;;  %v3567_v27 = vpop.eup %2357  ;;  %v1168_v29 = vmul.f32 1.442695, %v1167_v10  ;;  %v3579_v43 = vadd.f32 %v2356_v63, %v1158_v18  ;;  %1534 = vmatpush.msrb.mxu2 %v1519_v23  ;;  %2122 = vmatpush.msra.mxu3 %v1519_v23 }
 0x195   : > { %v3556_v49 = vmax.f32 %v1215_v0, %v934_v61  ;;  %2363 = vpow2.f32 %v1134_v52  ;;  %v3559_v17 = vadd.f32 %v1156_v46, %v1155_v9  ;;  %v3563_v20 = vadd.f32 %v3457_v4, %v934_v61 }
 0x196   : > { %2365 = vpow2.f32 %v1137_v7  ;;  %v1074_v36 = vadd.f32 %v3567_v27, %v1073_v8  ;;  %v1171_v41 = vmul.f32 1.442695, %v1170_v47  ;;  %v1013_v46 = vadd.f32 %v1012_v3, %v3507_v12 }
 0x197   : > { %v1217_v62 = vsub.f32 %v1215_v0, %v3556_v49  ;;  %v1220_v6 = vsub.f32 %v934_v61, %v3556_v49  ;;  %2367 = vpow2.f32 %v2065_v16  ;;  %v1249_v55 = vadd.f32 %v3450_v60, %v3556_v49  ;;  %v3595_v61 = vpop.f32.mrf.mxu2 }
 0x198   : > { %v3584_v30 = vmax.f32 %v3516_v22, %v3563_v20  ;;  %v3608_v12 = vadd.f32 %v3512_v1, %v3446_v58 }
 0x199   : > { %v2360_v54 = vpop.eup %2359  ;;  %v1218_v25 = vmul.f32 1.442695, %v1217_v62  ;;  %v1221_v42 = vmul.f32 1.442695, %v1220_v6 }
 0x19a   : > { %v936_v35 = vpop.f32.mrf.mxu3  ;;  %v2362_v38 = vpop.eup %2361  ;;  %v1190_v44 = vmul.f32 %v2360_v54, %v3571_v48  ;;  %v1201_v3 = vsub.f32 %v3516_v22, %v3584_v30 }
 0x19b   : > { %v937_v19 = vadd.f32 %v936_v35, %v3434_v50  ;;  %v3577_v37 = vpop.f32.mrf.mxu0  ;;  %2369 = vpow2.f32 %v1218_v25  ;;  %v3586_v51 = vpop.eup %2363  ;;  %v1192_v63 = vmul.f32 %v2362_v38, %v3579_v43  ;;  %v1189_v0 = vmul.f32 %v2362_v38, %v3559_v17 }
 0x19c   : > { %v1015_v45 = vpop.f32.mrf.mxu1  ;;  %2371 = vpow2.f32 %v1221_v42  ;;  %v3598_v7 = vpop.eup %2365  ;;  %v2066_v25 = vmul.f32 -1.442695, %v1013_v46  ;;  %v1139_v58 = vmul.f32 %v3586_v51, %v3521_v26  ;;  %v1204_v46 = vsub.f32 %v3563_v20, %v3584_v30 }
 0x19d   : > { %v3589_v50 = vadd.f32 %v3457_v4, %v937_v19  ;;  %v3591_v52 = vmax.f32 %v1249_v55, %v937_v19  ;;  %2373 = vrcp.f32 %v1074_v36  ;;  %v2368_v16 = vpop.eup %2367  ;;  %v3612_v47 = vadd.f32 %v1190_v44, %v1189_v0 }
 0x19e   : > { %2375 = vpow2.f32 %v1168_v29  ;;  %v3618_v29 = vadd.f32 %v2360_v54, %v1192_v63  ;;  %v1140_v1 = vmul.f32 %v3598_v7, %v3534_v39  ;;  %v3624_v36 = vadd.f32 1.0, %v2368_v16  ;;  %v1518_v39 = vld [vmem:[#allocation21 + $0x38] sm:$0xff] }
 0x19f   : > { %v3602_v8 = vmax.f32 %v3556_v49, %v3589_v50  ;;  %v1251_v9 = vsub.f32 %v1249_v55, %v3591_v52  ;;  %v1254_v10 = vsub.f32 %v937_v19, %v3591_v52  ;;  %2377 = vpow2.f32 %v1171_v41  ;;  %1535 = vmatpush.msrb.mxu2 %v1518_v39  ;;  %2123 = vmatpush.msra.mxu3 %v1518_v39 }
 0x1a0   : > { %v1283_v38 = vadd.f32 %v3450_v60, %v3591_v52  ;;  %v1202_v63 = vmul.f32 1.442695, %v1201_v3  ;;  %v1016_v0 = vadd.f32 %v1015_v45, %v3549_v24  ;;  %v3653_v20 = vadd.f32 %v3543_v14, %v3455_v2 }
 0x1a1   : > { %v1252_v6 = vmul.f32 1.442695, %v1251_v9  ;;  %v1255_v28 = vmul.f32 1.442695, %v1254_v10  ;;  %v2370_v23 = vpop.eup %2369 }
 0x1a2   : > { %v939_v35 = vpop.f32.mrf.mxu3  ;;  %v2372_v22 = vpop.eup %2371  ;;  %v1226_v19 = vmul.f32 %v2370_v23, %v3618_v29  ;;  %v1223_v9 = vmul.f32 %v2370_v23, %v3612_v47  ;;  %v2067_v39 = vmul.f32 -1.442695, %v1016_v0 }
 0x1a3   : > { %2379 = vpow2.f32 %v1252_v6  ;;  %v3628_v41 = vpop.f32.mrf.mxu0  ;;  %v3630_v42 = vpop.eup %2373  ;;  %v1224_v54 = vmul.f32 %v2372_v22, %v3608_v12  ;;  %v940_v26 = vadd.f32 %v939_v35, %v3438_v53  ;;  %v1517_v6 = vld [vmem:[#allocation21 + $0x30] sm:$0xff]  ;;  %v1516_v35 = vld [vmem:[#allocation21 + $0x28] sm:$0xff] }
 0x1a4   : > { %2381 = vpow2.f32 %v1255_v28  ;;  %v3635_v55 = vpop.f32.mrf.mxu1  ;;  %v3637_v44 = vpop.eup %2375  ;;  %v3648_v28 = vadd.f32 %v1140_v1, %v1139_v58  ;;  %1536 = vmatpush.msrb.mxu2 %v1517_v6  ;;  %2124 = vmatpush.msra.mxu3 %v1517_v6  ;;  %v3657_v30 = vadd.f32 %v2372_v22, %v1226_v19  ;;  %v1205_v1 = vmul.f32 1.442695, %v1204_v46  ;;  %v1514_v6 = vld [vmem:[#allocation21 + $0x18] sm:$0xff] }
 0x1a5   : > { %v3643_v10 = vpop.eup %2377  ;;  %2383 = vpow2.f32 %v2066_v25  ;;  %v1267_v53 = vadd.f32 %v3457_v4, %v940_v26  ;;  %v3646_v16 = vmax.f32 %v1283_v38, %v940_v26  ;;  %v3655_v24 = vadd.f32 %v1224_v54, %v1223_v9  ;;  %v898_v25 = vpop.f32.mrf.mxu2 }
 0x1a6   : > { %4132 = vst [vmem:[#allocation50_spill] sm:$0xff] %v3648_v28  ;;  %2385 = vrcp.f32 %v3624_v36  ;;  %1537 = vmatpush.msrb.mxu2 %v1516_v35  ;;  %2125 = vmatpush.msra.mxu3 %v1516_v35 }
 0x1a7   : > { %4133 = vst [vmem:[#allocation51_spill] sm:$0xff] %v3657_v30  ;;  %v1268_v45 = vmax.f32 %v3591_v52, %v1267_v53  ;;  %v1285_v3 = vsub.f32 %v1283_v38, %v3646_v16  ;;  %v1288_v23 = vsub.f32 %v940_v26, %v3646_v16  ;;  %2387 = vpow2.f32 %v1202_v63  ;;  %v1515_v26 = vld [vmem:[#allocation21 + $0x20] sm:$0xff] }
 0x1a8   : > { %v1317_v2 = vadd.f32 %v3450_v60, %v3646_v16  ;;  %1538 = vmatpush.msrb.mxu2 %v1515_v26  ;;  %2126 = vmatpush.msra.mxu3 %v1515_v26 }
 0x1a9   : > { %v2380_v58 = vpop.eup %2379  ;;  %v1269_v54 = vsub.f32 %v3591_v52, %v1268_v45  ;;  %v1272_v19 = vsub.f32 %v1267_v53, %v1268_v45  ;;  %v1286_v38 = vmul.f32 1.442695, %v1285_v3  ;;  %v1289_v63 = vmul.f32 1.442695, %v1288_v23  ;;  %v1513_v45 = vld [vmem:[#allocation21 + $0x10] sm:$0xff] }
 0x1aa   : > { %v2382_v14 = vpop.eup %2381  ;;  %v1260_v22 = vmul.f32 %v2380_v58, %v3657_v30  ;;  %v942_v9 = vpop.f32.mrf.mxu3  ;;  %v1257_v60 = vmul.f32 %v2380_v58, %v3655_v24  ;;  %1539 = vmatpush.msrb.mxu2 %v1514_v6  ;;  %2127 = vmatpush.msra.mxu3 %v1514_v6 }
 0x1ab   : > { %v1258_v62 = vmul.f32 %v2382_v14, %v3653_v20  ;;  %v943_v46 = vadd.f32 %v942_v9, %v3444_v56  ;;  %v1003_v0 = vpop.f32.mrf.mxu0  ;;  %v3669_v35 = vpop.eup %2383  ;;  %v1270_v28 = vmul.f32 1.442695, %v1269_v54  ;;  %v1273_v52 = vmul.f32 1.442695, %v1272_v19 }
 0x1ac   : > { %v1261_v18 = vadd.f32 %v2382_v14, %v1260_v22  ;;  %2389 = vpow2.f32 %v1286_v38  ;;  %v1021_v53 = vpop.f32.mrf.mxu1  ;;  %v3671_v3 = vpop.eup %2385  ;;  %v1173_v56 = vmul.f32 %v3637_v44, %v3559_v17  ;;  %v1004_v58 = vadd.f32 %v1003_v0, %v3448_v59  ;;  %v1512_v14 = vld [vmem:[#allocation21 + $0x8] sm:$0xff]  ;;  %1540 = vmatpush.msrb.mxu2 %v1513_v45  ;;  %2128 = vmatpush.msra.mxu3 %v1513_v45 }
 0x1ad   : > { %2391 = vpow2.f32 %v1289_v63  ;;  %v1301_v23 = vadd.f32 %v3457_v4, %v943_v46  ;;  %v1318_v30 = vmax.f32 %v1317_v2, %v943_v46  ;;  %v3677_v22 = vadd.f32 %v1258_v62, %v1257_v60  ;;  %v3681_v19 = vpop.eup %2387  ;;  %v901_v0 = vpop.f32.mrf.mxu2 }
 0x1ae   : > { %2393 = vpow2.f32 %v1270_v28  ;;  %v1174_v54 = vmul.f32 %v3643_v10, %v3571_v48  ;;  %v1022_v17 = vadd.f32 %v1021_v53, %v898_v25  ;;  %v1511_v28 = vld [vmem:[#allocation21] sm:$0xff]  ;;  %1541 = vmatpush.msrb.mxu2 %v1512_v14  ;;  %v2063_v63 = vmul.f32 -1.442695, %v1004_v58  ;;  %2129 = vmatpush.msra.mxu3 %v1512_v14 }
 0x1af   : > { %2395 = vpow2.f32 %v1273_v52  ;;  %v1302_v4 = vmax.f32 %v3646_v16, %v1301_v23  ;;  %v1319_v38 = vsub.f32 %v1317_v2, %v1318_v30  ;;  %v1322_v9 = vsub.f32 %v943_v46, %v1318_v30  ;;  %1332 = vst [vmem:[#allocation6] sm:$0xff] %v1318_v30 }
 0x1b0   : > { %2397 = vpow2.f32 %v1205_v1  ;;  %v3685_v60 = vadd.f32 %v1174_v54, %v1173_v56  ;;  %1542 = vmatpush.msrb.mxu2 %v1511_v28  ;;  %v2069_v53 = vmul.f32 -1.442695, %v1022_v17  ;;  %2130 = vmatpush.msra.mxu3 %v1511_v28  ;;  %v3694_v17 = vadd.f32 1.0, %v3669_v35 }
 0x1b1   : > { %v1303_v59 = vsub.f32 %v3646_v16, %v1302_v4  ;;  %v1306_v62 = vsub.f32 %v1301_v23, %v1302_v4  ;;  %v1320_v26 = vmul.f32 1.442695, %v1319_v38  ;;  %v1323_v6 = vmul.f32 1.442695, %v1322_v9 }
 0x1b2   : > { %v2390_v48 = vpop.eup %2389  ;;  %2399 = vpow2.f32 %v2067_v39  ;;  %v981_v16 = vadd.f32 %v3577_v37, %v3467_v15  ;;  %v1070_v35 = vmul.f32 %v3527_v31, %v3480_v33  ;;  %v984_v31 = vadd.f32 %v3628_v41, %v3488_v40 }
 0x1b3   : > { %v2392_v2 = vpop.eup %2391  ;;  %v1294_v30 = vmul.f32 %v2390_v48, %v1261_v18  ;;  %v1304_v46 = vmul.f32 1.442695, %v1303_v59  ;;  %v1307_v1 = vmul.f32 1.442695, %v1306_v62  ;;  %2401 = vpow2.f32 %v1320_v26  ;;  %v1006_v25 = vpop.f32.mrf.mxu0 }
 0x1b4   : > { %v2394_v52 = vpop.eup %2393  ;;  %2403 = vpow2.f32 %v1323_v6  ;;  %v1007_v39 = vadd.f32 %v1006_v25, %v3459_v5  ;;  %v1024_v45 = vpop.f32.mrf.mxu1  ;;  %v4134_v59 = vsub.f32 %v3556_v49, %v3602_v8  ;;  %v1019_v6 = vadd.f32 %v3635_v55, %v3595_v61 }
 0x1b5   : > { %v2396_v23 = vpop.eup %2395  ;;  %v1278_v56 = vmul.f32 %v2394_v52, %v1261_v18  ;;  %v1295_v58 = vadd.f32 %v2392_v2, %v1294_v30  ;;  %2405 = vpow2.f32 %v1304_v46  ;;  %v1025_v14 = vadd.f32 %v1024_v45, %v901_v0 }
 0x1b6   : > { %v3690_v54 = vpop.eup %2397  ;;  %2407 = vpow2.f32 %v1307_v1  ;;  %v2064_v4 = vmul.f32 -1.442695, %v1007_v39  ;;  %v1275_v38 = vmul.f32 %v2394_v52, %v3677_v22  ;;  %v1276_v9 = vmul.f32 %v2396_v23, %v981_v16 }
 0x1b7   : > { %v1279_v15 = vadd.f32 %v2396_v23, %v1278_v56  ;;  %2409 = vpow2.f32 %v2063_v63  ;;  %v2070_v37 = vmul.f32 -1.442695, %v1025_v14  ;;  %v1236_v62 = vmul.f32 1.442695, %v4134_v59 }
 0x1b8   : > { %v2400_v5 = vpop.eup %2399  ;;  %2411 = vpow2.f32 %v2069_v53  ;;  %v1277_v18 = vadd.f32 %v1276_v9, %v1275_v38  ;;  %v4135_v30 = vsub.f32 %v3589_v50, %v3602_v8  ;;  %v1291_v49 = vmul.f32 %v2390_v48, %v3677_v22 }
 0x1b9   : > { %v2402_v28 = vpop.eup %2401  ;;  %2413 = vrcp.f32 %v1279_v15  ;;  %v1292_v1 = vmul.f32 %v2392_v2, %v981_v16  ;;  %v1071_v55 = vmul.f32 %v3567_v27, %v3482_v34  ;;  %v1108_v50 = vmul.f32 %v3509_v13, %v3529_v32 }
 0x1ba   : > { %v2404_v26 = vpop.eup %2403  ;;  %v1328_v0 = vmul.f32 %v2402_v28, %v1295_v58  ;;  %1333 = vst [vmem:[%s651_s15] sm:$0xff] %v2402_v28  ;;  %2415 = vpow2.f32 %v2064_v4  ;;  %v1239_v46 = vmul.f32 1.442695, %v4135_v30  ;;  %v2068_v22 = vmul.f32 -1.442695, %v1019_v6 }
 0x1bb   : > { %v2406_v63 = vpop.eup %2405  ;;  %1334 = vst [vmem:[%s658_s9] sm:$0xff] %v2404_v26  ;;  %2417 = vpow2.f32 %v2070_v37  ;;  %v1293_v8 = vadd.f32 %v1292_v1, %v1291_v49  ;;  %v1406_v16 = vmul.f32 %v3671_v3, %v3624_v36  ;;  %v1072_v13 = vadd.f32 %v1071_v55, %v1070_v35 }
 0x1bc   : > { %v2408_v25 = vpop.eup %2407  ;;  %2419 = vrcp.f32 %v3694_v17  ;;  %v1329_v61 = vadd.f32 %v2404_v26, %v1328_v0  ;;  %v1312_v52 = vmul.f32 %v2406_v63, %v1295_v58  ;;  %v1326_v32 = vmul.f32 %v2404_v26, %v984_v31 }
 0x1bd   : > { %v2410_v33 = vpop.eup %2409  ;;  %2421 = vpow2.f32 %v1236_v62  ;;  %v1309_v39 = vmul.f32 %v2406_v63, %v1293_v8  ;;  %v1325_v45 = vmul.f32 %v2402_v28, %v1293_v8  ;;  %v1142_v41 = vmul.f32 %v3586_v51, %v3553_v11 }
 0x1be   : > { %v2412_v53 = vpop.eup %2411  ;;  %1331 = vst [vmem:[#allocation5] sm:$0xff] %v1329_v61  ;;  %v3718_v48 = vadd.f32 1.0, %v2410_v33  ;;  %v1313_v2 = vadd.f32 %v2408_v25, %v1312_v52  ;;  %2423 = vpow2.f32 %v1239_v46  ;;  %v1310_v14 = vmul.f32 %v2408_v25, %v984_v31 }
 0x1bf   : > { %v2414_v34 = vpop.eup %2413  ;;  %v3722_v27 = vadd.f32 1.0, %v2412_v53  ;;  %v3734_v38 = vadd.f32 1.0, %v2400_v5  ;;  %v1407_v15 = vsub.f32 1.0, %v1406_v16  ;;  %v3742_v11 = vmul.f32 %v3630_v42, %v1072_v13 }
 0x1c0   : > { %v2416_v40 = vpop.eup %2415  ;;  %2425 = vrcp.f32 %v3718_v48  ;;  %v3730_v58 = vmul.f32 %v2414_v34, %v1277_v18  ;;  %v1109_v51 = vadd.f32 %v3514_v21, %v1108_v50  ;;  %v1384_v18 = vand.u32 2147483647, %v3718_v48 }
 0x1c1   : > { %v2418_v23 = vpop.eup %2417  ;;  %2427 = vrcp.f32 %v3722_v27  ;;  %v3728_v56 = vadd.f32 1.0, %v2416_v40  ;;  %v1386_v5 = vand.u32 2147483648, %v3718_v48  ;;  %v3749_v28 = vadd.f32 %v3598_v7, %v1142_v41 }
 0x1c2   : > { %v3732_v4 = vpop.eup %2419  ;;  %2429 = vpow2.f32 %v2068_v22  ;;  %v3736_v9 = vadd.f32 1.0, %v2418_v23  ;;  %v1474_v62 = vand.u32 2147483647, %v3722_v27  ;;  %v1311_v26 = vadd.f32 %v1310_v14, %v1309_v39 }
 0x1c3   : > { %v3738_v37 = vpop.eup %2421  ;;  %2431 = vrcp.f32 %v3728_v56  ;;  %v1327_v6 = vadd.f32 %v1326_v32, %v1325_v45  ;;  %v1476_v21 = vand.u32 2147483648, %v3722_v27  ;;  %v3757_v0 = vmul.f32 %v3671_v3, %v1407_v15 }
 0x1c4   : > { %2433 = vrcp.f32 %v3736_v9  ;;  %v3751_v59 = vpop.eup %2423  ;;  %v3761_v35 = vmul.f32 %v3637_v44, %v3579_v43  ;;  %vm1380_vm0 = vweird.f32 %v3718_v48  ;;  %vm1470_vm1 = vweird.f32 %v3722_v27 }
 0x1c5   : > { %2435 = vrcp.f32 %v1313_v2  ;;  %1330 = vst [vmem:[#allocation4] sm:$0xff] %v1327_v6  ;;  %vm3767_vm2 = vcmp.eq.f32.partialorder %v1384_v18, 8.507059e+37  ;;  %v1387_v1 = vor.u32 1.1754944e-38, %v1386_v5  ;;  %vm1395_vm3 = vweird.f32 %v3728_v56 }
 0x1c6   : > { %v2426_v42 = vpop.eup %2425  ;;  %2437 = vrcp.f32 %v3734_v38  ;;  %vm3772_vm4 = vcmp.eq.f32.partialorder %v1474_v62, 8.507059e+37  ;;  %v1399_v61 = vand.u32 2147483647, %v3728_v56  ;;  %v1401_v55 = vand.u32 2147483648, %v3728_v56 }
 0x1c7   : > { %v2428_v7 = vpop.eup %2427  ;;  %v1376_v63 = vmul.f32 %v2426_v42, %v3718_v48  ;;  %2439 = vrcp.f32 %v1109_v51  ;;  %v1477_v31 = vor.u32 1.1754944e-38, %v1476_v21  ;;  %vm1381_vm6 = vweird.f32 %v2426_v42 }
 0x1c8   : > { %v2430_v30 = vpop.eup %2429  ;;  %v1466_v46 = vmul.f32 %v2428_v7, %v3722_v27  ;;  %vm1471_vm5 = vweird.f32 %v2428_v7  ;;  %vm1485_vm7 = vweird.f32 %v3736_v9  ;;  %v1491_v45 = vand.u32 2147483648, %v3736_v9  ;;  %vm1382_vm10 = vmor %vm1380_vm0, %vm1381_vm6 }
 0x1c9   : > { %v2432_v43 = vpop.eup %2431  ;;  %v1377_v44 = vsub.f32 1.0, %v1376_v63  ;;  %vm3787_vm8 = vmor %vm1470_vm1, %vm1471_vm5  ;;  %v1207_v23 = vmul.f32 %v3681_v19, %v3612_v47  ;;  %v1489_v51 = vand.u32 2147483647, %v3736_v9  ;;  %v1402_v5 = vor.u32 1.1754944e-38, %v1401_v55 }
 0x1ca   : > { %v2434_v52 = vpop.eup %2433  ;;  %v1467_v33 = vsub.f32 1.0, %v1466_v46  ;;  %v1391_v50 = vmul.f32 %v2432_v43, %v3728_v56  ;;  %vm1396_vm11 = vweird.f32 %v2432_v43  ;;  %v1208_v62 = vmul.f32 %v3690_v54, %v3608_v12 }
 0x1cb   : > { %v2436_v8 = vpop.eup %2435  ;;  %v1378_v53 = vmul.f32 %v2426_v42, %v1377_v44  ;;  %v1481_v22 = vmul.f32 %v2434_v52, %v3736_v9  ;;  %vm1486_vm9 = vweird.f32 %v2434_v52  ;;  %vm1397_vm13 = vmor %vm1395_vm3, %vm1396_vm11  ;;  %vm1490_vm14 = vcmp.eq.f32.partialorder %v1489_v51, 8.507059e+37 }
 0x1cc   : > { %v3781_v2 = vpop.eup %2437  ;;  %v1468_v16 = vmul.f32 %v2428_v7, %v1467_v33  ;;  %v1392_v34 = vsub.f32 1.0, %v1391_v50  ;;  %v1315_v39 = vmul.f32 %v2436_v8, %v1311_v26  ;;  %vm3804_vm12 = vmor %vm1485_vm7, %vm1486_vm9  ;;  %v1209_v49 = vadd.f32 %v1208_v62, %v1207_v23 }
 0x1cd   : > { %v2440_v40 = vpop.eup %2439  ;;  %v1379_v13 = vadd.f32 %v2426_v42, %v1378_v53  ;;  %v1482_v41 = vsub.f32 1.0, %v1481_v22  ;;  %vm1400_vm15 = vcmp.eq.f32.partialorder %v1399_v61, 8.507059e+37  ;;  %vm1410_vm0 = vweird.f32 %v3624_v36 }
 0x1ce   : > { %v1469_v14 = vadd.f32 %v2428_v7, %v1468_v16  ;;  %v1393_v15 = vmul.f32 %v2432_v43, %v1392_v34  ;;  %vm1411_vm1 = vweird.f32 %v3671_v3  ;;  %v1241_v25 = vmul.f32 %v3738_v37, %v3655_v24  ;;  %v4147_v34 = vld [vmem:[#allocation50_spill] sm:$0xff] }
 0x1cf   : > { %v1383_v18 = vsel %vm1382_vm10, %v2426_v42, %v1379_v13  ;;  %v1483_v27 = vmul.f32 %v2434_v52, %v1482_v41  ;;  %v1210_v42 = vmul.f32 %v3681_v19, %v3618_v29  ;;  %v1421_v19 = vmul.f32 %v3732_v4, %v3694_v17 }
 0x1d0   : > { %v1388_v26 = vsel %vm3767_vm2, %v1387_v1, %v1383_v18  ;;  %v1473_v47 = vsel %vm3787_vm8, %v2428_v7, %v1469_v14  ;;  %v1394_v6 = vadd.f32 %v2432_v43, %v1393_v15  ;;  %v1492_v7 = vor.u32 1.1754944e-38, %v1491_v45  ;;  %vm3839_vm2 = vmor %vm1410_vm0, %vm1411_vm1 }
 0x1d1   : > { %v1503_v21 = vmul.f32 %v1388_v26, %v3742_v11  ;;  %v1478_v12 = vsel %vm3772_vm4, %v1477_v31, %v1473_v47  ;;  %v1484_v63 = vadd.f32 %v2434_v52, %v1483_v27  ;;  %v1211_v11 = vadd.f32 %v3690_v54, %v1210_v42 }
 0x1d2   : > { %v1509_v46 = vmul.f32 %v1478_v12, %v3730_v58  ;;  %v1398_v9 = vsel %vm1397_vm13, %v2432_v43, %v1394_v6  ;;  %v3821_v1 = vadd.f32 1.0, %v2430_v30  ;;  %v1416_v58 = vand.u32 2147483648, %v3624_v36  ;;  %v4144_v30 = vld [vmem:[#allocation51_spill] sm:$0xff] }
 0x1d3   : > { %1543 = vmatmul.f32.vlgmr.msrb.gmra.mxu2 %v1503_v21  ;;  %v1488_v29 = vsel %vm3804_vm12, %v2434_v52, %v1484_v63  ;;  %v1403_v56 = vsel %vm1400_vm15, %v1402_v5, %v1398_v9  ;;  %v1111_v43 = vmul.f32 %v2440_v40, %v3541_v57  ;;  %2441 = vrcp.f32 %v1211_v11 }
 0x1d4   : > { %1561 = vmatmul.f32.vlgmr.msra.gmra.mxu3 %v1509_v46  ;;  %v1493_v44 = vsel %vm1490_vm14, %v1492_v7, %v1488_v29  ;;  %2443 = vrcp.f32 %v3749_v28  ;;  %v1242_v54 = vmul.f32 %v3751_v59, %v3653_v20  ;;  %v1244_v61 = vmul.f32 %v3738_v37, %v4144_v30 }
 0x1d5   : > { %v1504_v55 = vmul.f32 %v1403_v56, %v1111_v43  ;;  %v1409_v52 = vadd.f32 %v3671_v3, %v3757_v0  ;;  %v1414_v57 = vand.u32 2147483647, %v3624_v36  ;;  %v1422_v33 = vsub.f32 1.0, %v1421_v19 }
 0x1d6   : > { %v1510_v31 = vmul.f32 %v1493_v44, %v1315_v39  ;;  %v1243_v24 = vadd.f32 %v1242_v54, %v1241_v25  ;;  %v1245_v20 = vadd.f32 %v3751_v59, %v1244_v61  ;;  %2445 = vrcp.f32 %v3821_v1 }
 0x1d7   : > { %v1417_v37 = vor.u32 1.1754944e-38, %v1416_v58  ;;  %v1177_v50 = vadd.f32 %v3643_v10, %v3761_v35  ;;  %v1413_v36 = vsel %vm3839_vm2, %v3671_v3, %v1409_v52  ;;  %vm1415_vm3 = vcmp.eq.f32.partialorder %v1414_v57, 8.507059e+37 }
 0x1d8   : > { %2447 = vrcp.f32 %v1245_v20  ;;  %v1423_v8 = vmul.f32 %v3732_v4, %v1422_v33  ;;  %v1436_v53 = vmul.f32 %v3781_v2, %v3734_v38  ;;  %vm1425_vm4 = vweird.f32 %v3694_v17 }
 0x1d9   : > { %v2442_v0 = vpop.eup %2441  ;;  %vm1426_vm5 = vweird.f32 %v3732_v4  ;;  %v1418_v10 = vsel %vm1415_vm3, %v1417_v37, %v1413_v36  ;;  %2449 = vrcp.f32 %v1177_v50  ;;  %v1431_v35 = vand.u32 2147483648, %v3694_v17 }
 0x1da   : > { %v2444_v59 = vpop.eup %2443  ;;  %v1213_v22 = vmul.f32 %v2442_v0, %v1209_v49  ;;  %v1424_v39 = vadd.f32 %v3732_v4, %v1423_v8  ;;  %v1429_v45 = vand.u32 2147483647, %v3694_v17  ;;  %v1437_v40 = vsub.f32 1.0, %v1436_v53  ;;  %vm1427_vm6 = vmor %vm1425_vm4, %vm1426_vm5 }
 0x1db   : > { %1546 = vmatmul.f32.gmra.mxu2 %v1504_v55  ;;  %v1145_v3 = vmul.f32 %v2444_v59, %v4147_v34  ;;  %v1432_v23 = vor.u32 1.1754944e-38, %v1431_v35  ;;  %vm1440_vm8 = vweird.f32 %v3734_v38  ;;  %vm1441_vm9 = vweird.f32 %v3781_v2 }
 0x1dc   : > { %1564 = vmatmul.f32.gmra.mxu3 %v1510_v31  ;;  %v2446_v16 = vpop.eup %2445  ;;  %v1428_v14 = vsel %vm1427_vm6, %v3732_v4, %v1424_v39  ;;  %vm1430_vm7 = vcmp.eq.f32.partialorder %v1429_v45, 8.507059e+37  ;;  %v1438_v15 = vmul.f32 %v3781_v2, %v1437_v40  ;;  %v1446_v5 = vand.u32 2147483648, %v3734_v38  ;;  %vm1442_vm10 = vmor %vm1440_vm8, %vm1441_vm9 }
 0x1dd   : > { %v1505_v32 = vmul.f32 %v1418_v10, %v1145_v3  ;;  %v1451_v51 = vmul.f32 %v2446_v16, %v3821_v1  ;;  %v1433_v17 = vsel %vm1430_vm7, %v1432_v23, %v1428_v14  ;;  %v1444_v26 = vand.u32 2147483647, %v3734_v38 }
 0x1de   : > { %v2448_v13 = vpop.eup %2447  ;;  %v1439_v62 = vadd.f32 %v3781_v2, %v1438_v15  ;;  %v1447_v6 = vor.u32 1.1754944e-38, %v1446_v5  ;;  %vm1455_vm12 = vweird.f32 %v3821_v1  ;;  %vm1456_vm13 = vweird.f32 %v2446_v16 }
 0x1df   : > { %v1247_v41 = vmul.f32 %v2448_v13, %v1243_v24  ;;  %v2450_v18 = vpop.eup %2449  ;;  %v1452_v4 = vsub.f32 1.0, %v1451_v51  ;;  %vm1445_vm11 = vcmp.eq.f32.partialorder %v1444_v26, 8.507059e+37  ;;  %v1459_v38 = vand.u32 2147483647, %v3821_v1  ;;  %vm1457_vm14 = vmor %vm1455_vm12, %vm1456_vm13 }
 0x1e0   : > { %v1179_v27 = vmul.f32 %v2450_v18, %v3685_v60  ;;  %v1443_v48 = vsel %vm1442_vm10, %v3781_v2, %v1439_v62  ;;  %v1461_v60 = vand.u32 2147483648, %v3821_v1 }
 0x1e1   : > { %v1453_v42 = vmul.f32 %v2446_v16, %v1452_v4  ;;  %v1448_v21 = vsel %vm1445_vm11, %v1447_v6, %v1443_v48  ;;  %vm1460_vm15 = vcmp.eq.f32.partialorder %v1459_v38, 8.507059e+37 }
 0x1e2   : > { %v1506_v47 = vmul.f32 %v1433_v17, %v1179_v27  ;;  %v1507_v63 = vmul.f32 %v1448_v21, %v1213_v22  ;;  %v1462_v7 = vor.u32 1.1754944e-38, %v1461_v60 }
 0x1e3   : > { %1549 = vmatmul.f32.gmra.mxu2 %v1505_v32  ;;  %v1454_v12 = vadd.f32 %v2446_v16, %v1453_v42 }
 0x1e5   : > { %v1458_v46 = vsel %vm1457_vm14, %v2446_v16, %v1454_v12 }
 0x1e6   : > { %v1463_v2 = vsel %vm1460_vm15, %v1462_v7, %v1458_v46 }
 0x1e7   : > { %v1508_v9 = vmul.f32 %v1463_v2, %v1247_v41 }
 0x1eb   : > { %1552 = vmatmul.f32.gmra.mxu2 %v1506_v47 }
 0x1f3   : > { %1555 = vmatmul.f32.gmra.mxu2 %v1507_v63 }
 0x1fb   : > { %1558 = vmatmul.f32.gmra.mxu2 %v1508_v9 }
 0x1fc   : > { %2748 = shalt.err (!%p2745_p7)
}
 0x1fd   : > { %2158 = dma.vmem_to_hbm [thread:$0]  (%p3149_p4), %s1732_s3, 128, %s1734_s24, %s1695_s10  }
 0x1fe   : > { %s4151_s20 = sld [smem:[#allocation63_spill]]  ;;  %s1745_s13 = sshll.u32 %s658_s9, 4  ;;  %s1746_s13 = int_to_ptr.vmem [resolvable:$true] %s1745_s13 }
 0x204   : > { %s4152_s6 = smov %s4151_s20  ;;  %s1743_s4 = scalar_lea.hbm %s4151_s20, %s2077_s7 }
 0x205   : > { %s1747_s2 = sshll.u32 %s1743_s4, 4  ;;  %s2769_s3 = scalar_lea.hbm %s4152_s6, 16  ;;  %s1748_s2 = int_to_ptr.hbm [resolvable:$true] %s1747_s2 }
 0x206   : > { %s2763_s17 = sshra.s32 %s1748_s2, 4  ;;  %s2764_s17 = int_to_ptr.hbm [resolvable:$true] %s2763_s17 }
 0x207   : > { %s2765_s27 = scalar_lea.hbm %s2764_s17, 8  ;;  %p2770_p9 = scmp.lt.s32.totalorder %s2764_s17, %s4152_s6 }
 0x208   : > { %p2766_p2 = scmp.ne.s32.totalorder %s2764_s17, %s2765_s27  ;;  %p2771_p10 = scmp.lt.s32.totalorder %s2769_s3, %s2765_s27 }
 0x20a   : > { %p2767_p8 = pnand %p2766_p2, %p3149_p4  ;;  %p2772_p11 = por %p2771_p10, %p2770_p9 }
 0x20c   : > { %p2768_p12 = pneg %p2767_p8 }
 0x20e   : > { %p2773_p5 = pnand %p2772_p11, %p2768_p12 }
 0x210   : > { %2776 = shalt.err (!%p2773_p5)
}
 0x211   : > { %2159 = dma.vmem_to_hbm [thread:$0]  (%p3149_p4), %s1746_s13, 128, %s1748_s2, %s1695_s10   ;;  %v2953_v56 = vmov 1983009808   ;;  %vm1569_vm0 = vcmask 1047556   ;;  %v2954_v0 = vmov 1934713408  }
 0x212   : > { %v1574_v58 = vunpack.c.l.s4 %v2953_v56  ;;  %v1622_v36 = vunpack.c.l.s4 %v2954_v0  ;;  %s4153_s2 = sld [smem:[#allocation37_spill]]  ;;  %s2082_s26 = sshll.u32 %s4148_s23, 5 }
 0x213   : > { %s4154_s7 = sld [smem:[#allocation61_spill]]  ;;  %s1714_s15 = sshll.u32 %s3324_s14, 4  ;;  %s1715_s15 = int_to_ptr.vmem [resolvable:$true] %s1714_s15 }
 0x214   : > { %v1575_v61 = vunpack.c.0.s8 %v1574_v58  ;;  %v1623_v45 = vunpack.c.0.s8 %v1622_v36  ;;  %s4155_s16 = sld [smem:[#allocation34_spill]] }
 0x218   : > { %s1711_s1 = sadd.s32 %s4153_s2, %s2082_s26 }
 0x219   : > { %s2076_s9 = sshll.u32 %s1711_s1, 3  ;;  %s2797_s24 = scalar_lea.hbm %s4154_s7, 512 }
 0x21a   : > { %s1713_s10 = scalar_lea.hbm %s4154_s7, %s2076_s9  ;;  %s4157_s13 = sand.u32 1, %s4155_s16  }
 0x21b   : > { %s1716_s20 = sshll.u32 %s1713_s10, 4  ;;  %s1690_s17 = scalar_lea.sflag [#allocation9], %s4157_s13  ;;  %s1717_s20 = int_to_ptr.hbm [resolvable:$true] %s1716_s20 }
 0x21c   : > { %s2791_s27 = sshra.s32 %s1717_s20, 4  ;;  %s2792_s27 = int_to_ptr.hbm [resolvable:$true] %s2791_s27 }
 0x21d   : > { %s2793_s21 = scalar_lea.hbm %s2792_s27, 64  ;;  %p2798_p7 = scmp.lt.s32.totalorder %s2792_s27, %s4154_s7 }
 0x21e   : > { %p2794_p4 = scmp.ne.s32.totalorder %s2792_s27, %s2793_s21  ;;  %p2799_p2 = scmp.lt.s32.totalorder %s2797_s24, %s2793_s21 }
 0x220   : > { %p2795_p13 = pnand %p2794_p4, %p3143_p0  ;;  %p2800_p8 = por %p2799_p2, %p2798_p7 }
 0x222   : > { %p2796_p6 = pneg %p2795_p13 }
 0x224   : > { %p2801_p12 = pnand %p2800_p8, %p2796_p6 }
 0x256   : > { %v1544_v49 = vpop.f32.mrf.mxu2 }
 0x257   : > { %v1562_v44 = vpop.f32.mrf.mxu3  ;;  %v1571_v52 = vrot.slane %v1544_v49, 4 }
 0x258   : > { %v1593_v24 = vrot.slane %v1562_v44, 4 }
 0x25e   : > { %v1547_v29 = vpop.f32.mrf.mxu2 }
 0x25f   : > { %v1583_v25 = vrot.slane %v1547_v29, 4  ;;  %v1565_v53 = vpop.f32.mrf.mxu3 }
 0x260   : > { %v1605_v3 = vrot.slane %v1565_v53, 4 }
 0x266   : > { %v1550_v19 = vpop.f32.mrf.mxu2 }
 0x267   : > { %v1568_v1 = vrot.slane %v1550_v19, 4  ;;  %v1572_v20 = vsel %vm1569_vm0, %v1550_v19, %v1571_v52 }
 0x268   : > { %v1580_v59 = vperm.slane %v1572_v20, %v1575_v61 }
 0x269   : > { %v1570_v30 = vsel %vm1569_vm0, %v1568_v1, %v1544_v49 }
 0x26a   : > { %v1576_v33 = vperm.slane %v1570_v30, %v1575_v61  ;;  %v1631_v40 = vrot.slane %v1580_v59, 4 }
 0x26c   : > { %v1619_v22 = vrot.slane %v1576_v33, 4 }
 0x26e   : > { %v1553_v11 = vpop.f32.mrf.mxu2 }
 0x26f   : > { %v1581_v43 = vrot.slane %v1553_v11, 4  ;;  %v1584_v55 = vsel %vm1569_vm0, %v1553_v11, %v1583_v25 }
 0x270   : > { %v1592_v31 = vperm.slane %v1584_v55, %v1575_v61 }
 0x271   : > { %v1582_v54 = vsel %vm1569_vm0, %v1581_v43, %v1547_v29 }
 0x272   : > { %v1588_v57 = vperm.slane %v1582_v54, %v1575_v61  ;;  %v1629_v10 = vrot.slane %v1592_v31, 4  ;;  %v1632_v18 = vsel %vm1569_vm0, %v1592_v31, %v1631_v40 }
 0x273   : > { %v1640_v48 = vperm.slane %v1632_v18, %v1623_v45 }
 0x274   : > { %v1617_v50 = vrot.slane %v1588_v57, 4  ;;  %v1620_v16 = vsel %vm1569_vm0, %v1588_v57, %v1619_v22  ;;  %v1630_v13 = vsel %vm1569_vm0, %v1629_v10, %v1580_v59 }
 0x275   : > { %v1628_v23 = vperm.slane %v1620_v16, %v1623_v45  ;;  %v1636_v27 = vperm.slane %v1630_v13, %v1623_v45  ;;  %v1679_v43 = vrot.slane %v1640_v48, 4 }
 0x276   : > { %v1556_v28 = vpop.f32.mrf.mxu2  ;;  %v1618_v39 = vsel %vm1569_vm0, %v1617_v50, %v1576_v33 }
 0x277   : > { %v1595_v37 = vrot.slane %v1556_v28, 4  ;;  %v1594_v8 = vsel %vm1569_vm0, %v1593_v24, %v1556_v28  ;;  %v1624_v51 = vperm.slane %v1618_v39, %v1623_v45  ;;  %v1671_v42 = vrot.slane %v1628_v23, 4 }
 0x278   : > { %v1600_v34 = vperm.slane %v1594_v8, %v1575_v61  ;;  %v1675_v49 = vrot.slane %v1636_v27, 4 }
 0x279   : > { %v1596_v35 = vsel %vm1569_vm0, %v1562_v44, %v1595_v37  ;;  %v1667_v60 = vrot.slane %v1624_v51, 4 }
 0x27a   : > { %v1604_v32 = vperm.slane %v1596_v35, %v1575_v61  ;;  %v1643_v17 = vrot.slane %v1600_v34, 4 }
 0x27c   : > { %v1655_v26 = vrot.slane %v1604_v32, 4 }
 0x27e   : > { %v1559_v41 = vpop.f32.mrf.mxu2 }
 0x27f   : > { %v1606_v14 = vsel %vm1569_vm0, %v1605_v3, %v1559_v41  ;;  %v1607_v15 = vrot.slane %v1559_v41, 4 }
 0x280   : > { %v1612_v5 = vperm.slane %v1606_v14, %v1575_v61 }
 0x281   : > { %v1608_v62 = vsel %vm1569_vm0, %v1565_v53, %v1607_v15 }
 0x282   : > { %v1616_v4 = vperm.slane %v1608_v62, %v1575_v61  ;;  %v1641_v47 = vrot.slane %v1612_v5, 4  ;;  %v1644_v6 = vsel %vm1569_vm0, %v1612_v5, %v1643_v17 }
 0x283   : > { %v1652_v21 = vperm.slane %v1644_v6, %v1623_v45 }
 0x284   : > { %v1642_v12 = vsel %vm1569_vm0, %v1641_v47, %v1600_v34  ;;  %v1653_v38 = vrot.slane %v1616_v4, 4  ;;  %v1656_v63 = vsel %vm1569_vm0, %v1616_v4, %v1655_v26 }
 0x285   : > { %v1648_v7 = vperm.slane %v1642_v12, %v1623_v45  ;;  %v1664_v46 = vperm.slane %v1656_v63, %v1623_v45  ;;  %v1669_v2 = vrot.slane %v1652_v21, 4  ;;  %v1672_v9 = vsel %vm1569_vm0, %v1652_v21, %v1671_v42 }
 0x286   : > { %v1654_v29 = vsel %vm1569_vm0, %v1653_v38, %v1604_v32  ;;  %1684 = vst [vmem:[%s3324_s14 + $0x18] sm:$0xff] %v1672_v9 }
 0x287   : > { %v1660_v19 = vperm.slane %v1654_v29, %v1623_v45  ;;  %v1665_v11 = vrot.slane %v1648_v7, 4  ;;  %v1668_v1 = vsel %vm1569_vm0, %v1648_v7, %v1667_v60  ;;  %v1670_v56 = vsel %vm1569_vm0, %v1669_v2, %v1628_v23 }
 0x288   : > { %v1677_v58 = vrot.slane %v1664_v46, 4  ;;  %1682 = vst [vmem:[%s3324_s14 + $0x8] sm:$0xff] %v1668_v1  ;;  %v1680_v55 = vsel %vm1569_vm0, %v1664_v46, %v1679_v43 }
 0x289   : > { %v1666_v44 = vsel %vm1569_vm0, %v1665_v11, %v1624_v51  ;;  %v1673_v25 = vrot.slane %v1660_v19, 4  ;;  %v1676_v54 = vsel %vm1569_vm0, %v1660_v19, %v1675_v49  ;;  %1683 = vst [vmem:[%s3324_s14 + $0x10] sm:$0xff] %v1670_v56 }
 0x28a   : > { %v1678_v30 = vsel %vm1569_vm0, %v1677_v58, %v1640_v48  ;;  %1681 = vst [vmem:[%s3324_s14] sm:$0xff] %v1666_v44 }
 0x28b   : > { %v1674_v61 = vsel %vm1569_vm0, %v1673_v25, %v1636_v27  ;;  %1686 = vst [vmem:[%s3324_s14 + $0x28] sm:$0xff] %v1676_v54 }
 0x28c   : > { %1685 = vst [vmem:[%s3324_s14 + $0x20] sm:$0xff] %v1674_v61 }
 0x28d   : > { %1687 = vst [vmem:[%s3324_s14 + $0x30] sm:$0xff] %v1678_v30 }
 0x28e   : > { %1688 = vst [vmem:[%s3324_s14 + $0x38] sm:$0xff] %v1680_v55 }
 0x28f   : > { %2804 = shalt.err (!%p2801_p12)
}
 0x290   : > { %s2955_s14 = smov 128   ;;  %s2956_s26 = smov 512  }
 0x291   : > { %s2957_s1 = smov 8  }
 0x292   : > { %2157 = dma.vmem_to_hbm [thread:$0]  (%p3143_p0), %s1715_s15, 1024, %s1717_s20, %s1690_s17, %s2955_s14, %s2956_s26, %s2957_s1  }
 0x293 PF: > { %s4158_s9 = sld [smem:[#allocation33_spill]]  ;;  %p2211_p9 = scmp.ge.s32.totalorder %s2943_s30, 2 }
 0x295   : > { %p2193_p10 = pnand %p2211_p9, %p3154_p3 }
 0x297   : > { %p2194_p11 = pneg %p2193_p10 }
 0x299   : > { %s1759_s11 = sand.u32 1, %s4158_s9  }
 0x29a   : > { %s1760_s10 = scalar_lea.sflag [#allocation9], %s1759_s11 }
 0x29b   : > { %2882 = dma.done.wait (%p2194_p11), %s1760_s10, 1024  }
 0x29c   : > { %2884 = vsyncadd (%p2194_p11), %s1760_s10, 4294966272  ;;  %s4160_s16 = sadd.s32 4294967294, %s2943_s30   ;;  %p2196_p5 = pnand %p2211_p9, %p3158_p1 }
 0x29d   : > { %s1769_s27 = sand.u32 1, %s4160_s16  }
 0x29e   : > { %p2197_p4 = pneg %p2196_p5  ;;  %s1770_s15 = scalar_lea.sflag [#allocation24], %s1769_s27 }
 0x2a0   : > { %2886 = dma.done.wait (%p2197_p4), %s1770_s15, 256  }
 0x2a1   : > { %2888 = vsyncadd (%p2197_p4), %s1770_s15, 4294967040  ;;  %s39_s30 = sadd.s32 1, %s2943_s30   ;;  %s4163_s17 = sld [smem:[#allocation34_spill]] }
 0x2a2   : > { %p3967_p0 = scmp.ge.s32.totalorder %s39_s30, 10   ;;  %s4164_s4 = sld [smem:[#allocation35_spill]] }
 0x2a3   : > { %s4165_s23 = sld [smem:[#allocation36_spill]]  ;;  %s4170_s18 = smov %s2899_s19 }
 0x2a4   : > { %s4166_s26 = sld [smem:[#allocation39_spill]]  ;;  %s4171_s19 = smov %s3256_s12 }
 0x2a5   : > { %s4167_s3 = sld [smem:[#allocation47_spill]]  ;;  %s4173_s21 = smov %s2911_s22 }
 0x2a6   : > { %s4168_s0 = sld [smem:[#allocation49_spill]]  ;;  %s4174_s22 = smov %s3250_s8 }
 0x2a7   : > { %s4175_s24 = smov %s2923_s25  ;;  %s4176_s25 = smov %s3253_s28 }
 0x2a8   : > { %s4172_s20 = smov %s4164_s4  ;;  %s4177_s27 = smov %s2939_s29 }
 0x2a9   :  { %38 = sbr.rel (!%p3967_p0) target bundleno = 31 (0x1f), region = 209 }
 0x2ab   : > { %s4178_s28 = smov %s4167_s3 }
 0x2ac   : > { %s4179_s29 = smov %s4168_s0 }
 0x2ae   :  { %1786 = vsyncpa [#allocation8], 1 }
 0x2af   :  { %1788 = vsyncpa [#allocation8 + $0x1], 1 }
 0x2b0   :  { %1789 = vsyncpa [#allocation11], 1 }
 0x2b1   :  { %1791 = vsyncpa [#allocation11 + $0x1], 1 }
 0x2b2   :  { %1792 = vsyncpa [#allocation14], 1 }
 0x2b3   :  { %1794 = vsyncpa [#allocation14 + $0x1], 1 }
 0x2b4   :  { %1795 = vsyncpa [#allocation17], 1 }
 0x2b5   :  { %1796 = vsyncpa [#allocation20], 1 }
 0x2b6   :  { %1797 = vsyncpa [#allocation9], 1 }
 0x2b7   :  { %1799 = vsyncpa [#allocation9 + $0x1], 1 }
 0x2b8   :  { %1800 = vsyncpa [#allocation24], 1 }
 0x2b9   :  { %1802 = vsyncpa [#allocation24 + $0x1], 1 }

// kernel: tpu_custom_call.1
= control target key start
LH: loop header
LB: loop body
LE: loop exit
PB: predicated region body
PF: predicated region fallthrough
CT: control target
= control target key end

     0   :  { %s3801_s0 = inlined_call_operand.hbm [shape: f32[512,128], index: 0, kind: input, shape index: {}]   ;;  %s3802_s1 = inlined_call_operand.hbm [shape: f32[16,128], index: 1, kind: input, shape index: {}]   ;;  %s3803_s2 = inlined_call_operand.hbm [shape: f32[16,128], index: 2, kind: input, shape index: {}]   ;;  %s3804_s3 = inlined_call_operand.hbm [shape: f32[16,128], index: 3, kind: input, shape index: {}]   ;;  %s3805_s4 = inlined_call_operand.hbm [shape: f32[16,128], index: 4, kind: input, shape index: {}]   ;;  %s3806_s5 = inlined_call_operand.hbm [shape: f32[8,128], index: 5, kind: input, shape index: {}]   ;;  %s3807_s6 = inlined_call_operand.hbm [shape: f32[128,384], index: 6, kind: input, shape index: {}]   ;;  %s3808_s7 = inlined_call_operand.hbm [shape: f32[128,384], index: 7, kind: input, shape index: {}]   ;;  %s3809_s8 = inlined_call_operand.hbm [shape: f32[128,128], index: 8, kind: input, shape index: {}]   ;;  %s3810_s9 = inlined_call_operand.hbm [shape: f32[512,128], index: 9, kind: output, shape index: {0}]   ;;  %s3811_s10 = inlined_call_operand.hbm [shape: f32[16,128], index: 10, kind: output, shape index: {1}]   ;;  %s3812_s11 = inlined_call_operand.hbm [shape: f32[16,128], index: 11, kind: output, shape index: {2}]  }
   0x1   :  { %3843 = sst [smem:[#allocation49_spill]] %s3801_s0 }
   0x2   :  { %3844 = sst [smem:[#allocation50_spill]] %s3802_s1 }
   0x3   :  { %3845 = sst [smem:[#allocation51_spill]] %s3804_s3 }
   0x4   :  { %3846 = sst [smem:[#allocation52_spill]] %s3805_s4 }
   0x5   :  { %3847 = sst [smem:[#allocation53_spill]] %s3806_s5 }
   0x6   :  { %3848 = sst [smem:[#allocation54_spill]] %s3807_s6 }
   0x7   :  { %3849 = sst [smem:[#allocation55_spill]] %s3808_s7 }
   0x8   :  { %3850 = sst [smem:[#allocation56_spill]] %s3809_s8 }
   0x9   :  { %3851 = sst [smem:[#allocation57_spill]] %s3810_s9 }
   0xa   :  { %3852 = sst [smem:[#allocation58_spill]] %s3811_s10 }
   0xb   :  { %3853 = sst [smem:[#allocation59_spill]] %s3812_s11 }
   0xc   :  { %17 = vsyncpa [#allocation8], 0 }
   0xd   :  { %19 = vsyncpa [#allocation8 + $0x1], 0 }
   0xe   :  { %20 = vsyncpa [#allocation11], 0 }
   0xf   :  { %22 = vsyncpa [#allocation11 + $0x1], 0 }
  0x10   :  { %23 = vsyncpa [#allocation14], 0 }
  0x11   :  { %25 = vsyncpa [#allocation14 + $0x1], 0 }
  0x12   :  { %26 = vsyncpa [#allocation17], 0 }
  0x13   :  { %27 = vsyncpa [#allocation20], 0 }
  0x14   :  { %28 = vsyncpa [#allocation9], 0 }
  0x15   :  { %30 = vsyncpa [#allocation9 + $0x1], 0 }
  0x16   :  { %31 = vsyncpa [#allocation24], 0 }
  0x17   :  { %33 = vsyncpa [#allocation24 + $0x1], 0  ;;  %s2857_s17 = smov 0   ;;  %s2859_s18 = smov 0  }
  0x18   :  { %s2861_s19 = smov 0   ;;  %s2863_s20 = smov 0  }
  0x19   :  { %s2865_s21 = smov 0   ;;  %s2867_s22 = smov 0  }
  0x1a   :  { %s2869_s23 = smov 0   ;;  %s2871_s24 = smov 0  }
  0x1b   :  { %s2873_s25 = smov 0   ;;  %s2875_s26 = smov 0  }
  0x1c   :  { %s2877_s27 = smov 0  }
  0x1d LB: > { %3854 = sst [smem:[#allocation33_spill]] %s2749_s18  ;;  %s2913_s28 = sadd.s32 4294967295, %s2785_s27   ;;  %s2785_s27 = sphi %s2877_s27, %s39_s27   ;;  %s2781_s26 = sphi %s2875_s26, %s3945_s26   ;;  %s2777_s25 = sphi %s2873_s25, %s3944_s25   ;;  %s2773_s24 = sphi %s2871_s24, %s3943_s24   ;;  %s2769_s23 = sphi %s2869_s23, %s3935_s23   ;;  %s2765_s22 = sphi %s2867_s22, %s3942_s22   ;;  %s2761_s21 = sphi %s2865_s21, %s3941_s21   ;;  %s2757_s20 = sphi %s2863_s20, %s3940_s20   ;;  %s2753_s19 = sphi %s2861_s19, %s3939_s19   ;;  %s2749_s18 = sphi %s2859_s18, %s3938_s18   ;;  %s2745_s17 = sphi %s2857_s17, %s3933_s17  }
  0x1e   : > { %3855 = sst [smem:[#allocation34_spill]] %s2757_s20  ;;  %p1924_p0 = scmp.ge.s32.totalorder %s2785_s27, 1 }
  0x1f   : > { %3856 = sst [smem:[#allocation35_spill]] %s2769_s23  ;;  %p76_p1 = scmp.eq.s32.totalorder %s2913_s28, 0 }
  0x20   : > { %3857 = sst [smem:[#allocation36_spill]] %s2773_s24  ;;  %p356_p2 = scmp.lt.s32.totalorder %s2785_s27, 9 }
  0x21   : > { %3858 = sst [smem:[#allocation37_spill]] %s2777_s25  ;;  %s2787_s14 = smov [#allocation16]  }
  0x22   : > { %3859 = sst [smem:[#allocation38_spill]] %s2913_s28  ;;  %p2921_p3 = pnand %p1924_p0, %p356_p2 }
  0x23   : > { %s3860_s5 = sld [smem:[#allocation53_spill]]  ;;  %s370_s15 = sshll.u32 %s2787_s14, 4  ;;  %s371_s15 = int_to_ptr.vmem [resolvable:$true] %s370_s15 }
  0x24   : > { %s3861_s13 = scalar_select %p2921_p3, 1, 0 }
  0x25   : > { %p2056_p4 = pneg %p2921_p3  ;;  %s3864_s7 = sld [smem:[#allocation55_spill]] }
  0x26   : > { %3862 = sst [smem:[#allocation39_spill]] %s3861_s13  ;;  %s2788_s14 = smov [#allocation19]  }
  0x27   : > { %p2929_p5 = pnand %p2056_p4, %p76_p1  ;;  %s395_s9 = sshll.u32 %s2788_s14, 4  ;;  %s396_s9 = int_to_ptr.vmem [resolvable:$true] %s395_s9 }
  0x28   : > { %s3817_s11 = smov 384   ;;  %s3818_s10 = smov 24  }
  0x29   : > { %s368_s12 = sshll.u32 %s3860_s5, 4  ;;  %s3816_s29 = sadd.s32 4294967294, %s2785_s27   ;;  %s369_s12 = int_to_ptr.hbm [resolvable:$true] %s368_s12 }
  0x2a   : > { %2059 = dma.hbm_to_vmem [thread:$0]  (!%p2929_p5), %s369_s12, 128, %s371_s15, [#allocation17]  }
  0x2b   : > { %s393_s5 = sshll.u32 %s3864_s7, 4  ;;  %p70_p6 = scmp.eq.s32.totalorder %s2785_s27, 0  ;;  %s394_s5 = int_to_ptr.hbm [resolvable:$true] %s393_s5 }
  0x2c   : > { %2065 = dma.hbm_to_vmem [thread:$0]  (!%p2929_p5), %s394_s5, 6144, %s396_s9, [#allocation20], %s3817_s11, %s3817_s11, %s3818_s10  }
  0x2d   : > { %p95_p7 = scmp.ne.s32.totalorder %s2753_s19, %s2749_s18  ;;  %p101_p8 = scmp.ne.s32.totalorder %s2749_s18, %s2745_s17 }
  0x2e   : > { %p3828_p9 = scmp.eq.s32.totalorder %s2913_s28, 7  ;;  %p2959_p11 = scmp.eq.s32.totalorder %s3816_s29, 7 }
  0x2f   : > { %p2953_p10 = por %p95_p7, %p70_p6  ;;  %p2965_p12 = por %p101_p8, %p76_p1 }
  0x30   : > { %p2971_p13 = por %p3828_p9, %p95_p7  ;;  %p2977_p0 = por %p2959_p11, %p101_p8 }
  0x31   : > { %s3867_s5 = scalar_select %p2965_p12, 1, 0 }
  0x32   : > { %s3869_s9 = scalar_select %p2971_p13, 1, 0 }
  0x33   : > { %3868 = sst [smem:[#allocation40_spill]] %s3867_s5  ;;  %p3827_p2 = scmp.lt.s32.totalorder %s2785_s27, 8 }
  0x34   : > { %3870 = sst [smem:[#allocation41_spill]] %s3869_s9  ;;  %s447_s14 = sand.u32 1, %s2785_s27  }
  0x35   : > { %s3871_s17 = scalar_select %p2977_p0, 1, 0 }
  0x36   : > { %s449_s29 = sand.u32 1, %s2753_s19   ;;  %s2987_s11 = sshll.u32 %s2781_s26, 3 }
  0x37   : > { %3872 = sst [smem:[#allocation42_spill]] %s3871_s17  ;;  %s2984_s30 = sshll.u32 %s449_s29, 3 }
  0x38   : > { %s3873_s1 = sld [smem:[#allocation50_spill]]  ;;  %s451_s24 = scalar_lea.vmem [#allocation10], %s2984_s30 }
  0x39   : > { %s459_s23 = sshll.u32 %s451_s24, 4  ;;  %p2998_p4 = pnand %p3827_p2, %p2953_p10  ;;  %s460_s23 = int_to_ptr.vmem [resolvable:$true] %s459_s23 }
  0x3a   : > { %s3875_s3 = sld [smem:[#allocation51_spill]]  ;;  %s3006_s7 = scalar_lea.sflag [#allocation11], %s447_s14 }
  0x3b   : > { %s489_s24 = scalar_lea.vmem [#allocation13], %s2984_s30  ;;  %s3876_s6 = sld [smem:[#allocation54_spill]] }
  0x3c   : > { %s497_s12 = sshll.u32 %s489_s24, 4  ;;  %s3877_s8 = sld [smem:[#allocation56_spill]]  ;;  %s498_s12 = int_to_ptr.vmem [resolvable:$true] %s497_s12 }
  0x3d   : > { %s3879_s4 = smov 384   ;;  %s3830_s18 = smov 128  }
  0x3e   : > { %s455_s9 = scalar_lea.hbm %s3873_s1, %s2987_s11  ;;  %s3831_s17 = smov 8  }
  0x3f   : > { %s457_s5 = sshll.u32 %s455_s9, 4  ;;  %s3012_s9 = scalar_lea.sflag [#allocation14], %s447_s14  ;;  %s458_s5 = int_to_ptr.hbm [resolvable:$true] %s457_s5 }
  0x40   : > { %s493_s13 = scalar_lea.hbm %s3875_s3, %s2987_s11  ;;  %s3878_s3 = smov 24  }
  0x41   : > { %2075 = dma.hbm_to_vmem [thread:$0]  (!%p2998_p4), %s458_s5, 128, %s460_s23, %s3006_s7  }
  0x42   : > { %s495_s10 = sshll.u32 %s493_s13, 4  ;;  %s379_s1 = sshll.u32 %s3876_s6, 4  ;;  %s496_s10 = int_to_ptr.hbm [resolvable:$true] %s495_s10  ;;  %s380_s1 = int_to_ptr.hbm [resolvable:$true] %s379_s1 }
  0x43   : > { %2081 = dma.hbm_to_vmem [thread:$0]  (!%p2998_p4), %s496_s10, 128, %s498_s12, %s3012_s9  }
  0x44   : > { %s2791_s23 = smov [#allocation18]   ;;  %s407_s14 = sshll.u32 %s3877_s8, 4  ;;  %s408_s14 = int_to_ptr.hbm [resolvable:$true] %s407_s14 }
  0x45   : > { %s381_s13 = sshll.u32 %s2791_s23, 4  ;;  %s2792_s10 = smov [#allocation21]   ;;  %s382_s13 = int_to_ptr.vmem [resolvable:$true] %s381_s13 }
  0x46   : > { %2062 = dma.hbm_to_vmem [thread:$0]  (!%p2929_p5), %s380_s1, 6144, %s382_s13, [#allocation17], %s3879_s4, %s3879_s4, %s3878_s3  }
  0x47   : > { %s409_s12 = sshll.u32 %s2792_s10, 4  ;;  %s48_s1 = sadd.s32 1, %s2777_s25  ;;  %s410_s12 = int_to_ptr.vmem [resolvable:$true] %s409_s12 }
  0x48   : > { %2068 = dma.hbm_to_vmem [thread:$0]  (!%p2929_p5), %s408_s14, 2048, %s410_s12, [#allocation20], %s3830_s18, %s3830_s18, %s3831_s17  }
  0x49   : > { %s51_s3 = sadd.s32 1, %s2781_s26  ;;  %p49_p7 = scmp.ge.s32.totalorder %s48_s1, 4 }
  0x4a   : > { %s1920_s4 = sshll.u32 %s2781_s26, 2  ;;  %s62_s13 = sadd.s32 1, %s2765_s22 }
  0x4b   : > { %s56_s23 = sadd.s32 %s2777_s25, %s1920_s4  ;;  %s3947_s1 = smov (%p49_p7, %s48_s1), 0 }
  0x4c   : > { %3880 = sst [smem:[#allocation43_spill]] %s3947_s1  ;;  %s3949_s3 = smov (!%p49_p7, %s51_s3), %s2781_s26 }
  0x4d   : > { %p69_p8 = scmp.ne.s32.totalorder %s2765_s22, %s2761_s21  ;;  %p75_p10 = scmp.ne.s32.totalorder %s2761_s21, %s2757_s20 }
  0x4e   : > { %p53_p2 = scmp.ge.s32.totalorder %s3949_s3, 2  ;;  %s423_s16 = sand.u32 1, %s2765_s22  }
  0x4f   : > { %p3048_p5 = por %p70_p6, %p69_p8  ;;  %p3054_p9 = por %p76_p1, %p75_p10 }
  0x50   : > { %s3951_s3 = smov (%p53_p2, %s3949_s3), 0  ;;  %p3884_p7 = scmp.eq.s32.totalorder %s2913_s28, 7 }
  0x51   : > { %3883 = sst [smem:[#allocation44_spill]] %s3951_s3  ;;  %p3068_p13 = por %p2959_p11, %p75_p10 }
  0x52   : > { %p3062_p0 = por %p3884_p7, %p69_p8  ;;  %s1921_s12 = sshll.u32 %s3951_s3, 2 }
  0x53   : > { %s3887_s10 = scalar_select %p3068_p13, 1, 0 }
  0x54   : > { %s3885_s14 = scalar_select %p3062_p0, 1, 0 }
  0x55   : > { %3888 = sst [smem:[#allocation46_spill]] %s3887_s10  ;;  %s85_s4 = ssub.s32 %s2781_s26, %s3951_s3 }
  0x56   : > { %3886 = sst [smem:[#allocation45_spill]] %s3885_s14  ;;  %s58_s18 = sadd.s32 %s1921_s12, %s3947_s1 }
  0x57   : > { %p86_p6 = scmp.eq.s32.totalorder %s85_s4, 0  ;;  %s59_s17 = ssub.s32 %s56_s23, %s58_s18 }
  0x58   : > { %p60_p2 = scmp.eq.s32.totalorder %s59_s17, 0  ;;  %s1930_s6 = sshll.u32 %s423_s16, 6 }
  0x59   : > { %s3889_s8 = sadd.s32 1, %s2753_s19  ;;  %s1974_s15 = sshll.u32 %s56_s23, 6 }
  0x5a   : > { %s3079_s25 = scalar_select %p86_p6, %s2753_s19, %s3889_s8  }
  0x5b   : > { %s3082_s20 = scalar_select %p60_p2, %s2765_s22, %s62_s13  }
  0x5c   : > { %s3890_s0 = sld [smem:[#allocation49_spill]]  ;;  %s427_s3 = scalar_lea.vmem [#allocation7], %s1930_s6 }
  0x5d   : > { %s437_s12 = sshll.u32 %s427_s3, 4  ;;  %p3891_p11 = scmp.lt.s32.totalorder %s2785_s27, 8  ;;  %s438_s12 = int_to_ptr.vmem [resolvable:$true] %s437_s12 }
  0x5e   : > { %s474_s23 = scalar_lea.hbm %s3803_s2, %s2987_s11  ;;  %s424_s13 = scalar_lea.sflag [#allocation8], %s423_s16 }
  0x5f   : > { %p2070_p8 = pnand %p3891_p11, %p3048_p5  ;;  %s476_s28 = sshll.u32 %s474_s23, 4  ;;  %s477_s28 = int_to_ptr.hbm [resolvable:$true] %s476_s28 }
  0x60   : > { %s3892_s14 = smov 8   ;;  %s3893_s4 = smov 128  }
  0x61   : > { %s470_s6 = scalar_lea.vmem [#allocation12], %s2984_s30  ;;  %s508_s8 = scalar_lea.vmem [#allocation15], %s2984_s30 }
  0x62   : > { %s434_s10 = scalar_lea.hbm %s3890_s0, %s1974_s15  ;;  %s478_s3 = sshll.u32 %s470_s6, 4  ;;  %s479_s3 = int_to_ptr.vmem [resolvable:$true] %s478_s3 }
  0x63   : > { %s435_s18 = sshll.u32 %s434_s10, 4  ;;  %s3894_s15 = sld [smem:[#allocation52_spill]]  ;;  %s436_s18 = int_to_ptr.hbm [resolvable:$true] %s435_s18 }
  0x64   : > { %2072 = dma.hbm_to_vmem [thread:$0]  (!%p2070_p8), %s436_s18, 1024, %s438_s12, %s424_s13, %s3893_s4, %s3893_s4, %s3892_s14  }
  0x65   : > { %2078 = dma.hbm_to_vmem [thread:$0]  (!%p2998_p4), %s477_s28, 128, %s479_s3, %s3006_s7  }
  0x66   : > { %s516_s17 = sshll.u32 %s508_s8, 4  ;;  %s517_s17 = int_to_ptr.vmem [resolvable:$true] %s516_s17 }
  0x67   : > { %525 = sbr.rel (%p2921_p3) target bundleno = 620 (0x26c), region = 56 }
  0x69   : > { %s512_s0 = scalar_lea.hbm %s3894_s15, %s2987_s11 }
  0x6a   : > { %s514_s1 = sshll.u32 %s512_s0, 4  ;;  %s515_s1 = int_to_ptr.hbm [resolvable:$true] %s514_s1 }
  0x6b   : > { %2084 = dma.hbm_to_vmem [thread:$0]  (!%p2998_p4), %s515_s1, 128, %s517_s17, %s3012_s9  }
  0x6c   : > { %s3113_s12 = sand.u32 1, %s2761_s21  }
  0x6d   : > { %s1943_s7 = sshll.u32 %s3113_s12, 6  ;;  %s528_s18 = scalar_lea.sflag [#allocation8], %s3113_s12 }
  0x6e   : > { %s3117_s23 = scalar_lea.vmem [#allocation7], %s1943_s7 }
  0x6f   : > { %2716 = dma.done.wait (%p3054_p9), %s528_s18, 1024  }
  0x70   : > { %2718 = vsyncadd (%p3054_p9), %s528_s18, 4294966272  ;;  %s3896_s0 = sld [smem:[#allocation38_spill]] }
  0x71   : > { %s3897_s11 = sld [smem:[#allocation33_spill]] }
  0x76   : > { %s3124_s29 = sand.u32 1, %s3896_s0  }
  0x77   : > { %s539_s9 = sand.u32 1, %s3897_s11   ;;  %s538_s28 = scalar_lea.sflag [#allocation11], %s3124_s29 }
  0x78   : > { %s3127_s1 = sshll.u32 %s539_s9, 3 }
  0x79   : > { %s541_s13 = scalar_lea.vmem [#allocation10], %s3127_s1 }
  0x7a   : > { %2720 = dma.done.wait (%p2965_p12), %s538_s28, 256  }
  0x7b   : > { %2722 = vsyncadd (%p2965_p12), %s538_s28, 4294967040  ;;  %s551_s24 = scalar_lea.vmem [#allocation12], %s3127_s1  ;;  %s558_s14 = scalar_lea.sflag [#allocation14], %s3124_s29 }
  0x7c   : > { %s561_s4 = scalar_lea.vmem [#allocation13], %s3127_s1 }
  0x7d   : > { %2724 = dma.done.wait (%p2965_p12), %s558_s14, 256  }
  0x7e   : > { %2726 = vsyncadd (%p2965_p12), %s558_s14, 4294967040  ;;  %s571_s6 = scalar_lea.vmem [#allocation15], %s3127_s1 }
  0x7f   : > { %2728 = dma.done.wait (%p76_p1), [#allocation17], 6272  }
  0x80   : > { %2730 = vsyncadd (%p76_p1), [#allocation17], 4294961024 }
  0x81   : > { %2732 = dma.done.wait (%p76_p1), [#allocation20], 8192  }
  0x82   : > { %2734 = vsyncadd (%p76_p1), [#allocation20], 4294959104  ;;  %s3151_s3 = scalar_lea.vmem [#allocation22], %s1943_s7  ;;  %s653_s5 = scalar_lea.vmem [#allocation23], %s3127_s1 }
  0x83   : > { %s660_s10 = scalar_lea.vmem [#allocation25], %s3127_s1  ;;  %s3899_s15 = sld [smem:[#allocation35_spill]] }
  0x89   : > { %p1955_p3 = scmp.ne.s32.totalorder %s3899_s15, 0 }
  0x8b   : > { %670 = sbr.rel (%p1955_p3) target bundleno = 149 (0x95), region = 96 }
  0x90   : > { %v671_v0 = vld [vmem:[%s541_s13] sm:$0xff]  ;;  %v673_v1 = vld [vmem:[%s551_s24] sm:$0xff] }
  0x91   : > { %v675_v2 = vld [vmem:[%s561_s4] sm:$0xff]  ;;  %672 = vst [vmem:[#allocation3] sm:$0xff] %v671_v0  ;;  %v677_v3 = vld [vmem:[%s571_s6] sm:$0xff] }
  0x92   : > { %674 = vst [vmem:[#allocation4] sm:$0xff] %v673_v1 }
  0x93   : > { %676 = vst [vmem:[#allocation5] sm:$0xff] %v675_v2 }
  0x94   : > { %678 = vst [vmem:[#allocation6] sm:$0xff] %v677_v3 }
  0x95 PF: > { %v782_v4 = vld [vmem:[#allocation19 + $0x168] sm:$0xff]  ;;  %v783_v5 = vld [vmem:[#allocation19 + $0x170] sm:$0xff]  ;;  %v780_v7 = vld [vmem:[#allocation19 + $0x158] sm:$0xff]  ;;  %s3916_s8 = sld [smem:[#allocation36_spill]]  ;;  %s1622_s30 = sshll.u32 %s653_s5, 4  ;;  %s1623_s30 = int_to_ptr.vmem [resolvable:$true] %s1622_s30 }
  0x96   : > { %v779_v6 = vld [vmem:[#allocation19 + $0x150] sm:$0xff]  ;;  %785 = vmatpush.msra.mxu0 %v782_v4  ;;  %1976 = vmatpush.msra.mxu3 %v782_v4  ;;  %v776_v8 = vld [vmem:[#allocation19 + $0x138] sm:$0xff]  ;;  %v777_v9 = vld [vmem:[#allocation19 + $0x140] sm:$0xff]  ;;  %s3917_s17 = sld [smem:[#allocation41_spill]]  ;;  %s3842_s28 = scalar_lea.sflag [#allocation24], %s3124_s29 }
  0x97   : > { %826 = vmatpush.msra.mxu1 %v783_v5  ;;  %v773_v10 = vld [vmem:[#allocation19 + $0x120] sm:$0xff]  ;;  %v774_v11 = vld [vmem:[#allocation19 + $0x128] sm:$0xff]  ;;  %v771_v13 = vld [vmem:[#allocation19 + $0x110] sm:$0xff] }
  0x98   : > { %786 = vmatpush.msra.mxu0 %v779_v6  ;;  %1977 = vmatpush.msra.mxu3 %v779_v6  ;;  %v770_v12 = vld [vmem:[#allocation19 + $0x108] sm:$0xff]  ;;  %v767_v14 = vld [vmem:[#allocation19 + $0xf0] sm:$0xff]  ;;  %v768_v15 = vld [vmem:[#allocation19 + $0xf8] sm:$0xff] }
  0x99   : > { %827 = vmatpush.msra.mxu1 %v780_v7  ;;  %v764_v16 = vld [vmem:[#allocation19 + $0xd8] sm:$0xff]  ;;  %v765_v17 = vld [vmem:[#allocation19 + $0xe0] sm:$0xff]  ;;  %v762_v19 = vld [vmem:[#allocation19 + $0xc8] sm:$0xff] }
  0x9a   : > { %787 = vmatpush.msra.mxu0 %v776_v8  ;;  %1978 = vmatpush.msra.mxu3 %v776_v8  ;;  %v761_v18 = vld [vmem:[#allocation19 + $0xc0] sm:$0xff]  ;;  %v758_v20 = vld [vmem:[#allocation19 + $0xa8] sm:$0xff]  ;;  %v759_v21 = vld [vmem:[#allocation19 + $0xb0] sm:$0xff] }
  0x9b   : > { %828 = vmatpush.msra.mxu1 %v777_v9  ;;  %v784_v22 = vld [vmem:[#allocation19 + $0x178] sm:$0xff]  ;;  %v755_v23 = vld [vmem:[#allocation19 + $0x90] sm:$0xff]  ;;  %v781_v24 = vld [vmem:[#allocation19 + $0x160] sm:$0xff]  ;;  %s1970_s16 = sshll.u32 %s3916_s8, 3 }
  0x9c   : > { %788 = vmatpush.msra.mxu0 %v773_v10  ;;  %1979 = vmatpush.msra.mxu3 %v773_v10  ;;  %v756_v25 = vld [vmem:[#allocation19 + $0x98] sm:$0xff]  ;;  %v778_v26 = vld [vmem:[#allocation19 + $0x148] sm:$0xff]  ;;  %v753_v28 = vld [vmem:[#allocation19 + $0x80] sm:$0xff]  ;;  %p3920_p9 = scmp.ne.s32.totalorder %s3917_s17, 0 }
  0x9d   : > { %829 = vmatpush.msra.mxu1 %v774_v11  ;;  %867 = vmatpush.msra.mxu2 %v784_v22  ;;  %v752_v27 = vld [vmem:[#allocation19 + $0x78] sm:$0xff]  ;;  %v775_v29 = vld [vmem:[#allocation19 + $0x130] sm:$0xff]  ;;  %v749_v30 = vld [vmem:[#allocation19 + $0x60] sm:$0xff] }
  0x9e   : > { %789 = vmatpush.msra.mxu0 %v770_v12  ;;  %1980 = vmatpush.msra.mxu3 %v770_v12  ;;  %v750_v31 = vld [vmem:[#allocation19 + $0x68] sm:$0xff]  ;;  %v772_v32 = vld [vmem:[#allocation19 + $0x118] sm:$0xff]  ;;  %v747_v34 = vld [vmem:[#allocation19 + $0x50] sm:$0xff] }
  0x9f   : > { %830 = vmatpush.msra.mxu1 %v771_v13  ;;  %868 = vmatpush.msra.mxu2 %v781_v24  ;;  %v746_v33 = vld [vmem:[#allocation19 + $0x48] sm:$0xff]  ;;  %v769_v35 = vld [vmem:[#allocation19 + $0x100] sm:$0xff]  ;;  %v743_v36 = vld [vmem:[#allocation19 + $0x30] sm:$0xff] }
  0xa0   : > { %790 = vmatpush.msra.mxu0 %v767_v14  ;;  %1981 = vmatpush.msra.mxu3 %v767_v14  ;;  %v744_v37 = vld [vmem:[#allocation19 + $0x38] sm:$0xff]  ;;  %v766_v38 = vld [vmem:[#allocation19 + $0xe8] sm:$0xff]  ;;  %v741_v40 = vld [vmem:[#allocation19 + $0x20] sm:$0xff] }
  0xa1   : > { %831 = vmatpush.msra.mxu1 %v768_v15  ;;  %869 = vmatpush.msra.mxu2 %v778_v26  ;;  %v740_v39 = vld [vmem:[#allocation19 + $0x18] sm:$0xff]  ;;  %v763_v41 = vld [vmem:[#allocation19 + $0xd0] sm:$0xff]  ;;  %v737_v42 = vld [vmem:[#allocation19] sm:$0xff] }
  0xa2   : > { %791 = vmatpush.msra.mxu0 %v764_v16  ;;  %1982 = vmatpush.msra.mxu3 %v764_v16  ;;  %v738_v43 = vld [vmem:[#allocation19 + $0x8] sm:$0xff]  ;;  %v3156_v44 = vld [vmem:[#allocation3] sm:$0xff]  ;;  %v3159_v45 = vld [vmem:[%s3117_s23 + $0x18] sm:$0xff] }
  0xa3   : > { %832 = vmatpush.msra.mxu1 %v765_v17  ;;  %870 = vmatpush.msra.mxu2 %v775_v29  ;;  %v735_v46 = vld [vmem:[#allocation18 + $0x170] sm:$0xff]  ;;  %v734_v47 = vld [vmem:[#allocation18 + $0x168] sm:$0xff]  ;;  %v760_v48 = vld [vmem:[#allocation19 + $0xb8] sm:$0xff] }
  0xa4   : > { %792 = vmatpush.msra.mxu0 %v761_v18  ;;  %1983 = vmatpush.msra.mxu3 %v761_v18  ;;  %v732_v49 = vld [vmem:[#allocation18 + $0x158] sm:$0xff]  ;;  %v731_v50 = vld [vmem:[#allocation18 + $0x150] sm:$0xff]  ;;  %v757_v51 = vld [vmem:[#allocation19 + $0xa0] sm:$0xff] }
  0xa5   : > { %833 = vmatpush.msra.mxu1 %v762_v19  ;;  %871 = vmatpush.msra.mxu2 %v772_v32  ;;  %v729_v52 = vld [vmem:[#allocation18 + $0x140] sm:$0xff]  ;;  %v728_v53 = vld [vmem:[#allocation18 + $0x138] sm:$0xff]  ;;  %v754_v55 = vld [vmem:[#allocation19 + $0x88] sm:$0xff] }
  0xa6   : > { %793 = vmatpush.msra.mxu0 %v758_v20  ;;  %1984 = vmatpush.msra.mxu3 %v758_v20  ;;  %v3164_v54 = vld [vmem:[#allocation18 + $0x178] sm:$0xff]  ;;  %v3166_v56 = vld [vmem:[#allocation18 + $0x160] sm:$0xff]  ;;  %v726_v57 = vld [vmem:[#allocation18 + $0x128] sm:$0xff] }
  0xa7   : > { %834 = vmatpush.msra.mxu1 %v759_v21  ;;  %872 = vmatpush.msra.mxu2 %v769_v35  ;;  %v725_v58 = vld [vmem:[#allocation18 + $0x120] sm:$0xff]  ;;  %v3170_v59 = vld [vmem:[%s3117_s23] sm:$0xff]  ;;  %v723_v61 = vld [vmem:[#allocation18 + $0x110] sm:$0xff] }
  0xa8   : > { %794 = vmatpush.msra.mxu0 %v755_v23  ;;  %1985 = vmatpush.msra.mxu3 %v755_v23  ;;  %v3173_v60 = vld [vmem:[%s3117_s23 + $0x20] sm:$0xff]  ;;  %v722_v62 = vld [vmem:[#allocation18 + $0x108] sm:$0xff]  ;;  %v751_v63 = vld [vmem:[#allocation19 + $0x70] sm:$0xff] }
  0xa9   : > { %835 = vmatpush.msra.mxu1 %v756_v25  ;;  %873 = vmatpush.msra.mxu2 %v766_v38  ;;  %v720_v0 = vld [vmem:[#allocation18 + $0xf8] sm:$0xff]  ;;  %v3178_v1 = vld [vmem:[#allocation18 + $0x148] sm:$0xff]  ;;  %v719_v2 = vld [vmem:[#allocation18 + $0xf0] sm:$0xff] }
  0xaa   : > { %795 = vmatpush.msra.mxu0 %v752_v27  ;;  %1986 = vmatpush.msra.mxu3 %v752_v27  ;;  %v748_v3 = vld [vmem:[#allocation19 + $0x58] sm:$0xff]  ;;  %v717_v4 = vld [vmem:[#allocation18 + $0xe0] sm:$0xff]  ;;  %v3181_v5 = vld [vmem:[#allocation18 + $0x130] sm:$0xff] }
  0xab   : > { %836 = vmatpush.msra.mxu1 %v753_v28  ;;  %874 = vmatpush.msra.mxu2 %v763_v41  ;;  %v716_v6 = vld [vmem:[#allocation18 + $0xd8] sm:$0xff]  ;;  %v745_v7 = vld [vmem:[#allocation19 + $0x40] sm:$0xff]  ;;  %v714_v8 = vld [vmem:[#allocation18 + $0xc8] sm:$0xff] }
  0xac   : > { %796 = vmatpush.msra.mxu0 %v749_v30  ;;  %1987 = vmatpush.msra.mxu3 %v749_v30  ;;  %v3184_v9 = vld [vmem:[#allocation18 + $0x118] sm:$0xff]  ;;  %v713_v10 = vld [vmem:[#allocation18 + $0xc0] sm:$0xff]  ;;  %v711_v13 = vld [vmem:[#allocation18 + $0xb0] sm:$0xff] }
  0xad   : > { %837 = vmatpush.msra.mxu1 %v750_v31  ;;  %875 = vmatpush.msra.mxu2 %v760_v48  ;;  %v3187_v11 = vld [vmem:[%s3117_s23 + $0x8] sm:$0xff]  ;;  %v710_v14 = vld [vmem:[#allocation18 + $0xa8] sm:$0xff]  ;;  %v708_v17 = vld [vmem:[#allocation18 + $0x98] sm:$0xff] }
  0xae   : > { %797 = vmatpush.msra.mxu0 %v746_v33  ;;  %1988 = vmatpush.msra.mxu3 %v746_v33  ;;  %v3191_v12 = vld [vmem:[%s3117_s23 + $0x28] sm:$0xff]  ;;  %v742_v15 = vld [vmem:[#allocation19 + $0x28] sm:$0xff]  ;;  %v707_v18 = vld [vmem:[#allocation18 + $0x90] sm:$0xff] }
  0xaf   : > { %838 = vmatpush.msra.mxu1 %v747_v34  ;;  %876 = vmatpush.msra.mxu2 %v757_v51  ;;  %v3195_v16 = vld [vmem:[#allocation18 + $0x100] sm:$0xff]  ;;  %v739_v19 = vld [vmem:[#allocation19 + $0x10] sm:$0xff]  ;;  %v3199_v20 = vld [vmem:[#allocation18 + $0xe8] sm:$0xff] }
  0xb0   : > { %798 = vmatpush.msra.mxu0 %v743_v36  ;;  %1989 = vmatpush.msra.mxu3 %v743_v36  ;;  %v705_v21 = vld [vmem:[#allocation18 + $0x80] sm:$0xff]  ;;  %v704_v22 = vld [vmem:[#allocation18 + $0x78] sm:$0xff]  ;;  %v3202_v23 = vld [vmem:[#allocation18 + $0xd0] sm:$0xff] }
  0xb1   : > { %839 = vmatpush.msra.mxu1 %v744_v37  ;;  %877 = vmatpush.msra.mxu2 %v754_v55  ;;  %v702_v24 = vld [vmem:[#allocation18 + $0x68] sm:$0xff]  ;;  %v701_v25 = vld [vmem:[#allocation18 + $0x60] sm:$0xff]  ;;  %v699_v28 = vld [vmem:[#allocation18 + $0x50] sm:$0xff] }
  0xb2   : > { %799 = vmatpush.msra.mxu0 %v740_v39  ;;  %1990 = vmatpush.msra.mxu3 %v740_v39  ;;  %v3206_v26 = vld [vmem:[%s3117_s23 + $0x10] sm:$0xff]  ;;  %v712_v30 = vld [vmem:[#allocation18 + $0xb8] sm:$0xff]  ;;  %v695_v32 = vld [vmem:[#allocation18 + $0x30] sm:$0xff] }
  0xb3   : > { %840 = vmatpush.msra.mxu1 %v741_v40  ;;  %878 = vmatpush.msra.mxu2 %v751_v63  ;;  %v3209_v27 = vld [vmem:[%s3117_s23 + $0x30] sm:$0xff]  ;;  %v696_v31 = vld [vmem:[#allocation18 + $0x38] sm:$0xff]  ;;  %v709_v33 = vld [vmem:[#allocation18 + $0xa0] sm:$0xff] }
  0xb4   : > { %800 = vmatpush.msra.mxu0 %v737_v42  ;;  %1991 = vmatpush.msra.mxu3 %v737_v42  ;;  %v698_v29 = vld [vmem:[#allocation18 + $0x48] sm:$0xff]  ;;  %v693_v34 = vld [vmem:[#allocation18 + $0x20] sm:$0xff]  ;;  %v692_v35 = vld [vmem:[#allocation18 + $0x18] sm:$0xff] }
  0xb5   : > { %841 = vmatpush.msra.mxu1 %v738_v43  ;;  %801 = vmatmul.f32.vlgmr.msra.gmra.mxu0 %v3156_v44  ;;  %v690_v36 = vld [vmem:[#allocation18 + $0x8] sm:$0xff]  ;;  %v689_v38 = vld [vmem:[#allocation18] sm:$0xff]  ;;  %v703_v39 = vld [vmem:[#allocation18 + $0x70] sm:$0xff] }
  0xb6   : > { %813 = vmatmul.f32.vlgmr.msra.gmra.mxu3 %v3159_v45  ;;  %842 = vmatmul.f32.vlgmr.msra.gmra.mxu1 %v3156_v44  ;;  %v706_v37 = vld [vmem:[#allocation18 + $0x88] sm:$0xff]  ;;  %v700_v40 = vld [vmem:[#allocation18 + $0x58] sm:$0xff]  ;;  %v697_v41 = vld [vmem:[#allocation18 + $0x40] sm:$0xff] }
  0xb7   : > { %949 = vmatpush.msrb.mxu0 %v735_v46  ;;  %908 = vmatpush.msrb.mxu3 %v734_v47  ;;  %v694_v42 = vld [vmem:[#allocation18 + $0x28] sm:$0xff]  ;;  %v691_v43 = vld [vmem:[#allocation18 + $0x10] sm:$0xff] }
  0xb8   : > { %1992 = vmatpush.msrb.mxu1 %v3164_v54  ;;  %879 = vmatpush.msra.mxu2 %v748_v3 }
  0xb9   : > { %950 = vmatpush.msrb.mxu0 %v732_v49  ;;  %909 = vmatpush.msrb.mxu3 %v731_v50 }
  0xba   : > { %1993 = vmatpush.msrb.mxu1 %v3166_v56  ;;  %880 = vmatpush.msra.mxu2 %v745_v7 }
  0xbb   : > { %951 = vmatpush.msrb.mxu0 %v729_v52  ;;  %910 = vmatpush.msrb.mxu3 %v728_v53 }
  0xbc   : > { %1994 = vmatpush.msrb.mxu1 %v3178_v1  ;;  %881 = vmatpush.msra.mxu2 %v742_v15 }
  0xbd   : > { %952 = vmatpush.msrb.mxu0 %v726_v57  ;;  %911 = vmatpush.msrb.mxu3 %v725_v58 }
  0xbe   : > { %804 = vmatmul.f32.gmra.mxu0 %v3170_v59  ;;  %816 = vmatmul.f32.gmra.mxu3 %v3173_v60 }
  0xbf   : > { %845 = vmatmul.f32.gmra.mxu1 %v3170_v59  ;;  %953 = vmatpush.msrb.mxu0 %v723_v61  ;;  %v1059_v61 = vld [vmem:[#allocation6] sm:$0xff] }
  0xc0   : > { %912 = vmatpush.msrb.mxu3 %v722_v62  ;;  %1995 = vmatpush.msrb.mxu1 %v3181_v5 }
  0xc1   : > { %954 = vmatpush.msrb.mxu0 %v720_v0  ;;  %882 = vmatpush.msra.mxu2 %v739_v19 }
  0xc2   : > { %913 = vmatpush.msrb.mxu3 %v719_v2  ;;  %1996 = vmatpush.msrb.mxu1 %v3184_v9 }
  0xc3   : > { %955 = vmatpush.msrb.mxu0 %v717_v4  ;;  %883 = vmatmul.f32.vlgmr.msra.gmra.mxu2 %v3156_v44  ;;  %v686_v44 = vld [vmem:[%s3117_s23 + $0x38] sm:$0xff]  ;;  %v3284_v4 = vld [vmem:[#allocation16] ss:$0 sm:$0xff]  ;;  %s3918_s23 = sld [smem:[#allocation58_spill]] }
  0xc4   : > { %914 = vmatpush.msrb.mxu3 %v716_v6  ;;  %1997 = vmatpush.msrb.mxu1 %v3195_v16  ;;  %688 = vst [vmem:[#allocation3] sm:$0xff] %v686_v44 }
  0xc5   : > { %956 = vmatpush.msrb.mxu0 %v714_v8 }
  0xc6   : > { %915 = vmatpush.msrb.mxu3 %v713_v10  ;;  %807 = vmatmul.f32.gmra.mxu0 %v3187_v11 }
  0xc7   : > { %819 = vmatmul.f32.gmra.mxu3 %v3191_v12  ;;  %848 = vmatmul.f32.gmra.mxu1 %v3187_v11 }
  0xc8   : > { %957 = vmatpush.msrb.mxu0 %v711_v13  ;;  %916 = vmatpush.msrb.mxu3 %v710_v14 }
  0xc9   : > { %1998 = vmatpush.msrb.mxu1 %v3199_v20  ;;  %s3919_s0 = smov %s3918_s23  ;;  %s1620_s11 = scalar_lea.hbm %s3918_s23, %s1970_s16 }
  0xca   : > { %958 = vmatpush.msrb.mxu0 %v708_v17  ;;  %917 = vmatpush.msrb.mxu3 %v707_v18  ;;  %v1529_v17 = vld [vmem:[#allocation21 + $0x70] sm:$0xff]  ;;  %s1624_s9 = sshll.u32 %s1620_s11, 4  ;;  %s2607_s6 = scalar_lea.hbm %s3919_s0, 16  ;;  %s1625_s9 = int_to_ptr.hbm [resolvable:$true] %s1624_s9 }
  0xcb   : > { %1999 = vmatpush.msrb.mxu1 %v3202_v23  ;;  %886 = vmatmul.f32.gmra.mxu2 %v3170_v59  ;;  %s2601_s13 = sshra.s32 %s1625_s9, 4  ;;  %s2602_s13 = int_to_ptr.hbm [resolvable:$true] %s2601_s13 }
  0xcc   : > { %959 = vmatpush.msrb.mxu0 %v705_v21  ;;  %918 = vmatpush.msrb.mxu3 %v704_v22  ;;  %s2603_s24 = scalar_lea.hbm %s2602_s13, 8  ;;  %p2608_p10 = scmp.lt.s32.totalorder %s2602_s13, %s3919_s0 }
  0xcd   : > { %2000 = vmatpush.msrb.mxu1 %v712_v30  ;;  %p2604_p1 = scmp.ne.s32.totalorder %s2602_s13, %s2603_s24  ;;  %p2609_p5 = scmp.lt.s32.totalorder %s2607_s6, %s2603_s24 }
  0xce   : > { %960 = vmatpush.msrb.mxu0 %v702_v24  ;;  %919 = vmatpush.msrb.mxu3 %v701_v25 }
  0xcf   : > { %810 = vmatmul.f32.gmra.mxu0 %v3206_v26  ;;  %822 = vmatmul.f32.gmra.mxu3 %v3209_v27  ;;  %p2605_p12 = pnand %p2604_p1, %p3920_p9  ;;  %p2610_p7 = por %p2609_p5, %p2608_p10 }
  0xd0   : > { %851 = vmatmul.f32.gmra.mxu1 %v3206_v26  ;;  %961 = vmatpush.msrb.mxu0 %v699_v28 }
  0xd1   : > { %920 = vmatpush.msrb.mxu3 %v698_v29  ;;  %2001 = vmatpush.msrb.mxu1 %v709_v33  ;;  %p2606_p4 = pneg %p2605_p12 }
  0xd2   : > { %962 = vmatpush.msrb.mxu0 %v696_v31 }
  0xd3   : > { %921 = vmatpush.msrb.mxu3 %v695_v32  ;;  %2002 = vmatpush.msrb.mxu1 %v706_v37  ;;  %p2611_p6 = pnand %p2610_p7, %p2606_p4 }
  0xd4   : > { %963 = vmatpush.msrb.mxu0 %v693_v34  ;;  %889 = vmatmul.f32.gmra.mxu2 %v3187_v11 }
  0xd5   : > { %922 = vmatpush.msrb.mxu3 %v692_v35  ;;  %2003 = vmatpush.msrb.mxu1 %v703_v39 }
  0xd6   : > { %964 = vmatpush.msrb.mxu0 %v690_v36 }
  0xd7   : > { %923 = vmatpush.msrb.mxu3 %v689_v38  ;;  %965 = vmatmul.f32.vlgmr.msrb.gmra.mxu0 %v3170_v59 }
  0xd8   : > { %854 = vmatmul.f32.gmra.mxu1 %v3159_v45  ;;  %924 = vmatmul.f32.vlgmr.msrb.gmra.mxu3 %v3170_v59 }
  0xd9   : > { %990 = vmatpush.msra.mxu0 %v3164_v54  ;;  %2004 = vmatpush.msrb.mxu1 %v700_v40 }
  0xdb   : > { %991 = vmatpush.msra.mxu0 %v3166_v56  ;;  %2005 = vmatpush.msrb.mxu1 %v697_v41 }
  0xdc   : > { %892 = vmatmul.f32.gmra.mxu2 %v3206_v26 }
  0xdd   : > { %992 = vmatpush.msra.mxu0 %v3178_v1  ;;  %2006 = vmatpush.msrb.mxu1 %v694_v42 }
  0xdf   : > { %968 = vmatmul.f32.gmra.mxu0 %v3187_v11  ;;  %2007 = vmatpush.msrb.mxu1 %v691_v43 }
  0xe0   : > { %857 = vmatmul.f32.gmra.mxu1 %v3173_v60  ;;  %927 = vmatmul.f32.gmra.mxu3 %v3187_v11 }
  0xe1   : > { %993 = vmatpush.msra.mxu0 %v3181_v5 }
  0xe3   : > { %994 = vmatpush.msra.mxu0 %v3184_v9 }
  0xe4   : > { %895 = vmatmul.f32.gmra.mxu2 %v3159_v45 }
  0xe5   : > { %995 = vmatpush.msra.mxu0 %v3195_v16  ;;  %v1530_v16 = vld [vmem:[#allocation21 + $0x78] sm:$0xff] }
  0xe6   : > { %1531 = vmatpush.msrb.mxu2 %v1530_v16  ;;  %2008 = vmatpush.msra.mxu3 %v1530_v16 }
  0xe7   : > { %971 = vmatmul.f32.gmra.mxu0 %v3206_v26 }
  0xe8   : > { %860 = vmatmul.f32.gmra.mxu1 %v3191_v12  ;;  %930 = vmatmul.f32.gmra.mxu3 %v3206_v26 }
  0xe9   : > { %996 = vmatpush.msra.mxu0 %v3199_v20  ;;  %1532 = vmatpush.msrb.mxu2 %v1529_v17 }
  0xea   : > { %2009 = vmatpush.msra.mxu3 %v1529_v17 }
  0xeb   : > { %997 = vmatpush.msra.mxu0 %v3202_v23 }
  0xec   : > { %898 = vmatmul.f32.gmra.mxu2 %v3173_v60 }
  0xed   : > { %998 = vmatpush.msra.mxu0 %v712_v30 }
  0xef   : > { %974 = vmatmul.f32.gmra.mxu0 %v3159_v45 }
  0xf0   : > { %863 = vmatmul.f32.gmra.mxu1 %v3209_v27  ;;  %933 = vmatmul.f32.gmra.mxu3 %v3159_v45 }
  0xf1   : > { %999 = vmatpush.msra.mxu0 %v709_v33  ;;  %v3307_v33 = vld [vmem:[#allocation4] sm:$0xff] }
  0xf3   : > { %1000 = vmatpush.msra.mxu0 %v706_v37 }
  0xf4   : > { %901 = vmatmul.f32.gmra.mxu2 %v3191_v12 }
  0xf5   : > { %1001 = vmatpush.msra.mxu0 %v703_v39 }
  0xf7   : > { %977 = vmatmul.f32.gmra.mxu0 %v3173_v60 }
  0xf8   : > { %936 = vmatmul.f32.gmra.mxu3 %v3173_v60  ;;  %1012 = vmatmul.f32.vlgmr.msrb.gmra.mxu1 %v3206_v26 }
  0xf9   : > { %1002 = vmatpush.msra.mxu0 %v700_v40 }
  0xfb   : > { %1003 = vmatpush.msra.mxu0 %v697_v41 }
  0xfc   : > { %904 = vmatmul.f32.gmra.mxu2 %v3209_v27 }
  0xfd   : > { %1004 = vmatpush.msra.mxu0 %v694_v42  ;;  %v1528_v42 = vld [vmem:[#allocation21 + $0x68] sm:$0xff] }
  0xfe   : > { %1533 = vmatpush.msrb.mxu2 %v1528_v42  ;;  %2010 = vmatpush.msra.mxu3 %v1528_v42 }
  0xff   : > { %980 = vmatmul.f32.gmra.mxu0 %v3191_v12 }
 0x100   : > { %939 = vmatmul.f32.gmra.mxu3 %v3191_v12  ;;  %1015 = vmatmul.f32.gmra.mxu1 %v3159_v45 }
 0x101   : > { %1005 = vmatpush.msra.mxu0 %v691_v43  ;;  %v1527_v43 = vld [vmem:[#allocation21 + $0x60] sm:$0xff] }
 0x102   : > { %1534 = vmatpush.msrb.mxu2 %v1527_v43  ;;  %2011 = vmatpush.msra.mxu3 %v1527_v43 }
 0x107   : > { %983 = vmatmul.f32.gmra.mxu0 %v3209_v27 }
 0x108   : > { %942 = vmatmul.f32.gmra.mxu3 %v3209_v27  ;;  %1018 = vmatmul.f32.gmra.mxu1 %v3173_v60  ;;  %v3277_v60 = vld [vmem:[#allocation16 + $0x1] ss:$0 sm:$0xff] }
 0x109   : > { %v1083_v62 = vadd.f32 %v3277_v60, %v1059_v61 }
 0x10f   : > { %986 = vmatmul.f32.gmra.mxu0 %v686_v44 }
 0x110   : > { %945 = vmatmul.f32.gmra.mxu3 %v686_v44  ;;  %1021 = vmatmul.f32.gmra.mxu1 %v3191_v12 }
 0x117   : > { %1006 = vmatmul.f32.vlgmr.msra.gmra.mxu0 %v3170_v59 }
 0x118   : > { %1024 = vmatmul.f32.gmra.mxu1 %v3209_v27 }
 0x11f   : > { %1009 = vmatmul.f32.gmra.mxu0 %v3187_v11 }
 0x120   : > { %1027 = vmatmul.f32.gmra.mxu1 %v686_v44 }
 0x132   : > { %v802_v45 = vpop.f32.mrf.mxu0 }
 0x133   : > { %v843_v46 = vpop.f32.mrf.mxu1 }
 0x139   : > { %v3257_v47 = vpop.f32.mrf.mxu3 }
 0x13b   : > { %v805_v48 = vpop.f32.mrf.mxu0 }
 0x13c   : > { %v3259_v49 = vpop.f32.mrf.mxu1 }
 0x141   : > { %v3261_v50 = vpop.f32.mrf.mxu3 }
 0x143   : > { %v808_v51 = vpop.f32.mrf.mxu0 }
 0x144   : > { %v3263_v52 = vpop.f32.mrf.mxu1 }
 0x146   : > { %v3275_v59 = vpop.f32.mrf.mxu2 }
 0x14a   : > { %v3265_v53 = vpop.f32.mrf.mxu3 }
 0x14c   : > { %v3267_v54 = vpop.f32.mrf.mxu0 }
 0x14d   : > { %v3269_v55 = vpop.f32.mrf.mxu1 }
 0x14e   : > { %v3286_v5 = vpop.f32.mrf.mxu2 }
 0x152   : > { %v3271_v56 = vpop.f32.mrf.mxu3 }
 0x154   : > { %v966_v57 = vpop.f32.mrf.mxu0 }
 0x155   : > { %v3273_v58 = vpop.f32.mrf.mxu1  ;;  %v3309_v34 = vadd.f32 %v966_v57, %v843_v46 }
 0x157   : > { %v3304_v24 = vpop.f32.mrf.mxu2 }
 0x15b   : > { %v925_v63 = vpop.f32.mrf.mxu3 }
 0x15c   : > { %v926_v0 = vadd.f32 %v925_v63, %v802_v45  ;;  %v3280_v1 = vpop.f32.mrf.mxu0 }
 0x15d   : > { %v3282_v2 = vpop.f32.mrf.mxu1 }
 0x15e   : > { %v1084_v3 = vmax.f32 %v1083_v62, %v926_v0  ;;  %v3289_v10 = vadd.f32 %v3284_v4, %v926_v0 }
 0x160   : > { %v1085_v6 = vsub.f32 %v1083_v62, %v1084_v3  ;;  %v1088_v7 = vsub.f32 %v926_v0, %v1084_v3  ;;  %v1117_v13 = vadd.f32 %v3277_v60, %v1084_v3  ;;  %v3300_v20 = vmax.f32 %v1059_v61, %v3289_v10  ;;  %v1058_v62 = vld [vmem:[#allocation5] sm:$0xff] }
 0x161   : > { %v970_v0 = vadd.f32 %v3280_v1, %v3259_v49 }
 0x162   : > { %v1086_v8 = vmul.f32 1.442695, %v1085_v6  ;;  %v1089_v9 = vmul.f32 1.442695, %v1088_v7  ;;  %v1068_v31 = vsub.f32 %v1059_v61, %v3300_v20  ;;  %v1071_v63 = vsub.f32 %v3289_v10, %v3300_v20 }
 0x163   : > { %v928_v11 = vpop.f32.mrf.mxu3 }
 0x164   : > { %2205 = vpow2.f32 %v1086_v8  ;;  %v929_v12 = vadd.f32 %v928_v11, %v805_v48  ;;  %v3292_v14 = vpop.f32.mrf.mxu0  ;;  %v1069_v45 = vmul.f32 1.442695, %v1068_v31 }
 0x165   : > { %2207 = vpow2.f32 %v1089_v9  ;;  %v3294_v15 = vpop.f32.mrf.mxu1 }
 0x166   : > { %v1101_v18 = vadd.f32 %v3284_v4, %v929_v12  ;;  %v3297_v19 = vmax.f32 %v1117_v13, %v929_v12 }
 0x168   : > { %v1102_v21 = vmax.f32 %v1084_v3, %v1101_v18  ;;  %v1119_v22 = vsub.f32 %v1117_v13, %v3297_v19  ;;  %v1122_v23 = vsub.f32 %v929_v12, %v3297_v19  ;;  %v1151_v39 = vadd.f32 %v3277_v60, %v3297_v19  ;;  %v3334_v12 = vpop.f32.mrf.mxu2 }
 0x16a   : > { %v2206_v25 = vpop.eup %2205  ;;  %v1103_v26 = vsub.f32 %v1084_v3, %v1102_v21  ;;  %v1106_v27 = vsub.f32 %v1101_v18, %v1102_v21  ;;  %v1120_v28 = vmul.f32 1.442695, %v1119_v22  ;;  %v1123_v29 = vmul.f32 1.442695, %v1122_v23 }
 0x16b   : > { %v2208_v30 = vpop.eup %2207  ;;  %v931_v32 = vpop.f32.mrf.mxu3  ;;  %v1091_v44 = vmul.f32 %v2206_v25, %v3307_v33  ;;  %v1094_v18 = vmul.f32 %v2206_v25, %v1058_v62 }
 0x16c   : > { %v1104_v35 = vmul.f32 1.442695, %v1103_v26  ;;  %v1107_v36 = vmul.f32 1.442695, %v1106_v27  ;;  %2209 = vpow2.f32 %v1120_v28  ;;  %v3311_v37 = vpop.f32.mrf.mxu0  ;;  %v932_v38 = vadd.f32 %v931_v32, %v808_v51 }
 0x16d   : > { %2211 = vpow2.f32 %v1123_v29  ;;  %v3315_v40 = vpop.f32.mrf.mxu1  ;;  %v1092_v41 = vmul.f32 %v2208_v30, %v3309_v34  ;;  %v1072_v28 = vmul.f32 1.442695, %v1071_v63  ;;  %v3356_v32 = vadd.f32 %v2208_v30, %v1094_v18 }
 0x16e   : > { %2213 = vpow2.f32 %v1104_v35  ;;  %v3320_v46 = vadd.f32 %v3284_v4, %v932_v38  ;;  %v3322_v48 = vmax.f32 %v1151_v39, %v932_v38  ;;  %v1526_v35 = vld [vmem:[#allocation21 + $0x58] sm:$0xff] }
 0x16f   : > { %2215 = vpow2.f32 %v1107_v36  ;;  %v1093_v3 = vadd.f32 %v1092_v41, %v1091_v44  ;;  %v1525_v36 = vld [vmem:[#allocation21 + $0x50] sm:$0xff]  ;;  %1535 = vmatpush.msrb.mxu2 %v1526_v35  ;;  %2012 = vmatpush.msra.mxu3 %v1526_v35 }
 0x170   : > { %v1153_v51 = vsub.f32 %v1151_v39, %v3322_v48  ;;  %v1156_v57 = vsub.f32 %v932_v38, %v3322_v48  ;;  %2217 = vpow2.f32 %v1069_v45  ;;  %v1136_v7 = vmax.f32 %v3297_v19, %v3320_v46 }
 0x171   : > { %v1185_v11 = vadd.f32 %v3277_v60, %v3322_v48  ;;  %v3361_v39 = vadd.f32 %v3292_v14, %v3263_v52  ;;  %1536 = vmatpush.msrb.mxu2 %v1525_v36  ;;  %2013 = vmatpush.msra.mxu3 %v1525_v36 }
 0x172   : > { %v2210_v61 = vpop.eup %2209  ;;  %v1154_v8 = vmul.f32 1.442695, %v1153_v51  ;;  %v1157_v16 = vmul.f32 1.442695, %v1156_v57  ;;  %v1140_v41 = vsub.f32 %v3320_v46, %v1136_v7 }
 0x173   : > { %v2212_v6 = vpop.eup %2211  ;;  %v934_v9 = vpop.f32.mrf.mxu3  ;;  %v1125_v17 = vmul.f32 %v2210_v61, %v1093_v3  ;;  %v1128_v44 = vmul.f32 %v2210_v61, %v3356_v32 }
 0x174   : > { %v3336_v13 = vpop.eup %2213  ;;  %v1126_v10 = vmul.f32 %v2212_v6, %v970_v0  ;;  %v935_v49 = vadd.f32 %v934_v9, %v3267_v54  ;;  %v3339_v1 = vpop.f32.mrf.mxu0  ;;  %2219 = vpow2.f32 %v1154_v8  ;;  %v1137_v54 = vsub.f32 %v3297_v19, %v1136_v7 }
 0x175   : > { %v1013_v20 = vpop.f32.mrf.mxu1  ;;  %v3341_v21 = vpop.eup %2215  ;;  %2221 = vpow2.f32 %v1157_v16  ;;  %v1109_v27 = vmul.f32 %v3336_v13, %v1093_v3  ;;  %v1141_v7 = vmul.f32 1.442695, %v1140_v41 }
 0x176   : > { %v3343_v22 = vmax.f32 %v1185_v11, %v935_v49  ;;  %v3346_v23 = vadd.f32 %v3284_v4, %v935_v49  ;;  %v3348_v26 = vadd.f32 %v1126_v10, %v1125_v17  ;;  %v3354_v31 = vpop.eup %2217  ;;  %v1110_v38 = vmul.f32 %v3341_v21, %v970_v0 }
 0x177   : > { %v1014_v45 = vadd.f32 %v1013_v20, %v3304_v24  ;;  %2223 = vpow2.f32 %v1072_v28  ;;  %v1138_v52 = vmul.f32 1.442695, %v1137_v54  ;;  %v3376_v24 = vpop.f32.mrf.mxu2  ;;  %v1077_v8 = vmul.f32 %v3354_v31, %v1058_v62  ;;  %v1524_v28 = vld [vmem:[#allocation21 + $0x48] sm:$0xff] }
 0x178   : > { %v1187_v29 = vsub.f32 %v1185_v11, %v3343_v22  ;;  %v1190_v25 = vsub.f32 %v935_v49, %v3343_v22  ;;  %v1170_v30 = vmax.f32 %v3322_v48, %v3346_v23  ;;  %v3368_v57 = vadd.f32 %v1110_v38, %v1109_v27  ;;  %1537 = vmatpush.msrb.mxu2 %v1524_v28 }
 0x179   : > { %v1219_v0 = vadd.f32 %v3277_v60, %v3343_v22  ;;  %v3380_v11 = vadd.f32 %v2212_v6, %v1128_v44  ;;  %v1958_v16 = vmul.f32 -1.442695, %v1014_v45  ;;  %2014 = vmatpush.msra.mxu3 %v1524_v28 }
 0x17a   : > { %v1188_v42 = vmul.f32 1.442695, %v1187_v29  ;;  %v1191_v19 = vmul.f32 1.442695, %v1190_v25  ;;  %v2220_v43 = vpop.eup %2219  ;;  %v1171_v10 = vsub.f32 %v3322_v48, %v1170_v30  ;;  %v3398_v48 = vadd.f32 %v3311_v37, %v3269_v55 }
 0x17b   : > { %v937_v51 = vpop.f32.mrf.mxu3  ;;  %v2222_v63 = vpop.eup %2221  ;;  %v1159_v9 = vmul.f32 %v2220_v43, %v3348_v26  ;;  %v1162_v18 = vmul.f32 %v2220_v43, %v3380_v11 }
 0x17c   : > { %v3370_v14 = vpop.f32.mrf.mxu0  ;;  %v1160_v46 = vmul.f32 %v2222_v63, %v3361_v39  ;;  %2225 = vpow2.f32 %v1191_v19  ;;  %v938_v61 = vadd.f32 %v937_v51, %v3257_v47  ;;  %v1174_v47 = vsub.f32 %v3346_v23, %v1170_v30  ;;  %v1523_v23 = vld [vmem:[#allocation21 + $0x40] sm:$0xff] }
 0x17d   : > { %v1016_v3 = vpop.f32.mrf.mxu1  ;;  %2227 = vpow2.f32 %v1188_v42  ;;  %v3394_v27 = vpop.eup %2223  ;;  %v1172_v29 = vmul.f32 1.442695, %v1171_v10  ;;  %v3406_v43 = vadd.f32 %v2222_v63, %v1162_v18  ;;  %1538 = vmatpush.msrb.mxu2 %v1523_v23  ;;  %2015 = vmatpush.msra.mxu3 %v1523_v23 }
 0x17e   : > { %v3383_v49 = vmax.f32 %v1219_v0, %v938_v61  ;;  %2229 = vpow2.f32 %v1138_v52  ;;  %v3386_v17 = vadd.f32 %v1160_v46, %v1159_v9  ;;  %v3390_v20 = vadd.f32 %v3284_v4, %v938_v61 }
 0x17f   : > { %2231 = vpow2.f32 %v1141_v7  ;;  %v1078_v36 = vadd.f32 %v3394_v27, %v1077_v8  ;;  %v1175_v41 = vmul.f32 1.442695, %v1174_v47  ;;  %v1017_v46 = vadd.f32 %v1016_v3, %v3334_v12 }
 0x180   : > { %v1221_v62 = vsub.f32 %v1219_v0, %v3383_v49  ;;  %v1224_v6 = vsub.f32 %v938_v61, %v3383_v49  ;;  %2233 = vpow2.f32 %v1958_v16  ;;  %v1253_v55 = vadd.f32 %v3277_v60, %v3383_v49  ;;  %v3422_v61 = vpop.f32.mrf.mxu2 }
 0x181   : > { %v3411_v30 = vmax.f32 %v3343_v22, %v3390_v20  ;;  %v3435_v12 = vadd.f32 %v3339_v1, %v3273_v58 }
 0x182   : > { %v2226_v54 = vpop.eup %2225  ;;  %v1222_v25 = vmul.f32 1.442695, %v1221_v62  ;;  %v1225_v42 = vmul.f32 1.442695, %v1224_v6 }
 0x183   : > { %v940_v35 = vpop.f32.mrf.mxu3  ;;  %v2228_v38 = vpop.eup %2227  ;;  %v1194_v44 = vmul.f32 %v2226_v54, %v3398_v48  ;;  %v1205_v3 = vsub.f32 %v3343_v22, %v3411_v30 }
 0x184   : > { %v941_v19 = vadd.f32 %v940_v35, %v3261_v50  ;;  %v3404_v37 = vpop.f32.mrf.mxu0  ;;  %2235 = vpow2.f32 %v1222_v25  ;;  %v3413_v51 = vpop.eup %2229  ;;  %v1196_v63 = vmul.f32 %v2228_v38, %v3406_v43  ;;  %v1193_v0 = vmul.f32 %v2228_v38, %v3386_v17 }
 0x185   : > { %v1019_v45 = vpop.f32.mrf.mxu1  ;;  %2237 = vpow2.f32 %v1225_v42  ;;  %v3425_v7 = vpop.eup %2231  ;;  %v1959_v25 = vmul.f32 -1.442695, %v1017_v46  ;;  %v1143_v58 = vmul.f32 %v3413_v51, %v3348_v26  ;;  %v1208_v46 = vsub.f32 %v3390_v20, %v3411_v30 }
 0x186   : > { %v3416_v50 = vadd.f32 %v3284_v4, %v941_v19  ;;  %v3418_v52 = vmax.f32 %v1253_v55, %v941_v19  ;;  %2239 = vrcp.f32 %v1078_v36  ;;  %v2234_v16 = vpop.eup %2233  ;;  %v3439_v47 = vadd.f32 %v1194_v44, %v1193_v0 }
 0x187   : > { %2241 = vpow2.f32 %v1172_v29  ;;  %v3445_v29 = vadd.f32 %v2226_v54, %v1196_v63  ;;  %v1144_v1 = vmul.f32 %v3425_v7, %v3361_v39  ;;  %v3451_v36 = vadd.f32 1.0, %v2234_v16  ;;  %v1522_v39 = vld [vmem:[#allocation21 + $0x38] sm:$0xff] }
 0x188   : > { %v3429_v8 = vmax.f32 %v3383_v49, %v3416_v50  ;;  %v1255_v9 = vsub.f32 %v1253_v55, %v3418_v52  ;;  %v1258_v10 = vsub.f32 %v941_v19, %v3418_v52  ;;  %2243 = vpow2.f32 %v1175_v41  ;;  %1539 = vmatpush.msrb.mxu2 %v1522_v39  ;;  %2016 = vmatpush.msra.mxu3 %v1522_v39 }
 0x189   : > { %v1287_v38 = vadd.f32 %v3277_v60, %v3418_v52  ;;  %v1206_v63 = vmul.f32 1.442695, %v1205_v3  ;;  %v1020_v0 = vadd.f32 %v1019_v45, %v3376_v24  ;;  %v3480_v20 = vadd.f32 %v3370_v14, %v3282_v2 }
 0x18a   : > { %v1256_v6 = vmul.f32 1.442695, %v1255_v9  ;;  %v1259_v28 = vmul.f32 1.442695, %v1258_v10  ;;  %v2236_v23 = vpop.eup %2235 }
 0x18b   : > { %v943_v35 = vpop.f32.mrf.mxu3  ;;  %v2238_v22 = vpop.eup %2237  ;;  %v1230_v19 = vmul.f32 %v2236_v23, %v3445_v29  ;;  %v1227_v9 = vmul.f32 %v2236_v23, %v3439_v47  ;;  %v1960_v39 = vmul.f32 -1.442695, %v1020_v0 }
 0x18c   : > { %2245 = vpow2.f32 %v1256_v6  ;;  %v3455_v41 = vpop.f32.mrf.mxu0  ;;  %v3457_v42 = vpop.eup %2239  ;;  %v1228_v54 = vmul.f32 %v2238_v22, %v3435_v12  ;;  %v944_v26 = vadd.f32 %v943_v35, %v3265_v53  ;;  %v1521_v6 = vld [vmem:[#allocation21 + $0x30] sm:$0xff]  ;;  %v1520_v35 = vld [vmem:[#allocation21 + $0x28] sm:$0xff] }
 0x18d   : > { %2247 = vpow2.f32 %v1259_v28  ;;  %v3462_v55 = vpop.f32.mrf.mxu1  ;;  %v3464_v44 = vpop.eup %2241  ;;  %v3475_v28 = vadd.f32 %v1144_v1, %v1143_v58  ;;  %1540 = vmatpush.msrb.mxu2 %v1521_v6  ;;  %2017 = vmatpush.msra.mxu3 %v1521_v6  ;;  %v3484_v30 = vadd.f32 %v2238_v22, %v1230_v19  ;;  %v1209_v1 = vmul.f32 1.442695, %v1208_v46  ;;  %v1518_v6 = vld [vmem:[#allocation21 + $0x18] sm:$0xff] }
 0x18e   : > { %v3470_v10 = vpop.eup %2243  ;;  %2249 = vpow2.f32 %v1959_v25  ;;  %v1271_v53 = vadd.f32 %v3284_v4, %v944_v26  ;;  %v3473_v16 = vmax.f32 %v1287_v38, %v944_v26  ;;  %v3482_v24 = vadd.f32 %v1228_v54, %v1227_v9  ;;  %v902_v25 = vpop.f32.mrf.mxu2 }
 0x18f   : > { %3900 = vst [vmem:[#allocation47_spill] sm:$0xff] %v3475_v28  ;;  %2251 = vrcp.f32 %v3451_v36  ;;  %1541 = vmatpush.msrb.mxu2 %v1520_v35  ;;  %2018 = vmatpush.msra.mxu3 %v1520_v35 }
 0x190   : > { %3901 = vst [vmem:[#allocation48_spill] sm:$0xff] %v3484_v30  ;;  %v1272_v45 = vmax.f32 %v3418_v52, %v1271_v53  ;;  %v1289_v3 = vsub.f32 %v1287_v38, %v3473_v16  ;;  %v1292_v23 = vsub.f32 %v944_v26, %v3473_v16  ;;  %2253 = vpow2.f32 %v1206_v63  ;;  %v1519_v26 = vld [vmem:[#allocation21 + $0x20] sm:$0xff] }
 0x191   : > { %v1321_v2 = vadd.f32 %v3277_v60, %v3473_v16  ;;  %1542 = vmatpush.msrb.mxu2 %v1519_v26  ;;  %2019 = vmatpush.msra.mxu3 %v1519_v26 }
 0x192   : > { %v2246_v58 = vpop.eup %2245  ;;  %v1273_v54 = vsub.f32 %v3418_v52, %v1272_v45  ;;  %v1276_v19 = vsub.f32 %v1271_v53, %v1272_v45  ;;  %v1290_v38 = vmul.f32 1.442695, %v1289_v3  ;;  %v1293_v63 = vmul.f32 1.442695, %v1292_v23  ;;  %v1517_v45 = vld [vmem:[#allocation21 + $0x10] sm:$0xff] }
 0x193   : > { %v2248_v14 = vpop.eup %2247  ;;  %v1264_v22 = vmul.f32 %v2246_v58, %v3484_v30  ;;  %v946_v9 = vpop.f32.mrf.mxu3  ;;  %v1261_v60 = vmul.f32 %v2246_v58, %v3482_v24  ;;  %1543 = vmatpush.msrb.mxu2 %v1518_v6  ;;  %2020 = vmatpush.msra.mxu3 %v1518_v6 }
 0x194   : > { %v1262_v62 = vmul.f32 %v2248_v14, %v3480_v20  ;;  %v947_v46 = vadd.f32 %v946_v9, %v3271_v56  ;;  %v1007_v0 = vpop.f32.mrf.mxu0  ;;  %v3496_v35 = vpop.eup %2249  ;;  %v1274_v28 = vmul.f32 1.442695, %v1273_v54  ;;  %v1277_v52 = vmul.f32 1.442695, %v1276_v19 }
 0x195   : > { %v1265_v18 = vadd.f32 %v2248_v14, %v1264_v22  ;;  %2255 = vpow2.f32 %v1290_v38  ;;  %v1025_v53 = vpop.f32.mrf.mxu1  ;;  %v3498_v3 = vpop.eup %2251  ;;  %v1177_v56 = vmul.f32 %v3464_v44, %v3386_v17  ;;  %v1008_v58 = vadd.f32 %v1007_v0, %v3275_v59  ;;  %v1516_v14 = vld [vmem:[#allocation21 + $0x8] sm:$0xff]  ;;  %1544 = vmatpush.msrb.mxu2 %v1517_v45  ;;  %2021 = vmatpush.msra.mxu3 %v1517_v45 }
 0x196   : > { %2257 = vpow2.f32 %v1293_v63  ;;  %v1305_v23 = vadd.f32 %v3284_v4, %v947_v46  ;;  %v1322_v30 = vmax.f32 %v1321_v2, %v947_v46  ;;  %v3504_v22 = vadd.f32 %v1262_v62, %v1261_v60  ;;  %v3508_v19 = vpop.eup %2253  ;;  %v905_v0 = vpop.f32.mrf.mxu2 }
 0x197   : > { %2259 = vpow2.f32 %v1274_v28  ;;  %v1178_v54 = vmul.f32 %v3470_v10, %v3398_v48  ;;  %v1026_v17 = vadd.f32 %v1025_v53, %v902_v25  ;;  %v1515_v28 = vld [vmem:[#allocation21] sm:$0xff]  ;;  %1545 = vmatpush.msrb.mxu2 %v1516_v14  ;;  %v1956_v63 = vmul.f32 -1.442695, %v1008_v58  ;;  %2022 = vmatpush.msra.mxu3 %v1516_v14 }
 0x198   : > { %2261 = vpow2.f32 %v1277_v52  ;;  %v1306_v4 = vmax.f32 %v3473_v16, %v1305_v23  ;;  %v1323_v38 = vsub.f32 %v1321_v2, %v1322_v30  ;;  %v1326_v9 = vsub.f32 %v947_v46, %v1322_v30  ;;  %1336 = vst [vmem:[#allocation6] sm:$0xff] %v1322_v30 }
 0x199   : > { %2263 = vpow2.f32 %v1209_v1  ;;  %v3512_v60 = vadd.f32 %v1178_v54, %v1177_v56  ;;  %1546 = vmatpush.msrb.mxu2 %v1515_v28  ;;  %v1962_v53 = vmul.f32 -1.442695, %v1026_v17  ;;  %2023 = vmatpush.msra.mxu3 %v1515_v28  ;;  %v3521_v17 = vadd.f32 1.0, %v3496_v35 }
 0x19a   : > { %v1307_v59 = vsub.f32 %v3473_v16, %v1306_v4  ;;  %v1310_v62 = vsub.f32 %v1305_v23, %v1306_v4  ;;  %v1324_v26 = vmul.f32 1.442695, %v1323_v38  ;;  %v1327_v6 = vmul.f32 1.442695, %v1326_v9 }
 0x19b   : > { %v2256_v48 = vpop.eup %2255  ;;  %2265 = vpow2.f32 %v1960_v39  ;;  %v985_v16 = vadd.f32 %v3404_v37, %v3294_v15  ;;  %v1074_v35 = vmul.f32 %v3354_v31, %v3307_v33  ;;  %v988_v31 = vadd.f32 %v3455_v41, %v3315_v40 }
 0x19c   : > { %v2258_v2 = vpop.eup %2257  ;;  %v1298_v30 = vmul.f32 %v2256_v48, %v1265_v18  ;;  %v1308_v46 = vmul.f32 1.442695, %v1307_v59  ;;  %v1311_v1 = vmul.f32 1.442695, %v1310_v62  ;;  %2267 = vpow2.f32 %v1324_v26  ;;  %v1010_v25 = vpop.f32.mrf.mxu0 }
 0x19d   : > { %v2260_v52 = vpop.eup %2259  ;;  %2269 = vpow2.f32 %v1327_v6  ;;  %v1011_v39 = vadd.f32 %v1010_v25, %v3286_v5  ;;  %v1028_v45 = vpop.f32.mrf.mxu1  ;;  %v3902_v59 = vsub.f32 %v3383_v49, %v3429_v8  ;;  %v1023_v6 = vadd.f32 %v3462_v55, %v3422_v61 }
 0x19e   : > { %v2262_v23 = vpop.eup %2261  ;;  %v1282_v56 = vmul.f32 %v2260_v52, %v1265_v18  ;;  %v1299_v58 = vadd.f32 %v2258_v2, %v1298_v30  ;;  %2271 = vpow2.f32 %v1308_v46  ;;  %v1029_v14 = vadd.f32 %v1028_v45, %v905_v0 }
 0x19f   : > { %v3517_v54 = vpop.eup %2263  ;;  %2273 = vpow2.f32 %v1311_v1  ;;  %v1957_v4 = vmul.f32 -1.442695, %v1011_v39  ;;  %v1279_v38 = vmul.f32 %v2260_v52, %v3504_v22  ;;  %v1280_v9 = vmul.f32 %v2262_v23, %v985_v16 }
 0x1a0   : > { %v1283_v15 = vadd.f32 %v2262_v23, %v1282_v56  ;;  %2275 = vpow2.f32 %v1956_v63  ;;  %v1963_v37 = vmul.f32 -1.442695, %v1029_v14  ;;  %v1240_v62 = vmul.f32 1.442695, %v3902_v59 }
 0x1a1   : > { %v2266_v5 = vpop.eup %2265  ;;  %2277 = vpow2.f32 %v1962_v53  ;;  %v1281_v18 = vadd.f32 %v1280_v9, %v1279_v38  ;;  %v3903_v30 = vsub.f32 %v3416_v50, %v3429_v8  ;;  %v1295_v49 = vmul.f32 %v2256_v48, %v3504_v22 }
 0x1a2   : > { %v2268_v28 = vpop.eup %2267  ;;  %2279 = vrcp.f32 %v1283_v15  ;;  %v1296_v1 = vmul.f32 %v2258_v2, %v985_v16  ;;  %v1075_v55 = vmul.f32 %v3394_v27, %v3309_v34  ;;  %v1112_v50 = vmul.f32 %v3336_v13, %v3356_v32 }
 0x1a3   : > { %v2270_v26 = vpop.eup %2269  ;;  %v1332_v0 = vmul.f32 %v2268_v28, %v1299_v58  ;;  %1337 = vst [vmem:[%s653_s5] sm:$0xff] %v2268_v28  ;;  %2281 = vpow2.f32 %v1957_v4  ;;  %v1243_v46 = vmul.f32 1.442695, %v3903_v30  ;;  %v1961_v22 = vmul.f32 -1.442695, %v1023_v6 }
 0x1a4   : > { %v2272_v63 = vpop.eup %2271  ;;  %1338 = vst [vmem:[%s660_s10] sm:$0xff] %v2270_v26  ;;  %2283 = vpow2.f32 %v1963_v37  ;;  %v1297_v8 = vadd.f32 %v1296_v1, %v1295_v49  ;;  %v1410_v16 = vmul.f32 %v3498_v3, %v3451_v36  ;;  %v1076_v13 = vadd.f32 %v1075_v55, %v1074_v35 }
 0x1a5   : > { %v2274_v25 = vpop.eup %2273  ;;  %2285 = vrcp.f32 %v3521_v17  ;;  %v1333_v61 = vadd.f32 %v2270_v26, %v1332_v0  ;;  %v1316_v52 = vmul.f32 %v2272_v63, %v1299_v58  ;;  %v1330_v32 = vmul.f32 %v2270_v26, %v988_v31 }
 0x1a6   : > { %v2276_v33 = vpop.eup %2275  ;;  %2287 = vpow2.f32 %v1240_v62  ;;  %v1313_v39 = vmul.f32 %v2272_v63, %v1297_v8  ;;  %v1329_v45 = vmul.f32 %v2268_v28, %v1297_v8  ;;  %v1146_v41 = vmul.f32 %v3413_v51, %v3380_v11 }
 0x1a7   : > { %v2278_v53 = vpop.eup %2277  ;;  %1335 = vst [vmem:[#allocation5] sm:$0xff] %v1333_v61  ;;  %v3545_v48 = vadd.f32 1.0, %v2276_v33  ;;  %v1317_v2 = vadd.f32 %v2274_v25, %v1316_v52  ;;  %2289 = vpow2.f32 %v1243_v46  ;;  %v1314_v14 = vmul.f32 %v2274_v25, %v988_v31 }
 0x1a8   : > { %v2280_v34 = vpop.eup %2279  ;;  %v3549_v27 = vadd.f32 1.0, %v2278_v53  ;;  %v3561_v38 = vadd.f32 1.0, %v2266_v5  ;;  %v1411_v15 = vsub.f32 1.0, %v1410_v16  ;;  %v3569_v11 = vmul.f32 %v3457_v42, %v1076_v13 }
 0x1a9   : > { %v2282_v40 = vpop.eup %2281  ;;  %2291 = vrcp.f32 %v3545_v48  ;;  %v3557_v58 = vmul.f32 %v2280_v34, %v1281_v18  ;;  %v1113_v51 = vadd.f32 %v3341_v21, %v1112_v50  ;;  %v1388_v18 = vand.u32 2147483647, %v3545_v48 }
 0x1aa   : > { %v2284_v23 = vpop.eup %2283  ;;  %2293 = vrcp.f32 %v3549_v27  ;;  %v3555_v56 = vadd.f32 1.0, %v2282_v40  ;;  %v1390_v5 = vand.u32 2147483648, %v3545_v48  ;;  %v3576_v28 = vadd.f32 %v3425_v7, %v1146_v41 }
 0x1ab   : > { %v3559_v4 = vpop.eup %2285  ;;  %2295 = vpow2.f32 %v1961_v22  ;;  %v3563_v9 = vadd.f32 1.0, %v2284_v23  ;;  %v1478_v62 = vand.u32 2147483647, %v3549_v27  ;;  %v1315_v26 = vadd.f32 %v1314_v14, %v1313_v39 }
 0x1ac   : > { %v3565_v37 = vpop.eup %2287  ;;  %2297 = vrcp.f32 %v3555_v56  ;;  %v1331_v6 = vadd.f32 %v1330_v32, %v1329_v45  ;;  %v1480_v21 = vand.u32 2147483648, %v3549_v27  ;;  %v3584_v0 = vmul.f32 %v3498_v3, %v1411_v15 }
 0x1ad   : > { %2299 = vrcp.f32 %v3563_v9  ;;  %v3578_v59 = vpop.eup %2289  ;;  %v3588_v35 = vmul.f32 %v3464_v44, %v3406_v43  ;;  %vm1384_vm0 = vweird.f32 %v3545_v48  ;;  %vm1474_vm1 = vweird.f32 %v3549_v27 }
 0x1ae   : > { %2301 = vrcp.f32 %v1317_v2  ;;  %1334 = vst [vmem:[#allocation4] sm:$0xff] %v1331_v6  ;;  %vm3594_vm2 = vcmp.eq.f32.partialorder %v1388_v18, 8.507059e+37  ;;  %v1391_v1 = vor.u32 1.1754944e-38, %v1390_v5  ;;  %vm1399_vm3 = vweird.f32 %v3555_v56 }
 0x1af   : > { %v2292_v42 = vpop.eup %2291  ;;  %2303 = vrcp.f32 %v3561_v38  ;;  %vm3599_vm4 = vcmp.eq.f32.partialorder %v1478_v62, 8.507059e+37  ;;  %v1403_v61 = vand.u32 2147483647, %v3555_v56  ;;  %v1405_v55 = vand.u32 2147483648, %v3555_v56 }
 0x1b0   : > { %v2294_v7 = vpop.eup %2293  ;;  %v1380_v63 = vmul.f32 %v2292_v42, %v3545_v48  ;;  %2305 = vrcp.f32 %v1113_v51  ;;  %v1481_v31 = vor.u32 1.1754944e-38, %v1480_v21  ;;  %vm1385_vm6 = vweird.f32 %v2292_v42 }
 0x1b1   : > { %v2296_v30 = vpop.eup %2295  ;;  %v1470_v46 = vmul.f32 %v2294_v7, %v3549_v27  ;;  %vm1475_vm5 = vweird.f32 %v2294_v7  ;;  %vm1489_vm7 = vweird.f32 %v3563_v9  ;;  %v1495_v45 = vand.u32 2147483648, %v3563_v9  ;;  %vm1386_vm10 = vmor %vm1384_vm0, %vm1385_vm6 }
 0x1b2   : > { %v2298_v43 = vpop.eup %2297  ;;  %v1381_v44 = vsub.f32 1.0, %v1380_v63  ;;  %vm3614_vm8 = vmor %vm1474_vm1, %vm1475_vm5  ;;  %v1211_v23 = vmul.f32 %v3508_v19, %v3439_v47  ;;  %v1493_v51 = vand.u32 2147483647, %v3563_v9  ;;  %v1406_v5 = vor.u32 1.1754944e-38, %v1405_v55 }
 0x1b3   : > { %v2300_v52 = vpop.eup %2299  ;;  %v1471_v33 = vsub.f32 1.0, %v1470_v46  ;;  %v1395_v50 = vmul.f32 %v2298_v43, %v3555_v56  ;;  %vm1400_vm11 = vweird.f32 %v2298_v43  ;;  %v1212_v62 = vmul.f32 %v3517_v54, %v3435_v12 }
 0x1b4   : > { %v2302_v8 = vpop.eup %2301  ;;  %v1382_v53 = vmul.f32 %v2292_v42, %v1381_v44  ;;  %v1485_v22 = vmul.f32 %v2300_v52, %v3563_v9  ;;  %vm1490_vm9 = vweird.f32 %v2300_v52  ;;  %vm1401_vm13 = vmor %vm1399_vm3, %vm1400_vm11  ;;  %vm1494_vm14 = vcmp.eq.f32.partialorder %v1493_v51, 8.507059e+37 }
 0x1b5   : > { %v3608_v2 = vpop.eup %2303  ;;  %v1472_v16 = vmul.f32 %v2294_v7, %v1471_v33  ;;  %v1396_v34 = vsub.f32 1.0, %v1395_v50  ;;  %v1319_v39 = vmul.f32 %v2302_v8, %v1315_v26  ;;  %vm3631_vm12 = vmor %vm1489_vm7, %vm1490_vm9  ;;  %v1213_v49 = vadd.f32 %v1212_v62, %v1211_v23 }
 0x1b6   : > { %v2306_v40 = vpop.eup %2305  ;;  %v1383_v13 = vadd.f32 %v2292_v42, %v1382_v53  ;;  %v1486_v41 = vsub.f32 1.0, %v1485_v22  ;;  %vm1404_vm15 = vcmp.eq.f32.partialorder %v1403_v61, 8.507059e+37  ;;  %vm1414_vm0 = vweird.f32 %v3451_v36 }
 0x1b7   : > { %v1473_v14 = vadd.f32 %v2294_v7, %v1472_v16  ;;  %v1397_v15 = vmul.f32 %v2298_v43, %v1396_v34  ;;  %vm1415_vm1 = vweird.f32 %v3498_v3  ;;  %v1245_v25 = vmul.f32 %v3565_v37, %v3482_v24  ;;  %v3915_v34 = vld [vmem:[#allocation47_spill] sm:$0xff] }
 0x1b8   : > { %v1387_v18 = vsel %vm1386_vm10, %v2292_v42, %v1383_v13  ;;  %v1487_v27 = vmul.f32 %v2300_v52, %v1486_v41  ;;  %v1214_v42 = vmul.f32 %v3508_v19, %v3445_v29  ;;  %v1425_v19 = vmul.f32 %v3559_v4, %v3521_v17 }
 0x1b9   : > { %v1392_v26 = vsel %vm3594_vm2, %v1391_v1, %v1387_v18  ;;  %v1477_v47 = vsel %vm3614_vm8, %v2294_v7, %v1473_v14  ;;  %v1398_v6 = vadd.f32 %v2298_v43, %v1397_v15  ;;  %v1496_v7 = vor.u32 1.1754944e-38, %v1495_v45  ;;  %vm3666_vm2 = vmor %vm1414_vm0, %vm1415_vm1 }
 0x1ba   : > { %v1507_v21 = vmul.f32 %v1392_v26, %v3569_v11  ;;  %v1482_v12 = vsel %vm3599_vm4, %v1481_v31, %v1477_v47  ;;  %v1488_v63 = vadd.f32 %v2300_v52, %v1487_v27  ;;  %v1215_v11 = vadd.f32 %v3517_v54, %v1214_v42 }
 0x1bb   : > { %v1513_v46 = vmul.f32 %v1482_v12, %v3557_v58  ;;  %v1402_v9 = vsel %vm1401_vm13, %v2298_v43, %v1398_v6  ;;  %v3648_v1 = vadd.f32 1.0, %v2296_v30  ;;  %v1420_v58 = vand.u32 2147483648, %v3451_v36  ;;  %v3912_v30 = vld [vmem:[#allocation48_spill] sm:$0xff] }
 0x1bc   : > { %1547 = vmatmul.f32.vlgmr.msrb.gmra.mxu2 %v1507_v21  ;;  %v1492_v29 = vsel %vm3631_vm12, %v2300_v52, %v1488_v63  ;;  %v1407_v56 = vsel %vm1404_vm15, %v1406_v5, %v1402_v9  ;;  %v1115_v43 = vmul.f32 %v2306_v40, %v3368_v57  ;;  %2307 = vrcp.f32 %v1215_v11 }
 0x1bd   : > { %1565 = vmatmul.f32.vlgmr.msra.gmra.mxu3 %v1513_v46  ;;  %v1497_v44 = vsel %vm1494_vm14, %v1496_v7, %v1492_v29  ;;  %2309 = vrcp.f32 %v3576_v28  ;;  %v1246_v54 = vmul.f32 %v3578_v59, %v3480_v20  ;;  %v1248_v61 = vmul.f32 %v3565_v37, %v3912_v30 }
 0x1be   : > { %v1508_v55 = vmul.f32 %v1407_v56, %v1115_v43  ;;  %v1413_v52 = vadd.f32 %v3498_v3, %v3584_v0  ;;  %v1418_v57 = vand.u32 2147483647, %v3451_v36  ;;  %v1426_v33 = vsub.f32 1.0, %v1425_v19 }
 0x1bf   : > { %v1514_v31 = vmul.f32 %v1497_v44, %v1319_v39  ;;  %v1247_v24 = vadd.f32 %v1246_v54, %v1245_v25  ;;  %v1249_v20 = vadd.f32 %v3578_v59, %v1248_v61  ;;  %2311 = vrcp.f32 %v3648_v1 }
 0x1c0   : > { %v1421_v37 = vor.u32 1.1754944e-38, %v1420_v58  ;;  %v1181_v50 = vadd.f32 %v3470_v10, %v3588_v35  ;;  %v1417_v36 = vsel %vm3666_vm2, %v3498_v3, %v1413_v52  ;;  %vm1419_vm3 = vcmp.eq.f32.partialorder %v1418_v57, 8.507059e+37 }
 0x1c1   : > { %2313 = vrcp.f32 %v1249_v20  ;;  %v1427_v8 = vmul.f32 %v3559_v4, %v1426_v33  ;;  %v1440_v53 = vmul.f32 %v3608_v2, %v3561_v38  ;;  %vm1429_vm4 = vweird.f32 %v3521_v17 }
 0x1c2   : > { %v2308_v0 = vpop.eup %2307  ;;  %vm1430_vm5 = vweird.f32 %v3559_v4  ;;  %v1422_v10 = vsel %vm1419_vm3, %v1421_v37, %v1417_v36  ;;  %2315 = vrcp.f32 %v1181_v50  ;;  %v1435_v35 = vand.u32 2147483648, %v3521_v17 }
 0x1c3   : > { %v2310_v59 = vpop.eup %2309  ;;  %v1217_v22 = vmul.f32 %v2308_v0, %v1213_v49  ;;  %v1428_v39 = vadd.f32 %v3559_v4, %v1427_v8  ;;  %v1433_v45 = vand.u32 2147483647, %v3521_v17  ;;  %v1441_v40 = vsub.f32 1.0, %v1440_v53  ;;  %vm1431_vm6 = vmor %vm1429_vm4, %vm1430_vm5 }
 0x1c4   : > { %1550 = vmatmul.f32.gmra.mxu2 %v1508_v55  ;;  %v1149_v3 = vmul.f32 %v2310_v59, %v3915_v34  ;;  %v1436_v23 = vor.u32 1.1754944e-38, %v1435_v35  ;;  %vm1444_vm8 = vweird.f32 %v3561_v38  ;;  %vm1445_vm9 = vweird.f32 %v3608_v2 }
 0x1c5   : > { %1568 = vmatmul.f32.gmra.mxu3 %v1514_v31  ;;  %v2312_v16 = vpop.eup %2311  ;;  %v1432_v14 = vsel %vm1431_vm6, %v3559_v4, %v1428_v39  ;;  %vm1434_vm7 = vcmp.eq.f32.partialorder %v1433_v45, 8.507059e+37  ;;  %v1442_v15 = vmul.f32 %v3608_v2, %v1441_v40  ;;  %v1450_v5 = vand.u32 2147483648, %v3561_v38  ;;  %vm1446_vm10 = vmor %vm1444_vm8, %vm1445_vm9 }
 0x1c6   : > { %v1509_v32 = vmul.f32 %v1422_v10, %v1149_v3  ;;  %v1455_v51 = vmul.f32 %v2312_v16, %v3648_v1  ;;  %v1437_v17 = vsel %vm1434_vm7, %v1436_v23, %v1432_v14  ;;  %v1448_v26 = vand.u32 2147483647, %v3561_v38 }
 0x1c7   : > { %v2314_v13 = vpop.eup %2313  ;;  %v1443_v62 = vadd.f32 %v3608_v2, %v1442_v15  ;;  %v1451_v6 = vor.u32 1.1754944e-38, %v1450_v5  ;;  %vm1459_vm12 = vweird.f32 %v3648_v1  ;;  %vm1460_vm13 = vweird.f32 %v2312_v16 }
 0x1c8   : > { %v1251_v41 = vmul.f32 %v2314_v13, %v1247_v24  ;;  %v2316_v18 = vpop.eup %2315  ;;  %v1456_v4 = vsub.f32 1.0, %v1455_v51  ;;  %vm1449_vm11 = vcmp.eq.f32.partialorder %v1448_v26, 8.507059e+37  ;;  %v1463_v38 = vand.u32 2147483647, %v3648_v1  ;;  %vm1461_vm14 = vmor %vm1459_vm12, %vm1460_vm13 }
 0x1c9   : > { %v1183_v27 = vmul.f32 %v2316_v18, %v3512_v60  ;;  %v1447_v48 = vsel %vm1446_vm10, %v3608_v2, %v1443_v62  ;;  %v1465_v60 = vand.u32 2147483648, %v3648_v1 }
 0x1ca   : > { %v1457_v42 = vmul.f32 %v2312_v16, %v1456_v4  ;;  %v1452_v21 = vsel %vm1449_vm11, %v1451_v6, %v1447_v48  ;;  %vm1464_vm15 = vcmp.eq.f32.partialorder %v1463_v38, 8.507059e+37 }
 0x1cb   : > { %v1510_v47 = vmul.f32 %v1437_v17, %v1183_v27  ;;  %v1511_v63 = vmul.f32 %v1452_v21, %v1217_v22  ;;  %v1466_v7 = vor.u32 1.1754944e-38, %v1465_v60 }
 0x1cc   : > { %1553 = vmatmul.f32.gmra.mxu2 %v1509_v32  ;;  %v1458_v12 = vadd.f32 %v2312_v16, %v1457_v42 }
 0x1ce   : > { %v1462_v46 = vsel %vm1461_vm14, %v2312_v16, %v1458_v12 }
 0x1cf   : > { %v1467_v2 = vsel %vm1464_vm15, %v1466_v7, %v1462_v46 }
 0x1d0   : > { %v1512_v9 = vmul.f32 %v1467_v2, %v1251_v41 }
 0x1d4   : > { %1556 = vmatmul.f32.gmra.mxu2 %v1510_v47 }
 0x1dc   : > { %1559 = vmatmul.f32.gmra.mxu2 %v1511_v63 }
 0x1e4   : > { %1562 = vmatmul.f32.gmra.mxu2 %v1512_v9 }
 0x1e5   : > { %2614 = shalt.err (!%p2611_p6)
}
 0x1e6   : > { %2051 = dma.vmem_to_hbm [thread:$0]  (%p3920_p9), %s1623_s30, 128, %s1625_s9, %s3842_s28  }
 0x1e7   : > { %s3921_s23 = sld [smem:[#allocation59_spill]]  ;;  %s1636_s4 = sshll.u32 %s660_s10, 4  ;;  %s1637_s4 = int_to_ptr.vmem [resolvable:$true] %s1636_s4 }
 0x1ed   : > { %s3922_s11 = smov %s3921_s23  ;;  %s1634_s14 = scalar_lea.hbm %s3921_s23, %s1970_s16 }
 0x1ee   : > { %s1638_s15 = sshll.u32 %s1634_s14, 4  ;;  %s2635_s30 = scalar_lea.hbm %s3922_s11, 16  ;;  %s1639_s15 = int_to_ptr.hbm [resolvable:$true] %s1638_s15 }
 0x1ef   : > { %s2629_s13 = sshra.s32 %s1639_s15, 4  ;;  %s2630_s13 = int_to_ptr.hbm [resolvable:$true] %s2629_s13 }
 0x1f0   : > { %s2631_s24 = scalar_lea.hbm %s2630_s13, 8  ;;  %p2636_p3 = scmp.lt.s32.totalorder %s2630_s13, %s3922_s11 }
 0x1f1   : > { %p2632_p2 = scmp.ne.s32.totalorder %s2630_s13, %s2631_s24  ;;  %p2637_p1 = scmp.lt.s32.totalorder %s2635_s30, %s2631_s24 }
 0x1f3   : > { %p2633_p11 = pnand %p2632_p2, %p3920_p9  ;;  %p2638_p12 = por %p2637_p1, %p2636_p3 }
 0x1f5   : > { %p2634_p8 = pneg %p2633_p11 }
 0x1f7   : > { %p2639_p4 = pnand %p2638_p12, %p2634_p8 }
 0x1f9   : > { %2642 = shalt.err (!%p2639_p4)
}
 0x1fa   : > { %s3923_s1 = scalar_lea.sflag [#allocation24], %s3124_s29  ;;  %s3924_s10 = sld [smem:[#allocation35_spill]] }
 0x1fb   : > { %2052 = dma.vmem_to_hbm [thread:$0]  (%p3920_p9), %s1637_s4, 128, %s1639_s15, %s3923_s1  }
 0x1fc   : > { %s1967_s29 = sshll.u32 %s3916_s8, 2  ;;  %s3926_s23 = sld [smem:[#allocation57_spill]] }
 0x1fd   : > { %s1605_s15 = sshll.u32 %s3151_s3, 4  ;;  %s1581_s24 = scalar_lea.sflag [#allocation9], %s3113_s12  ;;  %s1606_s15 = int_to_ptr.vmem [resolvable:$true] %s1605_s15 }
 0x200   : > { %s1599_s17 = sadd.s32 %s3924_s10, %s1967_s29 }
 0x201   : > { %s1975_s28 = sshll.u32 %s1599_s17, 6 }
 0x202   : > { %s3927_s14 = smov %s3926_s23  ;;  %s1604_s4 = scalar_lea.hbm %s3926_s23, %s1975_s28 }
 0x203   : > { %s1607_s13 = sshll.u32 %s1604_s4, 4  ;;  %s2663_s9 = scalar_lea.hbm %s3927_s14, 512  ;;  %s1608_s13 = int_to_ptr.hbm [resolvable:$true] %s1607_s13 }
 0x204   : > { %s2657_s6 = sshra.s32 %s1608_s13, 4  ;;  %s2658_s6 = int_to_ptr.hbm [resolvable:$true] %s2657_s6 }
 0x205   : > { %s2659_s8 = scalar_lea.hbm %s2658_s6, 64  ;;  %p2664_p7 = scmp.lt.s32.totalorder %s2658_s6, %s3927_s14 }
 0x206   : > { %p2660_p9 = scmp.ne.s32.totalorder %s2658_s6, %s2659_s8  ;;  %p2665_p6 = scmp.lt.s32.totalorder %s2663_s9, %s2659_s8 }
 0x208   : > { %p2661_p10 = pnand %p2660_p9, %p3062_p0  ;;  %p2666_p2 = por %p2665_p6, %p2664_p7 }
 0x20a   : > { %p2662_p5 = pneg %p2661_p10 }
 0x20c   : > { %p2667_p11 = pnand %p2666_p2, %p2662_p5 }
 0x23f   : > { %v1548_v49 = vpop.f32.mrf.mxu2 }
 0x240   : > { %1572 = vst [vmem:[%s3151_s3] sm:$0xff] %v1548_v49  ;;  %v1566_v29 = vpop.f32.mrf.mxu3 }
 0x241   : > { %1578 = vst [vmem:[%s3151_s3 + $0x30] sm:$0xff] %v1566_v29 }
 0x247   : > { %v1551_v19 = vpop.f32.mrf.mxu2 }
 0x248   : > { %1573 = vst [vmem:[%s3151_s3 + $0x8] sm:$0xff] %v1551_v19  ;;  %v1569_v11 = vpop.f32.mrf.mxu3 }
 0x249   : > { %1579 = vst [vmem:[%s3151_s3 + $0x38] sm:$0xff] %v1569_v11 }
 0x24f   : > { %v1554_v1 = vpop.f32.mrf.mxu2 }
 0x250   : > { %1574 = vst [vmem:[%s3151_s3 + $0x10] sm:$0xff] %v1554_v1 }
 0x257   : > { %v1557_v56 = vpop.f32.mrf.mxu2 }
 0x258   : > { %1575 = vst [vmem:[%s3151_s3 + $0x18] sm:$0xff] %v1557_v56 }
 0x25f   : > { %v1560_v58 = vpop.f32.mrf.mxu2 }
 0x260   : > { %1576 = vst [vmem:[%s3151_s3 + $0x20] sm:$0xff] %v1560_v58 }
 0x267   : > { %v1563_v43 = vpop.f32.mrf.mxu2 }
 0x268   : > { %1577 = vst [vmem:[%s3151_s3 + $0x28] sm:$0xff] %v1563_v43 }
 0x269   : > { %2670 = shalt.err (!%p2667_p11)
}
 0x26a   : > { %s2795_s12 = smov 128   ;;  %s2796_s3 = smov 8  }
 0x26b   : > { %2050 = dma.vmem_to_hbm [thread:$0]  (%p3062_p0), %s1606_s15, 1024, %s1608_s13, %s1581_s24, %s2795_s12, %s2795_s12, %s2796_s3  }
 0x26c PF: > { %s3928_s29 = sld [smem:[#allocation34_spill]]  ;;  %p2104_p8 = scmp.ge.s32.totalorder %s2785_s27, 2 }
 0x26e   : > { %p2086_p3 = pnand %p2104_p8, %p3068_p13 }
 0x270   : > { %p2087_p1 = pneg %p2086_p3 }
 0x272   : > { %s1650_s28 = sand.u32 1, %s3928_s29  }
 0x273   : > { %s1651_s5 = scalar_lea.sflag [#allocation9], %s1650_s28 }
 0x274   : > { %2736 = dma.done.wait (%p2087_p1), %s1651_s5, 1024  }
 0x275   : > { %2738 = vsyncadd (%p2087_p1), %s1651_s5, 4294966272  ;;  %s3930_s18 = sadd.s32 4294967294, %s2785_s27   ;;  %s3931_s23 = sld [smem:[#allocation42_spill]] }
 0x276   : > { %s1660_s4 = sand.u32 1, %s3930_s18  }
 0x277   : > { %s1661_s16 = scalar_lea.sflag [#allocation24], %s1660_s4 }
 0x27b   : > { %p3932_p12 = scmp.ne.s32.totalorder %s3931_s23, 0 }
 0x27d   : > { %p2089_p4 = pnand %p2104_p8, %p3932_p12 }
 0x27f   : > { %p2090_p9 = pneg %p2089_p4 }
 0x281   : > { %2740 = dma.done.wait (%p2090_p9), %s1661_s16, 256  }
 0x282   : > { %2742 = vsyncadd (%p2090_p9), %s1661_s16, 4294967040  ;;  %s39_s27 = sadd.s32 1, %s2785_s27   ;;  %s3933_s17 = sld [smem:[#allocation33_spill]] }
 0x283   : > { %p36_p0 = scmp.ge.s32.totalorder %s39_s27, 10   ;;  %s3934_s15 = smov %s3082_s20 }
 0x284   : > { %s3935_s23 = sld [smem:[#allocation37_spill]]  ;;  %s3938_s18 = smov %s2753_s19 }
 0x285   : > { %s3936_s13 = sld [smem:[#allocation43_spill]]  ;;  %s3939_s19 = smov %s3079_s25 }
 0x286   : > { %s3937_s6 = sld [smem:[#allocation44_spill]]  ;;  %s3940_s20 = smov %s2761_s21 }
 0x287   : > { %s3941_s21 = smov %s2765_s22  ;;  %s3942_s22 = smov %s3934_s15 }
 0x288   : > { %s3943_s24 = smov %s2781_s26  ;;  %38 = sbr.rel (!%p36_p0) target bundleno = 29 (0x1d), region = 209 }
 0x28b   : > { %s3944_s25 = smov %s3936_s13 }
 0x28c   : > { %s3945_s26 = smov %s3937_s6 }
 0x28d   :  { %1677 = vsyncpa [#allocation8], 1 }
 0x28e   :  { %1679 = vsyncpa [#allocation8 + $0x1], 1 }
 0x28f   :  { %1680 = vsyncpa [#allocation11], 1 }
 0x290   :  { %1682 = vsyncpa [#allocation11 + $0x1], 1 }
 0x291   :  { %1683 = vsyncpa [#allocation14], 1 }
 0x292   :  { %1685 = vsyncpa [#allocation14 + $0x1], 1 }
 0x293   :  { %1686 = vsyncpa [#allocation17], 1 }
 0x294   :  { %1687 = vsyncpa [#allocation20], 1 }
 0x295   :  { %1688 = vsyncpa [#allocation9], 1 }
 0x296   :  { %1690 = vsyncpa [#allocation9 + $0x1], 1 }
 0x297   :  { %1691 = vsyncpa [#allocation24], 1 }
 0x298   :  { %1693 = vsyncpa [#allocation24 + $0x1], 1 }

</bundles_post_ra>
